<compile_context>
chip_gen: v7x
topology: tpu7x:2x2x1
jax: 0.10.0
libtpu: 0.0.40
codegen_flags: <defaults>
</compile_context>

<pallas_src>
import functools

import jax
import jax.numpy as jnp
from jax.experimental import pallas as pl
from jax.experimental.pallas import tpu as pltpu


# ----------------------------------------------------------------------------
# Generic tiled matmul + bias + optional ReLU kernels
# ----------------------------------------------------------------------------
def _matmul_bias_acc_kernel(a_ref, w_ref, b_ref, o_ref, *, apply_relu):
    """Multi-K-step variant: the f32 output block is the resident accumulator."""
    k = pl.program_id(2)

    @pl.when(k == 0)
    def _():
        o_ref[...] = jnp.broadcast_to(b_ref[...], o_ref.shape)

    o_ref[...] += jnp.dot(a_ref[...], w_ref[...],
                          preferred_element_type=jnp.float32)

    if apply_relu:
        @pl.when(k == pl.num_programs(2) - 1)
        def _():
            o_ref[...] = jnp.maximum(o_ref[...], 0.0)


def _matmul_bias_single_kernel(a_ref, w_ref, b_ref, o_ref, *, apply_relu):
    """Single-K-step variant: fused bias + ReLU + dtype cast, one store."""
    acc = jnp.dot(a_ref[...], w_ref[...],
                  preferred_element_type=jnp.float32) + b_ref[...]
    if apply_relu:
        acc = jnp.maximum(acc, 0.0)
    o_ref[...] = acc.astype(o_ref.dtype)


def _pick_tile(dim, cap, align):
    """Largest multiple of `align` that divides `dim` and is <= cap, else dim."""
    if dim % align != 0:
        return dim
    best, t = None, align
    while t <= min(dim, cap):
        if dim % t == 0:
            best = t
        t += align
    return best if best is not None else dim


def matmul_bias(a, w, b, *, apply_relu, out_dtype=jnp.float32,
                max_tm=256, max_tn=256, max_tk=6912):
    """a: (M, K) bf16, w: (K, N) bf16, b: (N,) f32 -> (M, N) out_dtype."""
    M, K = a.shape
    K2, N = w.shape
    assert K == K2 and b.shape == (N,)

    tm = _pick_tile(M, max_tm, 16)     # bf16 sublane-packing aligned M tiles
    tn = _pick_tile(N, max_tn, 128)    # lane-aligned N tiles (v7x 2-TC split)
    tk = _pick_tile(K, max_tk, 128)    # large K tiles (v5e scoped-VMEM safe)
    nm, nn, nk = M // tm, N // tn, K // tk
    assert nk == 1 or out_dtype == jnp.float32

    kernel = (_matmul_bias_single_kernel if nk == 1 else _matmul_bias_acc_kernel)

    cost = pl.CostEstimate(
        flops=2 * M * N * K,
        transcendentals=0,
        bytes_accessed=(a.size * a.dtype.itemsize + w.size * w.dtype.itemsize
                        + b.size * b.dtype.itemsize
                        + M * N * jnp.dtype(out_dtype).itemsize),
    )

    return pl.pallas_call(
        functools.partial(kernel, apply_relu=apply_relu),
        out_shape=jax.ShapeDtypeStruct((M, N), out_dtype),
        grid_spec=pltpu.PrefetchScalarGridSpec(
            num_scalar_prefetch=0,
            grid=(nm, nn, nk),
            in_specs=[
                pl.BlockSpec((tm, tk), lambda i, j, k: (i, k)),
                pl.BlockSpec((tk, tn), lambda i, j, k: (k, j)),
                pl.BlockSpec((1, tn), lambda i, j, k: (0, j)),
            ],
            out_specs=pl.BlockSpec((tm, tn), lambda i, j, k: (i, j)),
        ),
        compiler_params=pltpu.CompilerParams(
            dimension_semantics=("parallel", "parallel", "arbitrary")),
        cost_estimate=cost,
    )(a, w, b.reshape(1, N))


# ----------------------------------------------------------------------------
# Dueling head: single fused GEMM for [adv | v] + dueling combine
# ----------------------------------------------------------------------------
def _dueling_head_kernel(h_ref, wqv_ref, bqv_ref, q_ref, *, n_action):
    """[adv | v] = h @ [Wq | Wv] + [bq | bv]; q = v + adv - max(adv)/n_action."""
    logits = jnp.dot(h_ref[...], wqv_ref[...],
                     preferred_element_type=jnp.float32) + bqv_ref[...]
    adv = logits[:, :n_action]
    v = logits[:, n_action:n_action + 1]
    q_ref[...] = v + (adv - (1.0 / n_action) * jnp.max(adv, axis=-1, keepdims=True))


def dueling_head(h, wqv, bqv):
    B, H = h.shape
    nq = wqv.shape[1]
    n_action = nq - 1
    return pl.pallas_call(
        functools.partial(_dueling_head_kernel, n_action=n_action),
        out_shape=jax.ShapeDtypeStruct((B, n_action), jnp.float32),
        grid_spec=pltpu.PrefetchScalarGridSpec(
            num_scalar_prefetch=0,
            grid=(1,),
            in_specs=[
                pl.BlockSpec((B, H), lambda i: (0, 0)),
                pl.BlockSpec((H, nq), lambda i: (0, 0)),
                pl.BlockSpec((1, nq), lambda i: (0, 0)),
            ],
            out_specs=pl.BlockSpec((B, n_action), lambda i: (0, 0)),
        ),
    )(h, wqv, bqv.reshape(1, nq))


# ----------------------------------------------------------------------------
# im2col glue (plain JAX between Pallas GEMMs)
# ----------------------------------------------------------------------------
def conv1_im2col(x):
    """x: (B, 84, 84, C) bf16 -> (B*400, 64*C) patches for 8x8/stride-4 conv.
    Stride-factored: feature order (bi, bj, ri, rj, c), kh=4*bi+ri, kw=4*bj+rj."""
    B, H, W, C = x.shape
    assert H == 84 and W == 84
    xb = x.reshape(B, 21, 4, 21, 4, C)
    xs = xb.transpose(0, 1, 3, 2, 4, 5).reshape(B, 21, 21, 16 * C)
    parts = [xs[:, bi:bi + 20, bj:bj + 20, :] for bi in (0, 1) for bj in (0, 1)]
    return jnp.concatenate(parts, axis=-1).reshape(B * 400, 64 * C)


def conv2_im2col(h):
    """h: (B, 20, 20, Cp) bf16 -> (B*324, 9*Cp) patches for 3x3/stride-1 conv.
    Feature order (kh, kw, c); Cp=128 keeps each concat chunk lane-dense."""
    B, _, _, Cp = h.shape
    cols = [h[:, i:i + 18, j:j + 18, :] for i in range(3) for j in range(3)]
    return jnp.concatenate(cols, axis=-1).reshape(B * 324, 9 * Cp)


# ----------------------------------------------------------------------------
# Full forward pass (NHWC internally; flatten order folded into fc weight)
# ----------------------------------------------------------------------------
def forward(kp, x):
    B = x.shape[0]
    x = x.transpose(0, 2, 3, 1).astype(jnp.bfloat16)               # NCHW -> NHWC, bf16 once
    p1 = conv1_im2col(x)                                            # (B*400, 256)
    h1 = matmul_bias(p1, kp["w1m"], kp["b1p"], apply_relu=True,
                     out_dtype=jnp.bfloat16, max_tm=1024)           # (B*400, 128)
    h1 = h1.reshape(B, 20, 20, 128)
    p2 = conv2_im2col(h1)                                           # (B*324, 1152)
    h2 = matmul_bias(p2, kp["w2m"], kp["b2"], apply_relu=True,
                     out_dtype=jnp.bfloat16, max_tm=1024)           # (B*324, 64)
    # NHWC flatten; the PyTorch NCHW .view(-1, 20736) ordering is absorbed by
    # the row permutation applied to the fc weight in prepare_params().
    h2 = h2.reshape(B, 20736)
    h = matmul_bias(h2, kp["wfm"], kp["bf"], apply_relu=True)       # (B, 512) f32
    return dueling_head(h, kp["wqv"], kp["bqv"])                    # (B, n_action)


# ----------------------------------------------------------------------------
# One-time parameter preparation (layout folding, channel padding, bf16 casts)
# ----------------------------------------------------------------------------
def prepare_params(p):
    n_frame = p["w1"].shape[1]
    # Conv1 (32, Cin, 8, 8) -> stride-factored rows (bi, bj, ri, rj, cin);
    # output channels zero-padded 32 -> 128 for lane-dense stores.
    w1 = p["w1"].reshape(32, n_frame, 2, 4, 2, 4).transpose(2, 4, 3, 5, 1, 0)
    w1m = jnp.pad(w1.reshape(64 * n_frame, 32), ((0, 0), (0, 96))).astype(jnp.bfloat16)
    b1p = jnp.pad(p["b1"], (0, 96))
    # Conv2 (64, 32, 3, 3) -> rows (kh, kw, cin padded 32->128), cols 64.
    w2 = jnp.pad(p["w2"].transpose(2, 3, 1, 0), ((0, 0), (0, 0), (0, 96), (0, 0)))
    w2m = w2.reshape(9 * 128, 64).astype(jnp.bfloat16)
    # fc weight rows: NCHW flatten (C=64, H=18, W=18) -> NHWC flatten (H, W, C).
    wfm = (p["wf"].reshape(64, 18, 18, 512).transpose(1, 2, 0, 3)
           .reshape(20736, 512).astype(jnp.bfloat16))
    # q and v linears fused into one (512, n_action+1) GEMM.
    wqv = jnp.concatenate([p["wq"], p["wv"]], axis=1).astype(jnp.float32)
    bqv = jnp.concatenate([p["bq"], p["bv"]], axis=0).astype(jnp.float32)
    return dict(w1m=w1m, b1p=b1p, w2m=w2m, b2=p["b2"],
                wfm=wfm, bf=p["bf"], wqv=wqv, bqv=bqv)


# ----------------------------------------------------------------------------
# Deterministic parameter init (shapes follow the PyTorch module)
# ----------------------------------------------------------------------------
def init_params(key, n_frame, n_action):
    ks = jax.random.split(key, 8)

    def xavier(k, shape, fan_in, fan_out):
        bound = jnp.sqrt(6.0 / (fan_in + fan_out))
        return jax.random.uniform(k, shape, jnp.float32, -bound, bound)

    def linear(kw, kb, fan_in, fan_out):
        bound = 1.0 / jnp.sqrt(float(fan_in))
        w = jax.random.uniform(kw, (fan_in, fan_out), jnp.float32, -bound, bound)
        b = jax.random.uniform(kb, (fan_out,), jnp.float32, -bound, bound)
        return w, b

    w1 = xavier(ks[0], (32, n_frame, 8, 8), n_frame * 64, 32 * 64)
    b1 = jnp.full((32,), 0.01, jnp.float32)
    w2 = xavier(ks[1], (64, 32, 3, 3), 32 * 9, 64 * 9)
    b2 = jnp.full((64,), 0.01, jnp.float32)
    wf, bf = linear(ks[2], ks[3], 20736, 512)
    wq, bq = linear(ks[4], ks[5], 512, n_action)
    wv, bv = linear(ks[6], ks[7], 512, 1)
    return dict(w1=w1, b1=b1, w2=w2, b2=b2, wf=wf, bf=bf,
                wq=wq, bq=bq, wv=wv, bv=bv)


# ----------------------------------------------------------------------------
# Plain-JAX f32 reference (PyTorch-faithful layout) for a sanity check
# ----------------------------------------------------------------------------
def forward_ref(params, x):
    hp = jax.lax.Precision.HIGHEST
    dn = ("NCHW", "OIHW", "NCHW")
    x = jax.nn.relu(jax.lax.conv_general_dilated(
        x, params["w1"], (4, 4), "VALID", dimension_numbers=dn, precision=hp)
        + params["b1"][None, :, None, None])
    x = jax.nn.relu(jax.lax.conv_general_dilated(
        x, params["w2"], (1, 1), "VALID", dimension_numbers=dn, precision=hp)
        + params["b2"][None, :, None, None])
    h = x.reshape(x.shape[0], -1)
    h = jax.nn.relu(jnp.dot(h, params["wf"], precision=hp) + params["bf"])
    adv = jnp.dot(h, params["wq"], precision=hp) + params["bq"]
    v = jnp.dot(h, params["wv"], precision=hp) + params["bv"]
    # q = v + (adv - max(adv)/n_action)  -- exactly the PyTorch module's combine.
    return v + (adv - (1.0 / adv.shape[-1]) * jnp.max(adv, -1, keepdims=True))


if __name__ == "__main__":
    # The fc layer fixes the flattened size to 20736 = 64*18*18, forcing the
    # standard 84x84 Atari frame stack: x is (B, n_frame, 84, 84).
    B, n_frame, n_action = 2, 4, 6
    key = jax.random.PRNGKey(0)
    k_x, k_p = jax.random.split(key)
    x = jax.random.uniform(k_x, (B, n_frame, 84, 84), jnp.float32)
    params = init_params(k_p, n_frame, n_action)
    kparams = prepare_params(params)

    fwd = jax.jit(forward)
    q = jax.block_until_ready(fwd(kparams, x))
    q_ref = jax.block_until_ready(forward_ref(params, x))

    assert q.shape == (B, n_action) and q.dtype == jnp.float32
    err = float(jnp.max(jnp.abs(q - q_ref)))
    assert err < 2e-2, f"max abs error {err}"
    print("KERNEL_OK")
</pallas_src>

<mosaic_0001>
module attributes {stable_mosaic.version = 11 : i64} {
  func.func @_matmul_bias_single_kernel(%arg0: i32, %arg1: i32, %arg2: i32, %arg3: memref<800x256xbf16, #tpu.memory_space<vmem>>, %arg4: memref<256x128xbf16, #tpu.memory_space<vmem>>, %arg5: memref<1x128xf32, #tpu.memory_space<vmem>>, %arg6: memref<800x128xbf16, #tpu.memory_space<vmem>>) attributes {dimension_semantics = [#tpu.dimension_semantics<parallel>, #tpu.dimension_semantics<parallel>, #tpu.dimension_semantics<arbitrary>], iteration_bounds = array<i64: 1, 1, 1>, scalar_prefetch = 0 : i64, scratch_operands = 0 : i64, tpu.core_type = #tpu.core_type<tc>, window_params = [{transform_indices = @transform_0, window_bounds = array<i64: 800, 256>}, {transform_indices = @transform_1, window_bounds = array<i64: 256, 128>}, {transform_indices = @transform_2, window_bounds = array<i64: 1, 128>}, {transform_indices = @transform_3, window_bounds = array<i64: 800, 128>}]} {
    %c0 = arith.constant 0 : index
    %c0_0 = arith.constant 0 : index
    %0 = vector.load %arg3[%c0, %c0_0] : memref<800x256xbf16, #tpu.memory_space<vmem>>, vector<800x256xbf16>
    %c0_1 = arith.constant 0 : index
    %c0_2 = arith.constant 0 : index
    %1 = vector.load %arg4[%c0_1, %c0_2] : memref<256x128xbf16, #tpu.memory_space<vmem>>, vector<256x128xbf16>
    %cst = arith.constant dense<0.000000e+00> : vector<800x128xf32>
    %2 = tpu.matmul %0, %1, %cst {dimension_numbers = #tpu.dot_dimension_numbers<[1], [0], [0], [1], [0, 0, 1, 1], [], []>} : vector<800x256xbf16>, vector<256x128xbf16>, vector<800x128xf32> -> vector<800x128xf32>
    %c0_3 = arith.constant 0 : index
    %c0_4 = arith.constant 0 : index
    %3 = vector.load %arg5[%c0_3, %c0_4] : memref<1x128xf32, #tpu.memory_space<vmem>>, vector<1x128xf32>
    %4 = vector.broadcast %3 : vector<1x128xf32> to vector<800x128xf32>
    %5 = arith.addf %2, %4 : vector<800x128xf32>
    %cst_5 = arith.constant 0.000000e+00 : f32
    %6 = vector.broadcast %cst_5 : f32 to vector<800x128xf32>
    %7 = arith.maximumf %5, %6 : vector<800x128xf32>
    %8 = arith.truncf %7 : vector<800x128xf32> to vector<800x128xbf16>
    %c0_6 = arith.constant 0 : index
    %c0_7 = arith.constant 0 : index
    %9 = vector.load %arg6[%c0_6, %c0_7] : memref<800x128xbf16, #tpu.memory_space<vmem>>, vector<800x128xbf16>
    tpu.vector_store %arg6[%c0_6, %c0_7], %8 {strides = array<i32>} : memref<800x128xbf16, #tpu.memory_space<vmem>>, vector<800x128xbf16>,
    return
  }
  func.func @transform_0(%arg0: i32, %arg1: i32, %arg2: i32) -> (i32, i32) {
    %c0_i32 = arith.constant 0 : i32
    return %arg0, %arg2 : i32, i32
  }
  func.func @transform_1(%arg0: i32, %arg1: i32, %arg2: i32) -> (i32, i32) {
    %c0_i32 = arith.constant 0 : i32
    return %arg2, %arg1 : i32, i32
  }
  func.func @transform_2(%arg0: i32, %arg1: i32, %arg2: i32) -> (i32, i32) {
    %c0_i32 = arith.constant 0 : i32
    %c0_i32_0 = arith.constant 0 : i32
    return %c0_i32, %arg1 : i32, i32
  }
  func.func @transform_3(%arg0: i32, %arg1: i32, %arg2: i32) -> (i32, i32) {
    %c0_i32 = arith.constant 0 : i32
    return %arg0, %arg1 : i32, i32
  }
}

module attributes {stable_mosaic.version = 11 : i64} {
  func.func @_matmul_bias_single_kernel(%arg0: i32, %arg1: i32, %arg2: i32, %arg3: memref<648x1152xbf16, #tpu.memory_space<vmem>>, %arg4: memref<1152x64xbf16, #tpu.memory_space<vmem>>, %arg5: memref<1x64xf32, #tpu.memory_space<vmem>>, %arg6: memref<648x64xbf16, #tpu.memory_space<vmem>>) attributes {dimension_semantics = [#tpu.dimension_semantics<parallel>, #tpu.dimension_semantics<parallel>, #tpu.dimension_semantics<arbitrary>], iteration_bounds = array<i64: 1, 1, 1>, scalar_prefetch = 0 : i64, scratch_operands = 0 : i64, tpu.core_type = #tpu.core_type<tc>, window_params = [{transform_indices = @transform_0, window_bounds = array<i64: 648, 1152>}, {transform_indices = @transform_1, window_bounds = array<i64: 1152, 64>}, {transform_indices = @transform_2, window_bounds = array<i64: 1, 64>}, {transform_indices = @transform_3, window_bounds = array<i64: 648, 64>}]} {
    %c0 = arith.constant 0 : index
    %c0_0 = arith.constant 0 : index
    %0 = vector.load %arg3[%c0, %c0_0] : memref<648x1152xbf16, #tpu.memory_space<vmem>>, vector<648x1152xbf16>
    %c0_1 = arith.constant 0 : index
    %c0_2 = arith.constant 0 : index
    %1 = vector.load %arg4[%c0_1, %c0_2] : memref<1152x64xbf16, #tpu.memory_space<vmem>>, vector<1152x64xbf16>
    %cst = arith.constant dense<0.000000e+00> : vector<648x64xf32>
    %2 = tpu.matmul %0, %1, %cst {dimension_numbers = #tpu.dot_dimension_numbers<[1], [0], [0], [1], [0, 0, 1, 1], [], []>} : vector<648x1152xbf16>, vector<1152x64xbf16>, vector<648x64xf32> -> vector<648x64xf32>
    %c0_3 = arith.constant 0 : index
    %c0_4 = arith.constant 0 : index
    %3 = vector.load %arg5[%c0_3, %c0_4] : memref<1x64xf32, #tpu.memory_space<vmem>>, vector<1x64xf32>
    %4 = vector.broadcast %3 : vector<1x64xf32> to vector<648x64xf32>
    %5 = arith.addf %2, %4 : vector<648x64xf32>
    %cst_5 = arith.constant 0.000000e+00 : f32
    %6 = vector.broadcast %cst_5 : f32 to vector<648x64xf32>
    %7 = arith.maximumf %5, %6 : vector<648x64xf32>
    %8 = arith.truncf %7 : vector<648x64xf32> to vector<648x64xbf16>
    %c0_6 = arith.constant 0 : index
    %c0_7 = arith.constant 0 : index
    %9 = vector.load %arg6[%c0_6, %c0_7] : memref<648x64xbf16, #tpu.memory_space<vmem>>, vector<648x64xbf16>
    tpu.vector_store %arg6[%c0_6, %c0_7], %8 {strides = array<i32>} : memref<648x64xbf16, #tpu.memory_space<vmem>>, vector<648x64xbf16>,
    return
  }
  func.func @transform_0(%arg0: i32, %arg1: i32, %arg2: i32) -> (i32, i32) {
    %c0_i32 = arith.constant 0 : i32
    return %arg0, %arg2 : i32, i32
  }
  func.func @transform_1(%arg0: i32, %arg1: i32, %arg2: i32) -> (i32, i32) {
    %c0_i32 = arith.constant 0 : i32
    return %arg2, %arg1 : i32, i32
  }
  func.func @transform_2(%arg0: i32, %arg1: i32, %arg2: i32) -> (i32, i32) {
    %c0_i32 = arith.constant 0 : i32
    %c0_i32_0 = arith.constant 0 : i32
    return %c0_i32, %arg1 : i32, i32
  }
  func.func @transform_3(%arg0: i32, %arg1: i32, %arg2: i32) -> (i32, i32) {
    %c0_i32 = arith.constant 0 : i32
    return %arg0, %arg1 : i32, i32
  }
}

module attributes {stable_mosaic.version = 11 : i64} {
  func.func @_matmul_bias_acc_kernel(%arg0: i32, %arg1: i32, %arg2: i32, %arg3: memref<2x6912xbf16, #tpu.memory_space<vmem>>, %arg4: memref<6912x256xbf16, #tpu.memory_space<vmem>>, %arg5: memref<1x256xf32, #tpu.memory_space<vmem>>, %arg6: memref<2x256xf32, #tpu.memory_space<vmem>>) attributes {dimension_semantics = [#tpu.dimension_semantics<parallel>, #tpu.dimension_semantics<parallel>, #tpu.dimension_semantics<arbitrary>], iteration_bounds = array<i64: 1, 2, 3>, scalar_prefetch = 0 : i64, scratch_operands = 0 : i64, tpu.core_type = #tpu.core_type<tc>, window_params = [{transform_indices = @transform_0, window_bounds = array<i64: 2, 6912>}, {transform_indices = @transform_1, window_bounds = array<i64: 6912, 256>}, {transform_indices = @transform_2, window_bounds = array<i64: 1, 256>}, {transform_indices = @transform_3, window_bounds = array<i64: 2, 256>}]} {
    %c0_i32 = arith.constant 0 : i32
    %0 = arith.cmpi eq, %arg2, %c0_i32 : i32
    %1 = arith.extui %0 : i1 to i32
    %c0_i32_0 = arith.constant 0 : i32
    %2 = arith.cmpi ne, %1, %c0_i32_0 : i32
    scf.if %2 {
      %c0_9 = arith.constant 0 : index
      %c0_10 = arith.constant 0 : index
      %12 = vector.load %arg5[%c0_9, %c0_10] : memref<1x256xf32, #tpu.memory_space<vmem>>, vector<1x256xf32>
      %13 = vector.shape_cast %12 : vector<1x256xf32> to vector<1x256xf32>
      %14 = vector.broadcast %13 : vector<1x256xf32> to vector<2x256xf32>
      %c0_11 = arith.constant 0 : index
      %c0_12 = arith.constant 0 : index
      %15 = vector.load %arg6[%c0_11, %c0_12] : memref<2x256xf32, #tpu.memory_space<vmem>>, vector<2x256xf32>
      tpu.vector_store %arg6[%c0_11, %c0_12], %14 {strides = array<i32>} : memref<2x256xf32, #tpu.memory_space<vmem>>, vector<2x256xf32>,
    } else {
    }
    %c0 = arith.constant 0 : index
    %c0_1 = arith.constant 0 : index
    %3 = vector.load %arg6[%c0, %c0_1] : memref<2x256xf32, #tpu.memory_space<vmem>>, vector<2x256xf32>
    %c0_2 = arith.constant 0 : index
    %c0_3 = arith.constant 0 : index
    %4 = vector.load %arg3[%c0_2, %c0_3] : memref<2x6912xbf16, #tpu.memory_space<vmem>>, vector<2x6912xbf16>
    %c0_4 = arith.constant 0 : index
    %c0_5 = arith.constant 0 : index
    %5 = vector.load %arg4[%c0_4, %c0_5] : memref<6912x256xbf16, #tpu.memory_space<vmem>>, vector<6912x256xbf16>
    %cst = arith.constant dense<0.000000e+00> : vector<2x256xf32>
    %6 = tpu.matmul %4, %5, %cst {dimension_numbers = #tpu.dot_dimension_numbers<[1], [0], [0], [1], [0, 0, 1, 1], [], []>} : vector<2x6912xbf16>, vector<6912x256xbf16>, vector<2x256xf32> -> vector<2x256xf32>
    %7 = arith.addf %3, %6 : vector<2x256xf32>
    %c0_6 = arith.constant 0 : index
    %c0_7 = arith.constant 0 : index
    %8 = vector.load %arg6[%c0_6, %c0_7] : memref<2x256xf32, #tpu.memory_space<vmem>>, vector<2x256xf32>
    tpu.vector_store %arg6[%c0_6, %c0_7], %7 {strides = array<i32>} : memref<2x256xf32, #tpu.memory_space<vmem>>, vector<2x256xf32>,
    %c2_i32 = arith.constant 2 : i32
    %9 = arith.cmpi eq, %arg2, %c2_i32 : i32
    %10 = arith.extui %9 : i1 to i32
    %c0_i32_8 = arith.constant 0 : i32
    %11 = arith.cmpi ne, %10, %c0_i32_8 : i32
    scf.if %11 {
      %c0_9 = arith.constant 0 : index
      %c0_10 = arith.constant 0 : index
      %12 = vector.load %arg6[%c0_9, %c0_10] : memref<2x256xf32, #tpu.memory_space<vmem>>, vector<2x256xf32>
      %cst_11 = arith.constant 0.000000e+00 : f32
      %13 = vector.broadcast %cst_11 : f32 to vector<2x256xf32>
      %14 = arith.maximumf %12, %13 : vector<2x256xf32>
      %c0_12 = arith.constant 0 : index
      %c0_13 = arith.constant 0 : index
      %15 = vector.load %arg6[%c0_12, %c0_13] : memref<2x256xf32, #tpu.memory_space<vmem>>, vector<2x256xf32>
      tpu.vector_store %arg6[%c0_12, %c0_13], %14 {strides = array<i32>} : memref<2x256xf32, #tpu.memory_space<vmem>>, vector<2x256xf32>,
    } else {
    }
    return
  }
  func.func @transform_0(%arg0: i32, %arg1: i32, %arg2: i32) -> (i32, i32) {
    %c0_i32 = arith.constant 0 : i32
    return %arg0, %arg2 : i32, i32
  }
  func.func @transform_1(%arg0: i32, %arg1: i32, %arg2: i32) -> (i32, i32) {
    %c0_i32 = arith.constant 0 : i32
    return %arg2, %arg1 : i32, i32
  }
  func.func @transform_2(%arg0: i32, %arg1: i32, %arg2: i32) -> (i32, i32) {
    %c0_i32 = arith.constant 0 : i32
    %c0_i32_0 = arith.constant 0 : i32
    return %c0_i32, %arg1 : i32, i32
  }
  func.func @transform_3(%arg0: i32, %arg1: i32, %arg2: i32) -> (i32, i32) {
    %c0_i32 = arith.constant 0 : i32
    return %arg0, %arg1 : i32, i32
  }
}

module attributes {stable_mosaic.version = 11 : i64} {
  func.func @_dueling_head_kernel(%arg0: i32, %arg1: memref<2x512xf32, #tpu.memory_space<vmem>>, %arg2: memref<512x7xf32, #tpu.memory_space<vmem>>, %arg3: memref<1x7xf32, #tpu.memory_space<vmem>>, %arg4: memref<2x6xf32, #tpu.memory_space<vmem>>) attributes {dimension_semantics = [#tpu.dimension_semantics<arbitrary>], iteration_bounds = array<i64: 1>, scalar_prefetch = 0 : i64, scratch_operands = 0 : i64, tpu.core_type = #tpu.core_type<tc>, window_params = [{pipeline_mode = #tpu.pipeline_mode<synchronous>, transform_indices = @transform_0, window_bounds = array<i64: 2, 512>}, {pipeline_mode = #tpu.pipeline_mode<synchronous>, transform_indices = @transform_1, window_bounds = array<i64: 512, 7>}, {pipeline_mode = #tpu.pipeline_mode<synchronous>, transform_indices = @transform_2, window_bounds = array<i64: 1, 7>}, {pipeline_mode = #tpu.pipeline_mode<synchronous>, transform_indices = @transform_3, window_bounds = array<i64: 2, 6>}]} {
    %c0 = arith.constant 0 : index
    %c0_0 = arith.constant 0 : index
    %0 = vector.load %arg1[%c0, %c0_0] : memref<2x512xf32, #tpu.memory_space<vmem>>, vector<2x512xf32>
    %c0_1 = arith.constant 0 : index
    %c0_2 = arith.constant 0 : index
    %1 = vector.load %arg2[%c0_1, %c0_2] : memref<512x7xf32, #tpu.memory_space<vmem>>, vector<512x7xf32>
    %cst = arith.constant dense<0.000000e+00> : vector<2x7xf32>
    %2 = tpu.matmul %0, %1, %cst {dimension_numbers = #tpu.dot_dimension_numbers<[1], [0], [0], [1], [0, 0, 1, 1], [], []>} : vector<2x512xf32>, vector<512x7xf32>, vector<2x7xf32> -> vector<2x7xf32>
    %c0_3 = arith.constant 0 : index
    %c0_4 = arith.constant 0 : index
    %3 = vector.load %arg3[%c0_3, %c0_4] : memref<1x7xf32, #tpu.memory_space<vmem>>, vector<1x7xf32>
    %4 = vector.broadcast %3 : vector<1x7xf32> to vector<2x7xf32>
    %5 = arith.addf %2, %4 : vector<2x7xf32>
    %6 = vector.extract_strided_slice %5 {offsets = [0, 0], sizes = [2, 6], strides = [1, 1]} : vector<2x7xf32> to vector<2x6xf32>
    %7 = vector.extract_strided_slice %5 {offsets = [0, 6], sizes = [2, 1], strides = [1, 1]} : vector<2x7xf32> to vector<2x1xf32>
    %cst_5 = arith.constant dense<0xFF800000> : vector<2xf32>
    %8 = vector.multi_reduction <maximumf>, %6, %cst_5 [1] : vector<2x6xf32> to vector<2xf32>
    %9 = vector.shape_cast %8 : vector<2xf32> to vector<2x1xf32>
    %cst_6 = arith.constant 0.166666672 : f32
    %10 = vector.broadcast %cst_6 : f32 to vector<2x1xf32>
    %11 = arith.mulf %10, %9 : vector<2x1xf32>
    %12 = vector.broadcast %11 : vector<2x1xf32> to vector<2x6xf32>
    %13 = arith.subf %6, %12 : vector<2x6xf32>
    %14 = vector.broadcast %7 : vector<2x1xf32> to vector<2x6xf32>
    %15 = arith.addf %14, %13 : vector<2x6xf32>
    %c0_7 = arith.constant 0 : index
    %c0_8 = arith.constant 0 : index
    %16 = vector.load %arg4[%c0_7, %c0_8] : memref<2x6xf32, #tpu.memory_space<vmem>>, vector<2x6xf32>
    tpu.vector_store %arg4[%c0_7, %c0_8], %15 {strides = array<i32>} : memref<2x6xf32, #tpu.memory_space<vmem>>, vector<2x6xf32>,
    return
  }
  func.func @transform_0(%arg0: i32) -> (i32, i32) {
    %c0_i32 = arith.constant 0 : i32
    %c0_i32_0 = arith.constant 0 : i32
    %c0_i32_1 = arith.constant 0 : i32
    return %c0_i32, %c0_i32_0 : i32, i32
  }
  func.func @transform_1(%arg0: i32) -> (i32, i32) {
    %c0_i32 = arith.constant 0 : i32
    %c0_i32_0 = arith.constant 0 : i32
    %c0_i32_1 = arith.constant 0 : i32
    return %c0_i32, %c0_i32_0 : i32, i32
  }
  func.func @transform_2(%arg0: i32) -> (i32, i32) {
    %c0_i32 = arith.constant 0 : i32
    %c0_i32_0 = arith.constant 0 : i32
    %c0_i32_1 = arith.constant 0 : i32
    return %c0_i32, %c0_i32_0 : i32, i32
  }
  func.func @transform_3(%arg0: i32) -> (i32, i32) {
    %c0_i32 = arith.constant 0 : i32
    %c0_i32_0 = arith.constant 0 : i32
    %c0_i32_1 = arith.constant 0 : i32
    return %c0_i32, %c0_i32_0 : i32, i32
  }
}

</mosaic_0001>

<bundles_post_ra>
// kernel: forward.4
= control target key start
LH: loop header
LB: loop body
LE: loop exit
PB: predicated region body
PF: predicated region fallthrough
CT: control target
= control target key end

     0   :  { %v2602_v0 = vmov 0   ;;  %s3258_s1 = inlined_call_operand.vmem [shape: bf16[256,128], index: 1, kind: input, shape index: {}]   ;;  %s3259_s0 = inlined_call_operand.vmem [shape: bf16[800,256], index: 0, kind: input, shape index: {}]   ;;  %s3260_s2 = inlined_call_operand.vmem [shape: f32[1,128], index: 2, kind: input, shape index: {}]   ;;  %s3261_s3 = inlined_call_operand.vmem [shape: bf16[800,128], index: 3, kind: output, shape index: {}]  }
   0x1   :  { %750 = vmatprep.subr.bf16.mxu0 %v2602_v0  ;;  %2403 = vmatprep.subr.bf16.mxu1 %v2602_v0  ;;  %v2436_v1 = vld [vmem:[%s3258_s1] sm:$0xff]   ;;  %v2437_v2 = vld [vmem:[%s3258_s1 + $0x8] sm:$0xff]   ;;  %v2438_v3 = vld [vmem:[%s3258_s1 + $0x10] sm:$0xff]  }
   0x2   :  { %751 = vmatpush1.bf16.msra.mxu0 %v2436_v1  ;;  %2419 = vmatpush1.bf16.msra.mxu1 %v2436_v1  ;;  %v2439_v4 = vld [vmem:[%s3258_s1 + $0x18] sm:$0xff]   ;;  %v2440_v5 = vld [vmem:[%s3258_s1 + $0x20] sm:$0xff]   ;;  %v2441_v7 = vld [vmem:[%s3258_s1 + $0x28] sm:$0xff]  }
   0x3   :  { %752 = vmatprep.subr.bf16.mxu0 %v2602_v0  ;;  %2404 = vmatprep.subr.bf16.mxu1 %v2602_v0  ;;  %v2454_v6 = vld [vmem:[%s3259_s0 + $0x4] ss:$8 sps:$4 sm:$0xff]   ;;  %v2457_v8 = vld [vmem:[%s3259_s0 + $0x194] ss:$8 sps:$4 sm:$0xff]   ;;  %v2452_v19 = vld [vmem:[%s3259_s0] ss:$8 sps:$4 sm:$0xff]  }
   0x4   :  { %782 = vmatprep.mubr.bf16.mxu0 %v2454_v6  ;;  %982 = vmatprep.mubr.bf16.mxu1 %v2457_v8  ;;  %v2442_v9 = vld [vmem:[%s3258_s1 + $0x30] sm:$0xff]   ;;  %v2443_v10 = vld [vmem:[%s3258_s1 + $0x38] sm:$0xff]   ;;  %v2444_v11 = vld [vmem:[%s3258_s1 + $0x40] sm:$0xff]  }
   0x5   :  { %v2445_v12 = vld [vmem:[%s3258_s1 + $0x48] sm:$0xff]   ;;  %v2446_v13 = vld [vmem:[%s3258_s1 + $0x50] sm:$0xff]   ;;  %v2447_v14 = vld [vmem:[%s3258_s1 + $0x58] sm:$0xff]  }
   0x6   :  { %753 = vmatpush1.bf16.msra.mxu0 %v2437_v2  ;;  %2420 = vmatpush1.bf16.msra.mxu1 %v2437_v2  ;;  %v2448_v15 = vld [vmem:[%s3258_s1 + $0x60] sm:$0xff]   ;;  %v2449_v16 = vld [vmem:[%s3258_s1 + $0x68] sm:$0xff]   ;;  %v2450_v17 = vld [vmem:[%s3258_s1 + $0x70] sm:$0xff]  }
   0x7   :  { %754 = vmatprep.subr.bf16.mxu0 %v2602_v0  ;;  %2405 = vmatprep.subr.bf16.mxu1 %v2602_v0  ;;  %v2451_v18 = vld [vmem:[%s3258_s1 + $0x78] sm:$0xff]   ;;  %v2460_v22 = vld [vmem:[%s3259_s0 + $0x1a4] ss:$8 sps:$4 sm:$0xff]   ;;  %v2463_v24 = vld [vmem:[%s3259_s0 + $0x1a0] ss:$8 sps:$4 sm:$0xff]  }
   0x8   :  { %v2455_v20 = vld [vmem:[%s3259_s0 + $0x190] ss:$8 sps:$4 sm:$0xff]   ;;  %v2458_v21 = vld [vmem:[%s3259_s0 + $0x14] ss:$8 sps:$4 sm:$0xff]   ;;  %v2464_v25 = vld [vmem:[%s3259_s0 + $0x24] ss:$8 sps:$4 sm:$0xff]  }
   0x9   :  { %v2462_v23 = vld [vmem:[%s3259_s0 + $0x10] ss:$8 sps:$4 sm:$0xff]   ;;  %v2466_v26 = vld [vmem:[%s3259_s0 + $0x1b4] ss:$8 sps:$4 sm:$0xff]   ;;  %v2468_v27 = vld [vmem:[%s3259_s0 + $0x20] ss:$8 sps:$4 sm:$0xff]  }
   0xa   :  { %755 = vmatpush1.bf16.msra.mxu0 %v2438_v3  ;;  %2421 = vmatpush1.bf16.msra.mxu1 %v2438_v3  ;;  %v2469_v28 = vld [vmem:[%s3259_s0 + $0x1b0] ss:$8 sps:$4 sm:$0xff]   ;;  %v2470_v29 = vld [vmem:[%s3259_s0 + $0x34] ss:$8 sps:$4 sm:$0xff]   ;;  %v2472_v30 = vld [vmem:[%s3259_s0 + $0x1c4] ss:$8 sps:$4 sm:$0xff]  }
   0xb   :  { %756 = vmatprep.subr.bf16.mxu0 %v2602_v0  ;;  %2406 = vmatprep.subr.bf16.mxu1 %v2602_v0  ;;  %v2474_v31 = vld [vmem:[%s3259_s0 + $0x30] ss:$8 sps:$4 sm:$0xff]   ;;  %v2475_v32 = vld [vmem:[%s3259_s0 + $0x1c0] ss:$8 sps:$4 sm:$0xff]   ;;  %v2476_v33 = vld [vmem:[%s3259_s0 + $0x44] ss:$8 sps:$4 sm:$0xff]  }
   0xc   :  { %v2478_v34 = vld [vmem:[%s3259_s0 + $0x1d4] ss:$8 sps:$4 sm:$0xff]   ;;  %v2480_v35 = vld [vmem:[%s3259_s0 + $0x40] ss:$8 sps:$4 sm:$0xff]   ;;  %v2481_v36 = vld [vmem:[%s3259_s0 + $0x1d0] ss:$8 sps:$4 sm:$0xff]  }
   0xd   :  { %v2482_v37 = vld [vmem:[%s3259_s0 + $0x54] ss:$8 sps:$4 sm:$0xff]   ;;  %v2484_v38 = vld [vmem:[%s3259_s0 + $0x1e4] ss:$8 sps:$4 sm:$0xff]   ;;  %v2486_v39 = vld [vmem:[%s3259_s0 + $0x50] ss:$8 sps:$4 sm:$0xff]  }
   0xe   :  { %757 = vmatpush1.bf16.msra.mxu0 %v2439_v4  ;;  %2422 = vmatpush1.bf16.msra.mxu1 %v2439_v4  ;;  %v2487_v40 = vld [vmem:[%s3259_s0 + $0x1e0] ss:$8 sps:$4 sm:$0xff]   ;;  %v2488_v41 = vld [vmem:[%s3259_s0 + $0x64] ss:$8 sps:$4 sm:$0xff]   ;;  %v2490_v42 = vld [vmem:[%s3259_s0 + $0x1f4] ss:$8 sps:$4 sm:$0xff]  }
   0xf   :  { %758 = vmatprep.subr.bf16.mxu0 %v2602_v0  ;;  %2407 = vmatprep.subr.bf16.mxu1 %v2602_v0  ;;  %v2492_v43 = vld [vmem:[%s3259_s0 + $0x60] ss:$8 sps:$4 sm:$0xff]   ;;  %v2493_v44 = vld [vmem:[%s3259_s0 + $0x1f0] ss:$8 sps:$4 sm:$0xff]   ;;  %v2494_v45 = vld [vmem:[%s3259_s0 + $0x74] ss:$8 sps:$4 sm:$0xff]  }
  0x10   :  { %v2496_v46 = vld [vmem:[%s3259_s0 + $0x204] ss:$8 sps:$4 sm:$0xff]   ;;  %v2498_v47 = vld [vmem:[%s3259_s0 + $0x70] ss:$8 sps:$4 sm:$0xff]   ;;  %v2499_v48 = vld [vmem:[%s3259_s0 + $0x200] ss:$8 sps:$4 sm:$0xff]  }
  0x11   :  { %v2500_v49 = vld [vmem:[%s3259_s0 + $0x84] ss:$8 sps:$4 sm:$0xff]   ;;  %v2502_v50 = vld [vmem:[%s3259_s0 + $0x214] ss:$8 sps:$4 sm:$0xff]   ;;  %v2504_v51 = vld [vmem:[%s3259_s0 + $0x80] ss:$8 sps:$4 sm:$0xff]  }
  0x12   :  { %759 = vmatpush1.bf16.msra.mxu0 %v2440_v5  ;;  %2423 = vmatpush1.bf16.msra.mxu1 %v2440_v5  ;;  %v2505_v52 = vld [vmem:[%s3259_s0 + $0x210] ss:$8 sps:$4 sm:$0xff]   ;;  %v2506_v53 = vld [vmem:[%s3259_s0 + $0x94] ss:$8 sps:$4 sm:$0xff]   ;;  %v2508_v54 = vld [vmem:[%s3259_s0 + $0x224] ss:$8 sps:$4 sm:$0xff]  }
  0x13   :  { %760 = vmatprep.subr.bf16.mxu0 %v2602_v0  ;;  %2408 = vmatprep.subr.bf16.mxu1 %v2602_v0  ;;  %v2510_v55 = vld [vmem:[%s3259_s0 + $0x90] ss:$8 sps:$4 sm:$0xff]   ;;  %v2511_v56 = vld [vmem:[%s3259_s0 + $0x220] ss:$8 sps:$4 sm:$0xff]   ;;  %v2512_v57 = vld [vmem:[%s3259_s0 + $0xa4] ss:$8 sps:$4 sm:$0xff]  }
  0x14   :  { %v2514_v58 = vld [vmem:[%s3259_s0 + $0x234] ss:$8 sps:$4 sm:$0xff]   ;;  %v2516_v59 = vld [vmem:[%s3259_s0 + $0xa0] ss:$8 sps:$4 sm:$0xff]   ;;  %v2517_v60 = vld [vmem:[%s3259_s0 + $0x230] ss:$8 sps:$4 sm:$0xff]  }
  0x15   :  { %v2518_v61 = vld [vmem:[%s3259_s0 + $0xb4] ss:$8 sps:$4 sm:$0xff]   ;;  %v2520_v62 = vld [vmem:[%s3259_s0 + $0x244] ss:$8 sps:$4 sm:$0xff]   ;;  %v2522_v63 = vld [vmem:[%s3259_s0 + $0xb0] ss:$8 sps:$4 sm:$0xff]  }
  0x16   :  { %761 = vmatpush1.bf16.msra.mxu0 %v2441_v7  ;;  %2424 = vmatpush1.bf16.msra.mxu1 %v2441_v7  ;;  %v2524_v1 = vld [vmem:[%s3259_s0 + $0xc4] ss:$8 sps:$4 sm:$0xff]   ;;  %v2526_v2 = vld [vmem:[%s3259_s0 + $0x254] ss:$8 sps:$4 sm:$0xff]   ;;  %v2528_v3 = vld [vmem:[%s3259_s0 + $0xc0] ss:$8 sps:$4 sm:$0xff]  }
  0x17   :  { %762 = vmatprep.subr.bf16.mxu0 %v2602_v0  ;;  %2409 = vmatprep.subr.bf16.mxu1 %v2602_v0  ;;  %v2529_v4 = vld [vmem:[%s3259_s0 + $0x250] ss:$8 sps:$4 sm:$0xff]   ;;  %v2530_v5 = vld [vmem:[%s3259_s0 + $0xd4] ss:$8 sps:$4 sm:$0xff]   ;;  %v2532_v6 = vld [vmem:[%s3259_s0 + $0x264] ss:$8 sps:$4 sm:$0xff]  }
  0x18   :  { %v2534_v7 = vld [vmem:[%s3259_s0 + $0xd0] ss:$8 sps:$4 sm:$0xff]   ;;  %v2535_v8 = vld [vmem:[%s3259_s0 + $0x260] ss:$8 sps:$4 sm:$0xff]  }
  0x1a   :  { %763 = vmatpush1.bf16.msra.mxu0 %v2442_v9  ;;  %2425 = vmatpush1.bf16.msra.mxu1 %v2442_v9  ;;  %v2536_v9 = vld [vmem:[%s3259_s0 + $0xe4] ss:$8 sps:$4 sm:$0xff]  }
  0x1b   :  { %764 = vmatprep.subr.bf16.mxu0 %v2602_v0  ;;  %2410 = vmatprep.subr.bf16.mxu1 %v2602_v0 }
  0x1e   :  { %765 = vmatpush1.bf16.msra.mxu0 %v2443_v10  ;;  %2426 = vmatpush1.bf16.msra.mxu1 %v2443_v10  ;;  %v2538_v10 = vld [vmem:[%s3259_s0 + $0x274] ss:$8 sps:$4 sm:$0xff]  }
  0x1f   :  { %766 = vmatprep.subr.bf16.mxu0 %v2602_v0  ;;  %2411 = vmatprep.subr.bf16.mxu1 %v2602_v0 }
  0x22   :  { %767 = vmatpush1.bf16.msra.mxu0 %v2444_v11  ;;  %2427 = vmatpush1.bf16.msra.mxu1 %v2444_v11  ;;  %v2540_v11 = vld [vmem:[%s3259_s0 + $0xe0] ss:$8 sps:$4 sm:$0xff]  }
  0x23   :  { %768 = vmatprep.subr.bf16.mxu0 %v2602_v0  ;;  %2412 = vmatprep.subr.bf16.mxu1 %v2602_v0 }
  0x26   :  { %769 = vmatpush1.bf16.msra.mxu0 %v2445_v12  ;;  %2428 = vmatpush1.bf16.msra.mxu1 %v2445_v12  ;;  %v2541_v12 = vld [vmem:[%s3259_s0 + $0x270] ss:$8 sps:$4 sm:$0xff]  }
  0x27   :  { %770 = vmatprep.subr.bf16.mxu0 %v2602_v0  ;;  %2413 = vmatprep.subr.bf16.mxu1 %v2602_v0 }
  0x2a   :  { %771 = vmatpush1.bf16.msra.mxu0 %v2446_v13  ;;  %2429 = vmatpush1.bf16.msra.mxu1 %v2446_v13  ;;  %v2542_v13 = vld [vmem:[%s3259_s0 + $0xf4] ss:$8 sps:$4 sm:$0xff]  }
  0x2b   :  { %772 = vmatprep.subr.bf16.mxu0 %v2602_v0  ;;  %2414 = vmatprep.subr.bf16.mxu1 %v2602_v0 }
  0x2e   :  { %773 = vmatpush1.bf16.msra.mxu0 %v2447_v14  ;;  %2430 = vmatpush1.bf16.msra.mxu1 %v2447_v14  ;;  %v2544_v14 = vld [vmem:[%s3259_s0 + $0x284] ss:$8 sps:$4 sm:$0xff]  }
  0x2f   :  { %774 = vmatprep.subr.bf16.mxu0 %v2602_v0  ;;  %2415 = vmatprep.subr.bf16.mxu1 %v2602_v0 }
  0x32   :  { %775 = vmatpush1.bf16.msra.mxu0 %v2448_v15  ;;  %2431 = vmatpush1.bf16.msra.mxu1 %v2448_v15  ;;  %v2546_v15 = vld [vmem:[%s3259_s0 + $0xf0] ss:$8 sps:$4 sm:$0xff]  }
  0x33   :  { %776 = vmatprep.subr.bf16.mxu0 %v2602_v0  ;;  %2416 = vmatprep.subr.bf16.mxu1 %v2602_v0 }
  0x36   :  { %777 = vmatpush1.bf16.msra.mxu0 %v2449_v16  ;;  %2432 = vmatpush1.bf16.msra.mxu1 %v2449_v16  ;;  %v2547_v16 = vld [vmem:[%s3259_s0 + $0x280] ss:$8 sps:$4 sm:$0xff]  }
  0x37   :  { %778 = vmatprep.subr.bf16.mxu0 %v2602_v0  ;;  %2417 = vmatprep.subr.bf16.mxu1 %v2602_v0 }
  0x3a   :  { %779 = vmatpush1.bf16.msra.mxu0 %v2450_v17  ;;  %2433 = vmatpush1.bf16.msra.mxu1 %v2450_v17  ;;  %v2548_v17 = vld [vmem:[%s3259_s0 + $0x104] ss:$8 sps:$4 sm:$0xff]  }
  0x3b   :  { %780 = vmatprep.subr.bf16.mxu0 %v2602_v0  ;;  %2418 = vmatprep.subr.bf16.mxu1 %v2602_v0  ;;  %v2523_v0 = vld [vmem:[%s3259_s0 + $0x240] ss:$8 sps:$4 sm:$0xff]  }
  0x3e   :  { %781 = vmatpush1.bf16.msra.mxu0 %v2451_v18  ;;  %2434 = vmatpush1.bf16.msra.mxu1 %v2451_v18  ;;  %v2550_v18 = vld [vmem:[%s3259_s0 + $0x294] ss:$8 sps:$4 sm:$0xff]  }
  0x41   :  { %783 = vmatmul.mubr.bf16.vlgmr.msra.gmra.mrb[0].mxu0 %v2452_v19  ;;  %983 = vmatmul.mubr.bf16.vlgmr.msra.gmra.mrb[0].mxu1 %v2455_v20  ;;  %v2552_v19 = vld [vmem:[%s3259_s0 + $0x100] ss:$8 sps:$4 sm:$0xff]   ;;  %v2553_v20 = vld [vmem:[%s3259_s0 + $0x290] ss:$8 sps:$4 sm:$0xff]  }
  0x42   :  { %790 = vmatprep.mubr.bf16.mxu0 %v2458_v21  ;;  %990 = vmatprep.mubr.bf16.mxu1 %v2460_v22  ;;  %v2554_v21 = vld [vmem:[%s3259_s0 + $0x114] ss:$8 sps:$4 sm:$0xff]   ;;  %v2556_v22 = vld [vmem:[%s3259_s0 + $0x2a4] ss:$8 sps:$4 sm:$0xff]  }
  0x49   :  { %791 = vmatmul.mubr.bf16.gmra.mrb[4].mxu0 %v2462_v23  ;;  %991 = vmatmul.mubr.bf16.gmra.mrb[4].mxu1 %v2463_v24  ;;  %v2558_v23 = vld [vmem:[%s3259_s0 + $0x110] ss:$8 sps:$4 sm:$0xff]   ;;  %v2559_v24 = vld [vmem:[%s3259_s0 + $0x2a0] ss:$8 sps:$4 sm:$0xff]  }
  0x4a   :  { %798 = vmatprep.mubr.bf16.mxu0 %v2464_v25  ;;  %998 = vmatprep.mubr.bf16.mxu1 %v2466_v26  ;;  %v2560_v25 = vld [vmem:[%s3259_s0 + $0x124] ss:$8 sps:$4 sm:$0xff]   ;;  %v2562_v26 = vld [vmem:[%s3259_s0 + $0x2b4] ss:$8 sps:$4 sm:$0xff]  }
  0x51   :  { %799 = vmatmul.mubr.bf16.gmra.mrb[8].mxu0 %v2468_v27  ;;  %999 = vmatmul.mubr.bf16.gmra.mrb[8].mxu1 %v2469_v28  ;;  %v2564_v27 = vld [vmem:[%s3259_s0 + $0x120] ss:$8 sps:$4 sm:$0xff]   ;;  %v2565_v28 = vld [vmem:[%s3259_s0 + $0x2b0] ss:$8 sps:$4 sm:$0xff]  }
  0x52   :  { %806 = vmatprep.mubr.bf16.mxu0 %v2470_v29  ;;  %1006 = vmatprep.mubr.bf16.mxu1 %v2472_v30  ;;  %v2566_v29 = vld [vmem:[%s3259_s0 + $0x134] ss:$8 sps:$4 sm:$0xff]   ;;  %v2568_v30 = vld [vmem:[%s3259_s0 + $0x2c4] ss:$8 sps:$4 sm:$0xff]  }
  0x59   :  { %807 = vmatmul.mubr.bf16.gmra.mrb[12].mxu0 %v2474_v31  ;;  %1007 = vmatmul.mubr.bf16.gmra.mrb[12].mxu1 %v2475_v32  ;;  %v2570_v31 = vld [vmem:[%s3259_s0 + $0x130] ss:$8 sps:$4 sm:$0xff]   ;;  %v2571_v32 = vld [vmem:[%s3259_s0 + $0x2c0] ss:$8 sps:$4 sm:$0xff]  }
  0x5a   :  { %814 = vmatprep.mubr.bf16.mxu0 %v2476_v33  ;;  %1014 = vmatprep.mubr.bf16.mxu1 %v2478_v34  ;;  %v2572_v33 = vld [vmem:[%s3259_s0 + $0x144] ss:$8 sps:$4 sm:$0xff]   ;;  %v2574_v34 = vld [vmem:[%s3259_s0 + $0x2d4] ss:$8 sps:$4 sm:$0xff]  }
  0x61   :  { %815 = vmatmul.mubr.bf16.gmra.mrb[16].mxu0 %v2480_v35  ;;  %1015 = vmatmul.mubr.bf16.gmra.mrb[16].mxu1 %v2481_v36  ;;  %v2576_v35 = vld [vmem:[%s3259_s0 + $0x140] ss:$8 sps:$4 sm:$0xff]   ;;  %v2577_v36 = vld [vmem:[%s3259_s0 + $0x2d0] ss:$8 sps:$4 sm:$0xff]  }
  0x62   :  { %822 = vmatprep.mubr.bf16.mxu0 %v2482_v37  ;;  %1022 = vmatprep.mubr.bf16.mxu1 %v2484_v38  ;;  %v2578_v37 = vld [vmem:[%s3259_s0 + $0x154] ss:$8 sps:$4 sm:$0xff]   ;;  %v2580_v38 = vld [vmem:[%s3259_s0 + $0x2e4] ss:$8 sps:$4 sm:$0xff]  }
  0x69   :  { %823 = vmatmul.mubr.bf16.gmra.mrb[20].mxu0 %v2486_v39  ;;  %1023 = vmatmul.mubr.bf16.gmra.mrb[20].mxu1 %v2487_v40  ;;  %v2582_v39 = vld [vmem:[%s3259_s0 + $0x150] ss:$8 sps:$4 sm:$0xff]   ;;  %v2583_v40 = vld [vmem:[%s3259_s0 + $0x2e0] ss:$8 sps:$4 sm:$0xff]  }
  0x6a   :  { %830 = vmatprep.mubr.bf16.mxu0 %v2488_v41  ;;  %1030 = vmatprep.mubr.bf16.mxu1 %v2490_v42  ;;  %v2584_v41 = vld [vmem:[%s3259_s0 + $0x164] ss:$8 sps:$4 sm:$0xff]   ;;  %v2586_v42 = vld [vmem:[%s3259_s0 + $0x2f4] ss:$8 sps:$4 sm:$0xff]  }
  0x71   :  { %831 = vmatmul.mubr.bf16.gmra.mrb[24].mxu0 %v2492_v43  ;;  %1031 = vmatmul.mubr.bf16.gmra.mrb[24].mxu1 %v2493_v44  ;;  %v2588_v43 = vld [vmem:[%s3259_s0 + $0x160] ss:$8 sps:$4 sm:$0xff]   ;;  %v2589_v44 = vld [vmem:[%s3259_s0 + $0x2f0] ss:$8 sps:$4 sm:$0xff]  }
  0x72   :  { %838 = vmatprep.mubr.bf16.mxu0 %v2494_v45  ;;  %1038 = vmatprep.mubr.bf16.mxu1 %v2496_v46  ;;  %v2590_v45 = vld [vmem:[%s3259_s0 + $0x174] ss:$8 sps:$4 sm:$0xff]   ;;  %v2592_v46 = vld [vmem:[%s3259_s0 + $0x304] ss:$8 sps:$4 sm:$0xff]  }
  0x79   :  { %839 = vmatmul.mubr.bf16.gmra.mrb[28].mxu0 %v2498_v47  ;;  %1039 = vmatmul.mubr.bf16.gmra.mrb[28].mxu1 %v2499_v48  ;;  %v2594_v47 = vld [vmem:[%s3259_s0 + $0x170] ss:$8 sps:$4 sm:$0xff]   ;;  %v2595_v48 = vld [vmem:[%s3259_s0 + $0x300] ss:$8 sps:$4 sm:$0xff]  }
  0x7a   :  { %846 = vmatprep.mubr.bf16.mxu0 %v2500_v49  ;;  %1046 = vmatprep.mubr.bf16.mxu1 %v2502_v50  ;;  %v2596_v49 = vld [vmem:[%s3259_s0 + $0x184] ss:$8 sps:$4 sm:$0xff]   ;;  %v2598_v50 = vld [vmem:[%s3259_s0 + $0x314] ss:$8 sps:$4 sm:$0xff]  }
  0x81   :  { %847 = vmatmul.mubr.bf16.gmra.mrb[32].mxu0 %v2504_v51  ;;  %1047 = vmatmul.mubr.bf16.gmra.mrb[32].mxu1 %v2505_v52  ;;  %v2600_v51 = vld [vmem:[%s3259_s0 + $0x180] ss:$8 sps:$4 sm:$0xff]   ;;  %v2601_v52 = vld [vmem:[%s3259_s0 + $0x310] ss:$8 sps:$4 sm:$0xff]  }
  0x82   :  { %854 = vmatprep.mubr.bf16.mxu0 %v2506_v53  ;;  %1054 = vmatprep.mubr.bf16.mxu1 %v2508_v54  ;;  %v3006_v53 = vld [vmem:[%s3260_s2] ss:$0 sm:$0xff] }
  0x89   :  { %855 = vmatmul.mubr.bf16.gmra.mrb[36].mxu0 %v2510_v55  ;;  %1055 = vmatmul.mubr.bf16.gmra.mrb[36].mxu1 %v2511_v56 }
  0x8a   :  { %862 = vmatprep.mubr.bf16.mxu0 %v2512_v57  ;;  %1062 = vmatprep.mubr.bf16.mxu1 %v2514_v58 }
  0x91   :  { %863 = vmatmul.mubr.bf16.gmra.mrb[40].mxu0 %v2516_v59  ;;  %1063 = vmatmul.mubr.bf16.gmra.mrb[40].mxu1 %v2517_v60 }
  0x92   :  { %870 = vmatprep.mubr.bf16.mxu0 %v2518_v61  ;;  %1070 = vmatprep.mubr.bf16.mxu1 %v2520_v62 }
  0x99   :  { %871 = vmatmul.mubr.bf16.gmra.mrb[44].mxu0 %v2522_v63  ;;  %1071 = vmatmul.mubr.bf16.gmra.mrb[44].mxu1 %v2523_v0 }
  0x9a   :  { %878 = vmatprep.mubr.bf16.mxu0 %v2524_v1  ;;  %1078 = vmatprep.mubr.bf16.mxu1 %v2526_v2 }
  0xa1   :  { %879 = vmatmul.mubr.bf16.gmra.mrb[48].mxu0 %v2528_v3  ;;  %1079 = vmatmul.mubr.bf16.gmra.mrb[48].mxu1 %v2529_v4 }
  0xa2   :  { %886 = vmatprep.mubr.bf16.mxu0 %v2530_v5  ;;  %1086 = vmatprep.mubr.bf16.mxu1 %v2532_v6 }
  0xa9   :  { %887 = vmatmul.mubr.bf16.gmra.mrb[52].mxu0 %v2534_v7  ;;  %1087 = vmatmul.mubr.bf16.gmra.mrb[52].mxu1 %v2535_v8 }
  0xaa   :  { %894 = vmatprep.mubr.bf16.mxu0 %v2536_v9  ;;  %1094 = vmatprep.mubr.bf16.mxu1 %v2538_v10 }
  0xb1   :  { %895 = vmatmul.mubr.bf16.gmra.mrb[56].mxu0 %v2540_v11  ;;  %1095 = vmatmul.mubr.bf16.gmra.mrb[56].mxu1 %v2541_v12 }
  0xb2   :  { %902 = vmatprep.mubr.bf16.mxu0 %v2542_v13  ;;  %1102 = vmatprep.mubr.bf16.mxu1 %v2544_v14 }
  0xb9   :  { %903 = vmatmul.mubr.bf16.gmra.mrb[60].mxu0 %v2546_v15  ;;  %1103 = vmatmul.mubr.bf16.gmra.mrb[60].mxu1 %v2547_v16 }
  0xba   :  { %910 = vmatprep.mubr.bf16.mxu0 %v2548_v17  ;;  %1110 = vmatprep.mubr.bf16.mxu1 %v2550_v18 }
  0xc1   :  { %911 = vmatmul.mubr.bf16.gmra.mrb[64].mxu0 %v2552_v19  ;;  %1111 = vmatmul.mubr.bf16.gmra.mrb[64].mxu1 %v2553_v20 }
  0xc2   :  { %918 = vmatprep.mubr.bf16.mxu0 %v2554_v21  ;;  %1118 = vmatprep.mubr.bf16.mxu1 %v2556_v22 }
  0xc9   :  { %919 = vmatmul.mubr.bf16.gmra.mrb[68].mxu0 %v2558_v23  ;;  %1119 = vmatmul.mubr.bf16.gmra.mrb[68].mxu1 %v2559_v24 }
  0xca   :  { %926 = vmatprep.mubr.bf16.mxu0 %v2560_v25  ;;  %1126 = vmatprep.mubr.bf16.mxu1 %v2562_v26 }
  0xd1   :  { %927 = vmatmul.mubr.bf16.gmra.mrb[72].mxu0 %v2564_v27  ;;  %1127 = vmatmul.mubr.bf16.gmra.mrb[72].mxu1 %v2565_v28 }
  0xd2   :  { %934 = vmatprep.mubr.bf16.mxu0 %v2566_v29  ;;  %1134 = vmatprep.mubr.bf16.mxu1 %v2568_v30 }
  0xd9   :  { %935 = vmatmul.mubr.bf16.gmra.mrb[76].mxu0 %v2570_v31  ;;  %1135 = vmatmul.mubr.bf16.gmra.mrb[76].mxu1 %v2571_v32 }
  0xda   :  { %942 = vmatprep.mubr.bf16.mxu0 %v2572_v33  ;;  %1142 = vmatprep.mubr.bf16.mxu1 %v2574_v34 }
  0xe1   :  { %943 = vmatmul.mubr.bf16.gmra.mrb[80].mxu0 %v2576_v35  ;;  %1143 = vmatmul.mubr.bf16.gmra.mrb[80].mxu1 %v2577_v36 }
  0xe2   :  { %950 = vmatprep.mubr.bf16.mxu0 %v2578_v37  ;;  %1150 = vmatprep.mubr.bf16.mxu1 %v2580_v38 }
  0xe9   :  { %951 = vmatmul.mubr.bf16.gmra.mrb[84].mxu0 %v2582_v39  ;;  %1151 = vmatmul.mubr.bf16.gmra.mrb[84].mxu1 %v2583_v40 }
  0xea   :  { %958 = vmatprep.mubr.bf16.mxu0 %v2584_v41  ;;  %1158 = vmatprep.mubr.bf16.mxu1 %v2586_v42 }
  0xf1   :  { %959 = vmatmul.mubr.bf16.gmra.mrb[88].mxu0 %v2588_v43  ;;  %1159 = vmatmul.mubr.bf16.gmra.mrb[88].mxu1 %v2589_v44 }
  0xf2   :  { %966 = vmatprep.mubr.bf16.mxu0 %v2590_v45  ;;  %1166 = vmatprep.mubr.bf16.mxu1 %v2592_v46 }
  0xf9   :  { %967 = vmatmul.mubr.bf16.gmra.mrb[92].mxu0 %v2594_v47  ;;  %1167 = vmatmul.mubr.bf16.gmra.mrb[92].mxu1 %v2595_v48 }
  0xfa   :  { %974 = vmatprep.mubr.bf16.mxu0 %v2596_v49  ;;  %1174 = vmatprep.mubr.bf16.mxu1 %v2598_v50 }
 0x101   :  { %975 = vmatmul.mubr.bf16.gmra.mrb[96].mxu0 %v2600_v51  ;;  %1175 = vmatmul.mubr.bf16.gmra.mrb[96].mxu1 %v2601_v52 }
 0x114   :  { %v784_v54 = vpop.f32.mrb[0].mxu0  ;;  %v984_v55 = vpop.f32.mrb[0].mxu1 }
 0x115   :  { %v785_v56 = vadd.f32 %v3006_v53, %v784_v54  ;;  %v985_v57 = vadd.f32 %v3006_v53, %v984_v55  ;;  %v786_v58 = vpop.f32.mrb[1].mxu0  ;;  %v986_v59 = vpop.f32.mrb[1].mxu1 }
 0x116   :  { %v787_v60 = vpop.f32.mrb[2].mxu0  ;;  %v987_v61 = vpop.f32.mrb[2].mxu1 }
 0x117   :  { %v788_v62 = vadd.f32 %v3006_v53, %v787_v60  ;;  %v988_v63 = vadd.f32 %v3006_v53, %v987_v61  ;;  %v789_v0 = vpop.f32.mrb[3].mxu0  ;;  %v989_v1 = vpop.f32.mrb[3].mxu1  ;;  %v1183_v2 = vmax.f32 %v785_v56, 0.0  ;;  %v1233_v3 = vmax.f32 %v985_v57, 0.0 }
 0x119   :  { %v1184_v4 = vmax.f32 %v788_v62, 0.0  ;;  %v1234_v5 = vmax.f32 %v988_v63, 0.0 }
 0x11b   :  { %v2107_v6 = vpack.c.bf16 %v1184_v4, %v1183_v2  ;;  %v2232_v7 = vpack.c.bf16 %v1234_v5, %v1233_v3 }
 0x11c   :  { %v792_v8 = vpop.f32.mrb[4].mxu0  ;;  %v992_v9 = vpop.f32.mrb[4].mxu1 }
 0x11d   :  { %2108 = vst [vmem:[%s3261_s3] sm:$0xff] %v2107_v6   ;;  %2378 = vst [vmem:[%s3261_s3 + $0xc8] sm:$0xff] %v2232_v7   ;;  %v793_v10 = vadd.f32 %v3006_v53, %v792_v8  ;;  %v993_v11 = vadd.f32 %v3006_v53, %v992_v9  ;;  %v794_v12 = vpop.f32.mrb[5].mxu0  ;;  %v994_v13 = vpop.f32.mrb[5].mxu1 }
 0x11e   :  { %v795_v14 = vpop.f32.mrb[6].mxu0  ;;  %v995_v15 = vpop.f32.mrb[6].mxu1 }
 0x11f   :  { %v796_v16 = vadd.f32 %v3006_v53, %v795_v14  ;;  %v996_v17 = vadd.f32 %v3006_v53, %v995_v15  ;;  %v797_v18 = vpop.f32.mrb[7].mxu0  ;;  %v997_v19 = vpop.f32.mrb[7].mxu1  ;;  %v1185_v20 = vmax.f32 %v793_v10, 0.0  ;;  %v1235_v21 = vmax.f32 %v993_v11, 0.0 }
 0x121   :  { %v1186_v22 = vmax.f32 %v796_v16, 0.0  ;;  %v1236_v23 = vmax.f32 %v996_v17, 0.0 }
 0x123   :  { %v2112_v24 = vpack.c.bf16 %v1186_v22, %v1185_v20  ;;  %v2237_v25 = vpack.c.bf16 %v1236_v23, %v1235_v21 }
 0x124   :  { %v800_v26 = vpop.f32.mrb[8].mxu0  ;;  %v1000_v27 = vpop.f32.mrb[8].mxu1 }
 0x125   :  { %2354 = vst [vmem:[%s3261_s3 + $0x8] sm:$0xff] %v2112_v24   ;;  %2379 = vst [vmem:[%s3261_s3 + $0xd0] sm:$0xff] %v2237_v25   ;;  %v801_v28 = vadd.f32 %v3006_v53, %v800_v26  ;;  %v1001_v29 = vadd.f32 %v3006_v53, %v1000_v27  ;;  %v802_v30 = vpop.f32.mrb[9].mxu0  ;;  %v1002_v31 = vpop.f32.mrb[9].mxu1 }
 0x126   :  { %v803_v32 = vpop.f32.mrb[10].mxu0  ;;  %v1003_v33 = vpop.f32.mrb[10].mxu1 }
 0x127   :  { %v804_v34 = vadd.f32 %v3006_v53, %v803_v32  ;;  %v1004_v35 = vadd.f32 %v3006_v53, %v1003_v33  ;;  %v805_v36 = vpop.f32.mrb[11].mxu0  ;;  %v1005_v37 = vpop.f32.mrb[11].mxu1  ;;  %v1187_v38 = vmax.f32 %v801_v28, 0.0  ;;  %v1237_v39 = vmax.f32 %v1001_v29, 0.0 }
 0x129   :  { %v1188_v40 = vmax.f32 %v804_v34, 0.0  ;;  %v1238_v41 = vmax.f32 %v1004_v35, 0.0 }
 0x12b   :  { %v2117_v42 = vpack.c.bf16 %v1188_v40, %v1187_v38  ;;  %v2242_v43 = vpack.c.bf16 %v1238_v41, %v1237_v39 }
 0x12c   :  { %v808_v44 = vpop.f32.mrb[12].mxu0  ;;  %v1008_v45 = vpop.f32.mrb[12].mxu1 }
 0x12d   :  { %2355 = vst [vmem:[%s3261_s3 + $0x10] sm:$0xff] %v2117_v42   ;;  %2380 = vst [vmem:[%s3261_s3 + $0xd8] sm:$0xff] %v2242_v43   ;;  %v809_v46 = vadd.f32 %v3006_v53, %v808_v44  ;;  %v1009_v47 = vadd.f32 %v3006_v53, %v1008_v45  ;;  %v810_v48 = vpop.f32.mrb[13].mxu0  ;;  %v1010_v49 = vpop.f32.mrb[13].mxu1 }
 0x12e   :  { %v811_v50 = vpop.f32.mrb[14].mxu0  ;;  %v1011_v51 = vpop.f32.mrb[14].mxu1 }
 0x12f   :  { %v812_v52 = vadd.f32 %v3006_v53, %v811_v50  ;;  %v1012_v54 = vadd.f32 %v3006_v53, %v1011_v51  ;;  %v813_v55 = vpop.f32.mrb[15].mxu0  ;;  %v1013_v56 = vpop.f32.mrb[15].mxu1  ;;  %v1189_v57 = vmax.f32 %v809_v46, 0.0  ;;  %v1239_v58 = vmax.f32 %v1009_v47, 0.0 }
 0x131   :  { %v1190_v59 = vmax.f32 %v812_v52, 0.0  ;;  %v1240_v60 = vmax.f32 %v1012_v54, 0.0 }
 0x133   :  { %v2122_v61 = vpack.c.bf16 %v1190_v59, %v1189_v57  ;;  %v2247_v62 = vpack.c.bf16 %v1240_v60, %v1239_v58 }
 0x134   :  { %v816_v63 = vpop.f32.mrb[16].mxu0  ;;  %v1016_v0 = vpop.f32.mrb[16].mxu1 }
 0x135   :  { %2356 = vst [vmem:[%s3261_s3 + $0x18] sm:$0xff] %v2122_v61   ;;  %2381 = vst [vmem:[%s3261_s3 + $0xe0] sm:$0xff] %v2247_v62   ;;  %v817_v1 = vadd.f32 %v3006_v53, %v816_v63  ;;  %v1017_v2 = vadd.f32 %v3006_v53, %v1016_v0  ;;  %v818_v3 = vpop.f32.mrb[17].mxu0  ;;  %v1018_v4 = vpop.f32.mrb[17].mxu1 }
 0x136   :  { %v819_v5 = vpop.f32.mrb[18].mxu0  ;;  %v1019_v6 = vpop.f32.mrb[18].mxu1 }
 0x137   :  { %v820_v7 = vadd.f32 %v3006_v53, %v819_v5  ;;  %v1020_v8 = vadd.f32 %v3006_v53, %v1019_v6  ;;  %v821_v9 = vpop.f32.mrb[19].mxu0  ;;  %v1021_v10 = vpop.f32.mrb[19].mxu1  ;;  %v1191_v11 = vmax.f32 %v817_v1, 0.0  ;;  %v1241_v12 = vmax.f32 %v1017_v2, 0.0 }
 0x139   :  { %v1192_v13 = vmax.f32 %v820_v7, 0.0  ;;  %v1242_v14 = vmax.f32 %v1020_v8, 0.0 }
 0x13b   :  { %v2127_v15 = vpack.c.bf16 %v1192_v13, %v1191_v11  ;;  %v2252_v16 = vpack.c.bf16 %v1242_v14, %v1241_v12 }
 0x13c   :  { %v824_v17 = vpop.f32.mrb[20].mxu0  ;;  %v1024_v18 = vpop.f32.mrb[20].mxu1 }
 0x13d   :  { %2357 = vst [vmem:[%s3261_s3 + $0x20] sm:$0xff] %v2127_v15   ;;  %2382 = vst [vmem:[%s3261_s3 + $0xe8] sm:$0xff] %v2252_v16   ;;  %v825_v19 = vadd.f32 %v3006_v53, %v824_v17  ;;  %v1025_v20 = vadd.f32 %v3006_v53, %v1024_v18  ;;  %v826_v21 = vpop.f32.mrb[21].mxu0  ;;  %v1026_v22 = vpop.f32.mrb[21].mxu1 }
 0x13e   :  { %v827_v23 = vpop.f32.mrb[22].mxu0  ;;  %v1027_v24 = vpop.f32.mrb[22].mxu1 }
 0x13f   :  { %v828_v25 = vadd.f32 %v3006_v53, %v827_v23  ;;  %v1028_v26 = vadd.f32 %v3006_v53, %v1027_v24  ;;  %v829_v27 = vpop.f32.mrb[23].mxu0  ;;  %v1029_v28 = vpop.f32.mrb[23].mxu1  ;;  %v1193_v29 = vmax.f32 %v825_v19, 0.0  ;;  %v1243_v30 = vmax.f32 %v1025_v20, 0.0 }
 0x141   :  { %v1194_v31 = vmax.f32 %v828_v25, 0.0  ;;  %v1244_v32 = vmax.f32 %v1028_v26, 0.0 }
 0x143   :  { %v2132_v33 = vpack.c.bf16 %v1194_v31, %v1193_v29  ;;  %v2257_v34 = vpack.c.bf16 %v1244_v32, %v1243_v30 }
 0x144   :  { %v832_v35 = vpop.f32.mrb[24].mxu0  ;;  %v1032_v36 = vpop.f32.mrb[24].mxu1 }
 0x145   :  { %2358 = vst [vmem:[%s3261_s3 + $0x28] sm:$0xff] %v2132_v33   ;;  %2383 = vst [vmem:[%s3261_s3 + $0xf0] sm:$0xff] %v2257_v34   ;;  %v833_v37 = vadd.f32 %v3006_v53, %v832_v35  ;;  %v1033_v38 = vadd.f32 %v3006_v53, %v1032_v36  ;;  %v834_v39 = vpop.f32.mrb[25].mxu0  ;;  %v1034_v40 = vpop.f32.mrb[25].mxu1 }
 0x146   :  { %v835_v41 = vpop.f32.mrb[26].mxu0  ;;  %v1035_v42 = vpop.f32.mrb[26].mxu1 }
 0x147   :  { %v836_v43 = vadd.f32 %v3006_v53, %v835_v41  ;;  %v1036_v44 = vadd.f32 %v3006_v53, %v1035_v42  ;;  %v837_v45 = vpop.f32.mrb[27].mxu0  ;;  %v1037_v46 = vpop.f32.mrb[27].mxu1  ;;  %v1195_v47 = vmax.f32 %v833_v37, 0.0  ;;  %v1245_v48 = vmax.f32 %v1033_v38, 0.0 }
 0x149   :  { %v1196_v49 = vmax.f32 %v836_v43, 0.0  ;;  %v1246_v50 = vmax.f32 %v1036_v44, 0.0 }
 0x14b   :  { %v2137_v51 = vpack.c.bf16 %v1196_v49, %v1195_v47  ;;  %v2262_v52 = vpack.c.bf16 %v1246_v50, %v1245_v48 }
 0x14c   :  { %v840_v54 = vpop.f32.mrb[28].mxu0  ;;  %v1040_v55 = vpop.f32.mrb[28].mxu1 }
 0x14d   :  { %2359 = vst [vmem:[%s3261_s3 + $0x30] sm:$0xff] %v2137_v51   ;;  %2384 = vst [vmem:[%s3261_s3 + $0xf8] sm:$0xff] %v2262_v52   ;;  %v841_v56 = vadd.f32 %v3006_v53, %v840_v54  ;;  %v1041_v57 = vadd.f32 %v3006_v53, %v1040_v55  ;;  %v842_v58 = vpop.f32.mrb[29].mxu0  ;;  %v1042_v59 = vpop.f32.mrb[29].mxu1 }
 0x14e   :  { %v843_v60 = vpop.f32.mrb[30].mxu0  ;;  %v1043_v61 = vpop.f32.mrb[30].mxu1 }
 0x14f   :  { %v844_v62 = vadd.f32 %v3006_v53, %v843_v60  ;;  %v1044_v63 = vadd.f32 %v3006_v53, %v1043_v61  ;;  %v845_v0 = vpop.f32.mrb[31].mxu0  ;;  %v1045_v1 = vpop.f32.mrb[31].mxu1  ;;  %v1197_v2 = vmax.f32 %v841_v56, 0.0  ;;  %v1247_v3 = vmax.f32 %v1041_v57, 0.0 }
 0x151   :  { %v1198_v4 = vmax.f32 %v844_v62, 0.0  ;;  %v1248_v5 = vmax.f32 %v1044_v63, 0.0 }
 0x153   :  { %v2142_v6 = vpack.c.bf16 %v1198_v4, %v1197_v2  ;;  %v2267_v7 = vpack.c.bf16 %v1248_v5, %v1247_v3 }
 0x154   :  { %v848_v8 = vpop.f32.mrb[32].mxu0  ;;  %v1048_v9 = vpop.f32.mrb[32].mxu1 }
 0x155   :  { %2360 = vst [vmem:[%s3261_s3 + $0x38] sm:$0xff] %v2142_v6   ;;  %2385 = vst [vmem:[%s3261_s3 + $0x100] sm:$0xff] %v2267_v7   ;;  %v849_v10 = vadd.f32 %v3006_v53, %v848_v8  ;;  %v1049_v11 = vadd.f32 %v3006_v53, %v1048_v9  ;;  %v850_v12 = vpop.f32.mrb[33].mxu0  ;;  %v1050_v13 = vpop.f32.mrb[33].mxu1 }
 0x156   :  { %v851_v14 = vpop.f32.mrb[34].mxu0  ;;  %v1051_v15 = vpop.f32.mrb[34].mxu1 }
 0x157   :  { %v852_v16 = vadd.f32 %v3006_v53, %v851_v14  ;;  %v1052_v17 = vadd.f32 %v3006_v53, %v1051_v15  ;;  %v853_v18 = vpop.f32.mrb[35].mxu0  ;;  %v1053_v19 = vpop.f32.mrb[35].mxu1  ;;  %v1199_v20 = vmax.f32 %v849_v10, 0.0  ;;  %v1249_v21 = vmax.f32 %v1049_v11, 0.0 }
 0x159   :  { %v1200_v22 = vmax.f32 %v852_v16, 0.0  ;;  %v1250_v23 = vmax.f32 %v1052_v17, 0.0 }
 0x15b   :  { %v2147_v24 = vpack.c.bf16 %v1200_v22, %v1199_v20  ;;  %v2272_v25 = vpack.c.bf16 %v1250_v23, %v1249_v21 }
 0x15c   :  { %v856_v26 = vpop.f32.mrb[36].mxu0  ;;  %v1056_v27 = vpop.f32.mrb[36].mxu1 }
 0x15d   :  { %2361 = vst [vmem:[%s3261_s3 + $0x40] sm:$0xff] %v2147_v24   ;;  %2386 = vst [vmem:[%s3261_s3 + $0x108] sm:$0xff] %v2272_v25   ;;  %v857_v28 = vadd.f32 %v3006_v53, %v856_v26  ;;  %v1057_v29 = vadd.f32 %v3006_v53, %v1056_v27  ;;  %v858_v30 = vpop.f32.mrb[37].mxu0  ;;  %v1058_v31 = vpop.f32.mrb[37].mxu1 }
 0x15e   :  { %v859_v32 = vpop.f32.mrb[38].mxu0  ;;  %v1059_v33 = vpop.f32.mrb[38].mxu1 }
 0x15f   :  { %v860_v34 = vadd.f32 %v3006_v53, %v859_v32  ;;  %v1060_v35 = vadd.f32 %v3006_v53, %v1059_v33  ;;  %v861_v36 = vpop.f32.mrb[39].mxu0  ;;  %v1061_v37 = vpop.f32.mrb[39].mxu1  ;;  %v1201_v38 = vmax.f32 %v857_v28, 0.0  ;;  %v1251_v39 = vmax.f32 %v1057_v29, 0.0 }
 0x161   :  { %v1202_v40 = vmax.f32 %v860_v34, 0.0  ;;  %v1252_v41 = vmax.f32 %v1060_v35, 0.0 }
 0x163   :  { %v2152_v42 = vpack.c.bf16 %v1202_v40, %v1201_v38  ;;  %v2277_v43 = vpack.c.bf16 %v1252_v41, %v1251_v39 }
 0x164   :  { %v864_v44 = vpop.f32.mrb[40].mxu0  ;;  %v1064_v45 = vpop.f32.mrb[40].mxu1 }
 0x165   :  { %2362 = vst [vmem:[%s3261_s3 + $0x48] sm:$0xff] %v2152_v42   ;;  %2387 = vst [vmem:[%s3261_s3 + $0x110] sm:$0xff] %v2277_v43   ;;  %v865_v46 = vadd.f32 %v3006_v53, %v864_v44  ;;  %v1065_v47 = vadd.f32 %v3006_v53, %v1064_v45  ;;  %v866_v48 = vpop.f32.mrb[41].mxu0  ;;  %v1066_v49 = vpop.f32.mrb[41].mxu1 }
 0x166   :  { %v867_v50 = vpop.f32.mrb[42].mxu0  ;;  %v1067_v51 = vpop.f32.mrb[42].mxu1 }
 0x167   :  { %v868_v52 = vadd.f32 %v3006_v53, %v867_v50  ;;  %v1068_v54 = vadd.f32 %v3006_v53, %v1067_v51  ;;  %v869_v55 = vpop.f32.mrb[43].mxu0  ;;  %v1069_v56 = vpop.f32.mrb[43].mxu1  ;;  %v1203_v57 = vmax.f32 %v865_v46, 0.0  ;;  %v1253_v58 = vmax.f32 %v1065_v47, 0.0 }
 0x169   :  { %v1204_v59 = vmax.f32 %v868_v52, 0.0  ;;  %v1254_v60 = vmax.f32 %v1068_v54, 0.0 }
 0x16b   :  { %v2157_v61 = vpack.c.bf16 %v1204_v59, %v1203_v57  ;;  %v2282_v62 = vpack.c.bf16 %v1254_v60, %v1253_v58 }
 0x16c   :  { %v872_v63 = vpop.f32.mrb[44].mxu0  ;;  %v1072_v0 = vpop.f32.mrb[44].mxu1 }
 0x16d   :  { %2363 = vst [vmem:[%s3261_s3 + $0x50] sm:$0xff] %v2157_v61   ;;  %2388 = vst [vmem:[%s3261_s3 + $0x118] sm:$0xff] %v2282_v62   ;;  %v873_v1 = vadd.f32 %v3006_v53, %v872_v63  ;;  %v1073_v2 = vadd.f32 %v3006_v53, %v1072_v0  ;;  %v874_v3 = vpop.f32.mrb[45].mxu0  ;;  %v1074_v4 = vpop.f32.mrb[45].mxu1 }
 0x16e   :  { %v875_v5 = vpop.f32.mrb[46].mxu0  ;;  %v1075_v6 = vpop.f32.mrb[46].mxu1 }
 0x16f   :  { %v876_v7 = vadd.f32 %v3006_v53, %v875_v5  ;;  %v1076_v8 = vadd.f32 %v3006_v53, %v1075_v6  ;;  %v877_v9 = vpop.f32.mrb[47].mxu0  ;;  %v1077_v10 = vpop.f32.mrb[47].mxu1  ;;  %v1205_v11 = vmax.f32 %v873_v1, 0.0  ;;  %v1255_v12 = vmax.f32 %v1073_v2, 0.0 }
 0x171   :  { %v1206_v13 = vmax.f32 %v876_v7, 0.0  ;;  %v1256_v14 = vmax.f32 %v1076_v8, 0.0 }
 0x173   :  { %v2162_v15 = vpack.c.bf16 %v1206_v13, %v1205_v11  ;;  %v2287_v16 = vpack.c.bf16 %v1256_v14, %v1255_v12 }
 0x174   :  { %v880_v17 = vpop.f32.mrb[48].mxu0  ;;  %v1080_v18 = vpop.f32.mrb[48].mxu1 }
 0x175   :  { %2364 = vst [vmem:[%s3261_s3 + $0x58] sm:$0xff] %v2162_v15   ;;  %2389 = vst [vmem:[%s3261_s3 + $0x120] sm:$0xff] %v2287_v16   ;;  %v881_v19 = vadd.f32 %v3006_v53, %v880_v17  ;;  %v1081_v20 = vadd.f32 %v3006_v53, %v1080_v18  ;;  %v882_v21 = vpop.f32.mrb[49].mxu0  ;;  %v1082_v22 = vpop.f32.mrb[49].mxu1 }
 0x176   :  { %v883_v23 = vpop.f32.mrb[50].mxu0  ;;  %v1083_v24 = vpop.f32.mrb[50].mxu1 }
 0x177   :  { %v884_v25 = vadd.f32 %v3006_v53, %v883_v23  ;;  %v1084_v26 = vadd.f32 %v3006_v53, %v1083_v24  ;;  %v885_v27 = vpop.f32.mrb[51].mxu0  ;;  %v1085_v28 = vpop.f32.mrb[51].mxu1  ;;  %v1207_v29 = vmax.f32 %v881_v19, 0.0  ;;  %v1257_v30 = vmax.f32 %v1081_v20, 0.0 }
 0x179   :  { %v1208_v31 = vmax.f32 %v884_v25, 0.0  ;;  %v1258_v32 = vmax.f32 %v1084_v26, 0.0 }
 0x17b   :  { %v2167_v33 = vpack.c.bf16 %v1208_v31, %v1207_v29  ;;  %v2292_v34 = vpack.c.bf16 %v1258_v32, %v1257_v30 }
 0x17c   :  { %v888_v35 = vpop.f32.mrb[52].mxu0  ;;  %v1088_v36 = vpop.f32.mrb[52].mxu1 }
 0x17d   :  { %2365 = vst [vmem:[%s3261_s3 + $0x60] sm:$0xff] %v2167_v33   ;;  %2390 = vst [vmem:[%s3261_s3 + $0x128] sm:$0xff] %v2292_v34   ;;  %v889_v37 = vadd.f32 %v3006_v53, %v888_v35  ;;  %v1089_v38 = vadd.f32 %v3006_v53, %v1088_v36  ;;  %v890_v39 = vpop.f32.mrb[53].mxu0  ;;  %v1090_v40 = vpop.f32.mrb[53].mxu1 }
 0x17e   :  { %v891_v41 = vpop.f32.mrb[54].mxu0  ;;  %v1091_v42 = vpop.f32.mrb[54].mxu1 }
 0x17f   :  { %v892_v43 = vadd.f32 %v3006_v53, %v891_v41  ;;  %v1092_v44 = vadd.f32 %v3006_v53, %v1091_v42  ;;  %v893_v45 = vpop.f32.mrb[55].mxu0  ;;  %v1093_v46 = vpop.f32.mrb[55].mxu1  ;;  %v1209_v47 = vmax.f32 %v889_v37, 0.0  ;;  %v1259_v48 = vmax.f32 %v1089_v38, 0.0 }
 0x181   :  { %v1210_v49 = vmax.f32 %v892_v43, 0.0  ;;  %v1260_v50 = vmax.f32 %v1092_v44, 0.0 }
 0x183   :  { %v2172_v51 = vpack.c.bf16 %v1210_v49, %v1209_v47  ;;  %v2297_v52 = vpack.c.bf16 %v1260_v50, %v1259_v48 }
 0x184   :  { %v896_v54 = vpop.f32.mrb[56].mxu0  ;;  %v1096_v55 = vpop.f32.mrb[56].mxu1 }
 0x185   :  { %2366 = vst [vmem:[%s3261_s3 + $0x68] sm:$0xff] %v2172_v51   ;;  %2391 = vst [vmem:[%s3261_s3 + $0x130] sm:$0xff] %v2297_v52   ;;  %v897_v56 = vadd.f32 %v3006_v53, %v896_v54  ;;  %v1097_v57 = vadd.f32 %v3006_v53, %v1096_v55  ;;  %v898_v58 = vpop.f32.mrb[57].mxu0  ;;  %v1098_v59 = vpop.f32.mrb[57].mxu1 }
 0x186   :  { %v899_v60 = vpop.f32.mrb[58].mxu0  ;;  %v1099_v61 = vpop.f32.mrb[58].mxu1 }
 0x187   :  { %v900_v62 = vadd.f32 %v3006_v53, %v899_v60  ;;  %v1100_v63 = vadd.f32 %v3006_v53, %v1099_v61  ;;  %v901_v0 = vpop.f32.mrb[59].mxu0  ;;  %v1101_v1 = vpop.f32.mrb[59].mxu1  ;;  %v1211_v2 = vmax.f32 %v897_v56, 0.0  ;;  %v1261_v3 = vmax.f32 %v1097_v57, 0.0 }
 0x189   :  { %v1212_v4 = vmax.f32 %v900_v62, 0.0  ;;  %v1262_v5 = vmax.f32 %v1100_v63, 0.0 }
 0x18b   :  { %v2177_v6 = vpack.c.bf16 %v1212_v4, %v1211_v2  ;;  %v2302_v7 = vpack.c.bf16 %v1262_v5, %v1261_v3 }
 0x18c   :  { %v904_v8 = vpop.f32.mrb[60].mxu0  ;;  %v1104_v9 = vpop.f32.mrb[60].mxu1 }
 0x18d   :  { %2367 = vst [vmem:[%s3261_s3 + $0x70] sm:$0xff] %v2177_v6   ;;  %2392 = vst [vmem:[%s3261_s3 + $0x138] sm:$0xff] %v2302_v7   ;;  %v905_v10 = vadd.f32 %v3006_v53, %v904_v8  ;;  %v1105_v11 = vadd.f32 %v3006_v53, %v1104_v9  ;;  %v906_v12 = vpop.f32.mrb[61].mxu0  ;;  %v1106_v13 = vpop.f32.mrb[61].mxu1 }
 0x18e   :  { %v907_v14 = vpop.f32.mrb[62].mxu0  ;;  %v1107_v15 = vpop.f32.mrb[62].mxu1 }
 0x18f   :  { %v908_v16 = vadd.f32 %v3006_v53, %v907_v14  ;;  %v1108_v17 = vadd.f32 %v3006_v53, %v1107_v15  ;;  %v909_v18 = vpop.f32.mrb[63].mxu0  ;;  %v1109_v19 = vpop.f32.mrb[63].mxu1  ;;  %v1213_v20 = vmax.f32 %v905_v10, 0.0  ;;  %v1263_v21 = vmax.f32 %v1105_v11, 0.0 }
 0x191   :  { %v1214_v22 = vmax.f32 %v908_v16, 0.0  ;;  %v1264_v23 = vmax.f32 %v1108_v17, 0.0 }
 0x193   :  { %v2182_v24 = vpack.c.bf16 %v1214_v22, %v1213_v20  ;;  %v2307_v25 = vpack.c.bf16 %v1264_v23, %v1263_v21 }
 0x194   :  { %v912_v26 = vpop.f32.mrb[64].mxu0  ;;  %v1112_v27 = vpop.f32.mrb[64].mxu1 }
 0x195   :  { %2368 = vst [vmem:[%s3261_s3 + $0x78] sm:$0xff] %v2182_v24   ;;  %2393 = vst [vmem:[%s3261_s3 + $0x140] sm:$0xff] %v2307_v25   ;;  %v913_v28 = vadd.f32 %v3006_v53, %v912_v26  ;;  %v1113_v29 = vadd.f32 %v3006_v53, %v1112_v27  ;;  %v914_v30 = vpop.f32.mrb[65].mxu0  ;;  %v1114_v31 = vpop.f32.mrb[65].mxu1 }
 0x196   :  { %v915_v32 = vpop.f32.mrb[66].mxu0  ;;  %v1115_v33 = vpop.f32.mrb[66].mxu1 }
 0x197   :  { %v916_v34 = vadd.f32 %v3006_v53, %v915_v32  ;;  %v1116_v35 = vadd.f32 %v3006_v53, %v1115_v33  ;;  %v917_v36 = vpop.f32.mrb[67].mxu0  ;;  %v1117_v37 = vpop.f32.mrb[67].mxu1  ;;  %v1215_v38 = vmax.f32 %v913_v28, 0.0  ;;  %v1265_v39 = vmax.f32 %v1113_v29, 0.0 }
 0x199   :  { %v1216_v40 = vmax.f32 %v916_v34, 0.0  ;;  %v1266_v41 = vmax.f32 %v1116_v35, 0.0 }
 0x19b   :  { %v2187_v42 = vpack.c.bf16 %v1216_v40, %v1215_v38  ;;  %v2312_v43 = vpack.c.bf16 %v1266_v41, %v1265_v39 }
 0x19c   :  { %v920_v44 = vpop.f32.mrb[68].mxu0  ;;  %v1120_v45 = vpop.f32.mrb[68].mxu1 }
 0x19d   :  { %2369 = vst [vmem:[%s3261_s3 + $0x80] sm:$0xff] %v2187_v42   ;;  %2394 = vst [vmem:[%s3261_s3 + $0x148] sm:$0xff] %v2312_v43   ;;  %v921_v46 = vadd.f32 %v3006_v53, %v920_v44  ;;  %v1121_v47 = vadd.f32 %v3006_v53, %v1120_v45  ;;  %v922_v48 = vpop.f32.mrb[69].mxu0  ;;  %v1122_v49 = vpop.f32.mrb[69].mxu1 }
 0x19e   :  { %v923_v50 = vpop.f32.mrb[70].mxu0  ;;  %v1123_v51 = vpop.f32.mrb[70].mxu1 }
 0x19f   :  { %v924_v52 = vadd.f32 %v3006_v53, %v923_v50  ;;  %v1124_v54 = vadd.f32 %v3006_v53, %v1123_v51  ;;  %v925_v55 = vpop.f32.mrb[71].mxu0  ;;  %v1125_v56 = vpop.f32.mrb[71].mxu1  ;;  %v1217_v57 = vmax.f32 %v921_v46, 0.0  ;;  %v1267_v58 = vmax.f32 %v1121_v47, 0.0 }
 0x1a1   :  { %v1218_v59 = vmax.f32 %v924_v52, 0.0  ;;  %v1268_v60 = vmax.f32 %v1124_v54, 0.0 }
 0x1a3   :  { %v2192_v61 = vpack.c.bf16 %v1218_v59, %v1217_v57  ;;  %v2317_v62 = vpack.c.bf16 %v1268_v60, %v1267_v58 }
 0x1a4   :  { %v928_v63 = vpop.f32.mrb[72].mxu0  ;;  %v1128_v0 = vpop.f32.mrb[72].mxu1 }
 0x1a5   :  { %2370 = vst [vmem:[%s3261_s3 + $0x88] sm:$0xff] %v2192_v61   ;;  %2395 = vst [vmem:[%s3261_s3 + $0x150] sm:$0xff] %v2317_v62   ;;  %v929_v1 = vadd.f32 %v3006_v53, %v928_v63  ;;  %v1129_v2 = vadd.f32 %v3006_v53, %v1128_v0  ;;  %v930_v3 = vpop.f32.mrb[73].mxu0  ;;  %v1130_v4 = vpop.f32.mrb[73].mxu1 }
 0x1a6   :  { %v931_v5 = vpop.f32.mrb[74].mxu0  ;;  %v1131_v6 = vpop.f32.mrb[74].mxu1 }
 0x1a7   :  { %v932_v7 = vadd.f32 %v3006_v53, %v931_v5  ;;  %v1132_v8 = vadd.f32 %v3006_v53, %v1131_v6  ;;  %v933_v9 = vpop.f32.mrb[75].mxu0  ;;  %v1133_v10 = vpop.f32.mrb[75].mxu1  ;;  %v1219_v11 = vmax.f32 %v929_v1, 0.0  ;;  %v1269_v12 = vmax.f32 %v1129_v2, 0.0 }
 0x1a9   :  { %v1220_v13 = vmax.f32 %v932_v7, 0.0  ;;  %v1270_v14 = vmax.f32 %v1132_v8, 0.0 }
 0x1ab   :  { %v2197_v15 = vpack.c.bf16 %v1220_v13, %v1219_v11  ;;  %v2322_v16 = vpack.c.bf16 %v1270_v14, %v1269_v12 }
 0x1ac   :  { %v936_v17 = vpop.f32.mrb[76].mxu0  ;;  %v1136_v18 = vpop.f32.mrb[76].mxu1 }
 0x1ad   :  { %2371 = vst [vmem:[%s3261_s3 + $0x90] sm:$0xff] %v2197_v15   ;;  %2396 = vst [vmem:[%s3261_s3 + $0x158] sm:$0xff] %v2322_v16   ;;  %v937_v19 = vadd.f32 %v3006_v53, %v936_v17  ;;  %v1137_v20 = vadd.f32 %v3006_v53, %v1136_v18  ;;  %v938_v21 = vpop.f32.mrb[77].mxu0  ;;  %v1138_v22 = vpop.f32.mrb[77].mxu1 }
 0x1ae   :  { %v939_v23 = vpop.f32.mrb[78].mxu0  ;;  %v1139_v24 = vpop.f32.mrb[78].mxu1 }
 0x1af   :  { %v940_v25 = vadd.f32 %v3006_v53, %v939_v23  ;;  %v1140_v26 = vadd.f32 %v3006_v53, %v1139_v24  ;;  %v941_v27 = vpop.f32.mrb[79].mxu0  ;;  %v1141_v28 = vpop.f32.mrb[79].mxu1  ;;  %v1221_v29 = vmax.f32 %v937_v19, 0.0  ;;  %v1271_v30 = vmax.f32 %v1137_v20, 0.0 }
 0x1b1   :  { %v1222_v31 = vmax.f32 %v940_v25, 0.0  ;;  %v1272_v32 = vmax.f32 %v1140_v26, 0.0 }
 0x1b3   :  { %v2202_v33 = vpack.c.bf16 %v1222_v31, %v1221_v29  ;;  %v2327_v34 = vpack.c.bf16 %v1272_v32, %v1271_v30 }
 0x1b4   :  { %v944_v35 = vpop.f32.mrb[80].mxu0  ;;  %v1144_v36 = vpop.f32.mrb[80].mxu1 }
 0x1b5   :  { %2372 = vst [vmem:[%s3261_s3 + $0x98] sm:$0xff] %v2202_v33   ;;  %2397 = vst [vmem:[%s3261_s3 + $0x160] sm:$0xff] %v2327_v34   ;;  %v945_v37 = vadd.f32 %v3006_v53, %v944_v35  ;;  %v1145_v38 = vadd.f32 %v3006_v53, %v1144_v36  ;;  %v946_v39 = vpop.f32.mrb[81].mxu0  ;;  %v1146_v40 = vpop.f32.mrb[81].mxu1 }
 0x1b6   :  { %v947_v41 = vpop.f32.mrb[82].mxu0  ;;  %v1147_v42 = vpop.f32.mrb[82].mxu1 }
 0x1b7   :  { %v948_v43 = vadd.f32 %v3006_v53, %v947_v41  ;;  %v1148_v44 = vadd.f32 %v3006_v53, %v1147_v42  ;;  %v949_v45 = vpop.f32.mrb[83].mxu0  ;;  %v1149_v46 = vpop.f32.mrb[83].mxu1  ;;  %v1223_v47 = vmax.f32 %v945_v37, 0.0  ;;  %v1273_v48 = vmax.f32 %v1145_v38, 0.0 }
 0x1b9   :  { %v1224_v49 = vmax.f32 %v948_v43, 0.0  ;;  %v1274_v50 = vmax.f32 %v1148_v44, 0.0 }
 0x1bb   :  { %v2207_v51 = vpack.c.bf16 %v1224_v49, %v1223_v47  ;;  %v2332_v52 = vpack.c.bf16 %v1274_v50, %v1273_v48 }
 0x1bc   :  { %v952_v54 = vpop.f32.mrb[84].mxu0  ;;  %v1152_v55 = vpop.f32.mrb[84].mxu1 }
 0x1bd   :  { %2373 = vst [vmem:[%s3261_s3 + $0xa0] sm:$0xff] %v2207_v51   ;;  %2398 = vst [vmem:[%s3261_s3 + $0x168] sm:$0xff] %v2332_v52   ;;  %v953_v56 = vadd.f32 %v3006_v53, %v952_v54  ;;  %v1153_v57 = vadd.f32 %v3006_v53, %v1152_v55  ;;  %v954_v58 = vpop.f32.mrb[85].mxu0  ;;  %v1154_v59 = vpop.f32.mrb[85].mxu1 }
 0x1be   :  { %v955_v60 = vpop.f32.mrb[86].mxu0  ;;  %v1155_v61 = vpop.f32.mrb[86].mxu1 }
 0x1bf   :  { %v956_v62 = vadd.f32 %v3006_v53, %v955_v60  ;;  %v1156_v63 = vadd.f32 %v3006_v53, %v1155_v61  ;;  %v957_v0 = vpop.f32.mrb[87].mxu0  ;;  %v1157_v1 = vpop.f32.mrb[87].mxu1  ;;  %v1225_v2 = vmax.f32 %v953_v56, 0.0  ;;  %v1275_v3 = vmax.f32 %v1153_v57, 0.0 }
 0x1c1   :  { %v1226_v4 = vmax.f32 %v956_v62, 0.0  ;;  %v1276_v5 = vmax.f32 %v1156_v63, 0.0 }
 0x1c3   :  { %v2212_v6 = vpack.c.bf16 %v1226_v4, %v1225_v2  ;;  %v2337_v7 = vpack.c.bf16 %v1276_v5, %v1275_v3 }
 0x1c4   :  { %v960_v8 = vpop.f32.mrb[88].mxu0  ;;  %v1160_v9 = vpop.f32.mrb[88].mxu1 }
 0x1c5   :  { %2374 = vst [vmem:[%s3261_s3 + $0xa8] sm:$0xff] %v2212_v6   ;;  %2399 = vst [vmem:[%s3261_s3 + $0x170] sm:$0xff] %v2337_v7   ;;  %v961_v10 = vadd.f32 %v3006_v53, %v960_v8  ;;  %v1161_v11 = vadd.f32 %v3006_v53, %v1160_v9  ;;  %v962_v12 = vpop.f32.mrb[89].mxu0  ;;  %v1162_v13 = vpop.f32.mrb[89].mxu1 }
 0x1c6   :  { %v963_v14 = vpop.f32.mrb[90].mxu0  ;;  %v1163_v15 = vpop.f32.mrb[90].mxu1 }
 0x1c7   :  { %v964_v16 = vadd.f32 %v3006_v53, %v963_v14  ;;  %v1164_v17 = vadd.f32 %v3006_v53, %v1163_v15  ;;  %v965_v18 = vpop.f32.mrb[91].mxu0  ;;  %v1165_v19 = vpop.f32.mrb[91].mxu1  ;;  %v1227_v20 = vmax.f32 %v961_v10, 0.0  ;;  %v1277_v21 = vmax.f32 %v1161_v11, 0.0 }
 0x1c9   :  { %v1228_v22 = vmax.f32 %v964_v16, 0.0  ;;  %v1278_v23 = vmax.f32 %v1164_v17, 0.0 }
 0x1cb   :  { %v2217_v24 = vpack.c.bf16 %v1228_v22, %v1227_v20  ;;  %v2342_v25 = vpack.c.bf16 %v1278_v23, %v1277_v21 }
 0x1cc   :  { %v968_v26 = vpop.f32.mrb[92].mxu0  ;;  %v1168_v27 = vpop.f32.mrb[92].mxu1 }
 0x1cd   :  { %2375 = vst [vmem:[%s3261_s3 + $0xb0] sm:$0xff] %v2217_v24   ;;  %2400 = vst [vmem:[%s3261_s3 + $0x178] sm:$0xff] %v2342_v25   ;;  %v969_v28 = vadd.f32 %v3006_v53, %v968_v26  ;;  %v1169_v29 = vadd.f32 %v3006_v53, %v1168_v27  ;;  %v970_v30 = vpop.f32.mrb[93].mxu0  ;;  %v1170_v31 = vpop.f32.mrb[93].mxu1 }
 0x1ce   :  { %v971_v32 = vpop.f32.mrb[94].mxu0  ;;  %v1171_v33 = vpop.f32.mrb[94].mxu1 }
 0x1cf   :  { %v972_v34 = vadd.f32 %v3006_v53, %v971_v32  ;;  %v1172_v35 = vadd.f32 %v3006_v53, %v1171_v33  ;;  %v973_v36 = vpop.f32.mrb[95].mxu0  ;;  %v1173_v37 = vpop.f32.mrb[95].mxu1  ;;  %v1229_v38 = vmax.f32 %v969_v28, 0.0  ;;  %v1279_v39 = vmax.f32 %v1169_v29, 0.0 }
 0x1d1   :  { %v1230_v40 = vmax.f32 %v972_v34, 0.0  ;;  %v1280_v41 = vmax.f32 %v1172_v35, 0.0 }
 0x1d3   :  { %v2222_v42 = vpack.c.bf16 %v1230_v40, %v1229_v38  ;;  %v2347_v43 = vpack.c.bf16 %v1280_v41, %v1279_v39 }
 0x1d4   :  { %v976_v44 = vpop.f32.mrb[96].mxu0  ;;  %v1176_v45 = vpop.f32.mrb[96].mxu1 }
 0x1d5   :  { %2376 = vst [vmem:[%s3261_s3 + $0xb8] sm:$0xff] %v2222_v42   ;;  %2401 = vst [vmem:[%s3261_s3 + $0x180] sm:$0xff] %v2347_v43   ;;  %v977_v46 = vadd.f32 %v3006_v53, %v976_v44  ;;  %v1177_v47 = vadd.f32 %v3006_v53, %v1176_v45  ;;  %v978_v48 = vpop.f32.mrb[97].mxu0  ;;  %v1178_v49 = vpop.f32.mrb[97].mxu1 }
 0x1d6   :  { %v979_v50 = vpop.f32.mrb[98].mxu0  ;;  %v1179_v51 = vpop.f32.mrb[98].mxu1 }
 0x1d7   :  { %v980_v52 = vadd.f32 %v3006_v53, %v979_v50  ;;  %v1180_v54 = vadd.f32 %v3006_v53, %v1179_v51  ;;  %v981_v55 = vpop.f32.mrb[99].mxu0  ;;  %v1181_v56 = vpop.f32.mrb[99].mxu1  ;;  %v1231_v57 = vmax.f32 %v977_v46, 0.0  ;;  %v1281_v58 = vmax.f32 %v1177_v47, 0.0 }
 0x1d9   :  { %v1232_v59 = vmax.f32 %v980_v52, 0.0  ;;  %v1282_v60 = vmax.f32 %v1180_v54, 0.0 }
 0x1db   :  { %v2227_v61 = vpack.c.bf16 %v1232_v59, %v1231_v57  ;;  %v2352_v62 = vpack.c.bf16 %v1282_v60, %v1281_v58 }
 0x1dd   :  { %2377 = vst [vmem:[%s3261_s3 + $0xc0] sm:$0xff] %v2227_v61   ;;  %2402 = vst [vmem:[%s3261_s3 + $0x188] sm:$0xff] %v2352_v62  }

// kernel: forward.7
= control target key start
LH: loop header
LB: loop body
LE: loop exit
PB: predicated region body
PF: predicated region fallthrough
CT: control target
= control target key end

     0   :  { %v440_v47 = vmov 1983009808   ;;  %v92_v49 = vlaneseq  ;;  %s673_s0 = inlined_call_operand.vmem [shape: f32[2,512], index: 0, kind: input, shape index: {}]   ;;  %s674_s1 = inlined_call_operand.vmem [shape: f32[512,7], index: 1, kind: input, shape index: {}]   ;;  %s675_s2 = inlined_call_operand.vmem [shape: f32[1,7], index: 2, kind: input, shape index: {}]   ;;  %s676_s3 = inlined_call_operand.hbm [shape: f32[2,6], index: 3, kind: output, shape index: {}]  }
   0x1   :  { %v32_v0 = vld [vmem:[%s674_s1 + $0x80] sm:$0xff]  ;;  %v33_v1 = vld [vmem:[%s674_s1 + $0x88] sm:$0xff]  ;;  %v34_v11 = vld [vmem:[%s674_s1 + $0x90] sm:$0xff]  ;;  %v90_v48 = vunpack.c.l.s4 %v440_v47 }
   0x2   :  { %v16_v2 = vld [vmem:[%s674_s1] sm:$0xff]  ;;  %v347_v3 = vpack.c.bf16 %v33_v1, %v32_v0  ;;  %v17_v4 = vld [vmem:[%s674_s1 + $0x8] sm:$0xff]  ;;  %v35_v13 = vld [vmem:[%s674_s1 + $0x98] sm:$0xff]  ;;  %v93_v0 = vshrl.u32 %v92_v49, 7 }
   0x3   :  { %v64_v5 = vld [vmem:[%s674_s1 + $0x180] sm:$0xff]  ;;  %v65_v6 = vld [vmem:[%s674_s1 + $0x188] sm:$0xff]  ;;  %v349_v7 = vpack.c.bf16 %v17_v4, %v16_v2  ;;  %v18_v14 = vld [vmem:[%s674_s1 + $0x10] sm:$0xff]  ;;  %v351_v16 = vpack.c.bf16 %v35_v13, %v34_v11  ;;  %v91_v63 = vunpack.c.0.s8 %v90_v48 }
   0x4   :  { %v379_v8 = vpack.c.bf16 %v65_v6, %v64_v5  ;;  %v48_v9 = vld [vmem:[%s674_s1 + $0x100] sm:$0xff]  ;;  %v49_v10 = vld [vmem:[%s674_s1 + $0x108] sm:$0xff]  ;;  %348 = vmatprep.subr.bf16.mxu0 %v347_v3  ;;  %v19_v15 = vld [vmem:[%s674_s1 + $0x18] sm:$0xff] }
   0x5   :  { %v381_v12 = vpack.c.bf16 %v49_v10, %v48_v9  ;;  %350 = vmatpush3.bf16.msra.mxu0 %v349_v7  ;;  %v353_v17 = vpack.c.bf16 %v19_v15, %v18_v14  ;;  %v66_v18 = vld [vmem:[%s674_s1 + $0x190] sm:$0xff]  ;;  %v67_v19 = vld [vmem:[%s674_s1 + $0x198] sm:$0xff]  ;;  %v36_v23 = vld [vmem:[%s674_s1 + $0xa0] sm:$0xff]  ;;  %v94_v13 = vsub.s32 %v91_v63, %v93_v0 }
   0x6   :  { %380 = vmatprep.subr.bf16.mxu1 %v379_v8  ;;  %v50_v20 = vld [vmem:[%s674_s1 + $0x110] sm:$0xff]  ;;  %v383_v21 = vpack.c.bf16 %v67_v19, %v66_v18  ;;  %v51_v22 = vld [vmem:[%s674_s1 + $0x118] sm:$0xff]  ;;  %v37_v24 = vld [vmem:[%s674_s1 + $0xa8] sm:$0xff]  ;;  %352 = vmatprep.subr.bf16.mxu0 %v351_v16 }
   0x7   :  { %382 = vmatpush3.bf16.msra.mxu1 %v381_v12  ;;  %v385_v25 = vpack.c.bf16 %v51_v22, %v50_v20  ;;  %v355_v26 = vpack.c.bf16 %v37_v24, %v36_v23  ;;  %v20_v27 = vld [vmem:[%s674_s1 + $0x20] sm:$0xff]  ;;  %v21_v28 = vld [vmem:[%s674_s1 + $0x28] sm:$0xff]  ;;  %v38_v35 = vld [vmem:[%s674_s1 + $0xb0] sm:$0xff] }
   0x8   :  { %v68_v29 = vld [vmem:[%s674_s1 + $0x1a0] sm:$0xff]  ;;  %384 = vmatprep.subr.bf16.mxu1 %v383_v21  ;;  %v69_v30 = vld [vmem:[%s674_s1 + $0x1a8] sm:$0xff]  ;;  %v357_v33 = vpack.c.bf16 %v21_v28, %v20_v27  ;;  %v39_v36 = vld [vmem:[%s674_s1 + $0xb8] sm:$0xff] }
   0x9   :  { %v52_v31 = vld [vmem:[%s674_s1 + $0x120] sm:$0xff]  ;;  %v53_v32 = vld [vmem:[%s674_s1 + $0x128] sm:$0xff]  ;;  %354 = vmatpush3.bf16.msra.mxu0 %v353_v17  ;;  %v387_v34 = vpack.c.bf16 %v69_v30, %v68_v29  ;;  %v22_v37 = vld [vmem:[%s674_s1 + $0x30] sm:$0xff]  ;;  %v359_v39 = vpack.c.bf16 %v39_v36, %v38_v35 }
   0xa   :  { %356 = vmatprep.subr.bf16.mxu0 %v355_v26  ;;  %v389_v38 = vpack.c.bf16 %v53_v32, %v52_v31  ;;  %v23_v40 = vld [vmem:[%s674_s1 + $0x38] sm:$0xff]  ;;  %v70_v41 = vld [vmem:[%s674_s1 + $0x1b0] sm:$0xff]  ;;  %v40_v46 = vld [vmem:[%s674_s1 + $0xc0] sm:$0xff] }
   0xb   :  { %386 = vmatpush3.bf16.msra.mxu1 %v385_v25  ;;  %v71_v42 = vld [vmem:[%s674_s1 + $0x1b8] sm:$0xff]  ;;  %v54_v44 = vld [vmem:[%s674_s1 + $0x130] sm:$0xff]  ;;  %v41_v50 = vld [vmem:[%s674_s1 + $0xc8] sm:$0xff]  ;;  %v361_v51 = vpack.c.bf16 %v23_v40, %v22_v37 }
   0xc   :  { %388 = vmatprep.subr.bf16.mxu1 %v387_v34  ;;  %v391_v43 = vpack.c.bf16 %v71_v42, %v70_v41  ;;  %v55_v45 = vld [vmem:[%s674_s1 + $0x138] sm:$0xff]  ;;  %v72_v52 = vld [vmem:[%s674_s1 + $0x1c0] sm:$0xff]  ;;  %v73_v53 = vld [vmem:[%s674_s1 + $0x1c8] sm:$0xff]  ;;  %v363_v55 = vpack.c.bf16 %v41_v50, %v40_v46 }
   0xd   :  { %358 = vmatpush3.bf16.msra.mxu0 %v357_v33  ;;  %v393_v54 = vpack.c.bf16 %v55_v45, %v54_v44  ;;  %v24_v56 = vld [vmem:[%s674_s1 + $0x40] sm:$0xff]  ;;  %v25_v57 = vld [vmem:[%s674_s1 + $0x48] sm:$0xff]  ;;  %v395_v59 = vpack.c.bf16 %v73_v53, %v72_v52  ;;  %v42_v61 = vld [vmem:[%s674_s1 + $0xd0] sm:$0xff] }
   0xe   :  { %360 = vmatprep.subr.bf16.mxu0 %v359_v39  ;;  %v56_v58 = vld [vmem:[%s674_s1 + $0x140] sm:$0xff]  ;;  %v57_v60 = vld [vmem:[%s674_s1 + $0x148] sm:$0xff]  ;;  %v43_v62 = vld [vmem:[%s674_s1 + $0xd8] sm:$0xff]  ;;  %v365_v3 = vpack.c.bf16 %v25_v57, %v24_v56 }
   0xf   :  { %390 = vmatpush3.bf16.msra.mxu1 %v389_v38  ;;  %v74_v1 = vld [vmem:[%s674_s1 + $0x1d0] sm:$0xff]  ;;  %v75_v2 = vld [vmem:[%s674_s1 + $0x1d8] sm:$0xff]  ;;  %v397_v4 = vpack.c.bf16 %v57_v60, %v56_v58  ;;  %v367_v5 = vpack.c.bf16 %v43_v62, %v42_v61  ;;  %v44_v11 = vld [vmem:[%s674_s1 + $0xe0] sm:$0xff] }
  0x10   :  { %392 = vmatprep.subr.bf16.mxu1 %v391_v43  ;;  %v26_v6 = vld [vmem:[%s674_s1 + $0x50] sm:$0xff]  ;;  %v27_v7 = vld [vmem:[%s674_s1 + $0x58] sm:$0xff]  ;;  %v399_v9 = vpack.c.bf16 %v75_v2, %v74_v1  ;;  %v45_v12 = vld [vmem:[%s674_s1 + $0xe8] sm:$0xff] }
  0x11   :  { %362 = vmatpush3.bf16.msra.mxu0 %v361_v51  ;;  %v58_v8 = vld [vmem:[%s674_s1 + $0x150] sm:$0xff]  ;;  %v59_v10 = vld [vmem:[%s674_s1 + $0x158] sm:$0xff]  ;;  %v76_v14 = vld [vmem:[%s674_s1 + $0x1e0] sm:$0xff]  ;;  %v369_v16 = vpack.c.bf16 %v27_v7, %v26_v6  ;;  %v371_v20 = vpack.c.bf16 %v45_v12, %v44_v11 }
  0x12   :  { %364 = vmatprep.subr.bf16.mxu0 %v363_v55  ;;  %v77_v15 = vld [vmem:[%s674_s1 + $0x1e8] sm:$0xff]  ;;  %v28_v17 = vld [vmem:[%s674_s1 + $0x60] sm:$0xff]  ;;  %v401_v19 = vpack.c.bf16 %v59_v10, %v58_v8 }
  0x13   :  { %394 = vmatpush3.bf16.msra.mxu1 %v393_v54  ;;  %v29_v18 = vld [vmem:[%s674_s1 + $0x68] sm:$0xff]  ;;  %v60_v21 = vld [vmem:[%s674_s1 + $0x160] sm:$0xff] }
  0x14   :  { %396 = vmatprep.subr.bf16.mxu1 %v395_v59  ;;  %v15_v22 = vld [vmem:[%s673_s0] sm:$0xff] }
  0x15   :  { %366 = vmatpush3.bf16.msra.mxu0 %v365_v3 }
  0x16   :  { %368 = vmatprep.subr.bf16.mxu0 %v367_v5 }
  0x17   :  { %398 = vmatpush3.bf16.msra.mxu1 %v397_v4 }
  0x18   :  { %8 = vsyncpa [#allocation3], 0  ;;  %400 = vmatprep.subr.bf16.mxu1 %v399_v9  ;;  %v403_v23 = vpack.c.bf16 %v77_v15, %v76_v14  ;;  %v61_v24 = vld [vmem:[%s674_s1 + $0x168] sm:$0xff]  ;;  %v46_v25 = vld [vmem:[%s674_s1 + $0xf0] sm:$0xff]  ;;  %v95_v27 = vrot.slane %v15_v22, %v94_v13  ;;  %v88_v28 = vcombine.high %v15_v22, %v15_v22  ;;  %v373_v31 = vpack.c.bf16 %v29_v18, %v28_v17 }
  0x19   :  { %v47_v26 = vld [vmem:[%s674_s1 + $0xf8] sm:$0xff]  ;;  %v78_v29 = vld [vmem:[%s674_s1 + $0x1f0] sm:$0xff]  ;;  %370 = vmatpush3.bf16.msra.mxu0 %v369_v16  ;;  %v405_v34 = vpack.c.bf16 %v61_v24, %v60_v21  ;;  %v441_v44 = vmov 6   ;;  %v276_v46 = vld [vmem:[%s675_s2] ss:$0 sm:$0xff]  ;;  %vm249_vm0 = vcmask 41984  }
  0x1a   :  { %v79_v30 = vld [vmem:[%s674_s1 + $0x1f8] sm:$0xff]  ;;  %v103_v32 = vcombine.high %v95_v27, %v95_v27  ;;  %v102_v33 = vrot.slane %v88_v28, %v94_v13  ;;  %372 = vmatprep.subr.bf16.mxu0 %v371_v20  ;;  %v375_v35 = vpack.c.bf16 %v47_v26, %v46_v25  ;;  %v30_v36 = vld [vmem:[%s674_s1 + $0x70] sm:$0xff]  ;;  %414 = vset.pattern.permute.xlu0 %v441_v44 }
  0x1b   :  { %402 = vmatpush3.bf16.msra.mxu1 %v401_v19  ;;  %v31_v37 = vld [vmem:[%s674_s1 + $0x78] sm:$0xff]  ;;  %v407_v38 = vpack.c.bf16 %v79_v30, %v78_v29  ;;  %v62_v39 = vld [vmem:[%s674_s1 + $0x170] sm:$0xff] }
  0x1c   :  { %404 = vmatprep.subr.bf16.mxu1 %v403_v23  ;;  %v63_v40 = vld [vmem:[%s674_s1 + $0x178] sm:$0xff]  ;;  %173 = vmatprep.mubr.f32.mxu0 %v103_v32  ;;  %v104_v41 = vcombine.high %v102_v33, %v102_v33  ;;  %v377_v42 = vpack.c.bf16 %v31_v37, %v30_v36  ;;  %s442_s1 = smov [#allocation2]  }
  0x1d   :  { %374 = vmatpush3.bf16.msra.mxu0 %v373_v31  ;;  %v409_v43 = vpack.c.bf16 %v63_v40, %v62_v39  ;;  %s268_s8 = sshll.u32 %s442_s1, 4  ;;  %s269_s8 = int_to_ptr.vmem [resolvable:$true] %s268_s8 }
  0x1e   :  { %243 = vmatprep.mubr.f32.mxu1 %v104_v41  ;;  %376 = vmatprep.subr.bf16.mxu0 %v375_v35  ;;  %s416_s2 = scalar_lea.vmem %s269_s8, 32  ;;  %p421_p1 = scmp.lt.s32.totalorder %s269_s8, %s269_s8 }
  0x1f   :  { %406 = vmatpush3.bf16.msra.mxu1 %v405_v34  ;;  %p417_p0 = scmp.ne.s32.totalorder %s269_s8, %s416_s2  ;;  %p422_p2 = scmp.lt.s32.totalorder %s416_s2, %s416_s2 }
  0x20   :  { %408 = vmatprep.subr.bf16.mxu1 %v407_v38 }
  0x21   :  { %378 = vmatpush3.bf16.msra.mxu0 %v377_v42  ;;  %p423_p3 = por %p422_p2, %p421_p1 }
  0x23   :  { %410 = vmatpush3.bf16.msra.mxu1 %v409_v43  ;;  %p424_p4 = pnand %p423_p3, %p417_p0 }
  0x24   :  { %174 = vmatmul.mubr.f32.vlgmr.msra.gmra.mrb[0].mxu0 %v95_v27 }
  0x26   :  { %244 = vmatmul.mubr.f32.vlgmr.msra.gmra.mrb[0].mxu1 %v102_v33 }
  0xf7   :  { %v309_v45 = vpop.f32.mrb[0].mxu0 }
  0xf8   :  { %v310_v47 = vpop.f32.mrb[1].mxu0 }
  0xf9   :  { %v344_v48 = vpop.f32.mrb[0].mxu1  ;;  %v311_v49 = vadd.f32 %v310_v47, %v309_v45 }
  0xfa   :  { %v345_v50 = vpop.f32.mrb[1].mxu1 }
  0xfb   :  { %v346_v51 = vadd.f32 %v345_v50, %v344_v48  ;;  %v176_v52 = vadd.f32 %v311_v49, %v276_v46 }
  0xfd   :  { %v246_v53 = vadd.f32 %v346_v51, %v176_v52 }
  0xff   :  { %v250_v54 = vsel %vm249_vm0, %v246_v53, -inf }
 0x100   :  { %251 = vmax.xlane.f32.xlu0 %v250_v54 }
 0x116   :  { %257 = vperm.xlu0 %414, %v246_v53  }
 0x18d   :  { %v252_v55 = vpop.xlane.xlu0 %251 }
 0x18e   :  { %v253_v56 = vmul.f32 0.16666667, %v252_v55 }
 0x190   :  { %v254_v57 = vsub.f32 %v246_v53, %v253_v56 }
 0x195   :  { %v258_v58 = vpop.permute.xlu0 %257 }
 0x196   :  { %v260_v59 = vadd.f32 %v258_v58, %v254_v57 }
 0x198   :  { %261 = vst.msk [vmem:[#allocation2] sm:$0x3] %vm249_vm0, %v260_v59 }
 0x199   :  { %427 = shalt.err (!%p424_p4)
}
 0x19a   :  { %s428_s11 = scalar_lea.hbm %s676_s3, 32 }
 0x19b   :  { %p429_p5 = scmp.ne.s32.totalorder %s676_s3, %s428_s11  ;;  %p432_p6 = scmp.lt.u32.totalorder %s428_s11, %s676_s3 }
 0x19d   :  { %p434_p7 = pnand %p432_p6, %p429_p5 }
 0x19f   :  { %437 = shalt.err (!%p434_p7)
}
 0x1a0   :  { %271 = dma.vmem_to_hbm [thread:$0]  %s269_s8, 32, %s676_s3, [#allocation3]  }
 0x1a1   :  { %438 = dma.done.wait [#allocation3], 32  }
 0x1a2   :  { %439 = vsyncadd [#allocation3], 4294967264 }
 0x1a3   :  { %275 = vsyncpa [#allocation3], 1 }

// kernel: forward.6
= control target key start
LH: loop header
LB: loop body
LE: loop exit
PB: predicated region body
PF: predicated region fallthrough
CT: control target
= control target key end

     0   :  { %s16542_s12 = smov 0   ;;  %s16544_s13 = smov 0   ;;  %s19516_s0 = inlined_call_operand.vmem [shape: bf16[2,20736], index: 0, kind: input, shape index: {}]   ;;  %s19517_s1 = inlined_call_operand.vmem [shape: bf16[20736,512], index: 1, kind: input, shape index: {}]   ;;  %s19518_s2 = inlined_call_operand.vmem [shape: f32[1,512], index: 2, kind: input, shape index: {}]   ;;  %s19519_s3 = inlined_call_operand.vmem [shape: f32[2,512], index: 3, kind: output, shape index: {}]  }
   0x1   :  { %s16546_s14 = smov 0   ;;  %s16548_s15 = smov 0  }
   0x2   :  { %s16550_s16 = smov 0   ;;  %s16552_s17 = smov 0  }
   0x3   :  { %s16554_s18 = smov 0  }
   0x4 LB: > { %s25_s19 = sadd.s32 1, %s16510_s16  ;;  %s28_s20 = sadd.s32 1, %s16514_s17  ;;  %s16518_s18 = sphi %s16554_s18, %s13_s18   ;;  %s16514_s17 = sphi %s16552_s17, %s19525_s17   ;;  %s16510_s16 = sphi %s16550_s16, %s19524_s16   ;;  %s16506_s15 = sphi %s16548_s15, %s19523_s15   ;;  %s16502_s14 = sphi %s16546_s14, %s19522_s14   ;;  %s16498_s13 = sphi %s16544_s13, %s19521_s13   ;;  %s16494_s12 = sphi %s16542_s12, %s19520_s12  }
   0x5   : > { %p26_p0 = scmp.ge.s32.totalorder %s25_s19, 3  ;;  %p76_p1 = scmp.ne.s32.totalorder %s16498_s13, %s16494_s12 }
   0x6   : > { %p77_p2 = scmp.eq.s32.totalorder %s16518_s18, 0  ;;  %s69_s24 = sadd.s32 1, %s16498_s13 }
   0x7   : > { %s19527_s19 = smov (%p26_p0, %s25_s19), 0  ;;  %s19529_s20 = smov (!%p26_p0, %s28_s20), %s16514_s17 }
   0x8   : > { %p78_p3 = por %p77_p2, %p76_p1  ;;  %p30_p4 = scmp.ge.s32.totalorder %s19529_s20, 2 }
   0x9   : > { %s64_s21 = ssub.s32 %s16510_s16, %s19527_s19  ;;  %p14119_p6 = scmp.ge.s32.totalorder %s16518_s18, 6 }
   0xa   : > { %s19531_s20 = smov (%p30_p4, %s19529_s20), 0 }
   0xb   : > { %s65_s22 = ssub.s32 %s16514_s17, %s19531_s20  ;;  %156 = sbr.rel (%p14119_p6) target bundleno = 458 (0x1ca), region = 16 }
   0xc   : > { %s66_s23 = sor.u32 %s65_s22, %s64_s21 }
   0xd   : > { %p67_p5 = scmp.eq.s32.totalorder %s66_s23, 0 }
   0xf   : > { %s16593_s25 = scalar_select %p67_p5, %s16498_s13, %s69_s24  }
  0x12   : > { %171 = sbr.rel (!%p78_p3) target bundleno = 458 (0x1ca), region = 24  ;;  %s173_s26 = sand.u32 (%p78_p3), 1, %s16498_s13  }
  0x13   : > { %s15099_s27 = smul.u32 (%p78_p3), 6912, %s173_s26  ;;  %s14120_s28 = sshll.u32 (%p78_p3), %s16514_s17, 1 }
  0x14   : > { %s14996_s29 = smul.u32 (%p78_p3), 3456, %s16510_s16 }
  0x15   : > { %s16607_s8 = scalar_lea.vmem (%p78_p3), [#allocation2], %s15099_s27 }
  0x16   : > { %s179_s30 = sadd.s32 (%p78_p3), %s14996_s29, %s14120_s28 }
  0x17   : > { %s14122_s4 = sshll.u32 (%p78_p3), %s179_s30, 2 }
  0x18   : > { %s16602_s7 = scalar_lea.vmem (%p78_p3), %s19517_s1, %s14122_s4 }
  0x19   : > { %v1938_v0 = vld [vmem:[%s16602_s7] sm:$0xff]  ;;  %v1940_v1 = vld [vmem:[%s16602_s7 + $0x10] sm:$0xff] }
  0x1a   : > { %v1942_v2 = vld [vmem:[%s16602_s7 + $0x20] sm:$0xff]  ;;  %1939 = vst [vmem:[%s16607_s8] sm:$0xff] %v1938_v0  ;;  %1941 = vst [vmem:[%s16607_s8 + $0x8] sm:$0xff] %v1940_v1  ;;  %v1944_v3 = vld [vmem:[%s16602_s7 + $0x30] sm:$0xff] }
  0x1b   : > { %1943 = vst [vmem:[%s16607_s8 + $0x10] sm:$0xff] %v1942_v2  ;;  %v1946_v4 = vld [vmem:[%s16602_s7 + $0x40] sm:$0xff]  ;;  %v1948_v5 = vld [vmem:[%s16602_s7 + $0x50] sm:$0xff]  ;;  %1945 = vst [vmem:[%s16607_s8 + $0x18] sm:$0xff] %v1944_v3 }
  0x1c   : > { %1947 = vst [vmem:[%s16607_s8 + $0x20] sm:$0xff] %v1946_v4  ;;  %1949 = vst [vmem:[%s16607_s8 + $0x28] sm:$0xff] %v1948_v5  ;;  %v1950_v6 = vld [vmem:[%s16602_s7 + $0x60] sm:$0xff]  ;;  %v1952_v7 = vld [vmem:[%s16602_s7 + $0x70] sm:$0xff] }
  0x1d   : > { %v1954_v8 = vld [vmem:[%s16602_s7 + $0x80] sm:$0xff]  ;;  %1951 = vst [vmem:[%s16607_s8 + $0x30] sm:$0xff] %v1950_v6  ;;  %1953 = vst [vmem:[%s16607_s8 + $0x38] sm:$0xff] %v1952_v7  ;;  %v1956_v9 = vld [vmem:[%s16602_s7 + $0x90] sm:$0xff] }
  0x1e   : > { %1955 = vst [vmem:[%s16607_s8 + $0x40] sm:$0xff] %v1954_v8  ;;  %v1958_v10 = vld [vmem:[%s16602_s7 + $0xa0] sm:$0xff]  ;;  %v1960_v11 = vld [vmem:[%s16602_s7 + $0xb0] sm:$0xff]  ;;  %1957 = vst [vmem:[%s16607_s8 + $0x48] sm:$0xff] %v1956_v9 }
  0x1f   : > { %1959 = vst [vmem:[%s16607_s8 + $0x50] sm:$0xff] %v1958_v10  ;;  %1961 = vst [vmem:[%s16607_s8 + $0x58] sm:$0xff] %v1960_v11  ;;  %v1962_v12 = vld [vmem:[%s16602_s7 + $0xc0] sm:$0xff]  ;;  %v1964_v13 = vld [vmem:[%s16602_s7 + $0xd0] sm:$0xff] }
  0x20   : > { %v1966_v14 = vld [vmem:[%s16602_s7 + $0xe0] sm:$0xff]  ;;  %1963 = vst [vmem:[%s16607_s8 + $0x60] sm:$0xff] %v1962_v12  ;;  %1965 = vst [vmem:[%s16607_s8 + $0x68] sm:$0xff] %v1964_v13  ;;  %v1968_v15 = vld [vmem:[%s16602_s7 + $0xf0] sm:$0xff] }
  0x21   : > { %1967 = vst [vmem:[%s16607_s8 + $0x70] sm:$0xff] %v1966_v14  ;;  %v1970_v16 = vld [vmem:[%s16602_s7 + $0x100] sm:$0xff]  ;;  %v1972_v17 = vld [vmem:[%s16602_s7 + $0x110] sm:$0xff]  ;;  %1969 = vst [vmem:[%s16607_s8 + $0x78] sm:$0xff] %v1968_v15 }
  0x22   : > { %1971 = vst [vmem:[%s16607_s8 + $0x80] sm:$0xff] %v1970_v16  ;;  %1973 = vst [vmem:[%s16607_s8 + $0x88] sm:$0xff] %v1972_v17  ;;  %v1974_v18 = vld [vmem:[%s16602_s7 + $0x120] sm:$0xff]  ;;  %v1976_v19 = vld [vmem:[%s16602_s7 + $0x130] sm:$0xff] }
  0x23   : > { %v1978_v20 = vld [vmem:[%s16602_s7 + $0x140] sm:$0xff]  ;;  %1975 = vst [vmem:[%s16607_s8 + $0x90] sm:$0xff] %v1974_v18  ;;  %1977 = vst [vmem:[%s16607_s8 + $0x98] sm:$0xff] %v1976_v19  ;;  %v1980_v21 = vld [vmem:[%s16602_s7 + $0x150] sm:$0xff] }
  0x24   : > { %1979 = vst [vmem:[%s16607_s8 + $0xa0] sm:$0xff] %v1978_v20  ;;  %v1982_v22 = vld [vmem:[%s16602_s7 + $0x160] sm:$0xff]  ;;  %v1984_v23 = vld [vmem:[%s16602_s7 + $0x170] sm:$0xff]  ;;  %1981 = vst [vmem:[%s16607_s8 + $0xa8] sm:$0xff] %v1980_v21 }
  0x25   : > { %1983 = vst [vmem:[%s16607_s8 + $0xb0] sm:$0xff] %v1982_v22  ;;  %1985 = vst [vmem:[%s16607_s8 + $0xb8] sm:$0xff] %v1984_v23  ;;  %v1986_v24 = vld [vmem:[%s16602_s7 + $0x180] sm:$0xff]  ;;  %v1988_v25 = vld [vmem:[%s16602_s7 + $0x190] sm:$0xff] }
  0x26   : > { %v1990_v26 = vld [vmem:[%s16602_s7 + $0x1a0] sm:$0xff]  ;;  %1987 = vst [vmem:[%s16607_s8 + $0xc0] sm:$0xff] %v1986_v24  ;;  %1989 = vst [vmem:[%s16607_s8 + $0xc8] sm:$0xff] %v1988_v25  ;;  %v1992_v27 = vld [vmem:[%s16602_s7 + $0x1b0] sm:$0xff] }
  0x27   : > { %1991 = vst [vmem:[%s16607_s8 + $0xd0] sm:$0xff] %v1990_v26  ;;  %v1994_v28 = vld [vmem:[%s16602_s7 + $0x1c0] sm:$0xff]  ;;  %v1996_v29 = vld [vmem:[%s16602_s7 + $0x1d0] sm:$0xff]  ;;  %1993 = vst [vmem:[%s16607_s8 + $0xd8] sm:$0xff] %v1992_v27 }
  0x28   : > { %1995 = vst [vmem:[%s16607_s8 + $0xe0] sm:$0xff] %v1994_v28  ;;  %1997 = vst [vmem:[%s16607_s8 + $0xe8] sm:$0xff] %v1996_v29  ;;  %v1998_v30 = vld [vmem:[%s16602_s7 + $0x1e0] sm:$0xff]  ;;  %v2000_v31 = vld [vmem:[%s16602_s7 + $0x1f0] sm:$0xff] }
  0x29   : > { %v2002_v32 = vld [vmem:[%s16602_s7 + $0x200] sm:$0xff]  ;;  %1999 = vst [vmem:[%s16607_s8 + $0xf0] sm:$0xff] %v1998_v30  ;;  %2001 = vst [vmem:[%s16607_s8 + $0xf8] sm:$0xff] %v2000_v31  ;;  %v2004_v33 = vld [vmem:[%s16602_s7 + $0x210] sm:$0xff] }
  0x2a   : > { %2003 = vst [vmem:[%s16607_s8 + $0x100] sm:$0xff] %v2002_v32  ;;  %v2006_v34 = vld [vmem:[%s16602_s7 + $0x220] sm:$0xff]  ;;  %v2008_v35 = vld [vmem:[%s16602_s7 + $0x230] sm:$0xff]  ;;  %2005 = vst [vmem:[%s16607_s8 + $0x108] sm:$0xff] %v2004_v33 }
  0x2b   : > { %2007 = vst [vmem:[%s16607_s8 + $0x110] sm:$0xff] %v2006_v34  ;;  %2009 = vst [vmem:[%s16607_s8 + $0x118] sm:$0xff] %v2008_v35  ;;  %v2010_v36 = vld [vmem:[%s16602_s7 + $0x240] sm:$0xff]  ;;  %v2012_v37 = vld [vmem:[%s16602_s7 + $0x250] sm:$0xff] }
  0x2c   : > { %v2014_v38 = vld [vmem:[%s16602_s7 + $0x260] sm:$0xff]  ;;  %2011 = vst [vmem:[%s16607_s8 + $0x120] sm:$0xff] %v2010_v36  ;;  %2013 = vst [vmem:[%s16607_s8 + $0x128] sm:$0xff] %v2012_v37  ;;  %v2016_v39 = vld [vmem:[%s16602_s7 + $0x270] sm:$0xff] }
  0x2d   : > { %2015 = vst [vmem:[%s16607_s8 + $0x130] sm:$0xff] %v2014_v38  ;;  %v2018_v40 = vld [vmem:[%s16602_s7 + $0x280] sm:$0xff]  ;;  %v2020_v41 = vld [vmem:[%s16602_s7 + $0x290] sm:$0xff]  ;;  %2017 = vst [vmem:[%s16607_s8 + $0x138] sm:$0xff] %v2016_v39 }
  0x2e   : > { %2019 = vst [vmem:[%s16607_s8 + $0x140] sm:$0xff] %v2018_v40  ;;  %2021 = vst [vmem:[%s16607_s8 + $0x148] sm:$0xff] %v2020_v41  ;;  %v2022_v42 = vld [vmem:[%s16602_s7 + $0x2a0] sm:$0xff]  ;;  %v2024_v43 = vld [vmem:[%s16602_s7 + $0x2b0] sm:$0xff] }
  0x2f   : > { %v2026_v44 = vld [vmem:[%s16602_s7 + $0x2c0] sm:$0xff]  ;;  %2023 = vst [vmem:[%s16607_s8 + $0x150] sm:$0xff] %v2022_v42  ;;  %2025 = vst [vmem:[%s16607_s8 + $0x158] sm:$0xff] %v2024_v43  ;;  %v2028_v45 = vld [vmem:[%s16602_s7 + $0x2d0] sm:$0xff] }
  0x30   : > { %2027 = vst [vmem:[%s16607_s8 + $0x160] sm:$0xff] %v2026_v44  ;;  %v2030_v46 = vld [vmem:[%s16602_s7 + $0x2e0] sm:$0xff]  ;;  %v2032_v47 = vld [vmem:[%s16602_s7 + $0x2f0] sm:$0xff]  ;;  %2029 = vst [vmem:[%s16607_s8 + $0x168] sm:$0xff] %v2028_v45 }
  0x31   : > { %2031 = vst [vmem:[%s16607_s8 + $0x170] sm:$0xff] %v2030_v46  ;;  %2033 = vst [vmem:[%s16607_s8 + $0x178] sm:$0xff] %v2032_v47  ;;  %v2034_v48 = vld [vmem:[%s16602_s7 + $0x300] sm:$0xff]  ;;  %v2036_v49 = vld [vmem:[%s16602_s7 + $0x310] sm:$0xff] }
  0x32   : > { %v2038_v50 = vld [vmem:[%s16602_s7 + $0x320] sm:$0xff]  ;;  %2035 = vst [vmem:[%s16607_s8 + $0x180] sm:$0xff] %v2034_v48  ;;  %2037 = vst [vmem:[%s16607_s8 + $0x188] sm:$0xff] %v2036_v49  ;;  %v2040_v51 = vld [vmem:[%s16602_s7 + $0x330] sm:$0xff] }
  0x33   : > { %2039 = vst [vmem:[%s16607_s8 + $0x190] sm:$0xff] %v2038_v50  ;;  %v2042_v52 = vld [vmem:[%s16602_s7 + $0x340] sm:$0xff]  ;;  %v2044_v53 = vld [vmem:[%s16602_s7 + $0x350] sm:$0xff]  ;;  %2041 = vst [vmem:[%s16607_s8 + $0x198] sm:$0xff] %v2040_v51 }
  0x34   : > { %2043 = vst [vmem:[%s16607_s8 + $0x1a0] sm:$0xff] %v2042_v52  ;;  %2045 = vst [vmem:[%s16607_s8 + $0x1a8] sm:$0xff] %v2044_v53  ;;  %v2046_v54 = vld [vmem:[%s16602_s7 + $0x360] sm:$0xff]  ;;  %v2048_v55 = vld [vmem:[%s16602_s7 + $0x370] sm:$0xff] }
  0x35   : > { %v2050_v56 = vld [vmem:[%s16602_s7 + $0x380] sm:$0xff]  ;;  %2047 = vst [vmem:[%s16607_s8 + $0x1b0] sm:$0xff] %v2046_v54  ;;  %2049 = vst [vmem:[%s16607_s8 + $0x1b8] sm:$0xff] %v2048_v55  ;;  %v2052_v57 = vld [vmem:[%s16602_s7 + $0x390] sm:$0xff] }
  0x36   : > { %2051 = vst [vmem:[%s16607_s8 + $0x1c0] sm:$0xff] %v2050_v56  ;;  %v2054_v58 = vld [vmem:[%s16602_s7 + $0x3a0] sm:$0xff]  ;;  %v2056_v59 = vld [vmem:[%s16602_s7 + $0x3b0] sm:$0xff]  ;;  %2053 = vst [vmem:[%s16607_s8 + $0x1c8] sm:$0xff] %v2052_v57 }
  0x37   : > { %2055 = vst [vmem:[%s16607_s8 + $0x1d0] sm:$0xff] %v2054_v58  ;;  %2057 = vst [vmem:[%s16607_s8 + $0x1d8] sm:$0xff] %v2056_v59  ;;  %v2058_v60 = vld [vmem:[%s16602_s7 + $0x3c0] sm:$0xff]  ;;  %v2060_v61 = vld [vmem:[%s16602_s7 + $0x3d0] sm:$0xff] }
  0x38   : > { %v2062_v62 = vld [vmem:[%s16602_s7 + $0x3e0] sm:$0xff]  ;;  %2059 = vst [vmem:[%s16607_s8 + $0x1e0] sm:$0xff] %v2058_v60  ;;  %2061 = vst [vmem:[%s16607_s8 + $0x1e8] sm:$0xff] %v2060_v61  ;;  %v2064_v63 = vld [vmem:[%s16602_s7 + $0x3f0] sm:$0xff] }
  0x39   : > { %2063 = vst [vmem:[%s16607_s8 + $0x1f0] sm:$0xff] %v2062_v62  ;;  %v2066_v0 = vld [vmem:[%s16602_s7 + $0x400] sm:$0xff]  ;;  %v2068_v1 = vld [vmem:[%s16602_s7 + $0x410] sm:$0xff]  ;;  %2065 = vst [vmem:[%s16607_s8 + $0x1f8] sm:$0xff] %v2064_v63 }
  0x3a   : > { %2067 = vst [vmem:[%s16607_s8 + $0x200] sm:$0xff] %v2066_v0  ;;  %2069 = vst [vmem:[%s16607_s8 + $0x208] sm:$0xff] %v2068_v1  ;;  %v2070_v2 = vld [vmem:[%s16602_s7 + $0x420] sm:$0xff]  ;;  %v2072_v3 = vld [vmem:[%s16602_s7 + $0x430] sm:$0xff] }
  0x3b   : > { %v2074_v4 = vld [vmem:[%s16602_s7 + $0x440] sm:$0xff]  ;;  %2071 = vst [vmem:[%s16607_s8 + $0x210] sm:$0xff] %v2070_v2  ;;  %2073 = vst [vmem:[%s16607_s8 + $0x218] sm:$0xff] %v2072_v3  ;;  %v2076_v5 = vld [vmem:[%s16602_s7 + $0x450] sm:$0xff] }
  0x3c   : > { %2075 = vst [vmem:[%s16607_s8 + $0x220] sm:$0xff] %v2074_v4  ;;  %v2078_v6 = vld [vmem:[%s16602_s7 + $0x460] sm:$0xff]  ;;  %v2080_v7 = vld [vmem:[%s16602_s7 + $0x470] sm:$0xff]  ;;  %2077 = vst [vmem:[%s16607_s8 + $0x228] sm:$0xff] %v2076_v5 }
  0x3d   : > { %2079 = vst [vmem:[%s16607_s8 + $0x230] sm:$0xff] %v2078_v6  ;;  %2081 = vst [vmem:[%s16607_s8 + $0x238] sm:$0xff] %v2080_v7  ;;  %v2082_v8 = vld [vmem:[%s16602_s7 + $0x480] sm:$0xff]  ;;  %v2084_v9 = vld [vmem:[%s16602_s7 + $0x490] sm:$0xff] }
  0x3e   : > { %v2086_v10 = vld [vmem:[%s16602_s7 + $0x4a0] sm:$0xff]  ;;  %2083 = vst [vmem:[%s16607_s8 + $0x240] sm:$0xff] %v2082_v8  ;;  %2085 = vst [vmem:[%s16607_s8 + $0x248] sm:$0xff] %v2084_v9  ;;  %v2088_v11 = vld [vmem:[%s16602_s7 + $0x4b0] sm:$0xff] }
  0x3f   : > { %2087 = vst [vmem:[%s16607_s8 + $0x250] sm:$0xff] %v2086_v10  ;;  %v2090_v12 = vld [vmem:[%s16602_s7 + $0x4c0] sm:$0xff]  ;;  %v2092_v13 = vld [vmem:[%s16602_s7 + $0x4d0] sm:$0xff]  ;;  %2089 = vst [vmem:[%s16607_s8 + $0x258] sm:$0xff] %v2088_v11 }
  0x40   : > { %2091 = vst [vmem:[%s16607_s8 + $0x260] sm:$0xff] %v2090_v12  ;;  %2093 = vst [vmem:[%s16607_s8 + $0x268] sm:$0xff] %v2092_v13  ;;  %v2094_v14 = vld [vmem:[%s16602_s7 + $0x4e0] sm:$0xff]  ;;  %v2096_v15 = vld [vmem:[%s16602_s7 + $0x4f0] sm:$0xff] }
  0x41   : > { %v2098_v16 = vld [vmem:[%s16602_s7 + $0x500] sm:$0xff]  ;;  %2095 = vst [vmem:[%s16607_s8 + $0x270] sm:$0xff] %v2094_v14  ;;  %2097 = vst [vmem:[%s16607_s8 + $0x278] sm:$0xff] %v2096_v15  ;;  %v2100_v17 = vld [vmem:[%s16602_s7 + $0x510] sm:$0xff] }
  0x42   : > { %2099 = vst [vmem:[%s16607_s8 + $0x280] sm:$0xff] %v2098_v16  ;;  %v2102_v18 = vld [vmem:[%s16602_s7 + $0x520] sm:$0xff]  ;;  %v2104_v19 = vld [vmem:[%s16602_s7 + $0x530] sm:$0xff]  ;;  %2101 = vst [vmem:[%s16607_s8 + $0x288] sm:$0xff] %v2100_v17 }
  0x43   : > { %2103 = vst [vmem:[%s16607_s8 + $0x290] sm:$0xff] %v2102_v18  ;;  %2105 = vst [vmem:[%s16607_s8 + $0x298] sm:$0xff] %v2104_v19  ;;  %v2106_v20 = vld [vmem:[%s16602_s7 + $0x540] sm:$0xff]  ;;  %v2108_v21 = vld [vmem:[%s16602_s7 + $0x550] sm:$0xff] }
  0x44   : > { %v2110_v22 = vld [vmem:[%s16602_s7 + $0x560] sm:$0xff]  ;;  %2107 = vst [vmem:[%s16607_s8 + $0x2a0] sm:$0xff] %v2106_v20  ;;  %2109 = vst [vmem:[%s16607_s8 + $0x2a8] sm:$0xff] %v2108_v21  ;;  %v2112_v23 = vld [vmem:[%s16602_s7 + $0x570] sm:$0xff] }
  0x45   : > { %2111 = vst [vmem:[%s16607_s8 + $0x2b0] sm:$0xff] %v2110_v22  ;;  %v2114_v24 = vld [vmem:[%s16602_s7 + $0x580] sm:$0xff]  ;;  %v2116_v25 = vld [vmem:[%s16602_s7 + $0x590] sm:$0xff]  ;;  %2113 = vst [vmem:[%s16607_s8 + $0x2b8] sm:$0xff] %v2112_v23 }
  0x46   : > { %2115 = vst [vmem:[%s16607_s8 + $0x2c0] sm:$0xff] %v2114_v24  ;;  %2117 = vst [vmem:[%s16607_s8 + $0x2c8] sm:$0xff] %v2116_v25  ;;  %v2118_v26 = vld [vmem:[%s16602_s7 + $0x5a0] sm:$0xff]  ;;  %v2120_v27 = vld [vmem:[%s16602_s7 + $0x5b0] sm:$0xff] }
  0x47   : > { %v2122_v28 = vld [vmem:[%s16602_s7 + $0x5c0] sm:$0xff]  ;;  %2119 = vst [vmem:[%s16607_s8 + $0x2d0] sm:$0xff] %v2118_v26  ;;  %2121 = vst [vmem:[%s16607_s8 + $0x2d8] sm:$0xff] %v2120_v27  ;;  %v2124_v29 = vld [vmem:[%s16602_s7 + $0x5d0] sm:$0xff] }
  0x48   : > { %2123 = vst [vmem:[%s16607_s8 + $0x2e0] sm:$0xff] %v2122_v28  ;;  %v2126_v30 = vld [vmem:[%s16602_s7 + $0x5e0] sm:$0xff]  ;;  %v2128_v31 = vld [vmem:[%s16602_s7 + $0x5f0] sm:$0xff]  ;;  %2125 = vst [vmem:[%s16607_s8 + $0x2e8] sm:$0xff] %v2124_v29 }
  0x49   : > { %2127 = vst [vmem:[%s16607_s8 + $0x2f0] sm:$0xff] %v2126_v30  ;;  %2129 = vst [vmem:[%s16607_s8 + $0x2f8] sm:$0xff] %v2128_v31  ;;  %v2130_v32 = vld [vmem:[%s16602_s7 + $0x600] sm:$0xff]  ;;  %v2132_v33 = vld [vmem:[%s16602_s7 + $0x610] sm:$0xff] }
  0x4a   : > { %v2134_v34 = vld [vmem:[%s16602_s7 + $0x620] sm:$0xff]  ;;  %2131 = vst [vmem:[%s16607_s8 + $0x300] sm:$0xff] %v2130_v32  ;;  %2133 = vst [vmem:[%s16607_s8 + $0x308] sm:$0xff] %v2132_v33  ;;  %v2136_v35 = vld [vmem:[%s16602_s7 + $0x630] sm:$0xff] }
  0x4b   : > { %2135 = vst [vmem:[%s16607_s8 + $0x310] sm:$0xff] %v2134_v34  ;;  %v2138_v36 = vld [vmem:[%s16602_s7 + $0x640] sm:$0xff]  ;;  %v2140_v37 = vld [vmem:[%s16602_s7 + $0x650] sm:$0xff]  ;;  %2137 = vst [vmem:[%s16607_s8 + $0x318] sm:$0xff] %v2136_v35 }
  0x4c   : > { %2139 = vst [vmem:[%s16607_s8 + $0x320] sm:$0xff] %v2138_v36  ;;  %2141 = vst [vmem:[%s16607_s8 + $0x328] sm:$0xff] %v2140_v37  ;;  %v2142_v38 = vld [vmem:[%s16602_s7 + $0x660] sm:$0xff]  ;;  %v2144_v39 = vld [vmem:[%s16602_s7 + $0x670] sm:$0xff] }
  0x4d   : > { %v2146_v40 = vld [vmem:[%s16602_s7 + $0x680] sm:$0xff]  ;;  %2143 = vst [vmem:[%s16607_s8 + $0x330] sm:$0xff] %v2142_v38  ;;  %2145 = vst [vmem:[%s16607_s8 + $0x338] sm:$0xff] %v2144_v39  ;;  %v2148_v41 = vld [vmem:[%s16602_s7 + $0x690] sm:$0xff] }
  0x4e   : > { %2147 = vst [vmem:[%s16607_s8 + $0x340] sm:$0xff] %v2146_v40  ;;  %v2150_v42 = vld [vmem:[%s16602_s7 + $0x6a0] sm:$0xff]  ;;  %v2152_v43 = vld [vmem:[%s16602_s7 + $0x6b0] sm:$0xff]  ;;  %2149 = vst [vmem:[%s16607_s8 + $0x348] sm:$0xff] %v2148_v41 }
  0x4f   : > { %2151 = vst [vmem:[%s16607_s8 + $0x350] sm:$0xff] %v2150_v42  ;;  %2153 = vst [vmem:[%s16607_s8 + $0x358] sm:$0xff] %v2152_v43  ;;  %v2154_v44 = vld [vmem:[%s16602_s7 + $0x6c0] sm:$0xff]  ;;  %v2156_v45 = vld [vmem:[%s16602_s7 + $0x6d0] sm:$0xff] }
  0x50   : > { %v2158_v46 = vld [vmem:[%s16602_s7 + $0x6e0] sm:$0xff]  ;;  %2155 = vst [vmem:[%s16607_s8 + $0x360] sm:$0xff] %v2154_v44  ;;  %2157 = vst [vmem:[%s16607_s8 + $0x368] sm:$0xff] %v2156_v45  ;;  %v2160_v47 = vld [vmem:[%s16602_s7 + $0x6f0] sm:$0xff] }
  0x51   : > { %2159 = vst [vmem:[%s16607_s8 + $0x370] sm:$0xff] %v2158_v46  ;;  %v2162_v48 = vld [vmem:[%s16602_s7 + $0x700] sm:$0xff]  ;;  %v2164_v49 = vld [vmem:[%s16602_s7 + $0x710] sm:$0xff]  ;;  %2161 = vst [vmem:[%s16607_s8 + $0x378] sm:$0xff] %v2160_v47 }
  0x52   : > { %2163 = vst [vmem:[%s16607_s8 + $0x380] sm:$0xff] %v2162_v48  ;;  %2165 = vst [vmem:[%s16607_s8 + $0x388] sm:$0xff] %v2164_v49  ;;  %v2166_v50 = vld [vmem:[%s16602_s7 + $0x720] sm:$0xff]  ;;  %v2168_v51 = vld [vmem:[%s16602_s7 + $0x730] sm:$0xff] }
  0x53   : > { %v2170_v52 = vld [vmem:[%s16602_s7 + $0x740] sm:$0xff]  ;;  %2167 = vst [vmem:[%s16607_s8 + $0x390] sm:$0xff] %v2166_v50  ;;  %2169 = vst [vmem:[%s16607_s8 + $0x398] sm:$0xff] %v2168_v51  ;;  %v2172_v53 = vld [vmem:[%s16602_s7 + $0x750] sm:$0xff] }
  0x54   : > { %2171 = vst [vmem:[%s16607_s8 + $0x3a0] sm:$0xff] %v2170_v52  ;;  %v2174_v54 = vld [vmem:[%s16602_s7 + $0x760] sm:$0xff]  ;;  %v2176_v55 = vld [vmem:[%s16602_s7 + $0x770] sm:$0xff]  ;;  %2173 = vst [vmem:[%s16607_s8 + $0x3a8] sm:$0xff] %v2172_v53 }
  0x55   : > { %2175 = vst [vmem:[%s16607_s8 + $0x3b0] sm:$0xff] %v2174_v54  ;;  %2177 = vst [vmem:[%s16607_s8 + $0x3b8] sm:$0xff] %v2176_v55  ;;  %v2178_v56 = vld [vmem:[%s16602_s7 + $0x780] sm:$0xff]  ;;  %v2180_v57 = vld [vmem:[%s16602_s7 + $0x790] sm:$0xff] }
  0x56   : > { %v2182_v58 = vld [vmem:[%s16602_s7 + $0x7a0] sm:$0xff]  ;;  %2179 = vst [vmem:[%s16607_s8 + $0x3c0] sm:$0xff] %v2178_v56  ;;  %2181 = vst [vmem:[%s16607_s8 + $0x3c8] sm:$0xff] %v2180_v57  ;;  %v2184_v59 = vld [vmem:[%s16602_s7 + $0x7b0] sm:$0xff] }
  0x57   : > { %2183 = vst [vmem:[%s16607_s8 + $0x3d0] sm:$0xff] %v2182_v58  ;;  %v2186_v60 = vld [vmem:[%s16602_s7 + $0x7c0] sm:$0xff]  ;;  %v2188_v61 = vld [vmem:[%s16602_s7 + $0x7d0] sm:$0xff]  ;;  %2185 = vst [vmem:[%s16607_s8 + $0x3d8] sm:$0xff] %v2184_v59 }
  0x58   : > { %2187 = vst [vmem:[%s16607_s8 + $0x3e0] sm:$0xff] %v2186_v60  ;;  %2189 = vst [vmem:[%s16607_s8 + $0x3e8] sm:$0xff] %v2188_v61  ;;  %v2190_v62 = vld [vmem:[%s16602_s7 + $0x7e0] sm:$0xff]  ;;  %v2192_v63 = vld [vmem:[%s16602_s7 + $0x7f0] sm:$0xff] }
  0x59   : > { %v2194_v0 = vld [vmem:[%s16602_s7 + $0x800] sm:$0xff]  ;;  %2191 = vst [vmem:[%s16607_s8 + $0x3f0] sm:$0xff] %v2190_v62  ;;  %2193 = vst [vmem:[%s16607_s8 + $0x3f8] sm:$0xff] %v2192_v63  ;;  %v2196_v1 = vld [vmem:[%s16602_s7 + $0x810] sm:$0xff] }
  0x5a   : > { %2195 = vst [vmem:[%s16607_s8 + $0x400] sm:$0xff] %v2194_v0  ;;  %v2198_v2 = vld [vmem:[%s16602_s7 + $0x820] sm:$0xff]  ;;  %v2200_v3 = vld [vmem:[%s16602_s7 + $0x830] sm:$0xff]  ;;  %2197 = vst [vmem:[%s16607_s8 + $0x408] sm:$0xff] %v2196_v1 }
  0x5b   : > { %2199 = vst [vmem:[%s16607_s8 + $0x410] sm:$0xff] %v2198_v2  ;;  %2201 = vst [vmem:[%s16607_s8 + $0x418] sm:$0xff] %v2200_v3  ;;  %v2202_v4 = vld [vmem:[%s16602_s7 + $0x840] sm:$0xff]  ;;  %v2204_v5 = vld [vmem:[%s16602_s7 + $0x850] sm:$0xff] }
  0x5c   : > { %v2206_v6 = vld [vmem:[%s16602_s7 + $0x860] sm:$0xff]  ;;  %2203 = vst [vmem:[%s16607_s8 + $0x420] sm:$0xff] %v2202_v4  ;;  %2205 = vst [vmem:[%s16607_s8 + $0x428] sm:$0xff] %v2204_v5  ;;  %v2208_v7 = vld [vmem:[%s16602_s7 + $0x870] sm:$0xff] }
  0x5d   : > { %2207 = vst [vmem:[%s16607_s8 + $0x430] sm:$0xff] %v2206_v6  ;;  %v2210_v8 = vld [vmem:[%s16602_s7 + $0x880] sm:$0xff]  ;;  %v2212_v9 = vld [vmem:[%s16602_s7 + $0x890] sm:$0xff]  ;;  %2209 = vst [vmem:[%s16607_s8 + $0x438] sm:$0xff] %v2208_v7 }
  0x5e   : > { %2211 = vst [vmem:[%s16607_s8 + $0x440] sm:$0xff] %v2210_v8  ;;  %2213 = vst [vmem:[%s16607_s8 + $0x448] sm:$0xff] %v2212_v9  ;;  %v2214_v10 = vld [vmem:[%s16602_s7 + $0x8a0] sm:$0xff]  ;;  %v2216_v11 = vld [vmem:[%s16602_s7 + $0x8b0] sm:$0xff] }
  0x5f   : > { %v2218_v12 = vld [vmem:[%s16602_s7 + $0x8c0] sm:$0xff]  ;;  %2215 = vst [vmem:[%s16607_s8 + $0x450] sm:$0xff] %v2214_v10  ;;  %2217 = vst [vmem:[%s16607_s8 + $0x458] sm:$0xff] %v2216_v11  ;;  %v2220_v13 = vld [vmem:[%s16602_s7 + $0x8d0] sm:$0xff] }
  0x60   : > { %2219 = vst [vmem:[%s16607_s8 + $0x460] sm:$0xff] %v2218_v12  ;;  %v2222_v14 = vld [vmem:[%s16602_s7 + $0x8e0] sm:$0xff]  ;;  %v2224_v15 = vld [vmem:[%s16602_s7 + $0x8f0] sm:$0xff]  ;;  %2221 = vst [vmem:[%s16607_s8 + $0x468] sm:$0xff] %v2220_v13 }
  0x61   : > { %2223 = vst [vmem:[%s16607_s8 + $0x470] sm:$0xff] %v2222_v14  ;;  %2225 = vst [vmem:[%s16607_s8 + $0x478] sm:$0xff] %v2224_v15  ;;  %v2226_v16 = vld [vmem:[%s16602_s7 + $0x900] sm:$0xff]  ;;  %v2228_v17 = vld [vmem:[%s16602_s7 + $0x910] sm:$0xff] }
  0x62   : > { %v2230_v18 = vld [vmem:[%s16602_s7 + $0x920] sm:$0xff]  ;;  %2227 = vst [vmem:[%s16607_s8 + $0x480] sm:$0xff] %v2226_v16  ;;  %2229 = vst [vmem:[%s16607_s8 + $0x488] sm:$0xff] %v2228_v17  ;;  %v2232_v19 = vld [vmem:[%s16602_s7 + $0x930] sm:$0xff] }
  0x63   : > { %2231 = vst [vmem:[%s16607_s8 + $0x490] sm:$0xff] %v2230_v18  ;;  %v2234_v20 = vld [vmem:[%s16602_s7 + $0x940] sm:$0xff]  ;;  %v2236_v21 = vld [vmem:[%s16602_s7 + $0x950] sm:$0xff]  ;;  %2233 = vst [vmem:[%s16607_s8 + $0x498] sm:$0xff] %v2232_v19 }
  0x64   : > { %2235 = vst [vmem:[%s16607_s8 + $0x4a0] sm:$0xff] %v2234_v20  ;;  %2237 = vst [vmem:[%s16607_s8 + $0x4a8] sm:$0xff] %v2236_v21  ;;  %v2238_v22 = vld [vmem:[%s16602_s7 + $0x960] sm:$0xff]  ;;  %v2240_v23 = vld [vmem:[%s16602_s7 + $0x970] sm:$0xff] }
  0x65   : > { %v2242_v24 = vld [vmem:[%s16602_s7 + $0x980] sm:$0xff]  ;;  %2239 = vst [vmem:[%s16607_s8 + $0x4b0] sm:$0xff] %v2238_v22  ;;  %2241 = vst [vmem:[%s16607_s8 + $0x4b8] sm:$0xff] %v2240_v23  ;;  %v2244_v25 = vld [vmem:[%s16602_s7 + $0x990] sm:$0xff] }
  0x66   : > { %2243 = vst [vmem:[%s16607_s8 + $0x4c0] sm:$0xff] %v2242_v24  ;;  %v2246_v26 = vld [vmem:[%s16602_s7 + $0x9a0] sm:$0xff]  ;;  %v2248_v27 = vld [vmem:[%s16602_s7 + $0x9b0] sm:$0xff]  ;;  %2245 = vst [vmem:[%s16607_s8 + $0x4c8] sm:$0xff] %v2244_v25 }
  0x67   : > { %2247 = vst [vmem:[%s16607_s8 + $0x4d0] sm:$0xff] %v2246_v26  ;;  %2249 = vst [vmem:[%s16607_s8 + $0x4d8] sm:$0xff] %v2248_v27  ;;  %v2250_v28 = vld [vmem:[%s16602_s7 + $0x9c0] sm:$0xff]  ;;  %v2252_v29 = vld [vmem:[%s16602_s7 + $0x9d0] sm:$0xff] }
  0x68   : > { %v2254_v30 = vld [vmem:[%s16602_s7 + $0x9e0] sm:$0xff]  ;;  %2251 = vst [vmem:[%s16607_s8 + $0x4e0] sm:$0xff] %v2250_v28  ;;  %2253 = vst [vmem:[%s16607_s8 + $0x4e8] sm:$0xff] %v2252_v29  ;;  %v2256_v31 = vld [vmem:[%s16602_s7 + $0x9f0] sm:$0xff] }
  0x69   : > { %2255 = vst [vmem:[%s16607_s8 + $0x4f0] sm:$0xff] %v2254_v30  ;;  %v2258_v32 = vld [vmem:[%s16602_s7 + $0xa00] sm:$0xff]  ;;  %v2260_v33 = vld [vmem:[%s16602_s7 + $0xa10] sm:$0xff]  ;;  %2257 = vst [vmem:[%s16607_s8 + $0x4f8] sm:$0xff] %v2256_v31 }
  0x6a   : > { %2259 = vst [vmem:[%s16607_s8 + $0x500] sm:$0xff] %v2258_v32  ;;  %2261 = vst [vmem:[%s16607_s8 + $0x508] sm:$0xff] %v2260_v33  ;;  %v2262_v34 = vld [vmem:[%s16602_s7 + $0xa20] sm:$0xff]  ;;  %v2264_v35 = vld [vmem:[%s16602_s7 + $0xa30] sm:$0xff] }
  0x6b   : > { %v2266_v36 = vld [vmem:[%s16602_s7 + $0xa40] sm:$0xff]  ;;  %2263 = vst [vmem:[%s16607_s8 + $0x510] sm:$0xff] %v2262_v34  ;;  %2265 = vst [vmem:[%s16607_s8 + $0x518] sm:$0xff] %v2264_v35  ;;  %v2268_v37 = vld [vmem:[%s16602_s7 + $0xa50] sm:$0xff] }
  0x6c   : > { %2267 = vst [vmem:[%s16607_s8 + $0x520] sm:$0xff] %v2266_v36  ;;  %v2270_v38 = vld [vmem:[%s16602_s7 + $0xa60] sm:$0xff]  ;;  %v2272_v39 = vld [vmem:[%s16602_s7 + $0xa70] sm:$0xff]  ;;  %2269 = vst [vmem:[%s16607_s8 + $0x528] sm:$0xff] %v2268_v37 }
  0x6d   : > { %2271 = vst [vmem:[%s16607_s8 + $0x530] sm:$0xff] %v2270_v38  ;;  %2273 = vst [vmem:[%s16607_s8 + $0x538] sm:$0xff] %v2272_v39  ;;  %v2274_v40 = vld [vmem:[%s16602_s7 + $0xa80] sm:$0xff]  ;;  %v2276_v41 = vld [vmem:[%s16602_s7 + $0xa90] sm:$0xff] }
  0x6e   : > { %v2278_v42 = vld [vmem:[%s16602_s7 + $0xaa0] sm:$0xff]  ;;  %2275 = vst [vmem:[%s16607_s8 + $0x540] sm:$0xff] %v2274_v40  ;;  %2277 = vst [vmem:[%s16607_s8 + $0x548] sm:$0xff] %v2276_v41  ;;  %v2280_v43 = vld [vmem:[%s16602_s7 + $0xab0] sm:$0xff] }
  0x6f   : > { %2279 = vst [vmem:[%s16607_s8 + $0x550] sm:$0xff] %v2278_v42  ;;  %v2282_v44 = vld [vmem:[%s16602_s7 + $0xac0] sm:$0xff]  ;;  %v2284_v45 = vld [vmem:[%s16602_s7 + $0xad0] sm:$0xff]  ;;  %2281 = vst [vmem:[%s16607_s8 + $0x558] sm:$0xff] %v2280_v43 }
  0x70   : > { %2283 = vst [vmem:[%s16607_s8 + $0x560] sm:$0xff] %v2282_v44  ;;  %2285 = vst [vmem:[%s16607_s8 + $0x568] sm:$0xff] %v2284_v45  ;;  %v2286_v46 = vld [vmem:[%s16602_s7 + $0xae0] sm:$0xff]  ;;  %v2288_v47 = vld [vmem:[%s16602_s7 + $0xaf0] sm:$0xff] }
  0x71   : > { %v2290_v48 = vld [vmem:[%s16602_s7 + $0xb00] sm:$0xff]  ;;  %2287 = vst [vmem:[%s16607_s8 + $0x570] sm:$0xff] %v2286_v46  ;;  %2289 = vst [vmem:[%s16607_s8 + $0x578] sm:$0xff] %v2288_v47  ;;  %v2292_v49 = vld [vmem:[%s16602_s7 + $0xb10] sm:$0xff] }
  0x72   : > { %2291 = vst [vmem:[%s16607_s8 + $0x580] sm:$0xff] %v2290_v48  ;;  %v2294_v50 = vld [vmem:[%s16602_s7 + $0xb20] sm:$0xff]  ;;  %v2296_v51 = vld [vmem:[%s16602_s7 + $0xb30] sm:$0xff]  ;;  %2293 = vst [vmem:[%s16607_s8 + $0x588] sm:$0xff] %v2292_v49 }
  0x73   : > { %2295 = vst [vmem:[%s16607_s8 + $0x590] sm:$0xff] %v2294_v50  ;;  %2297 = vst [vmem:[%s16607_s8 + $0x598] sm:$0xff] %v2296_v51  ;;  %v2298_v52 = vld [vmem:[%s16602_s7 + $0xb40] sm:$0xff]  ;;  %v2300_v53 = vld [vmem:[%s16602_s7 + $0xb50] sm:$0xff] }
  0x74   : > { %v2302_v54 = vld [vmem:[%s16602_s7 + $0xb60] sm:$0xff]  ;;  %2299 = vst [vmem:[%s16607_s8 + $0x5a0] sm:$0xff] %v2298_v52  ;;  %2301 = vst [vmem:[%s16607_s8 + $0x5a8] sm:$0xff] %v2300_v53  ;;  %v2304_v55 = vld [vmem:[%s16602_s7 + $0xb70] sm:$0xff] }
  0x75   : > { %2303 = vst [vmem:[%s16607_s8 + $0x5b0] sm:$0xff] %v2302_v54  ;;  %v2306_v56 = vld [vmem:[%s16602_s7 + $0xb80] sm:$0xff]  ;;  %v2308_v57 = vld [vmem:[%s16602_s7 + $0xb90] sm:$0xff]  ;;  %2305 = vst [vmem:[%s16607_s8 + $0x5b8] sm:$0xff] %v2304_v55 }
  0x76   : > { %2307 = vst [vmem:[%s16607_s8 + $0x5c0] sm:$0xff] %v2306_v56  ;;  %2309 = vst [vmem:[%s16607_s8 + $0x5c8] sm:$0xff] %v2308_v57  ;;  %v2310_v58 = vld [vmem:[%s16602_s7 + $0xba0] sm:$0xff]  ;;  %v2312_v59 = vld [vmem:[%s16602_s7 + $0xbb0] sm:$0xff] }
  0x77   : > { %v2314_v60 = vld [vmem:[%s16602_s7 + $0xbc0] sm:$0xff]  ;;  %2311 = vst [vmem:[%s16607_s8 + $0x5d0] sm:$0xff] %v2310_v58  ;;  %2313 = vst [vmem:[%s16607_s8 + $0x5d8] sm:$0xff] %v2312_v59  ;;  %v2316_v61 = vld [vmem:[%s16602_s7 + $0xbd0] sm:$0xff] }
  0x78   : > { %2315 = vst [vmem:[%s16607_s8 + $0x5e0] sm:$0xff] %v2314_v60  ;;  %v2318_v62 = vld [vmem:[%s16602_s7 + $0xbe0] sm:$0xff]  ;;  %v2320_v63 = vld [vmem:[%s16602_s7 + $0xbf0] sm:$0xff]  ;;  %2317 = vst [vmem:[%s16607_s8 + $0x5e8] sm:$0xff] %v2316_v61 }
  0x79   : > { %2319 = vst [vmem:[%s16607_s8 + $0x5f0] sm:$0xff] %v2318_v62  ;;  %2321 = vst [vmem:[%s16607_s8 + $0x5f8] sm:$0xff] %v2320_v63  ;;  %v2322_v0 = vld [vmem:[%s16602_s7 + $0xc00] sm:$0xff]  ;;  %v2324_v1 = vld [vmem:[%s16602_s7 + $0xc10] sm:$0xff] }
  0x7a   : > { %v2326_v2 = vld [vmem:[%s16602_s7 + $0xc20] sm:$0xff]  ;;  %2323 = vst [vmem:[%s16607_s8 + $0x600] sm:$0xff] %v2322_v0  ;;  %2325 = vst [vmem:[%s16607_s8 + $0x608] sm:$0xff] %v2324_v1  ;;  %v2328_v3 = vld [vmem:[%s16602_s7 + $0xc30] sm:$0xff] }
  0x7b   : > { %2327 = vst [vmem:[%s16607_s8 + $0x610] sm:$0xff] %v2326_v2  ;;  %v2330_v4 = vld [vmem:[%s16602_s7 + $0xc40] sm:$0xff]  ;;  %v2332_v5 = vld [vmem:[%s16602_s7 + $0xc50] sm:$0xff]  ;;  %2329 = vst [vmem:[%s16607_s8 + $0x618] sm:$0xff] %v2328_v3 }
  0x7c   : > { %2331 = vst [vmem:[%s16607_s8 + $0x620] sm:$0xff] %v2330_v4  ;;  %2333 = vst [vmem:[%s16607_s8 + $0x628] sm:$0xff] %v2332_v5  ;;  %v2334_v6 = vld [vmem:[%s16602_s7 + $0xc60] sm:$0xff]  ;;  %v2336_v7 = vld [vmem:[%s16602_s7 + $0xc70] sm:$0xff] }
  0x7d   : > { %v2338_v8 = vld [vmem:[%s16602_s7 + $0xc80] sm:$0xff]  ;;  %2335 = vst [vmem:[%s16607_s8 + $0x630] sm:$0xff] %v2334_v6  ;;  %2337 = vst [vmem:[%s16607_s8 + $0x638] sm:$0xff] %v2336_v7  ;;  %v2340_v9 = vld [vmem:[%s16602_s7 + $0xc90] sm:$0xff] }
  0x7e   : > { %2339 = vst [vmem:[%s16607_s8 + $0x640] sm:$0xff] %v2338_v8  ;;  %v2342_v10 = vld [vmem:[%s16602_s7 + $0xca0] sm:$0xff]  ;;  %v2344_v11 = vld [vmem:[%s16602_s7 + $0xcb0] sm:$0xff]  ;;  %2341 = vst [vmem:[%s16607_s8 + $0x648] sm:$0xff] %v2340_v9 }
  0x7f   : > { %2343 = vst [vmem:[%s16607_s8 + $0x650] sm:$0xff] %v2342_v10  ;;  %2345 = vst [vmem:[%s16607_s8 + $0x658] sm:$0xff] %v2344_v11  ;;  %v2346_v12 = vld [vmem:[%s16602_s7 + $0xcc0] sm:$0xff]  ;;  %v2348_v13 = vld [vmem:[%s16602_s7 + $0xcd0] sm:$0xff] }
  0x80   : > { %v2350_v14 = vld [vmem:[%s16602_s7 + $0xce0] sm:$0xff]  ;;  %2347 = vst [vmem:[%s16607_s8 + $0x660] sm:$0xff] %v2346_v12  ;;  %2349 = vst [vmem:[%s16607_s8 + $0x668] sm:$0xff] %v2348_v13  ;;  %v2352_v15 = vld [vmem:[%s16602_s7 + $0xcf0] sm:$0xff] }
  0x81   : > { %2351 = vst [vmem:[%s16607_s8 + $0x670] sm:$0xff] %v2350_v14  ;;  %v2354_v16 = vld [vmem:[%s16602_s7 + $0xd00] sm:$0xff]  ;;  %v2356_v17 = vld [vmem:[%s16602_s7 + $0xd10] sm:$0xff]  ;;  %2353 = vst [vmem:[%s16607_s8 + $0x678] sm:$0xff] %v2352_v15 }
  0x82   : > { %2355 = vst [vmem:[%s16607_s8 + $0x680] sm:$0xff] %v2354_v16  ;;  %2357 = vst [vmem:[%s16607_s8 + $0x688] sm:$0xff] %v2356_v17  ;;  %v2358_v18 = vld [vmem:[%s16602_s7 + $0xd20] sm:$0xff]  ;;  %v2360_v19 = vld [vmem:[%s16602_s7 + $0xd30] sm:$0xff] }
  0x83   : > { %v2362_v20 = vld [vmem:[%s16602_s7 + $0xd40] sm:$0xff]  ;;  %2359 = vst [vmem:[%s16607_s8 + $0x690] sm:$0xff] %v2358_v18  ;;  %2361 = vst [vmem:[%s16607_s8 + $0x698] sm:$0xff] %v2360_v19  ;;  %v2364_v21 = vld [vmem:[%s16602_s7 + $0xd50] sm:$0xff] }
  0x84   : > { %2363 = vst [vmem:[%s16607_s8 + $0x6a0] sm:$0xff] %v2362_v20  ;;  %v2366_v22 = vld [vmem:[%s16602_s7 + $0xd60] sm:$0xff]  ;;  %v2368_v23 = vld [vmem:[%s16602_s7 + $0xd70] sm:$0xff]  ;;  %2365 = vst [vmem:[%s16607_s8 + $0x6a8] sm:$0xff] %v2364_v21 }
  0x85   : > { %2367 = vst [vmem:[%s16607_s8 + $0x6b0] sm:$0xff] %v2366_v22  ;;  %2369 = vst [vmem:[%s16607_s8 + $0x6b8] sm:$0xff] %v2368_v23  ;;  %v2370_v24 = vld [vmem:[%s16602_s7 + $0xd80] sm:$0xff]  ;;  %v2372_v25 = vld [vmem:[%s16602_s7 + $0xd90] sm:$0xff] }
  0x86   : > { %v2374_v26 = vld [vmem:[%s16602_s7 + $0xda0] sm:$0xff]  ;;  %2371 = vst [vmem:[%s16607_s8 + $0x6c0] sm:$0xff] %v2370_v24  ;;  %2373 = vst [vmem:[%s16607_s8 + $0x6c8] sm:$0xff] %v2372_v25  ;;  %v2376_v27 = vld [vmem:[%s16602_s7 + $0xdb0] sm:$0xff] }
  0x87   : > { %2375 = vst [vmem:[%s16607_s8 + $0x6d0] sm:$0xff] %v2374_v26  ;;  %v2378_v28 = vld [vmem:[%s16602_s7 + $0xdc0] sm:$0xff]  ;;  %v2380_v29 = vld [vmem:[%s16602_s7 + $0xdd0] sm:$0xff]  ;;  %2377 = vst [vmem:[%s16607_s8 + $0x6d8] sm:$0xff] %v2376_v27 }
  0x88   : > { %2379 = vst [vmem:[%s16607_s8 + $0x6e0] sm:$0xff] %v2378_v28  ;;  %2381 = vst [vmem:[%s16607_s8 + $0x6e8] sm:$0xff] %v2380_v29  ;;  %v2382_v30 = vld [vmem:[%s16602_s7 + $0xde0] sm:$0xff]  ;;  %v2384_v31 = vld [vmem:[%s16602_s7 + $0xdf0] sm:$0xff] }
  0x89   : > { %v2386_v32 = vld [vmem:[%s16602_s7 + $0xe00] sm:$0xff]  ;;  %2383 = vst [vmem:[%s16607_s8 + $0x6f0] sm:$0xff] %v2382_v30  ;;  %2385 = vst [vmem:[%s16607_s8 + $0x6f8] sm:$0xff] %v2384_v31  ;;  %v2388_v33 = vld [vmem:[%s16602_s7 + $0xe10] sm:$0xff] }
  0x8a   : > { %2387 = vst [vmem:[%s16607_s8 + $0x700] sm:$0xff] %v2386_v32  ;;  %v2390_v34 = vld [vmem:[%s16602_s7 + $0xe20] sm:$0xff]  ;;  %v2392_v35 = vld [vmem:[%s16602_s7 + $0xe30] sm:$0xff]  ;;  %2389 = vst [vmem:[%s16607_s8 + $0x708] sm:$0xff] %v2388_v33 }
  0x8b   : > { %2391 = vst [vmem:[%s16607_s8 + $0x710] sm:$0xff] %v2390_v34  ;;  %2393 = vst [vmem:[%s16607_s8 + $0x718] sm:$0xff] %v2392_v35  ;;  %v2394_v36 = vld [vmem:[%s16602_s7 + $0xe40] sm:$0xff]  ;;  %v2396_v37 = vld [vmem:[%s16602_s7 + $0xe50] sm:$0xff] }
  0x8c   : > { %v2398_v38 = vld [vmem:[%s16602_s7 + $0xe60] sm:$0xff]  ;;  %2395 = vst [vmem:[%s16607_s8 + $0x720] sm:$0xff] %v2394_v36  ;;  %2397 = vst [vmem:[%s16607_s8 + $0x728] sm:$0xff] %v2396_v37  ;;  %v2400_v39 = vld [vmem:[%s16602_s7 + $0xe70] sm:$0xff] }
  0x8d   : > { %2399 = vst [vmem:[%s16607_s8 + $0x730] sm:$0xff] %v2398_v38  ;;  %v2402_v40 = vld [vmem:[%s16602_s7 + $0xe80] sm:$0xff]  ;;  %v2404_v41 = vld [vmem:[%s16602_s7 + $0xe90] sm:$0xff]  ;;  %2401 = vst [vmem:[%s16607_s8 + $0x738] sm:$0xff] %v2400_v39 }
  0x8e   : > { %2403 = vst [vmem:[%s16607_s8 + $0x740] sm:$0xff] %v2402_v40  ;;  %2405 = vst [vmem:[%s16607_s8 + $0x748] sm:$0xff] %v2404_v41  ;;  %v2406_v42 = vld [vmem:[%s16602_s7 + $0xea0] sm:$0xff]  ;;  %v2408_v43 = vld [vmem:[%s16602_s7 + $0xeb0] sm:$0xff] }
  0x8f   : > { %v2410_v44 = vld [vmem:[%s16602_s7 + $0xec0] sm:$0xff]  ;;  %2407 = vst [vmem:[%s16607_s8 + $0x750] sm:$0xff] %v2406_v42  ;;  %2409 = vst [vmem:[%s16607_s8 + $0x758] sm:$0xff] %v2408_v43  ;;  %v2412_v45 = vld [vmem:[%s16602_s7 + $0xed0] sm:$0xff] }
  0x90   : > { %2411 = vst [vmem:[%s16607_s8 + $0x760] sm:$0xff] %v2410_v44  ;;  %v2414_v46 = vld [vmem:[%s16602_s7 + $0xee0] sm:$0xff]  ;;  %v2416_v47 = vld [vmem:[%s16602_s7 + $0xef0] sm:$0xff]  ;;  %2413 = vst [vmem:[%s16607_s8 + $0x768] sm:$0xff] %v2412_v45 }
  0x91   : > { %2415 = vst [vmem:[%s16607_s8 + $0x770] sm:$0xff] %v2414_v46  ;;  %2417 = vst [vmem:[%s16607_s8 + $0x778] sm:$0xff] %v2416_v47  ;;  %v2418_v48 = vld [vmem:[%s16602_s7 + $0xf00] sm:$0xff]  ;;  %v2420_v49 = vld [vmem:[%s16602_s7 + $0xf10] sm:$0xff] }
  0x92   : > { %v2422_v50 = vld [vmem:[%s16602_s7 + $0xf20] sm:$0xff]  ;;  %2419 = vst [vmem:[%s16607_s8 + $0x780] sm:$0xff] %v2418_v48  ;;  %2421 = vst [vmem:[%s16607_s8 + $0x788] sm:$0xff] %v2420_v49  ;;  %v2424_v51 = vld [vmem:[%s16602_s7 + $0xf30] sm:$0xff] }
  0x93   : > { %2423 = vst [vmem:[%s16607_s8 + $0x790] sm:$0xff] %v2422_v50  ;;  %v2426_v52 = vld [vmem:[%s16602_s7 + $0xf40] sm:$0xff]  ;;  %v2428_v53 = vld [vmem:[%s16602_s7 + $0xf50] sm:$0xff]  ;;  %2425 = vst [vmem:[%s16607_s8 + $0x798] sm:$0xff] %v2424_v51 }
  0x94   : > { %2427 = vst [vmem:[%s16607_s8 + $0x7a0] sm:$0xff] %v2426_v52  ;;  %2429 = vst [vmem:[%s16607_s8 + $0x7a8] sm:$0xff] %v2428_v53  ;;  %v2430_v54 = vld [vmem:[%s16602_s7 + $0xf60] sm:$0xff]  ;;  %v2432_v55 = vld [vmem:[%s16602_s7 + $0xf70] sm:$0xff] }
  0x95   : > { %v2434_v56 = vld [vmem:[%s16602_s7 + $0xf80] sm:$0xff]  ;;  %2431 = vst [vmem:[%s16607_s8 + $0x7b0] sm:$0xff] %v2430_v54  ;;  %2433 = vst [vmem:[%s16607_s8 + $0x7b8] sm:$0xff] %v2432_v55  ;;  %v2436_v57 = vld [vmem:[%s16602_s7 + $0xf90] sm:$0xff] }
  0x96   : > { %2435 = vst [vmem:[%s16607_s8 + $0x7c0] sm:$0xff] %v2434_v56  ;;  %v2438_v58 = vld [vmem:[%s16602_s7 + $0xfa0] sm:$0xff]  ;;  %v2440_v59 = vld [vmem:[%s16602_s7 + $0xfb0] sm:$0xff]  ;;  %2437 = vst [vmem:[%s16607_s8 + $0x7c8] sm:$0xff] %v2436_v57 }
  0x97   : > { %2439 = vst [vmem:[%s16607_s8 + $0x7d0] sm:$0xff] %v2438_v58  ;;  %2441 = vst [vmem:[%s16607_s8 + $0x7d8] sm:$0xff] %v2440_v59  ;;  %v2442_v60 = vld [vmem:[%s16602_s7 + $0xfc0] sm:$0xff]  ;;  %v2444_v61 = vld [vmem:[%s16602_s7 + $0xfd0] sm:$0xff] }
  0x98   : > { %v2446_v62 = vld [vmem:[%s16602_s7 + $0xfe0] sm:$0xff]  ;;  %2443 = vst [vmem:[%s16607_s8 + $0x7e0] sm:$0xff] %v2442_v60  ;;  %2445 = vst [vmem:[%s16607_s8 + $0x7e8] sm:$0xff] %v2444_v61  ;;  %v2448_v63 = vld [vmem:[%s16602_s7 + $0xff0] sm:$0xff] }
  0x99   : > { %2447 = vst [vmem:[%s16607_s8 + $0x7f0] sm:$0xff] %v2446_v62  ;;  %v2450_v0 = vld [vmem:[%s16602_s7 + $0x1000] sm:$0xff]  ;;  %v2452_v1 = vld [vmem:[%s16602_s7 + $0x1010] sm:$0xff]  ;;  %2449 = vst [vmem:[%s16607_s8 + $0x7f8] sm:$0xff] %v2448_v63 }
  0x9a   : > { %2451 = vst [vmem:[%s16607_s8 + $0x800] sm:$0xff] %v2450_v0  ;;  %2453 = vst [vmem:[%s16607_s8 + $0x808] sm:$0xff] %v2452_v1  ;;  %v2454_v2 = vld [vmem:[%s16602_s7 + $0x1020] sm:$0xff]  ;;  %v2456_v3 = vld [vmem:[%s16602_s7 + $0x1030] sm:$0xff] }
  0x9b   : > { %v2458_v4 = vld [vmem:[%s16602_s7 + $0x1040] sm:$0xff]  ;;  %2455 = vst [vmem:[%s16607_s8 + $0x810] sm:$0xff] %v2454_v2  ;;  %2457 = vst [vmem:[%s16607_s8 + $0x818] sm:$0xff] %v2456_v3  ;;  %v2460_v5 = vld [vmem:[%s16602_s7 + $0x1050] sm:$0xff] }
  0x9c   : > { %2459 = vst [vmem:[%s16607_s8 + $0x820] sm:$0xff] %v2458_v4  ;;  %v2462_v6 = vld [vmem:[%s16602_s7 + $0x1060] sm:$0xff]  ;;  %v2464_v7 = vld [vmem:[%s16602_s7 + $0x1070] sm:$0xff]  ;;  %2461 = vst [vmem:[%s16607_s8 + $0x828] sm:$0xff] %v2460_v5 }
  0x9d   : > { %2463 = vst [vmem:[%s16607_s8 + $0x830] sm:$0xff] %v2462_v6  ;;  %2465 = vst [vmem:[%s16607_s8 + $0x838] sm:$0xff] %v2464_v7  ;;  %v2466_v8 = vld [vmem:[%s16602_s7 + $0x1080] sm:$0xff]  ;;  %v2468_v9 = vld [vmem:[%s16602_s7 + $0x1090] sm:$0xff] }
  0x9e   : > { %v2470_v10 = vld [vmem:[%s16602_s7 + $0x10a0] sm:$0xff]  ;;  %2467 = vst [vmem:[%s16607_s8 + $0x840] sm:$0xff] %v2466_v8  ;;  %2469 = vst [vmem:[%s16607_s8 + $0x848] sm:$0xff] %v2468_v9  ;;  %v2472_v11 = vld [vmem:[%s16602_s7 + $0x10b0] sm:$0xff] }
  0x9f   : > { %2471 = vst [vmem:[%s16607_s8 + $0x850] sm:$0xff] %v2470_v10  ;;  %v2474_v12 = vld [vmem:[%s16602_s7 + $0x10c0] sm:$0xff]  ;;  %v2476_v13 = vld [vmem:[%s16602_s7 + $0x10d0] sm:$0xff]  ;;  %2473 = vst [vmem:[%s16607_s8 + $0x858] sm:$0xff] %v2472_v11 }
  0xa0   : > { %2475 = vst [vmem:[%s16607_s8 + $0x860] sm:$0xff] %v2474_v12  ;;  %2477 = vst [vmem:[%s16607_s8 + $0x868] sm:$0xff] %v2476_v13  ;;  %v2478_v14 = vld [vmem:[%s16602_s7 + $0x10e0] sm:$0xff]  ;;  %v2480_v15 = vld [vmem:[%s16602_s7 + $0x10f0] sm:$0xff] }
  0xa1   : > { %v2482_v16 = vld [vmem:[%s16602_s7 + $0x1100] sm:$0xff]  ;;  %2479 = vst [vmem:[%s16607_s8 + $0x870] sm:$0xff] %v2478_v14  ;;  %2481 = vst [vmem:[%s16607_s8 + $0x878] sm:$0xff] %v2480_v15  ;;  %v2484_v17 = vld [vmem:[%s16602_s7 + $0x1110] sm:$0xff] }
  0xa2   : > { %2483 = vst [vmem:[%s16607_s8 + $0x880] sm:$0xff] %v2482_v16  ;;  %v2486_v18 = vld [vmem:[%s16602_s7 + $0x1120] sm:$0xff]  ;;  %v2488_v19 = vld [vmem:[%s16602_s7 + $0x1130] sm:$0xff]  ;;  %2485 = vst [vmem:[%s16607_s8 + $0x888] sm:$0xff] %v2484_v17 }
  0xa3   : > { %2487 = vst [vmem:[%s16607_s8 + $0x890] sm:$0xff] %v2486_v18  ;;  %2489 = vst [vmem:[%s16607_s8 + $0x898] sm:$0xff] %v2488_v19  ;;  %v2490_v20 = vld [vmem:[%s16602_s7 + $0x1140] sm:$0xff]  ;;  %v2492_v21 = vld [vmem:[%s16602_s7 + $0x1150] sm:$0xff] }
  0xa4   : > { %v2494_v22 = vld [vmem:[%s16602_s7 + $0x1160] sm:$0xff]  ;;  %2491 = vst [vmem:[%s16607_s8 + $0x8a0] sm:$0xff] %v2490_v20  ;;  %2493 = vst [vmem:[%s16607_s8 + $0x8a8] sm:$0xff] %v2492_v21  ;;  %v2496_v23 = vld [vmem:[%s16602_s7 + $0x1170] sm:$0xff] }
  0xa5   : > { %2495 = vst [vmem:[%s16607_s8 + $0x8b0] sm:$0xff] %v2494_v22  ;;  %v2498_v24 = vld [vmem:[%s16602_s7 + $0x1180] sm:$0xff]  ;;  %v2500_v25 = vld [vmem:[%s16602_s7 + $0x1190] sm:$0xff]  ;;  %2497 = vst [vmem:[%s16607_s8 + $0x8b8] sm:$0xff] %v2496_v23 }
  0xa6   : > { %2499 = vst [vmem:[%s16607_s8 + $0x8c0] sm:$0xff] %v2498_v24  ;;  %2501 = vst [vmem:[%s16607_s8 + $0x8c8] sm:$0xff] %v2500_v25  ;;  %v2502_v26 = vld [vmem:[%s16602_s7 + $0x11a0] sm:$0xff]  ;;  %v2504_v27 = vld [vmem:[%s16602_s7 + $0x11b0] sm:$0xff] }
  0xa7   : > { %v2506_v28 = vld [vmem:[%s16602_s7 + $0x11c0] sm:$0xff]  ;;  %2503 = vst [vmem:[%s16607_s8 + $0x8d0] sm:$0xff] %v2502_v26  ;;  %2505 = vst [vmem:[%s16607_s8 + $0x8d8] sm:$0xff] %v2504_v27  ;;  %v2508_v29 = vld [vmem:[%s16602_s7 + $0x11d0] sm:$0xff] }
  0xa8   : > { %2507 = vst [vmem:[%s16607_s8 + $0x8e0] sm:$0xff] %v2506_v28  ;;  %v2510_v30 = vld [vmem:[%s16602_s7 + $0x11e0] sm:$0xff]  ;;  %v2512_v31 = vld [vmem:[%s16602_s7 + $0x11f0] sm:$0xff]  ;;  %2509 = vst [vmem:[%s16607_s8 + $0x8e8] sm:$0xff] %v2508_v29 }
  0xa9   : > { %2511 = vst [vmem:[%s16607_s8 + $0x8f0] sm:$0xff] %v2510_v30  ;;  %2513 = vst [vmem:[%s16607_s8 + $0x8f8] sm:$0xff] %v2512_v31  ;;  %v2514_v32 = vld [vmem:[%s16602_s7 + $0x1200] sm:$0xff]  ;;  %v2516_v33 = vld [vmem:[%s16602_s7 + $0x1210] sm:$0xff] }
  0xaa   : > { %v2518_v34 = vld [vmem:[%s16602_s7 + $0x1220] sm:$0xff]  ;;  %2515 = vst [vmem:[%s16607_s8 + $0x900] sm:$0xff] %v2514_v32  ;;  %2517 = vst [vmem:[%s16607_s8 + $0x908] sm:$0xff] %v2516_v33  ;;  %v2520_v35 = vld [vmem:[%s16602_s7 + $0x1230] sm:$0xff] }
  0xab   : > { %2519 = vst [vmem:[%s16607_s8 + $0x910] sm:$0xff] %v2518_v34  ;;  %v2522_v36 = vld [vmem:[%s16602_s7 + $0x1240] sm:$0xff]  ;;  %v2524_v37 = vld [vmem:[%s16602_s7 + $0x1250] sm:$0xff]  ;;  %2521 = vst [vmem:[%s16607_s8 + $0x918] sm:$0xff] %v2520_v35 }
  0xac   : > { %2523 = vst [vmem:[%s16607_s8 + $0x920] sm:$0xff] %v2522_v36  ;;  %2525 = vst [vmem:[%s16607_s8 + $0x928] sm:$0xff] %v2524_v37  ;;  %v2526_v38 = vld [vmem:[%s16602_s7 + $0x1260] sm:$0xff]  ;;  %v2528_v39 = vld [vmem:[%s16602_s7 + $0x1270] sm:$0xff] }
  0xad   : > { %v2530_v40 = vld [vmem:[%s16602_s7 + $0x1280] sm:$0xff]  ;;  %2527 = vst [vmem:[%s16607_s8 + $0x930] sm:$0xff] %v2526_v38  ;;  %2529 = vst [vmem:[%s16607_s8 + $0x938] sm:$0xff] %v2528_v39  ;;  %v2532_v41 = vld [vmem:[%s16602_s7 + $0x1290] sm:$0xff] }
  0xae   : > { %2531 = vst [vmem:[%s16607_s8 + $0x940] sm:$0xff] %v2530_v40  ;;  %v2534_v42 = vld [vmem:[%s16602_s7 + $0x12a0] sm:$0xff]  ;;  %v2536_v43 = vld [vmem:[%s16602_s7 + $0x12b0] sm:$0xff]  ;;  %2533 = vst [vmem:[%s16607_s8 + $0x948] sm:$0xff] %v2532_v41 }
  0xaf   : > { %2535 = vst [vmem:[%s16607_s8 + $0x950] sm:$0xff] %v2534_v42  ;;  %2537 = vst [vmem:[%s16607_s8 + $0x958] sm:$0xff] %v2536_v43  ;;  %v2538_v44 = vld [vmem:[%s16602_s7 + $0x12c0] sm:$0xff]  ;;  %v2540_v45 = vld [vmem:[%s16602_s7 + $0x12d0] sm:$0xff] }
  0xb0   : > { %v2542_v46 = vld [vmem:[%s16602_s7 + $0x12e0] sm:$0xff]  ;;  %2539 = vst [vmem:[%s16607_s8 + $0x960] sm:$0xff] %v2538_v44  ;;  %2541 = vst [vmem:[%s16607_s8 + $0x968] sm:$0xff] %v2540_v45  ;;  %v2544_v47 = vld [vmem:[%s16602_s7 + $0x12f0] sm:$0xff] }
  0xb1   : > { %2543 = vst [vmem:[%s16607_s8 + $0x970] sm:$0xff] %v2542_v46  ;;  %v2546_v48 = vld [vmem:[%s16602_s7 + $0x1300] sm:$0xff]  ;;  %v2548_v49 = vld [vmem:[%s16602_s7 + $0x1310] sm:$0xff]  ;;  %2545 = vst [vmem:[%s16607_s8 + $0x978] sm:$0xff] %v2544_v47 }
  0xb2   : > { %2547 = vst [vmem:[%s16607_s8 + $0x980] sm:$0xff] %v2546_v48  ;;  %2549 = vst [vmem:[%s16607_s8 + $0x988] sm:$0xff] %v2548_v49  ;;  %v2550_v50 = vld [vmem:[%s16602_s7 + $0x1320] sm:$0xff]  ;;  %v2552_v51 = vld [vmem:[%s16602_s7 + $0x1330] sm:$0xff] }
  0xb3   : > { %v2554_v52 = vld [vmem:[%s16602_s7 + $0x1340] sm:$0xff]  ;;  %2551 = vst [vmem:[%s16607_s8 + $0x990] sm:$0xff] %v2550_v50  ;;  %2553 = vst [vmem:[%s16607_s8 + $0x998] sm:$0xff] %v2552_v51  ;;  %v2556_v53 = vld [vmem:[%s16602_s7 + $0x1350] sm:$0xff] }
  0xb4   : > { %2555 = vst [vmem:[%s16607_s8 + $0x9a0] sm:$0xff] %v2554_v52  ;;  %v2558_v54 = vld [vmem:[%s16602_s7 + $0x1360] sm:$0xff]  ;;  %v2560_v55 = vld [vmem:[%s16602_s7 + $0x1370] sm:$0xff]  ;;  %2557 = vst [vmem:[%s16607_s8 + $0x9a8] sm:$0xff] %v2556_v53 }
  0xb5   : > { %2559 = vst [vmem:[%s16607_s8 + $0x9b0] sm:$0xff] %v2558_v54  ;;  %2561 = vst [vmem:[%s16607_s8 + $0x9b8] sm:$0xff] %v2560_v55  ;;  %v2562_v56 = vld [vmem:[%s16602_s7 + $0x1380] sm:$0xff]  ;;  %v2564_v57 = vld [vmem:[%s16602_s7 + $0x1390] sm:$0xff] }
  0xb6   : > { %v2566_v58 = vld [vmem:[%s16602_s7 + $0x13a0] sm:$0xff]  ;;  %2563 = vst [vmem:[%s16607_s8 + $0x9c0] sm:$0xff] %v2562_v56  ;;  %2565 = vst [vmem:[%s16607_s8 + $0x9c8] sm:$0xff] %v2564_v57  ;;  %v2568_v59 = vld [vmem:[%s16602_s7 + $0x13b0] sm:$0xff] }
  0xb7   : > { %2567 = vst [vmem:[%s16607_s8 + $0x9d0] sm:$0xff] %v2566_v58  ;;  %v2570_v60 = vld [vmem:[%s16602_s7 + $0x13c0] sm:$0xff]  ;;  %v2572_v61 = vld [vmem:[%s16602_s7 + $0x13d0] sm:$0xff]  ;;  %2569 = vst [vmem:[%s16607_s8 + $0x9d8] sm:$0xff] %v2568_v59 }
  0xb8   : > { %2571 = vst [vmem:[%s16607_s8 + $0x9e0] sm:$0xff] %v2570_v60  ;;  %2573 = vst [vmem:[%s16607_s8 + $0x9e8] sm:$0xff] %v2572_v61  ;;  %v2574_v62 = vld [vmem:[%s16602_s7 + $0x13e0] sm:$0xff]  ;;  %v2576_v63 = vld [vmem:[%s16602_s7 + $0x13f0] sm:$0xff] }
  0xb9   : > { %v2578_v0 = vld [vmem:[%s16602_s7 + $0x1400] sm:$0xff]  ;;  %2575 = vst [vmem:[%s16607_s8 + $0x9f0] sm:$0xff] %v2574_v62  ;;  %2577 = vst [vmem:[%s16607_s8 + $0x9f8] sm:$0xff] %v2576_v63  ;;  %v2580_v1 = vld [vmem:[%s16602_s7 + $0x1410] sm:$0xff] }
  0xba   : > { %2579 = vst [vmem:[%s16607_s8 + $0xa00] sm:$0xff] %v2578_v0  ;;  %v2582_v2 = vld [vmem:[%s16602_s7 + $0x1420] sm:$0xff]  ;;  %v2584_v3 = vld [vmem:[%s16602_s7 + $0x1430] sm:$0xff]  ;;  %2581 = vst [vmem:[%s16607_s8 + $0xa08] sm:$0xff] %v2580_v1 }
  0xbb   : > { %2583 = vst [vmem:[%s16607_s8 + $0xa10] sm:$0xff] %v2582_v2  ;;  %2585 = vst [vmem:[%s16607_s8 + $0xa18] sm:$0xff] %v2584_v3  ;;  %v2586_v4 = vld [vmem:[%s16602_s7 + $0x1440] sm:$0xff]  ;;  %v2588_v5 = vld [vmem:[%s16602_s7 + $0x1450] sm:$0xff] }
  0xbc   : > { %v2590_v6 = vld [vmem:[%s16602_s7 + $0x1460] sm:$0xff]  ;;  %2587 = vst [vmem:[%s16607_s8 + $0xa20] sm:$0xff] %v2586_v4  ;;  %2589 = vst [vmem:[%s16607_s8 + $0xa28] sm:$0xff] %v2588_v5  ;;  %v2592_v7 = vld [vmem:[%s16602_s7 + $0x1470] sm:$0xff] }
  0xbd   : > { %2591 = vst [vmem:[%s16607_s8 + $0xa30] sm:$0xff] %v2590_v6  ;;  %v2594_v8 = vld [vmem:[%s16602_s7 + $0x1480] sm:$0xff]  ;;  %v2596_v9 = vld [vmem:[%s16602_s7 + $0x1490] sm:$0xff]  ;;  %2593 = vst [vmem:[%s16607_s8 + $0xa38] sm:$0xff] %v2592_v7 }
  0xbe   : > { %2595 = vst [vmem:[%s16607_s8 + $0xa40] sm:$0xff] %v2594_v8  ;;  %2597 = vst [vmem:[%s16607_s8 + $0xa48] sm:$0xff] %v2596_v9  ;;  %v2598_v10 = vld [vmem:[%s16602_s7 + $0x14a0] sm:$0xff]  ;;  %v2600_v11 = vld [vmem:[%s16602_s7 + $0x14b0] sm:$0xff] }
  0xbf   : > { %v2602_v12 = vld [vmem:[%s16602_s7 + $0x14c0] sm:$0xff]  ;;  %2599 = vst [vmem:[%s16607_s8 + $0xa50] sm:$0xff] %v2598_v10  ;;  %2601 = vst [vmem:[%s16607_s8 + $0xa58] sm:$0xff] %v2600_v11  ;;  %v2604_v13 = vld [vmem:[%s16602_s7 + $0x14d0] sm:$0xff] }
  0xc0   : > { %2603 = vst [vmem:[%s16607_s8 + $0xa60] sm:$0xff] %v2602_v12  ;;  %v2606_v14 = vld [vmem:[%s16602_s7 + $0x14e0] sm:$0xff]  ;;  %v2608_v15 = vld [vmem:[%s16602_s7 + $0x14f0] sm:$0xff]  ;;  %2605 = vst [vmem:[%s16607_s8 + $0xa68] sm:$0xff] %v2604_v13 }
  0xc1   : > { %2607 = vst [vmem:[%s16607_s8 + $0xa70] sm:$0xff] %v2606_v14  ;;  %2609 = vst [vmem:[%s16607_s8 + $0xa78] sm:$0xff] %v2608_v15  ;;  %v2610_v16 = vld [vmem:[%s16602_s7 + $0x1500] sm:$0xff]  ;;  %v2612_v17 = vld [vmem:[%s16602_s7 + $0x1510] sm:$0xff] }
  0xc2   : > { %v2614_v18 = vld [vmem:[%s16602_s7 + $0x1520] sm:$0xff]  ;;  %2611 = vst [vmem:[%s16607_s8 + $0xa80] sm:$0xff] %v2610_v16  ;;  %2613 = vst [vmem:[%s16607_s8 + $0xa88] sm:$0xff] %v2612_v17  ;;  %v2616_v19 = vld [vmem:[%s16602_s7 + $0x1530] sm:$0xff] }
  0xc3   : > { %2615 = vst [vmem:[%s16607_s8 + $0xa90] sm:$0xff] %v2614_v18  ;;  %v2618_v20 = vld [vmem:[%s16602_s7 + $0x1540] sm:$0xff]  ;;  %v2620_v21 = vld [vmem:[%s16602_s7 + $0x1550] sm:$0xff]  ;;  %2617 = vst [vmem:[%s16607_s8 + $0xa98] sm:$0xff] %v2616_v19 }
  0xc4   : > { %2619 = vst [vmem:[%s16607_s8 + $0xaa0] sm:$0xff] %v2618_v20  ;;  %2621 = vst [vmem:[%s16607_s8 + $0xaa8] sm:$0xff] %v2620_v21  ;;  %v2622_v22 = vld [vmem:[%s16602_s7 + $0x1560] sm:$0xff]  ;;  %v2624_v23 = vld [vmem:[%s16602_s7 + $0x1570] sm:$0xff] }
  0xc5   : > { %v2626_v24 = vld [vmem:[%s16602_s7 + $0x1580] sm:$0xff]  ;;  %2623 = vst [vmem:[%s16607_s8 + $0xab0] sm:$0xff] %v2622_v22  ;;  %2625 = vst [vmem:[%s16607_s8 + $0xab8] sm:$0xff] %v2624_v23  ;;  %v2628_v25 = vld [vmem:[%s16602_s7 + $0x1590] sm:$0xff] }
  0xc6   : > { %2627 = vst [vmem:[%s16607_s8 + $0xac0] sm:$0xff] %v2626_v24  ;;  %v2630_v26 = vld [vmem:[%s16602_s7 + $0x15a0] sm:$0xff]  ;;  %v2632_v27 = vld [vmem:[%s16602_s7 + $0x15b0] sm:$0xff]  ;;  %2629 = vst [vmem:[%s16607_s8 + $0xac8] sm:$0xff] %v2628_v25 }
  0xc7   : > { %2631 = vst [vmem:[%s16607_s8 + $0xad0] sm:$0xff] %v2630_v26  ;;  %2633 = vst [vmem:[%s16607_s8 + $0xad8] sm:$0xff] %v2632_v27  ;;  %v2634_v28 = vld [vmem:[%s16602_s7 + $0x15c0] sm:$0xff]  ;;  %v2636_v29 = vld [vmem:[%s16602_s7 + $0x15d0] sm:$0xff] }
  0xc8   : > { %v2638_v30 = vld [vmem:[%s16602_s7 + $0x15e0] sm:$0xff]  ;;  %2635 = vst [vmem:[%s16607_s8 + $0xae0] sm:$0xff] %v2634_v28  ;;  %2637 = vst [vmem:[%s16607_s8 + $0xae8] sm:$0xff] %v2636_v29  ;;  %v2640_v31 = vld [vmem:[%s16602_s7 + $0x15f0] sm:$0xff] }
  0xc9   : > { %2639 = vst [vmem:[%s16607_s8 + $0xaf0] sm:$0xff] %v2638_v30  ;;  %v2642_v32 = vld [vmem:[%s16602_s7 + $0x1600] sm:$0xff]  ;;  %v2644_v33 = vld [vmem:[%s16602_s7 + $0x1610] sm:$0xff]  ;;  %2641 = vst [vmem:[%s16607_s8 + $0xaf8] sm:$0xff] %v2640_v31 }
  0xca   : > { %2643 = vst [vmem:[%s16607_s8 + $0xb00] sm:$0xff] %v2642_v32  ;;  %2645 = vst [vmem:[%s16607_s8 + $0xb08] sm:$0xff] %v2644_v33  ;;  %v2646_v34 = vld [vmem:[%s16602_s7 + $0x1620] sm:$0xff]  ;;  %v2648_v35 = vld [vmem:[%s16602_s7 + $0x1630] sm:$0xff] }
  0xcb   : > { %v2650_v36 = vld [vmem:[%s16602_s7 + $0x1640] sm:$0xff]  ;;  %2647 = vst [vmem:[%s16607_s8 + $0xb10] sm:$0xff] %v2646_v34  ;;  %2649 = vst [vmem:[%s16607_s8 + $0xb18] sm:$0xff] %v2648_v35  ;;  %v2652_v37 = vld [vmem:[%s16602_s7 + $0x1650] sm:$0xff] }
  0xcc   : > { %2651 = vst [vmem:[%s16607_s8 + $0xb20] sm:$0xff] %v2650_v36  ;;  %v2654_v38 = vld [vmem:[%s16602_s7 + $0x1660] sm:$0xff]  ;;  %v2656_v39 = vld [vmem:[%s16602_s7 + $0x1670] sm:$0xff]  ;;  %2653 = vst [vmem:[%s16607_s8 + $0xb28] sm:$0xff] %v2652_v37 }
  0xcd   : > { %2655 = vst [vmem:[%s16607_s8 + $0xb30] sm:$0xff] %v2654_v38  ;;  %2657 = vst [vmem:[%s16607_s8 + $0xb38] sm:$0xff] %v2656_v39  ;;  %v2658_v40 = vld [vmem:[%s16602_s7 + $0x1680] sm:$0xff]  ;;  %v2660_v41 = vld [vmem:[%s16602_s7 + $0x1690] sm:$0xff] }
  0xce   : > { %v2662_v42 = vld [vmem:[%s16602_s7 + $0x16a0] sm:$0xff]  ;;  %2659 = vst [vmem:[%s16607_s8 + $0xb40] sm:$0xff] %v2658_v40  ;;  %2661 = vst [vmem:[%s16607_s8 + $0xb48] sm:$0xff] %v2660_v41  ;;  %v2664_v43 = vld [vmem:[%s16602_s7 + $0x16b0] sm:$0xff] }
  0xcf   : > { %2663 = vst [vmem:[%s16607_s8 + $0xb50] sm:$0xff] %v2662_v42  ;;  %v2666_v44 = vld [vmem:[%s16602_s7 + $0x16c0] sm:$0xff]  ;;  %v2668_v45 = vld [vmem:[%s16602_s7 + $0x16d0] sm:$0xff]  ;;  %2665 = vst [vmem:[%s16607_s8 + $0xb58] sm:$0xff] %v2664_v43 }
  0xd0   : > { %2667 = vst [vmem:[%s16607_s8 + $0xb60] sm:$0xff] %v2666_v44  ;;  %2669 = vst [vmem:[%s16607_s8 + $0xb68] sm:$0xff] %v2668_v45  ;;  %v2670_v46 = vld [vmem:[%s16602_s7 + $0x16e0] sm:$0xff]  ;;  %v2672_v47 = vld [vmem:[%s16602_s7 + $0x16f0] sm:$0xff] }
  0xd1   : > { %v2674_v48 = vld [vmem:[%s16602_s7 + $0x1700] sm:$0xff]  ;;  %2671 = vst [vmem:[%s16607_s8 + $0xb70] sm:$0xff] %v2670_v46  ;;  %2673 = vst [vmem:[%s16607_s8 + $0xb78] sm:$0xff] %v2672_v47  ;;  %v2676_v49 = vld [vmem:[%s16602_s7 + $0x1710] sm:$0xff] }
  0xd2   : > { %2675 = vst [vmem:[%s16607_s8 + $0xb80] sm:$0xff] %v2674_v48  ;;  %v2678_v50 = vld [vmem:[%s16602_s7 + $0x1720] sm:$0xff]  ;;  %v2680_v51 = vld [vmem:[%s16602_s7 + $0x1730] sm:$0xff]  ;;  %2677 = vst [vmem:[%s16607_s8 + $0xb88] sm:$0xff] %v2676_v49 }
  0xd3   : > { %2679 = vst [vmem:[%s16607_s8 + $0xb90] sm:$0xff] %v2678_v50  ;;  %2681 = vst [vmem:[%s16607_s8 + $0xb98] sm:$0xff] %v2680_v51  ;;  %v2682_v52 = vld [vmem:[%s16602_s7 + $0x1740] sm:$0xff]  ;;  %v2684_v53 = vld [vmem:[%s16602_s7 + $0x1750] sm:$0xff] }
  0xd4   : > { %v2686_v54 = vld [vmem:[%s16602_s7 + $0x1760] sm:$0xff]  ;;  %2683 = vst [vmem:[%s16607_s8 + $0xba0] sm:$0xff] %v2682_v52  ;;  %2685 = vst [vmem:[%s16607_s8 + $0xba8] sm:$0xff] %v2684_v53  ;;  %v2688_v55 = vld [vmem:[%s16602_s7 + $0x1770] sm:$0xff] }
  0xd5   : > { %2687 = vst [vmem:[%s16607_s8 + $0xbb0] sm:$0xff] %v2686_v54  ;;  %v2690_v56 = vld [vmem:[%s16602_s7 + $0x1780] sm:$0xff]  ;;  %v2692_v57 = vld [vmem:[%s16602_s7 + $0x1790] sm:$0xff]  ;;  %2689 = vst [vmem:[%s16607_s8 + $0xbb8] sm:$0xff] %v2688_v55 }
  0xd6   : > { %2691 = vst [vmem:[%s16607_s8 + $0xbc0] sm:$0xff] %v2690_v56  ;;  %2693 = vst [vmem:[%s16607_s8 + $0xbc8] sm:$0xff] %v2692_v57  ;;  %v2694_v58 = vld [vmem:[%s16602_s7 + $0x17a0] sm:$0xff]  ;;  %v2696_v59 = vld [vmem:[%s16602_s7 + $0x17b0] sm:$0xff] }
  0xd7   : > { %v2698_v60 = vld [vmem:[%s16602_s7 + $0x17c0] sm:$0xff]  ;;  %2695 = vst [vmem:[%s16607_s8 + $0xbd0] sm:$0xff] %v2694_v58  ;;  %2697 = vst [vmem:[%s16607_s8 + $0xbd8] sm:$0xff] %v2696_v59  ;;  %v2700_v61 = vld [vmem:[%s16602_s7 + $0x17d0] sm:$0xff] }
  0xd8   : > { %2699 = vst [vmem:[%s16607_s8 + $0xbe0] sm:$0xff] %v2698_v60  ;;  %v2702_v62 = vld [vmem:[%s16602_s7 + $0x17e0] sm:$0xff]  ;;  %v2704_v63 = vld [vmem:[%s16602_s7 + $0x17f0] sm:$0xff]  ;;  %2701 = vst [vmem:[%s16607_s8 + $0xbe8] sm:$0xff] %v2700_v61 }
  0xd9   : > { %2703 = vst [vmem:[%s16607_s8 + $0xbf0] sm:$0xff] %v2702_v62  ;;  %2705 = vst [vmem:[%s16607_s8 + $0xbf8] sm:$0xff] %v2704_v63  ;;  %v2706_v0 = vld [vmem:[%s16602_s7 + $0x1800] sm:$0xff]  ;;  %v2708_v1 = vld [vmem:[%s16602_s7 + $0x1810] sm:$0xff] }
  0xda   : > { %v2710_v2 = vld [vmem:[%s16602_s7 + $0x1820] sm:$0xff]  ;;  %2707 = vst [vmem:[%s16607_s8 + $0xc00] sm:$0xff] %v2706_v0  ;;  %2709 = vst [vmem:[%s16607_s8 + $0xc08] sm:$0xff] %v2708_v1  ;;  %v2712_v3 = vld [vmem:[%s16602_s7 + $0x1830] sm:$0xff] }
  0xdb   : > { %2711 = vst [vmem:[%s16607_s8 + $0xc10] sm:$0xff] %v2710_v2  ;;  %v2714_v4 = vld [vmem:[%s16602_s7 + $0x1840] sm:$0xff]  ;;  %v2716_v5 = vld [vmem:[%s16602_s7 + $0x1850] sm:$0xff]  ;;  %2713 = vst [vmem:[%s16607_s8 + $0xc18] sm:$0xff] %v2712_v3 }
  0xdc   : > { %2715 = vst [vmem:[%s16607_s8 + $0xc20] sm:$0xff] %v2714_v4  ;;  %2717 = vst [vmem:[%s16607_s8 + $0xc28] sm:$0xff] %v2716_v5  ;;  %v2718_v6 = vld [vmem:[%s16602_s7 + $0x1860] sm:$0xff]  ;;  %v2720_v7 = vld [vmem:[%s16602_s7 + $0x1870] sm:$0xff] }
  0xdd   : > { %v2722_v8 = vld [vmem:[%s16602_s7 + $0x1880] sm:$0xff]  ;;  %2719 = vst [vmem:[%s16607_s8 + $0xc30] sm:$0xff] %v2718_v6  ;;  %2721 = vst [vmem:[%s16607_s8 + $0xc38] sm:$0xff] %v2720_v7  ;;  %v2724_v9 = vld [vmem:[%s16602_s7 + $0x1890] sm:$0xff] }
  0xde   : > { %2723 = vst [vmem:[%s16607_s8 + $0xc40] sm:$0xff] %v2722_v8  ;;  %v2726_v10 = vld [vmem:[%s16602_s7 + $0x18a0] sm:$0xff]  ;;  %v2728_v11 = vld [vmem:[%s16602_s7 + $0x18b0] sm:$0xff]  ;;  %2725 = vst [vmem:[%s16607_s8 + $0xc48] sm:$0xff] %v2724_v9 }
  0xdf   : > { %2727 = vst [vmem:[%s16607_s8 + $0xc50] sm:$0xff] %v2726_v10  ;;  %2729 = vst [vmem:[%s16607_s8 + $0xc58] sm:$0xff] %v2728_v11  ;;  %v2730_v12 = vld [vmem:[%s16602_s7 + $0x18c0] sm:$0xff]  ;;  %v2732_v13 = vld [vmem:[%s16602_s7 + $0x18d0] sm:$0xff] }
  0xe0   : > { %v2734_v14 = vld [vmem:[%s16602_s7 + $0x18e0] sm:$0xff]  ;;  %2731 = vst [vmem:[%s16607_s8 + $0xc60] sm:$0xff] %v2730_v12  ;;  %2733 = vst [vmem:[%s16607_s8 + $0xc68] sm:$0xff] %v2732_v13  ;;  %v2736_v15 = vld [vmem:[%s16602_s7 + $0x18f0] sm:$0xff] }
  0xe1   : > { %2735 = vst [vmem:[%s16607_s8 + $0xc70] sm:$0xff] %v2734_v14  ;;  %v2738_v16 = vld [vmem:[%s16602_s7 + $0x1900] sm:$0xff]  ;;  %v2740_v17 = vld [vmem:[%s16602_s7 + $0x1910] sm:$0xff]  ;;  %2737 = vst [vmem:[%s16607_s8 + $0xc78] sm:$0xff] %v2736_v15 }
  0xe2   : > { %2739 = vst [vmem:[%s16607_s8 + $0xc80] sm:$0xff] %v2738_v16  ;;  %2741 = vst [vmem:[%s16607_s8 + $0xc88] sm:$0xff] %v2740_v17  ;;  %v2742_v18 = vld [vmem:[%s16602_s7 + $0x1920] sm:$0xff]  ;;  %v2744_v19 = vld [vmem:[%s16602_s7 + $0x1930] sm:$0xff] }
  0xe3   : > { %v2746_v20 = vld [vmem:[%s16602_s7 + $0x1940] sm:$0xff]  ;;  %2743 = vst [vmem:[%s16607_s8 + $0xc90] sm:$0xff] %v2742_v18  ;;  %2745 = vst [vmem:[%s16607_s8 + $0xc98] sm:$0xff] %v2744_v19  ;;  %v2748_v21 = vld [vmem:[%s16602_s7 + $0x1950] sm:$0xff] }
  0xe4   : > { %2747 = vst [vmem:[%s16607_s8 + $0xca0] sm:$0xff] %v2746_v20  ;;  %v2750_v22 = vld [vmem:[%s16602_s7 + $0x1960] sm:$0xff]  ;;  %v2752_v23 = vld [vmem:[%s16602_s7 + $0x1970] sm:$0xff]  ;;  %2749 = vst [vmem:[%s16607_s8 + $0xca8] sm:$0xff] %v2748_v21 }
  0xe5   : > { %2751 = vst [vmem:[%s16607_s8 + $0xcb0] sm:$0xff] %v2750_v22  ;;  %2753 = vst [vmem:[%s16607_s8 + $0xcb8] sm:$0xff] %v2752_v23  ;;  %v2754_v24 = vld [vmem:[%s16602_s7 + $0x1980] sm:$0xff]  ;;  %v2756_v25 = vld [vmem:[%s16602_s7 + $0x1990] sm:$0xff] }
  0xe6   : > { %v2758_v26 = vld [vmem:[%s16602_s7 + $0x19a0] sm:$0xff]  ;;  %2755 = vst [vmem:[%s16607_s8 + $0xcc0] sm:$0xff] %v2754_v24  ;;  %2757 = vst [vmem:[%s16607_s8 + $0xcc8] sm:$0xff] %v2756_v25  ;;  %v2760_v27 = vld [vmem:[%s16602_s7 + $0x19b0] sm:$0xff] }
  0xe7   : > { %2759 = vst [vmem:[%s16607_s8 + $0xcd0] sm:$0xff] %v2758_v26  ;;  %v2762_v28 = vld [vmem:[%s16602_s7 + $0x19c0] sm:$0xff]  ;;  %v2764_v29 = vld [vmem:[%s16602_s7 + $0x19d0] sm:$0xff]  ;;  %2761 = vst [vmem:[%s16607_s8 + $0xcd8] sm:$0xff] %v2760_v27 }
  0xe8   : > { %2763 = vst [vmem:[%s16607_s8 + $0xce0] sm:$0xff] %v2762_v28  ;;  %2765 = vst [vmem:[%s16607_s8 + $0xce8] sm:$0xff] %v2764_v29  ;;  %v2766_v30 = vld [vmem:[%s16602_s7 + $0x19e0] sm:$0xff]  ;;  %v2768_v31 = vld [vmem:[%s16602_s7 + $0x19f0] sm:$0xff] }
  0xe9   : > { %v2770_v32 = vld [vmem:[%s16602_s7 + $0x1a00] sm:$0xff]  ;;  %2767 = vst [vmem:[%s16607_s8 + $0xcf0] sm:$0xff] %v2766_v30  ;;  %2769 = vst [vmem:[%s16607_s8 + $0xcf8] sm:$0xff] %v2768_v31  ;;  %v2772_v33 = vld [vmem:[%s16602_s7 + $0x1a10] sm:$0xff] }
  0xea   : > { %2771 = vst [vmem:[%s16607_s8 + $0xd00] sm:$0xff] %v2770_v32  ;;  %v2774_v34 = vld [vmem:[%s16602_s7 + $0x1a20] sm:$0xff]  ;;  %v2776_v35 = vld [vmem:[%s16602_s7 + $0x1a30] sm:$0xff]  ;;  %2773 = vst [vmem:[%s16607_s8 + $0xd08] sm:$0xff] %v2772_v33 }
  0xeb   : > { %2775 = vst [vmem:[%s16607_s8 + $0xd10] sm:$0xff] %v2774_v34  ;;  %2777 = vst [vmem:[%s16607_s8 + $0xd18] sm:$0xff] %v2776_v35  ;;  %v2778_v36 = vld [vmem:[%s16602_s7 + $0x1a40] sm:$0xff]  ;;  %v2780_v37 = vld [vmem:[%s16602_s7 + $0x1a50] sm:$0xff] }
  0xec   : > { %v2782_v38 = vld [vmem:[%s16602_s7 + $0x1a60] sm:$0xff]  ;;  %2779 = vst [vmem:[%s16607_s8 + $0xd20] sm:$0xff] %v2778_v36  ;;  %2781 = vst [vmem:[%s16607_s8 + $0xd28] sm:$0xff] %v2780_v37  ;;  %v2784_v39 = vld [vmem:[%s16602_s7 + $0x1a70] sm:$0xff] }
  0xed   : > { %2783 = vst [vmem:[%s16607_s8 + $0xd30] sm:$0xff] %v2782_v38  ;;  %v2786_v40 = vld [vmem:[%s16602_s7 + $0x1a80] sm:$0xff]  ;;  %v2788_v41 = vld [vmem:[%s16602_s7 + $0x1a90] sm:$0xff]  ;;  %2785 = vst [vmem:[%s16607_s8 + $0xd38] sm:$0xff] %v2784_v39 }
  0xee   : > { %2787 = vst [vmem:[%s16607_s8 + $0xd40] sm:$0xff] %v2786_v40  ;;  %2789 = vst [vmem:[%s16607_s8 + $0xd48] sm:$0xff] %v2788_v41  ;;  %v2790_v42 = vld [vmem:[%s16602_s7 + $0x1aa0] sm:$0xff]  ;;  %v2792_v43 = vld [vmem:[%s16602_s7 + $0x1ab0] sm:$0xff] }
  0xef   : > { %v2794_v44 = vld [vmem:[%s16602_s7 + $0x1ac0] sm:$0xff]  ;;  %2791 = vst [vmem:[%s16607_s8 + $0xd50] sm:$0xff] %v2790_v42  ;;  %2793 = vst [vmem:[%s16607_s8 + $0xd58] sm:$0xff] %v2792_v43  ;;  %v2796_v45 = vld [vmem:[%s16602_s7 + $0x1ad0] sm:$0xff] }
  0xf0   : > { %2795 = vst [vmem:[%s16607_s8 + $0xd60] sm:$0xff] %v2794_v44  ;;  %v2798_v46 = vld [vmem:[%s16602_s7 + $0x1ae0] sm:$0xff]  ;;  %v2800_v47 = vld [vmem:[%s16602_s7 + $0x1af0] sm:$0xff]  ;;  %2797 = vst [vmem:[%s16607_s8 + $0xd68] sm:$0xff] %v2796_v45 }
  0xf1   : > { %2799 = vst [vmem:[%s16607_s8 + $0xd70] sm:$0xff] %v2798_v46  ;;  %2801 = vst [vmem:[%s16607_s8 + $0xd78] sm:$0xff] %v2800_v47  ;;  %v2802_v48 = vld [vmem:[%s16602_s7 + $0x1b00] sm:$0xff]  ;;  %v2804_v49 = vld [vmem:[%s16602_s7 + $0x1b10] sm:$0xff] }
  0xf2   : > { %v2806_v50 = vld [vmem:[%s16602_s7 + $0x1b20] sm:$0xff]  ;;  %2803 = vst [vmem:[%s16607_s8 + $0xd80] sm:$0xff] %v2802_v48  ;;  %2805 = vst [vmem:[%s16607_s8 + $0xd88] sm:$0xff] %v2804_v49  ;;  %v2808_v51 = vld [vmem:[%s16602_s7 + $0x1b30] sm:$0xff] }
  0xf3   : > { %2807 = vst [vmem:[%s16607_s8 + $0xd90] sm:$0xff] %v2806_v50  ;;  %v2810_v52 = vld [vmem:[%s16602_s7 + $0x1b40] sm:$0xff]  ;;  %v2812_v53 = vld [vmem:[%s16602_s7 + $0x1b50] sm:$0xff]  ;;  %2809 = vst [vmem:[%s16607_s8 + $0xd98] sm:$0xff] %v2808_v51 }
  0xf4   : > { %2811 = vst [vmem:[%s16607_s8 + $0xda0] sm:$0xff] %v2810_v52  ;;  %2813 = vst [vmem:[%s16607_s8 + $0xda8] sm:$0xff] %v2812_v53  ;;  %v2814_v54 = vld [vmem:[%s16602_s7 + $0x1b60] sm:$0xff]  ;;  %v2816_v55 = vld [vmem:[%s16602_s7 + $0x1b70] sm:$0xff] }
  0xf5   : > { %v2818_v56 = vld [vmem:[%s16602_s7 + $0x1b80] sm:$0xff]  ;;  %2815 = vst [vmem:[%s16607_s8 + $0xdb0] sm:$0xff] %v2814_v54  ;;  %2817 = vst [vmem:[%s16607_s8 + $0xdb8] sm:$0xff] %v2816_v55  ;;  %v2820_v57 = vld [vmem:[%s16602_s7 + $0x1b90] sm:$0xff] }
  0xf6   : > { %2819 = vst [vmem:[%s16607_s8 + $0xdc0] sm:$0xff] %v2818_v56  ;;  %v2822_v58 = vld [vmem:[%s16602_s7 + $0x1ba0] sm:$0xff]  ;;  %v2824_v59 = vld [vmem:[%s16602_s7 + $0x1bb0] sm:$0xff]  ;;  %2821 = vst [vmem:[%s16607_s8 + $0xdc8] sm:$0xff] %v2820_v57 }
  0xf7   : > { %2823 = vst [vmem:[%s16607_s8 + $0xdd0] sm:$0xff] %v2822_v58  ;;  %2825 = vst [vmem:[%s16607_s8 + $0xdd8] sm:$0xff] %v2824_v59  ;;  %v2826_v60 = vld [vmem:[%s16602_s7 + $0x1bc0] sm:$0xff]  ;;  %v2828_v61 = vld [vmem:[%s16602_s7 + $0x1bd0] sm:$0xff] }
  0xf8   : > { %v2830_v62 = vld [vmem:[%s16602_s7 + $0x1be0] sm:$0xff]  ;;  %2827 = vst [vmem:[%s16607_s8 + $0xde0] sm:$0xff] %v2826_v60  ;;  %2829 = vst [vmem:[%s16607_s8 + $0xde8] sm:$0xff] %v2828_v61  ;;  %v2832_v63 = vld [vmem:[%s16602_s7 + $0x1bf0] sm:$0xff] }
  0xf9   : > { %2831 = vst [vmem:[%s16607_s8 + $0xdf0] sm:$0xff] %v2830_v62  ;;  %v2834_v0 = vld [vmem:[%s16602_s7 + $0x1c00] sm:$0xff]  ;;  %v2836_v1 = vld [vmem:[%s16602_s7 + $0x1c10] sm:$0xff]  ;;  %2833 = vst [vmem:[%s16607_s8 + $0xdf8] sm:$0xff] %v2832_v63 }
  0xfa   : > { %2835 = vst [vmem:[%s16607_s8 + $0xe00] sm:$0xff] %v2834_v0  ;;  %2837 = vst [vmem:[%s16607_s8 + $0xe08] sm:$0xff] %v2836_v1  ;;  %v2838_v2 = vld [vmem:[%s16602_s7 + $0x1c20] sm:$0xff]  ;;  %v2840_v3 = vld [vmem:[%s16602_s7 + $0x1c30] sm:$0xff] }
  0xfb   : > { %v2842_v4 = vld [vmem:[%s16602_s7 + $0x1c40] sm:$0xff]  ;;  %2839 = vst [vmem:[%s16607_s8 + $0xe10] sm:$0xff] %v2838_v2  ;;  %2841 = vst [vmem:[%s16607_s8 + $0xe18] sm:$0xff] %v2840_v3  ;;  %v2844_v5 = vld [vmem:[%s16602_s7 + $0x1c50] sm:$0xff] }
  0xfc   : > { %2843 = vst [vmem:[%s16607_s8 + $0xe20] sm:$0xff] %v2842_v4  ;;  %v2846_v6 = vld [vmem:[%s16602_s7 + $0x1c60] sm:$0xff]  ;;  %v2848_v7 = vld [vmem:[%s16602_s7 + $0x1c70] sm:$0xff]  ;;  %2845 = vst [vmem:[%s16607_s8 + $0xe28] sm:$0xff] %v2844_v5 }
  0xfd   : > { %2847 = vst [vmem:[%s16607_s8 + $0xe30] sm:$0xff] %v2846_v6  ;;  %2849 = vst [vmem:[%s16607_s8 + $0xe38] sm:$0xff] %v2848_v7  ;;  %v2850_v8 = vld [vmem:[%s16602_s7 + $0x1c80] sm:$0xff]  ;;  %v2852_v9 = vld [vmem:[%s16602_s7 + $0x1c90] sm:$0xff] }
  0xfe   : > { %v2854_v10 = vld [vmem:[%s16602_s7 + $0x1ca0] sm:$0xff]  ;;  %2851 = vst [vmem:[%s16607_s8 + $0xe40] sm:$0xff] %v2850_v8  ;;  %2853 = vst [vmem:[%s16607_s8 + $0xe48] sm:$0xff] %v2852_v9  ;;  %v2856_v11 = vld [vmem:[%s16602_s7 + $0x1cb0] sm:$0xff] }
  0xff   : > { %2855 = vst [vmem:[%s16607_s8 + $0xe50] sm:$0xff] %v2854_v10  ;;  %v2858_v12 = vld [vmem:[%s16602_s7 + $0x1cc0] sm:$0xff]  ;;  %v2860_v13 = vld [vmem:[%s16602_s7 + $0x1cd0] sm:$0xff]  ;;  %2857 = vst [vmem:[%s16607_s8 + $0xe58] sm:$0xff] %v2856_v11 }
 0x100   : > { %2859 = vst [vmem:[%s16607_s8 + $0xe60] sm:$0xff] %v2858_v12  ;;  %2861 = vst [vmem:[%s16607_s8 + $0xe68] sm:$0xff] %v2860_v13  ;;  %v2862_v14 = vld [vmem:[%s16602_s7 + $0x1ce0] sm:$0xff]  ;;  %v2864_v15 = vld [vmem:[%s16602_s7 + $0x1cf0] sm:$0xff] }
 0x101   : > { %v2866_v16 = vld [vmem:[%s16602_s7 + $0x1d00] sm:$0xff]  ;;  %2863 = vst [vmem:[%s16607_s8 + $0xe70] sm:$0xff] %v2862_v14  ;;  %2865 = vst [vmem:[%s16607_s8 + $0xe78] sm:$0xff] %v2864_v15  ;;  %v2868_v17 = vld [vmem:[%s16602_s7 + $0x1d10] sm:$0xff] }
 0x102   : > { %2867 = vst [vmem:[%s16607_s8 + $0xe80] sm:$0xff] %v2866_v16  ;;  %v2870_v18 = vld [vmem:[%s16602_s7 + $0x1d20] sm:$0xff]  ;;  %v2872_v19 = vld [vmem:[%s16602_s7 + $0x1d30] sm:$0xff]  ;;  %2869 = vst [vmem:[%s16607_s8 + $0xe88] sm:$0xff] %v2868_v17 }
 0x103   : > { %2871 = vst [vmem:[%s16607_s8 + $0xe90] sm:$0xff] %v2870_v18  ;;  %2873 = vst [vmem:[%s16607_s8 + $0xe98] sm:$0xff] %v2872_v19  ;;  %v2874_v20 = vld [vmem:[%s16602_s7 + $0x1d40] sm:$0xff]  ;;  %v2876_v21 = vld [vmem:[%s16602_s7 + $0x1d50] sm:$0xff] }
 0x104   : > { %v2878_v22 = vld [vmem:[%s16602_s7 + $0x1d60] sm:$0xff]  ;;  %2875 = vst [vmem:[%s16607_s8 + $0xea0] sm:$0xff] %v2874_v20  ;;  %2877 = vst [vmem:[%s16607_s8 + $0xea8] sm:$0xff] %v2876_v21  ;;  %v2880_v23 = vld [vmem:[%s16602_s7 + $0x1d70] sm:$0xff] }
 0x105   : > { %2879 = vst [vmem:[%s16607_s8 + $0xeb0] sm:$0xff] %v2878_v22  ;;  %v2882_v24 = vld [vmem:[%s16602_s7 + $0x1d80] sm:$0xff]  ;;  %v2884_v25 = vld [vmem:[%s16602_s7 + $0x1d90] sm:$0xff]  ;;  %2881 = vst [vmem:[%s16607_s8 + $0xeb8] sm:$0xff] %v2880_v23 }
 0x106   : > { %2883 = vst [vmem:[%s16607_s8 + $0xec0] sm:$0xff] %v2882_v24  ;;  %2885 = vst [vmem:[%s16607_s8 + $0xec8] sm:$0xff] %v2884_v25  ;;  %v2886_v26 = vld [vmem:[%s16602_s7 + $0x1da0] sm:$0xff]  ;;  %v2888_v27 = vld [vmem:[%s16602_s7 + $0x1db0] sm:$0xff] }
 0x107   : > { %v2890_v28 = vld [vmem:[%s16602_s7 + $0x1dc0] sm:$0xff]  ;;  %2887 = vst [vmem:[%s16607_s8 + $0xed0] sm:$0xff] %v2886_v26  ;;  %2889 = vst [vmem:[%s16607_s8 + $0xed8] sm:$0xff] %v2888_v27  ;;  %v2892_v29 = vld [vmem:[%s16602_s7 + $0x1dd0] sm:$0xff] }
 0x108   : > { %2891 = vst [vmem:[%s16607_s8 + $0xee0] sm:$0xff] %v2890_v28  ;;  %v2894_v30 = vld [vmem:[%s16602_s7 + $0x1de0] sm:$0xff]  ;;  %v2896_v31 = vld [vmem:[%s16602_s7 + $0x1df0] sm:$0xff]  ;;  %2893 = vst [vmem:[%s16607_s8 + $0xee8] sm:$0xff] %v2892_v29 }
 0x109   : > { %2895 = vst [vmem:[%s16607_s8 + $0xef0] sm:$0xff] %v2894_v30  ;;  %2897 = vst [vmem:[%s16607_s8 + $0xef8] sm:$0xff] %v2896_v31  ;;  %v2898_v32 = vld [vmem:[%s16602_s7 + $0x1e00] sm:$0xff]  ;;  %v2900_v33 = vld [vmem:[%s16602_s7 + $0x1e10] sm:$0xff] }
 0x10a   : > { %v2902_v34 = vld [vmem:[%s16602_s7 + $0x1e20] sm:$0xff]  ;;  %2899 = vst [vmem:[%s16607_s8 + $0xf00] sm:$0xff] %v2898_v32  ;;  %2901 = vst [vmem:[%s16607_s8 + $0xf08] sm:$0xff] %v2900_v33  ;;  %v2904_v35 = vld [vmem:[%s16602_s7 + $0x1e30] sm:$0xff] }
 0x10b   : > { %2903 = vst [vmem:[%s16607_s8 + $0xf10] sm:$0xff] %v2902_v34  ;;  %v2906_v36 = vld [vmem:[%s16602_s7 + $0x1e40] sm:$0xff]  ;;  %v2908_v37 = vld [vmem:[%s16602_s7 + $0x1e50] sm:$0xff]  ;;  %2905 = vst [vmem:[%s16607_s8 + $0xf18] sm:$0xff] %v2904_v35 }
 0x10c   : > { %2907 = vst [vmem:[%s16607_s8 + $0xf20] sm:$0xff] %v2906_v36  ;;  %2909 = vst [vmem:[%s16607_s8 + $0xf28] sm:$0xff] %v2908_v37  ;;  %v2910_v38 = vld [vmem:[%s16602_s7 + $0x1e60] sm:$0xff]  ;;  %v2912_v39 = vld [vmem:[%s16602_s7 + $0x1e70] sm:$0xff] }
 0x10d   : > { %v2914_v40 = vld [vmem:[%s16602_s7 + $0x1e80] sm:$0xff]  ;;  %2911 = vst [vmem:[%s16607_s8 + $0xf30] sm:$0xff] %v2910_v38  ;;  %2913 = vst [vmem:[%s16607_s8 + $0xf38] sm:$0xff] %v2912_v39  ;;  %v2916_v41 = vld [vmem:[%s16602_s7 + $0x1e90] sm:$0xff] }
 0x10e   : > { %2915 = vst [vmem:[%s16607_s8 + $0xf40] sm:$0xff] %v2914_v40  ;;  %v2918_v42 = vld [vmem:[%s16602_s7 + $0x1ea0] sm:$0xff]  ;;  %v2920_v43 = vld [vmem:[%s16602_s7 + $0x1eb0] sm:$0xff]  ;;  %2917 = vst [vmem:[%s16607_s8 + $0xf48] sm:$0xff] %v2916_v41 }
 0x10f   : > { %2919 = vst [vmem:[%s16607_s8 + $0xf50] sm:$0xff] %v2918_v42  ;;  %2921 = vst [vmem:[%s16607_s8 + $0xf58] sm:$0xff] %v2920_v43  ;;  %v2922_v44 = vld [vmem:[%s16602_s7 + $0x1ec0] sm:$0xff]  ;;  %v2924_v45 = vld [vmem:[%s16602_s7 + $0x1ed0] sm:$0xff] }
 0x110   : > { %v2926_v46 = vld [vmem:[%s16602_s7 + $0x1ee0] sm:$0xff]  ;;  %2923 = vst [vmem:[%s16607_s8 + $0xf60] sm:$0xff] %v2922_v44  ;;  %2925 = vst [vmem:[%s16607_s8 + $0xf68] sm:$0xff] %v2924_v45  ;;  %v2928_v47 = vld [vmem:[%s16602_s7 + $0x1ef0] sm:$0xff] }
 0x111   : > { %2927 = vst [vmem:[%s16607_s8 + $0xf70] sm:$0xff] %v2926_v46  ;;  %v2930_v48 = vld [vmem:[%s16602_s7 + $0x1f00] sm:$0xff]  ;;  %v2932_v49 = vld [vmem:[%s16602_s7 + $0x1f10] sm:$0xff]  ;;  %2929 = vst [vmem:[%s16607_s8 + $0xf78] sm:$0xff] %v2928_v47 }
 0x112   : > { %2931 = vst [vmem:[%s16607_s8 + $0xf80] sm:$0xff] %v2930_v48  ;;  %2933 = vst [vmem:[%s16607_s8 + $0xf88] sm:$0xff] %v2932_v49  ;;  %v2934_v50 = vld [vmem:[%s16602_s7 + $0x1f20] sm:$0xff]  ;;  %v2936_v51 = vld [vmem:[%s16602_s7 + $0x1f30] sm:$0xff] }
 0x113   : > { %v2938_v52 = vld [vmem:[%s16602_s7 + $0x1f40] sm:$0xff]  ;;  %2935 = vst [vmem:[%s16607_s8 + $0xf90] sm:$0xff] %v2934_v50  ;;  %2937 = vst [vmem:[%s16607_s8 + $0xf98] sm:$0xff] %v2936_v51  ;;  %v2940_v53 = vld [vmem:[%s16602_s7 + $0x1f50] sm:$0xff] }
 0x114   : > { %2939 = vst [vmem:[%s16607_s8 + $0xfa0] sm:$0xff] %v2938_v52  ;;  %v2942_v54 = vld [vmem:[%s16602_s7 + $0x1f60] sm:$0xff]  ;;  %v2944_v55 = vld [vmem:[%s16602_s7 + $0x1f70] sm:$0xff]  ;;  %2941 = vst [vmem:[%s16607_s8 + $0xfa8] sm:$0xff] %v2940_v53 }
 0x115   : > { %2943 = vst [vmem:[%s16607_s8 + $0xfb0] sm:$0xff] %v2942_v54  ;;  %2945 = vst [vmem:[%s16607_s8 + $0xfb8] sm:$0xff] %v2944_v55  ;;  %v2946_v56 = vld [vmem:[%s16602_s7 + $0x1f80] sm:$0xff]  ;;  %v2948_v57 = vld [vmem:[%s16602_s7 + $0x1f90] sm:$0xff] }
 0x116   : > { %v2950_v58 = vld [vmem:[%s16602_s7 + $0x1fa0] sm:$0xff]  ;;  %2947 = vst [vmem:[%s16607_s8 + $0xfc0] sm:$0xff] %v2946_v56  ;;  %2949 = vst [vmem:[%s16607_s8 + $0xfc8] sm:$0xff] %v2948_v57  ;;  %v2952_v59 = vld [vmem:[%s16602_s7 + $0x1fb0] sm:$0xff] }
 0x117   : > { %2951 = vst [vmem:[%s16607_s8 + $0xfd0] sm:$0xff] %v2950_v58  ;;  %v2954_v60 = vld [vmem:[%s16602_s7 + $0x1fc0] sm:$0xff]  ;;  %v2956_v61 = vld [vmem:[%s16602_s7 + $0x1fd0] sm:$0xff]  ;;  %2953 = vst [vmem:[%s16607_s8 + $0xfd8] sm:$0xff] %v2952_v59 }
 0x118   : > { %2955 = vst [vmem:[%s16607_s8 + $0xfe0] sm:$0xff] %v2954_v60  ;;  %2957 = vst [vmem:[%s16607_s8 + $0xfe8] sm:$0xff] %v2956_v61  ;;  %v2958_v62 = vld [vmem:[%s16602_s7 + $0x1fe0] sm:$0xff]  ;;  %v2960_v63 = vld [vmem:[%s16602_s7 + $0x1ff0] sm:$0xff] }
 0x119   : > { %v2962_v0 = vld [vmem:[%s16602_s7 + $0x2000] sm:$0xff]  ;;  %2959 = vst [vmem:[%s16607_s8 + $0xff0] sm:$0xff] %v2958_v62  ;;  %2961 = vst [vmem:[%s16607_s8 + $0xff8] sm:$0xff] %v2960_v63  ;;  %v2964_v1 = vld [vmem:[%s16602_s7 + $0x2010] sm:$0xff] }
 0x11a   : > { %2963 = vst [vmem:[%s16607_s8 + $0x1000] sm:$0xff] %v2962_v0  ;;  %v2966_v2 = vld [vmem:[%s16602_s7 + $0x2020] sm:$0xff]  ;;  %v2968_v3 = vld [vmem:[%s16602_s7 + $0x2030] sm:$0xff]  ;;  %2965 = vst [vmem:[%s16607_s8 + $0x1008] sm:$0xff] %v2964_v1 }
 0x11b   : > { %2967 = vst [vmem:[%s16607_s8 + $0x1010] sm:$0xff] %v2966_v2  ;;  %2969 = vst [vmem:[%s16607_s8 + $0x1018] sm:$0xff] %v2968_v3  ;;  %v2970_v4 = vld [vmem:[%s16602_s7 + $0x2040] sm:$0xff]  ;;  %v2972_v5 = vld [vmem:[%s16602_s7 + $0x2050] sm:$0xff] }
 0x11c   : > { %v2974_v6 = vld [vmem:[%s16602_s7 + $0x2060] sm:$0xff]  ;;  %2971 = vst [vmem:[%s16607_s8 + $0x1020] sm:$0xff] %v2970_v4  ;;  %2973 = vst [vmem:[%s16607_s8 + $0x1028] sm:$0xff] %v2972_v5  ;;  %v2976_v7 = vld [vmem:[%s16602_s7 + $0x2070] sm:$0xff] }
 0x11d   : > { %2975 = vst [vmem:[%s16607_s8 + $0x1030] sm:$0xff] %v2974_v6  ;;  %v2978_v8 = vld [vmem:[%s16602_s7 + $0x2080] sm:$0xff]  ;;  %v2980_v9 = vld [vmem:[%s16602_s7 + $0x2090] sm:$0xff]  ;;  %2977 = vst [vmem:[%s16607_s8 + $0x1038] sm:$0xff] %v2976_v7 }
 0x11e   : > { %2979 = vst [vmem:[%s16607_s8 + $0x1040] sm:$0xff] %v2978_v8  ;;  %2981 = vst [vmem:[%s16607_s8 + $0x1048] sm:$0xff] %v2980_v9  ;;  %v2982_v10 = vld [vmem:[%s16602_s7 + $0x20a0] sm:$0xff]  ;;  %v2984_v11 = vld [vmem:[%s16602_s7 + $0x20b0] sm:$0xff] }
 0x11f   : > { %v2986_v12 = vld [vmem:[%s16602_s7 + $0x20c0] sm:$0xff]  ;;  %2983 = vst [vmem:[%s16607_s8 + $0x1050] sm:$0xff] %v2982_v10  ;;  %2985 = vst [vmem:[%s16607_s8 + $0x1058] sm:$0xff] %v2984_v11  ;;  %v2988_v13 = vld [vmem:[%s16602_s7 + $0x20d0] sm:$0xff] }
 0x120   : > { %2987 = vst [vmem:[%s16607_s8 + $0x1060] sm:$0xff] %v2986_v12  ;;  %v2990_v14 = vld [vmem:[%s16602_s7 + $0x20e0] sm:$0xff]  ;;  %v2992_v15 = vld [vmem:[%s16602_s7 + $0x20f0] sm:$0xff]  ;;  %2989 = vst [vmem:[%s16607_s8 + $0x1068] sm:$0xff] %v2988_v13 }
 0x121   : > { %2991 = vst [vmem:[%s16607_s8 + $0x1070] sm:$0xff] %v2990_v14  ;;  %2993 = vst [vmem:[%s16607_s8 + $0x1078] sm:$0xff] %v2992_v15  ;;  %v2994_v16 = vld [vmem:[%s16602_s7 + $0x2100] sm:$0xff]  ;;  %v2996_v17 = vld [vmem:[%s16602_s7 + $0x2110] sm:$0xff] }
 0x122   : > { %v2998_v18 = vld [vmem:[%s16602_s7 + $0x2120] sm:$0xff]  ;;  %2995 = vst [vmem:[%s16607_s8 + $0x1080] sm:$0xff] %v2994_v16  ;;  %2997 = vst [vmem:[%s16607_s8 + $0x1088] sm:$0xff] %v2996_v17  ;;  %v3000_v19 = vld [vmem:[%s16602_s7 + $0x2130] sm:$0xff] }
 0x123   : > { %2999 = vst [vmem:[%s16607_s8 + $0x1090] sm:$0xff] %v2998_v18  ;;  %v3002_v20 = vld [vmem:[%s16602_s7 + $0x2140] sm:$0xff]  ;;  %v3004_v21 = vld [vmem:[%s16602_s7 + $0x2150] sm:$0xff]  ;;  %3001 = vst [vmem:[%s16607_s8 + $0x1098] sm:$0xff] %v3000_v19 }
 0x124   : > { %3003 = vst [vmem:[%s16607_s8 + $0x10a0] sm:$0xff] %v3002_v20  ;;  %3005 = vst [vmem:[%s16607_s8 + $0x10a8] sm:$0xff] %v3004_v21  ;;  %v3006_v22 = vld [vmem:[%s16602_s7 + $0x2160] sm:$0xff]  ;;  %v3008_v23 = vld [vmem:[%s16602_s7 + $0x2170] sm:$0xff] }
 0x125   : > { %v3010_v24 = vld [vmem:[%s16602_s7 + $0x2180] sm:$0xff]  ;;  %3007 = vst [vmem:[%s16607_s8 + $0x10b0] sm:$0xff] %v3006_v22  ;;  %3009 = vst [vmem:[%s16607_s8 + $0x10b8] sm:$0xff] %v3008_v23  ;;  %v3012_v25 = vld [vmem:[%s16602_s7 + $0x2190] sm:$0xff] }
 0x126   : > { %3011 = vst [vmem:[%s16607_s8 + $0x10c0] sm:$0xff] %v3010_v24  ;;  %v3014_v26 = vld [vmem:[%s16602_s7 + $0x21a0] sm:$0xff]  ;;  %v3016_v27 = vld [vmem:[%s16602_s7 + $0x21b0] sm:$0xff]  ;;  %3013 = vst [vmem:[%s16607_s8 + $0x10c8] sm:$0xff] %v3012_v25 }
 0x127   : > { %3015 = vst [vmem:[%s16607_s8 + $0x10d0] sm:$0xff] %v3014_v26  ;;  %3017 = vst [vmem:[%s16607_s8 + $0x10d8] sm:$0xff] %v3016_v27  ;;  %v3018_v28 = vld [vmem:[%s16602_s7 + $0x21c0] sm:$0xff]  ;;  %v3020_v29 = vld [vmem:[%s16602_s7 + $0x21d0] sm:$0xff] }
 0x128   : > { %v3022_v30 = vld [vmem:[%s16602_s7 + $0x21e0] sm:$0xff]  ;;  %3019 = vst [vmem:[%s16607_s8 + $0x10e0] sm:$0xff] %v3018_v28  ;;  %3021 = vst [vmem:[%s16607_s8 + $0x10e8] sm:$0xff] %v3020_v29  ;;  %v3024_v31 = vld [vmem:[%s16602_s7 + $0x21f0] sm:$0xff] }
 0x129   : > { %3023 = vst [vmem:[%s16607_s8 + $0x10f0] sm:$0xff] %v3022_v30  ;;  %v3026_v32 = vld [vmem:[%s16602_s7 + $0x2200] sm:$0xff]  ;;  %v3028_v33 = vld [vmem:[%s16602_s7 + $0x2210] sm:$0xff]  ;;  %3025 = vst [vmem:[%s16607_s8 + $0x10f8] sm:$0xff] %v3024_v31 }
 0x12a   : > { %3027 = vst [vmem:[%s16607_s8 + $0x1100] sm:$0xff] %v3026_v32  ;;  %3029 = vst [vmem:[%s16607_s8 + $0x1108] sm:$0xff] %v3028_v33  ;;  %v3030_v34 = vld [vmem:[%s16602_s7 + $0x2220] sm:$0xff]  ;;  %v3032_v35 = vld [vmem:[%s16602_s7 + $0x2230] sm:$0xff] }
 0x12b   : > { %v3034_v36 = vld [vmem:[%s16602_s7 + $0x2240] sm:$0xff]  ;;  %3031 = vst [vmem:[%s16607_s8 + $0x1110] sm:$0xff] %v3030_v34  ;;  %3033 = vst [vmem:[%s16607_s8 + $0x1118] sm:$0xff] %v3032_v35  ;;  %v3036_v37 = vld [vmem:[%s16602_s7 + $0x2250] sm:$0xff] }
 0x12c   : > { %3035 = vst [vmem:[%s16607_s8 + $0x1120] sm:$0xff] %v3034_v36  ;;  %v3038_v38 = vld [vmem:[%s16602_s7 + $0x2260] sm:$0xff]  ;;  %v3040_v39 = vld [vmem:[%s16602_s7 + $0x2270] sm:$0xff]  ;;  %3037 = vst [vmem:[%s16607_s8 + $0x1128] sm:$0xff] %v3036_v37 }
 0x12d   : > { %3039 = vst [vmem:[%s16607_s8 + $0x1130] sm:$0xff] %v3038_v38  ;;  %3041 = vst [vmem:[%s16607_s8 + $0x1138] sm:$0xff] %v3040_v39  ;;  %v3042_v40 = vld [vmem:[%s16602_s7 + $0x2280] sm:$0xff]  ;;  %v3044_v41 = vld [vmem:[%s16602_s7 + $0x2290] sm:$0xff] }
 0x12e   : > { %v3046_v42 = vld [vmem:[%s16602_s7 + $0x22a0] sm:$0xff]  ;;  %3043 = vst [vmem:[%s16607_s8 + $0x1140] sm:$0xff] %v3042_v40  ;;  %3045 = vst [vmem:[%s16607_s8 + $0x1148] sm:$0xff] %v3044_v41  ;;  %v3048_v43 = vld [vmem:[%s16602_s7 + $0x22b0] sm:$0xff] }
 0x12f   : > { %3047 = vst [vmem:[%s16607_s8 + $0x1150] sm:$0xff] %v3046_v42  ;;  %v3050_v44 = vld [vmem:[%s16602_s7 + $0x22c0] sm:$0xff]  ;;  %v3052_v45 = vld [vmem:[%s16602_s7 + $0x22d0] sm:$0xff]  ;;  %3049 = vst [vmem:[%s16607_s8 + $0x1158] sm:$0xff] %v3048_v43 }
 0x130   : > { %3051 = vst [vmem:[%s16607_s8 + $0x1160] sm:$0xff] %v3050_v44  ;;  %3053 = vst [vmem:[%s16607_s8 + $0x1168] sm:$0xff] %v3052_v45  ;;  %v3054_v46 = vld [vmem:[%s16602_s7 + $0x22e0] sm:$0xff]  ;;  %v3056_v47 = vld [vmem:[%s16602_s7 + $0x22f0] sm:$0xff] }
 0x131   : > { %v3058_v48 = vld [vmem:[%s16602_s7 + $0x2300] sm:$0xff]  ;;  %3055 = vst [vmem:[%s16607_s8 + $0x1170] sm:$0xff] %v3054_v46  ;;  %3057 = vst [vmem:[%s16607_s8 + $0x1178] sm:$0xff] %v3056_v47  ;;  %v3060_v49 = vld [vmem:[%s16602_s7 + $0x2310] sm:$0xff] }
 0x132   : > { %3059 = vst [vmem:[%s16607_s8 + $0x1180] sm:$0xff] %v3058_v48  ;;  %v3062_v50 = vld [vmem:[%s16602_s7 + $0x2320] sm:$0xff]  ;;  %v3064_v51 = vld [vmem:[%s16602_s7 + $0x2330] sm:$0xff]  ;;  %3061 = vst [vmem:[%s16607_s8 + $0x1188] sm:$0xff] %v3060_v49 }
 0x133   : > { %3063 = vst [vmem:[%s16607_s8 + $0x1190] sm:$0xff] %v3062_v50  ;;  %3065 = vst [vmem:[%s16607_s8 + $0x1198] sm:$0xff] %v3064_v51  ;;  %v3066_v52 = vld [vmem:[%s16602_s7 + $0x2340] sm:$0xff]  ;;  %v3068_v53 = vld [vmem:[%s16602_s7 + $0x2350] sm:$0xff] }
 0x134   : > { %v3070_v54 = vld [vmem:[%s16602_s7 + $0x2360] sm:$0xff]  ;;  %3067 = vst [vmem:[%s16607_s8 + $0x11a0] sm:$0xff] %v3066_v52  ;;  %3069 = vst [vmem:[%s16607_s8 + $0x11a8] sm:$0xff] %v3068_v53  ;;  %v3072_v55 = vld [vmem:[%s16602_s7 + $0x2370] sm:$0xff] }
 0x135   : > { %3071 = vst [vmem:[%s16607_s8 + $0x11b0] sm:$0xff] %v3070_v54  ;;  %v3074_v56 = vld [vmem:[%s16602_s7 + $0x2380] sm:$0xff]  ;;  %v3076_v57 = vld [vmem:[%s16602_s7 + $0x2390] sm:$0xff]  ;;  %3073 = vst [vmem:[%s16607_s8 + $0x11b8] sm:$0xff] %v3072_v55 }
 0x136   : > { %3075 = vst [vmem:[%s16607_s8 + $0x11c0] sm:$0xff] %v3074_v56  ;;  %3077 = vst [vmem:[%s16607_s8 + $0x11c8] sm:$0xff] %v3076_v57  ;;  %v3078_v58 = vld [vmem:[%s16602_s7 + $0x23a0] sm:$0xff]  ;;  %v3080_v59 = vld [vmem:[%s16602_s7 + $0x23b0] sm:$0xff] }
 0x137   : > { %v3082_v60 = vld [vmem:[%s16602_s7 + $0x23c0] sm:$0xff]  ;;  %3079 = vst [vmem:[%s16607_s8 + $0x11d0] sm:$0xff] %v3078_v58  ;;  %3081 = vst [vmem:[%s16607_s8 + $0x11d8] sm:$0xff] %v3080_v59  ;;  %v3084_v61 = vld [vmem:[%s16602_s7 + $0x23d0] sm:$0xff] }
 0x138   : > { %3083 = vst [vmem:[%s16607_s8 + $0x11e0] sm:$0xff] %v3082_v60  ;;  %v3086_v62 = vld [vmem:[%s16602_s7 + $0x23e0] sm:$0xff]  ;;  %v3088_v63 = vld [vmem:[%s16602_s7 + $0x23f0] sm:$0xff]  ;;  %3085 = vst [vmem:[%s16607_s8 + $0x11e8] sm:$0xff] %v3084_v61 }
 0x139   : > { %3087 = vst [vmem:[%s16607_s8 + $0x11f0] sm:$0xff] %v3086_v62  ;;  %3089 = vst [vmem:[%s16607_s8 + $0x11f8] sm:$0xff] %v3088_v63  ;;  %v3090_v0 = vld [vmem:[%s16602_s7 + $0x2400] sm:$0xff]  ;;  %v3092_v1 = vld [vmem:[%s16602_s7 + $0x2410] sm:$0xff] }
 0x13a   : > { %v3094_v2 = vld [vmem:[%s16602_s7 + $0x2420] sm:$0xff]  ;;  %3091 = vst [vmem:[%s16607_s8 + $0x1200] sm:$0xff] %v3090_v0  ;;  %3093 = vst [vmem:[%s16607_s8 + $0x1208] sm:$0xff] %v3092_v1  ;;  %v3096_v3 = vld [vmem:[%s16602_s7 + $0x2430] sm:$0xff] }
 0x13b   : > { %3095 = vst [vmem:[%s16607_s8 + $0x1210] sm:$0xff] %v3094_v2  ;;  %v3098_v4 = vld [vmem:[%s16602_s7 + $0x2440] sm:$0xff]  ;;  %v3100_v5 = vld [vmem:[%s16602_s7 + $0x2450] sm:$0xff]  ;;  %3097 = vst [vmem:[%s16607_s8 + $0x1218] sm:$0xff] %v3096_v3 }
 0x13c   : > { %3099 = vst [vmem:[%s16607_s8 + $0x1220] sm:$0xff] %v3098_v4  ;;  %3101 = vst [vmem:[%s16607_s8 + $0x1228] sm:$0xff] %v3100_v5  ;;  %v3102_v6 = vld [vmem:[%s16602_s7 + $0x2460] sm:$0xff]  ;;  %v3104_v7 = vld [vmem:[%s16602_s7 + $0x2470] sm:$0xff] }
 0x13d   : > { %v3106_v8 = vld [vmem:[%s16602_s7 + $0x2480] sm:$0xff]  ;;  %3103 = vst [vmem:[%s16607_s8 + $0x1230] sm:$0xff] %v3102_v6  ;;  %3105 = vst [vmem:[%s16607_s8 + $0x1238] sm:$0xff] %v3104_v7  ;;  %v3108_v9 = vld [vmem:[%s16602_s7 + $0x2490] sm:$0xff] }
 0x13e   : > { %3107 = vst [vmem:[%s16607_s8 + $0x1240] sm:$0xff] %v3106_v8  ;;  %v3110_v10 = vld [vmem:[%s16602_s7 + $0x24a0] sm:$0xff]  ;;  %v3112_v11 = vld [vmem:[%s16602_s7 + $0x24b0] sm:$0xff]  ;;  %3109 = vst [vmem:[%s16607_s8 + $0x1248] sm:$0xff] %v3108_v9 }
 0x13f   : > { %3111 = vst [vmem:[%s16607_s8 + $0x1250] sm:$0xff] %v3110_v10  ;;  %3113 = vst [vmem:[%s16607_s8 + $0x1258] sm:$0xff] %v3112_v11  ;;  %v3114_v12 = vld [vmem:[%s16602_s7 + $0x24c0] sm:$0xff]  ;;  %v3116_v13 = vld [vmem:[%s16602_s7 + $0x24d0] sm:$0xff] }
 0x140   : > { %v3118_v14 = vld [vmem:[%s16602_s7 + $0x24e0] sm:$0xff]  ;;  %3115 = vst [vmem:[%s16607_s8 + $0x1260] sm:$0xff] %v3114_v12  ;;  %3117 = vst [vmem:[%s16607_s8 + $0x1268] sm:$0xff] %v3116_v13  ;;  %v3120_v15 = vld [vmem:[%s16602_s7 + $0x24f0] sm:$0xff] }
 0x141   : > { %3119 = vst [vmem:[%s16607_s8 + $0x1270] sm:$0xff] %v3118_v14  ;;  %v3122_v16 = vld [vmem:[%s16602_s7 + $0x2500] sm:$0xff]  ;;  %v3124_v17 = vld [vmem:[%s16602_s7 + $0x2510] sm:$0xff]  ;;  %3121 = vst [vmem:[%s16607_s8 + $0x1278] sm:$0xff] %v3120_v15 }
 0x142   : > { %3123 = vst [vmem:[%s16607_s8 + $0x1280] sm:$0xff] %v3122_v16  ;;  %3125 = vst [vmem:[%s16607_s8 + $0x1288] sm:$0xff] %v3124_v17  ;;  %v3126_v18 = vld [vmem:[%s16602_s7 + $0x2520] sm:$0xff]  ;;  %v3128_v19 = vld [vmem:[%s16602_s7 + $0x2530] sm:$0xff] }
 0x143   : > { %v3130_v20 = vld [vmem:[%s16602_s7 + $0x2540] sm:$0xff]  ;;  %3127 = vst [vmem:[%s16607_s8 + $0x1290] sm:$0xff] %v3126_v18  ;;  %3129 = vst [vmem:[%s16607_s8 + $0x1298] sm:$0xff] %v3128_v19  ;;  %v3132_v21 = vld [vmem:[%s16602_s7 + $0x2550] sm:$0xff] }
 0x144   : > { %3131 = vst [vmem:[%s16607_s8 + $0x12a0] sm:$0xff] %v3130_v20  ;;  %v3134_v22 = vld [vmem:[%s16602_s7 + $0x2560] sm:$0xff]  ;;  %v3136_v23 = vld [vmem:[%s16602_s7 + $0x2570] sm:$0xff]  ;;  %3133 = vst [vmem:[%s16607_s8 + $0x12a8] sm:$0xff] %v3132_v21 }
 0x145   : > { %3135 = vst [vmem:[%s16607_s8 + $0x12b0] sm:$0xff] %v3134_v22  ;;  %3137 = vst [vmem:[%s16607_s8 + $0x12b8] sm:$0xff] %v3136_v23  ;;  %v3138_v24 = vld [vmem:[%s16602_s7 + $0x2580] sm:$0xff]  ;;  %v3140_v25 = vld [vmem:[%s16602_s7 + $0x2590] sm:$0xff] }
 0x146   : > { %v3142_v26 = vld [vmem:[%s16602_s7 + $0x25a0] sm:$0xff]  ;;  %3139 = vst [vmem:[%s16607_s8 + $0x12c0] sm:$0xff] %v3138_v24  ;;  %3141 = vst [vmem:[%s16607_s8 + $0x12c8] sm:$0xff] %v3140_v25  ;;  %v3144_v27 = vld [vmem:[%s16602_s7 + $0x25b0] sm:$0xff] }
 0x147   : > { %3143 = vst [vmem:[%s16607_s8 + $0x12d0] sm:$0xff] %v3142_v26  ;;  %v3146_v28 = vld [vmem:[%s16602_s7 + $0x25c0] sm:$0xff]  ;;  %v3148_v29 = vld [vmem:[%s16602_s7 + $0x25d0] sm:$0xff]  ;;  %3145 = vst [vmem:[%s16607_s8 + $0x12d8] sm:$0xff] %v3144_v27 }
 0x148   : > { %3147 = vst [vmem:[%s16607_s8 + $0x12e0] sm:$0xff] %v3146_v28  ;;  %3149 = vst [vmem:[%s16607_s8 + $0x12e8] sm:$0xff] %v3148_v29  ;;  %v3150_v30 = vld [vmem:[%s16602_s7 + $0x25e0] sm:$0xff]  ;;  %v3152_v31 = vld [vmem:[%s16602_s7 + $0x25f0] sm:$0xff] }
 0x149   : > { %v3154_v32 = vld [vmem:[%s16602_s7 + $0x2600] sm:$0xff]  ;;  %3151 = vst [vmem:[%s16607_s8 + $0x12f0] sm:$0xff] %v3150_v30  ;;  %3153 = vst [vmem:[%s16607_s8 + $0x12f8] sm:$0xff] %v3152_v31  ;;  %v3156_v33 = vld [vmem:[%s16602_s7 + $0x2610] sm:$0xff] }
 0x14a   : > { %3155 = vst [vmem:[%s16607_s8 + $0x1300] sm:$0xff] %v3154_v32  ;;  %v3158_v34 = vld [vmem:[%s16602_s7 + $0x2620] sm:$0xff]  ;;  %v3160_v35 = vld [vmem:[%s16602_s7 + $0x2630] sm:$0xff]  ;;  %3157 = vst [vmem:[%s16607_s8 + $0x1308] sm:$0xff] %v3156_v33 }
 0x14b   : > { %3159 = vst [vmem:[%s16607_s8 + $0x1310] sm:$0xff] %v3158_v34  ;;  %3161 = vst [vmem:[%s16607_s8 + $0x1318] sm:$0xff] %v3160_v35  ;;  %v3162_v36 = vld [vmem:[%s16602_s7 + $0x2640] sm:$0xff]  ;;  %v3164_v37 = vld [vmem:[%s16602_s7 + $0x2650] sm:$0xff] }
 0x14c   : > { %v3166_v38 = vld [vmem:[%s16602_s7 + $0x2660] sm:$0xff]  ;;  %3163 = vst [vmem:[%s16607_s8 + $0x1320] sm:$0xff] %v3162_v36  ;;  %3165 = vst [vmem:[%s16607_s8 + $0x1328] sm:$0xff] %v3164_v37  ;;  %v3168_v39 = vld [vmem:[%s16602_s7 + $0x2670] sm:$0xff] }
 0x14d   : > { %3167 = vst [vmem:[%s16607_s8 + $0x1330] sm:$0xff] %v3166_v38  ;;  %v3170_v40 = vld [vmem:[%s16602_s7 + $0x2680] sm:$0xff]  ;;  %v3172_v41 = vld [vmem:[%s16602_s7 + $0x2690] sm:$0xff]  ;;  %3169 = vst [vmem:[%s16607_s8 + $0x1338] sm:$0xff] %v3168_v39 }
 0x14e   : > { %3171 = vst [vmem:[%s16607_s8 + $0x1340] sm:$0xff] %v3170_v40  ;;  %3173 = vst [vmem:[%s16607_s8 + $0x1348] sm:$0xff] %v3172_v41  ;;  %v3174_v42 = vld [vmem:[%s16602_s7 + $0x26a0] sm:$0xff]  ;;  %v3176_v43 = vld [vmem:[%s16602_s7 + $0x26b0] sm:$0xff] }
 0x14f   : > { %v3178_v44 = vld [vmem:[%s16602_s7 + $0x26c0] sm:$0xff]  ;;  %3175 = vst [vmem:[%s16607_s8 + $0x1350] sm:$0xff] %v3174_v42  ;;  %3177 = vst [vmem:[%s16607_s8 + $0x1358] sm:$0xff] %v3176_v43  ;;  %v3180_v45 = vld [vmem:[%s16602_s7 + $0x26d0] sm:$0xff] }
 0x150   : > { %3179 = vst [vmem:[%s16607_s8 + $0x1360] sm:$0xff] %v3178_v44  ;;  %v3182_v46 = vld [vmem:[%s16602_s7 + $0x26e0] sm:$0xff]  ;;  %v3184_v47 = vld [vmem:[%s16602_s7 + $0x26f0] sm:$0xff]  ;;  %3181 = vst [vmem:[%s16607_s8 + $0x1368] sm:$0xff] %v3180_v45 }
 0x151   : > { %3183 = vst [vmem:[%s16607_s8 + $0x1370] sm:$0xff] %v3182_v46  ;;  %3185 = vst [vmem:[%s16607_s8 + $0x1378] sm:$0xff] %v3184_v47  ;;  %v3186_v48 = vld [vmem:[%s16602_s7 + $0x2700] sm:$0xff]  ;;  %v3188_v49 = vld [vmem:[%s16602_s7 + $0x2710] sm:$0xff] }
 0x152   : > { %v3190_v50 = vld [vmem:[%s16602_s7 + $0x2720] sm:$0xff]  ;;  %3187 = vst [vmem:[%s16607_s8 + $0x1380] sm:$0xff] %v3186_v48  ;;  %3189 = vst [vmem:[%s16607_s8 + $0x1388] sm:$0xff] %v3188_v49  ;;  %v3192_v51 = vld [vmem:[%s16602_s7 + $0x2730] sm:$0xff] }
 0x153   : > { %3191 = vst [vmem:[%s16607_s8 + $0x1390] sm:$0xff] %v3190_v50  ;;  %v3194_v52 = vld [vmem:[%s16602_s7 + $0x2740] sm:$0xff]  ;;  %v3196_v53 = vld [vmem:[%s16602_s7 + $0x2750] sm:$0xff]  ;;  %3193 = vst [vmem:[%s16607_s8 + $0x1398] sm:$0xff] %v3192_v51 }
 0x154   : > { %3195 = vst [vmem:[%s16607_s8 + $0x13a0] sm:$0xff] %v3194_v52  ;;  %3197 = vst [vmem:[%s16607_s8 + $0x13a8] sm:$0xff] %v3196_v53  ;;  %v3198_v54 = vld [vmem:[%s16602_s7 + $0x2760] sm:$0xff]  ;;  %v3200_v55 = vld [vmem:[%s16602_s7 + $0x2770] sm:$0xff] }
 0x155   : > { %v3202_v56 = vld [vmem:[%s16602_s7 + $0x2780] sm:$0xff]  ;;  %3199 = vst [vmem:[%s16607_s8 + $0x13b0] sm:$0xff] %v3198_v54  ;;  %3201 = vst [vmem:[%s16607_s8 + $0x13b8] sm:$0xff] %v3200_v55  ;;  %v3204_v57 = vld [vmem:[%s16602_s7 + $0x2790] sm:$0xff] }
 0x156   : > { %3203 = vst [vmem:[%s16607_s8 + $0x13c0] sm:$0xff] %v3202_v56  ;;  %v3206_v58 = vld [vmem:[%s16602_s7 + $0x27a0] sm:$0xff]  ;;  %v3208_v59 = vld [vmem:[%s16602_s7 + $0x27b0] sm:$0xff]  ;;  %3205 = vst [vmem:[%s16607_s8 + $0x13c8] sm:$0xff] %v3204_v57 }
 0x157   : > { %3207 = vst [vmem:[%s16607_s8 + $0x13d0] sm:$0xff] %v3206_v58  ;;  %3209 = vst [vmem:[%s16607_s8 + $0x13d8] sm:$0xff] %v3208_v59  ;;  %v3210_v60 = vld [vmem:[%s16602_s7 + $0x27c0] sm:$0xff]  ;;  %v3212_v61 = vld [vmem:[%s16602_s7 + $0x27d0] sm:$0xff] }
 0x158   : > { %v3214_v62 = vld [vmem:[%s16602_s7 + $0x27e0] sm:$0xff]  ;;  %3211 = vst [vmem:[%s16607_s8 + $0x13e0] sm:$0xff] %v3210_v60  ;;  %3213 = vst [vmem:[%s16607_s8 + $0x13e8] sm:$0xff] %v3212_v61  ;;  %v3216_v63 = vld [vmem:[%s16602_s7 + $0x27f0] sm:$0xff] }
 0x159   : > { %3215 = vst [vmem:[%s16607_s8 + $0x13f0] sm:$0xff] %v3214_v62  ;;  %v3218_v0 = vld [vmem:[%s16602_s7 + $0x2800] sm:$0xff]  ;;  %v3220_v1 = vld [vmem:[%s16602_s7 + $0x2810] sm:$0xff]  ;;  %3217 = vst [vmem:[%s16607_s8 + $0x13f8] sm:$0xff] %v3216_v63 }
 0x15a   : > { %3219 = vst [vmem:[%s16607_s8 + $0x1400] sm:$0xff] %v3218_v0  ;;  %3221 = vst [vmem:[%s16607_s8 + $0x1408] sm:$0xff] %v3220_v1  ;;  %v3222_v2 = vld [vmem:[%s16602_s7 + $0x2820] sm:$0xff]  ;;  %v3224_v3 = vld [vmem:[%s16602_s7 + $0x2830] sm:$0xff] }
 0x15b   : > { %v3226_v4 = vld [vmem:[%s16602_s7 + $0x2840] sm:$0xff]  ;;  %3223 = vst [vmem:[%s16607_s8 + $0x1410] sm:$0xff] %v3222_v2  ;;  %3225 = vst [vmem:[%s16607_s8 + $0x1418] sm:$0xff] %v3224_v3  ;;  %v3228_v5 = vld [vmem:[%s16602_s7 + $0x2850] sm:$0xff] }
 0x15c   : > { %3227 = vst [vmem:[%s16607_s8 + $0x1420] sm:$0xff] %v3226_v4  ;;  %v3230_v6 = vld [vmem:[%s16602_s7 + $0x2860] sm:$0xff]  ;;  %v3232_v7 = vld [vmem:[%s16602_s7 + $0x2870] sm:$0xff]  ;;  %3229 = vst [vmem:[%s16607_s8 + $0x1428] sm:$0xff] %v3228_v5 }
 0x15d   : > { %3231 = vst [vmem:[%s16607_s8 + $0x1430] sm:$0xff] %v3230_v6  ;;  %3233 = vst [vmem:[%s16607_s8 + $0x1438] sm:$0xff] %v3232_v7  ;;  %v3234_v8 = vld [vmem:[%s16602_s7 + $0x2880] sm:$0xff]  ;;  %v3236_v9 = vld [vmem:[%s16602_s7 + $0x2890] sm:$0xff] }
 0x15e   : > { %v3238_v10 = vld [vmem:[%s16602_s7 + $0x28a0] sm:$0xff]  ;;  %3235 = vst [vmem:[%s16607_s8 + $0x1440] sm:$0xff] %v3234_v8  ;;  %3237 = vst [vmem:[%s16607_s8 + $0x1448] sm:$0xff] %v3236_v9  ;;  %v3240_v11 = vld [vmem:[%s16602_s7 + $0x28b0] sm:$0xff] }
 0x15f   : > { %3239 = vst [vmem:[%s16607_s8 + $0x1450] sm:$0xff] %v3238_v10  ;;  %v3242_v12 = vld [vmem:[%s16602_s7 + $0x28c0] sm:$0xff]  ;;  %v3244_v13 = vld [vmem:[%s16602_s7 + $0x28d0] sm:$0xff]  ;;  %3241 = vst [vmem:[%s16607_s8 + $0x1458] sm:$0xff] %v3240_v11 }
 0x160   : > { %3243 = vst [vmem:[%s16607_s8 + $0x1460] sm:$0xff] %v3242_v12  ;;  %3245 = vst [vmem:[%s16607_s8 + $0x1468] sm:$0xff] %v3244_v13  ;;  %v3246_v14 = vld [vmem:[%s16602_s7 + $0x28e0] sm:$0xff]  ;;  %v3248_v15 = vld [vmem:[%s16602_s7 + $0x28f0] sm:$0xff] }
 0x161   : > { %v3250_v16 = vld [vmem:[%s16602_s7 + $0x2900] sm:$0xff]  ;;  %3247 = vst [vmem:[%s16607_s8 + $0x1470] sm:$0xff] %v3246_v14  ;;  %3249 = vst [vmem:[%s16607_s8 + $0x1478] sm:$0xff] %v3248_v15  ;;  %v3252_v17 = vld [vmem:[%s16602_s7 + $0x2910] sm:$0xff] }
 0x162   : > { %3251 = vst [vmem:[%s16607_s8 + $0x1480] sm:$0xff] %v3250_v16  ;;  %v3254_v18 = vld [vmem:[%s16602_s7 + $0x2920] sm:$0xff]  ;;  %v3256_v19 = vld [vmem:[%s16602_s7 + $0x2930] sm:$0xff]  ;;  %3253 = vst [vmem:[%s16607_s8 + $0x1488] sm:$0xff] %v3252_v17 }
 0x163   : > { %3255 = vst [vmem:[%s16607_s8 + $0x1490] sm:$0xff] %v3254_v18  ;;  %3257 = vst [vmem:[%s16607_s8 + $0x1498] sm:$0xff] %v3256_v19  ;;  %v3258_v20 = vld [vmem:[%s16602_s7 + $0x2940] sm:$0xff]  ;;  %v3260_v21 = vld [vmem:[%s16602_s7 + $0x2950] sm:$0xff] }
 0x164   : > { %v3262_v22 = vld [vmem:[%s16602_s7 + $0x2960] sm:$0xff]  ;;  %3259 = vst [vmem:[%s16607_s8 + $0x14a0] sm:$0xff] %v3258_v20  ;;  %3261 = vst [vmem:[%s16607_s8 + $0x14a8] sm:$0xff] %v3260_v21  ;;  %v3264_v23 = vld [vmem:[%s16602_s7 + $0x2970] sm:$0xff] }
 0x165   : > { %3263 = vst [vmem:[%s16607_s8 + $0x14b0] sm:$0xff] %v3262_v22  ;;  %v3266_v24 = vld [vmem:[%s16602_s7 + $0x2980] sm:$0xff]  ;;  %v3268_v25 = vld [vmem:[%s16602_s7 + $0x2990] sm:$0xff]  ;;  %3265 = vst [vmem:[%s16607_s8 + $0x14b8] sm:$0xff] %v3264_v23 }
 0x166   : > { %3267 = vst [vmem:[%s16607_s8 + $0x14c0] sm:$0xff] %v3266_v24  ;;  %3269 = vst [vmem:[%s16607_s8 + $0x14c8] sm:$0xff] %v3268_v25  ;;  %v3270_v26 = vld [vmem:[%s16602_s7 + $0x29a0] sm:$0xff]  ;;  %v3272_v27 = vld [vmem:[%s16602_s7 + $0x29b0] sm:$0xff] }
 0x167   : > { %v3274_v28 = vld [vmem:[%s16602_s7 + $0x29c0] sm:$0xff]  ;;  %3271 = vst [vmem:[%s16607_s8 + $0x14d0] sm:$0xff] %v3270_v26  ;;  %3273 = vst [vmem:[%s16607_s8 + $0x14d8] sm:$0xff] %v3272_v27  ;;  %v3276_v29 = vld [vmem:[%s16602_s7 + $0x29d0] sm:$0xff] }
 0x168   : > { %3275 = vst [vmem:[%s16607_s8 + $0x14e0] sm:$0xff] %v3274_v28  ;;  %v3278_v30 = vld [vmem:[%s16602_s7 + $0x29e0] sm:$0xff]  ;;  %v3280_v31 = vld [vmem:[%s16602_s7 + $0x29f0] sm:$0xff]  ;;  %3277 = vst [vmem:[%s16607_s8 + $0x14e8] sm:$0xff] %v3276_v29 }
 0x169   : > { %3279 = vst [vmem:[%s16607_s8 + $0x14f0] sm:$0xff] %v3278_v30  ;;  %3281 = vst [vmem:[%s16607_s8 + $0x14f8] sm:$0xff] %v3280_v31  ;;  %v3282_v32 = vld [vmem:[%s16602_s7 + $0x2a00] sm:$0xff]  ;;  %v3284_v33 = vld [vmem:[%s16602_s7 + $0x2a10] sm:$0xff] }
 0x16a   : > { %v3286_v34 = vld [vmem:[%s16602_s7 + $0x2a20] sm:$0xff]  ;;  %3283 = vst [vmem:[%s16607_s8 + $0x1500] sm:$0xff] %v3282_v32  ;;  %3285 = vst [vmem:[%s16607_s8 + $0x1508] sm:$0xff] %v3284_v33  ;;  %v3288_v35 = vld [vmem:[%s16602_s7 + $0x2a30] sm:$0xff] }
 0x16b   : > { %3287 = vst [vmem:[%s16607_s8 + $0x1510] sm:$0xff] %v3286_v34  ;;  %v3290_v36 = vld [vmem:[%s16602_s7 + $0x2a40] sm:$0xff]  ;;  %v3292_v37 = vld [vmem:[%s16602_s7 + $0x2a50] sm:$0xff]  ;;  %3289 = vst [vmem:[%s16607_s8 + $0x1518] sm:$0xff] %v3288_v35 }
 0x16c   : > { %3291 = vst [vmem:[%s16607_s8 + $0x1520] sm:$0xff] %v3290_v36  ;;  %3293 = vst [vmem:[%s16607_s8 + $0x1528] sm:$0xff] %v3292_v37  ;;  %v3294_v38 = vld [vmem:[%s16602_s7 + $0x2a60] sm:$0xff]  ;;  %v3296_v39 = vld [vmem:[%s16602_s7 + $0x2a70] sm:$0xff] }
 0x16d   : > { %v3298_v40 = vld [vmem:[%s16602_s7 + $0x2a80] sm:$0xff]  ;;  %3295 = vst [vmem:[%s16607_s8 + $0x1530] sm:$0xff] %v3294_v38  ;;  %3297 = vst [vmem:[%s16607_s8 + $0x1538] sm:$0xff] %v3296_v39  ;;  %v3300_v41 = vld [vmem:[%s16602_s7 + $0x2a90] sm:$0xff] }
 0x16e   : > { %3299 = vst [vmem:[%s16607_s8 + $0x1540] sm:$0xff] %v3298_v40  ;;  %v3302_v42 = vld [vmem:[%s16602_s7 + $0x2aa0] sm:$0xff]  ;;  %v3304_v43 = vld [vmem:[%s16602_s7 + $0x2ab0] sm:$0xff]  ;;  %3301 = vst [vmem:[%s16607_s8 + $0x1548] sm:$0xff] %v3300_v41 }
 0x16f   : > { %3303 = vst [vmem:[%s16607_s8 + $0x1550] sm:$0xff] %v3302_v42  ;;  %3305 = vst [vmem:[%s16607_s8 + $0x1558] sm:$0xff] %v3304_v43  ;;  %v3306_v44 = vld [vmem:[%s16602_s7 + $0x2ac0] sm:$0xff]  ;;  %v3308_v45 = vld [vmem:[%s16602_s7 + $0x2ad0] sm:$0xff] }
 0x170   : > { %v3310_v46 = vld [vmem:[%s16602_s7 + $0x2ae0] sm:$0xff]  ;;  %3307 = vst [vmem:[%s16607_s8 + $0x1560] sm:$0xff] %v3306_v44  ;;  %3309 = vst [vmem:[%s16607_s8 + $0x1568] sm:$0xff] %v3308_v45  ;;  %v3312_v47 = vld [vmem:[%s16602_s7 + $0x2af0] sm:$0xff] }
 0x171   : > { %3311 = vst [vmem:[%s16607_s8 + $0x1570] sm:$0xff] %v3310_v46  ;;  %v3314_v48 = vld [vmem:[%s16602_s7 + $0x2b00] sm:$0xff]  ;;  %v3316_v49 = vld [vmem:[%s16602_s7 + $0x2b10] sm:$0xff]  ;;  %3313 = vst [vmem:[%s16607_s8 + $0x1578] sm:$0xff] %v3312_v47 }
 0x172   : > { %3315 = vst [vmem:[%s16607_s8 + $0x1580] sm:$0xff] %v3314_v48  ;;  %3317 = vst [vmem:[%s16607_s8 + $0x1588] sm:$0xff] %v3316_v49  ;;  %v3318_v50 = vld [vmem:[%s16602_s7 + $0x2b20] sm:$0xff]  ;;  %v3320_v51 = vld [vmem:[%s16602_s7 + $0x2b30] sm:$0xff] }
 0x173   : > { %v3322_v52 = vld [vmem:[%s16602_s7 + $0x2b40] sm:$0xff]  ;;  %3319 = vst [vmem:[%s16607_s8 + $0x1590] sm:$0xff] %v3318_v50  ;;  %3321 = vst [vmem:[%s16607_s8 + $0x1598] sm:$0xff] %v3320_v51  ;;  %v3324_v53 = vld [vmem:[%s16602_s7 + $0x2b50] sm:$0xff] }
 0x174   : > { %3323 = vst [vmem:[%s16607_s8 + $0x15a0] sm:$0xff] %v3322_v52  ;;  %v3326_v54 = vld [vmem:[%s16602_s7 + $0x2b60] sm:$0xff]  ;;  %v3328_v55 = vld [vmem:[%s16602_s7 + $0x2b70] sm:$0xff]  ;;  %3325 = vst [vmem:[%s16607_s8 + $0x15a8] sm:$0xff] %v3324_v53 }
 0x175   : > { %3327 = vst [vmem:[%s16607_s8 + $0x15b0] sm:$0xff] %v3326_v54  ;;  %3329 = vst [vmem:[%s16607_s8 + $0x15b8] sm:$0xff] %v3328_v55  ;;  %v3330_v56 = vld [vmem:[%s16602_s7 + $0x2b80] sm:$0xff]  ;;  %v3332_v57 = vld [vmem:[%s16602_s7 + $0x2b90] sm:$0xff] }
 0x176   : > { %v3334_v58 = vld [vmem:[%s16602_s7 + $0x2ba0] sm:$0xff]  ;;  %3331 = vst [vmem:[%s16607_s8 + $0x15c0] sm:$0xff] %v3330_v56  ;;  %3333 = vst [vmem:[%s16607_s8 + $0x15c8] sm:$0xff] %v3332_v57  ;;  %v3336_v59 = vld [vmem:[%s16602_s7 + $0x2bb0] sm:$0xff] }
 0x177   : > { %3335 = vst [vmem:[%s16607_s8 + $0x15d0] sm:$0xff] %v3334_v58  ;;  %v3338_v60 = vld [vmem:[%s16602_s7 + $0x2bc0] sm:$0xff]  ;;  %v3340_v61 = vld [vmem:[%s16602_s7 + $0x2bd0] sm:$0xff]  ;;  %3337 = vst [vmem:[%s16607_s8 + $0x15d8] sm:$0xff] %v3336_v59 }
 0x178   : > { %3339 = vst [vmem:[%s16607_s8 + $0x15e0] sm:$0xff] %v3338_v60  ;;  %3341 = vst [vmem:[%s16607_s8 + $0x15e8] sm:$0xff] %v3340_v61  ;;  %v3342_v62 = vld [vmem:[%s16602_s7 + $0x2be0] sm:$0xff]  ;;  %v3344_v63 = vld [vmem:[%s16602_s7 + $0x2bf0] sm:$0xff] }
 0x179   : > { %v3346_v0 = vld [vmem:[%s16602_s7 + $0x2c00] sm:$0xff]  ;;  %3343 = vst [vmem:[%s16607_s8 + $0x15f0] sm:$0xff] %v3342_v62  ;;  %3345 = vst [vmem:[%s16607_s8 + $0x15f8] sm:$0xff] %v3344_v63  ;;  %v3348_v1 = vld [vmem:[%s16602_s7 + $0x2c10] sm:$0xff] }
 0x17a   : > { %3347 = vst [vmem:[%s16607_s8 + $0x1600] sm:$0xff] %v3346_v0  ;;  %v3350_v2 = vld [vmem:[%s16602_s7 + $0x2c20] sm:$0xff]  ;;  %v3352_v3 = vld [vmem:[%s16602_s7 + $0x2c30] sm:$0xff]  ;;  %3349 = vst [vmem:[%s16607_s8 + $0x1608] sm:$0xff] %v3348_v1 }
 0x17b   : > { %3351 = vst [vmem:[%s16607_s8 + $0x1610] sm:$0xff] %v3350_v2  ;;  %3353 = vst [vmem:[%s16607_s8 + $0x1618] sm:$0xff] %v3352_v3  ;;  %v3354_v4 = vld [vmem:[%s16602_s7 + $0x2c40] sm:$0xff]  ;;  %v3356_v5 = vld [vmem:[%s16602_s7 + $0x2c50] sm:$0xff] }
 0x17c   : > { %v3358_v6 = vld [vmem:[%s16602_s7 + $0x2c60] sm:$0xff]  ;;  %3355 = vst [vmem:[%s16607_s8 + $0x1620] sm:$0xff] %v3354_v4  ;;  %3357 = vst [vmem:[%s16607_s8 + $0x1628] sm:$0xff] %v3356_v5  ;;  %v3360_v7 = vld [vmem:[%s16602_s7 + $0x2c70] sm:$0xff] }
 0x17d   : > { %3359 = vst [vmem:[%s16607_s8 + $0x1630] sm:$0xff] %v3358_v6  ;;  %v3362_v8 = vld [vmem:[%s16602_s7 + $0x2c80] sm:$0xff]  ;;  %v3364_v9 = vld [vmem:[%s16602_s7 + $0x2c90] sm:$0xff]  ;;  %3361 = vst [vmem:[%s16607_s8 + $0x1638] sm:$0xff] %v3360_v7 }
 0x17e   : > { %3363 = vst [vmem:[%s16607_s8 + $0x1640] sm:$0xff] %v3362_v8  ;;  %3365 = vst [vmem:[%s16607_s8 + $0x1648] sm:$0xff] %v3364_v9  ;;  %v3366_v10 = vld [vmem:[%s16602_s7 + $0x2ca0] sm:$0xff]  ;;  %v3368_v11 = vld [vmem:[%s16602_s7 + $0x2cb0] sm:$0xff] }
 0x17f   : > { %v3370_v12 = vld [vmem:[%s16602_s7 + $0x2cc0] sm:$0xff]  ;;  %3367 = vst [vmem:[%s16607_s8 + $0x1650] sm:$0xff] %v3366_v10  ;;  %3369 = vst [vmem:[%s16607_s8 + $0x1658] sm:$0xff] %v3368_v11  ;;  %v3372_v13 = vld [vmem:[%s16602_s7 + $0x2cd0] sm:$0xff] }
 0x180   : > { %3371 = vst [vmem:[%s16607_s8 + $0x1660] sm:$0xff] %v3370_v12  ;;  %v3374_v14 = vld [vmem:[%s16602_s7 + $0x2ce0] sm:$0xff]  ;;  %v3376_v15 = vld [vmem:[%s16602_s7 + $0x2cf0] sm:$0xff]  ;;  %3373 = vst [vmem:[%s16607_s8 + $0x1668] sm:$0xff] %v3372_v13 }
 0x181   : > { %3375 = vst [vmem:[%s16607_s8 + $0x1670] sm:$0xff] %v3374_v14  ;;  %3377 = vst [vmem:[%s16607_s8 + $0x1678] sm:$0xff] %v3376_v15  ;;  %v3378_v16 = vld [vmem:[%s16602_s7 + $0x2d00] sm:$0xff]  ;;  %v3380_v17 = vld [vmem:[%s16602_s7 + $0x2d10] sm:$0xff] }
 0x182   : > { %v3382_v18 = vld [vmem:[%s16602_s7 + $0x2d20] sm:$0xff]  ;;  %3379 = vst [vmem:[%s16607_s8 + $0x1680] sm:$0xff] %v3378_v16  ;;  %3381 = vst [vmem:[%s16607_s8 + $0x1688] sm:$0xff] %v3380_v17  ;;  %v3384_v19 = vld [vmem:[%s16602_s7 + $0x2d30] sm:$0xff] }
 0x183   : > { %3383 = vst [vmem:[%s16607_s8 + $0x1690] sm:$0xff] %v3382_v18  ;;  %v3386_v20 = vld [vmem:[%s16602_s7 + $0x2d40] sm:$0xff]  ;;  %v3388_v21 = vld [vmem:[%s16602_s7 + $0x2d50] sm:$0xff]  ;;  %3385 = vst [vmem:[%s16607_s8 + $0x1698] sm:$0xff] %v3384_v19 }
 0x184   : > { %3387 = vst [vmem:[%s16607_s8 + $0x16a0] sm:$0xff] %v3386_v20  ;;  %3389 = vst [vmem:[%s16607_s8 + $0x16a8] sm:$0xff] %v3388_v21  ;;  %v3390_v22 = vld [vmem:[%s16602_s7 + $0x2d60] sm:$0xff]  ;;  %v3392_v23 = vld [vmem:[%s16602_s7 + $0x2d70] sm:$0xff] }
 0x185   : > { %v3394_v24 = vld [vmem:[%s16602_s7 + $0x2d80] sm:$0xff]  ;;  %3391 = vst [vmem:[%s16607_s8 + $0x16b0] sm:$0xff] %v3390_v22  ;;  %3393 = vst [vmem:[%s16607_s8 + $0x16b8] sm:$0xff] %v3392_v23  ;;  %v3396_v25 = vld [vmem:[%s16602_s7 + $0x2d90] sm:$0xff] }
 0x186   : > { %3395 = vst [vmem:[%s16607_s8 + $0x16c0] sm:$0xff] %v3394_v24  ;;  %v3398_v26 = vld [vmem:[%s16602_s7 + $0x2da0] sm:$0xff]  ;;  %v3400_v27 = vld [vmem:[%s16602_s7 + $0x2db0] sm:$0xff]  ;;  %3397 = vst [vmem:[%s16607_s8 + $0x16c8] sm:$0xff] %v3396_v25 }
 0x187   : > { %3399 = vst [vmem:[%s16607_s8 + $0x16d0] sm:$0xff] %v3398_v26  ;;  %3401 = vst [vmem:[%s16607_s8 + $0x16d8] sm:$0xff] %v3400_v27  ;;  %v3402_v28 = vld [vmem:[%s16602_s7 + $0x2dc0] sm:$0xff]  ;;  %v3404_v29 = vld [vmem:[%s16602_s7 + $0x2dd0] sm:$0xff] }
 0x188   : > { %v3406_v30 = vld [vmem:[%s16602_s7 + $0x2de0] sm:$0xff]  ;;  %3403 = vst [vmem:[%s16607_s8 + $0x16e0] sm:$0xff] %v3402_v28  ;;  %3405 = vst [vmem:[%s16607_s8 + $0x16e8] sm:$0xff] %v3404_v29  ;;  %v3408_v31 = vld [vmem:[%s16602_s7 + $0x2df0] sm:$0xff] }
 0x189   : > { %3407 = vst [vmem:[%s16607_s8 + $0x16f0] sm:$0xff] %v3406_v30  ;;  %v3410_v32 = vld [vmem:[%s16602_s7 + $0x2e00] sm:$0xff]  ;;  %v3412_v33 = vld [vmem:[%s16602_s7 + $0x2e10] sm:$0xff]  ;;  %3409 = vst [vmem:[%s16607_s8 + $0x16f8] sm:$0xff] %v3408_v31 }
 0x18a   : > { %3411 = vst [vmem:[%s16607_s8 + $0x1700] sm:$0xff] %v3410_v32  ;;  %3413 = vst [vmem:[%s16607_s8 + $0x1708] sm:$0xff] %v3412_v33  ;;  %v3414_v34 = vld [vmem:[%s16602_s7 + $0x2e20] sm:$0xff]  ;;  %v3416_v35 = vld [vmem:[%s16602_s7 + $0x2e30] sm:$0xff] }
 0x18b   : > { %v3418_v36 = vld [vmem:[%s16602_s7 + $0x2e40] sm:$0xff]  ;;  %3415 = vst [vmem:[%s16607_s8 + $0x1710] sm:$0xff] %v3414_v34  ;;  %3417 = vst [vmem:[%s16607_s8 + $0x1718] sm:$0xff] %v3416_v35  ;;  %v3420_v37 = vld [vmem:[%s16602_s7 + $0x2e50] sm:$0xff] }
 0x18c   : > { %3419 = vst [vmem:[%s16607_s8 + $0x1720] sm:$0xff] %v3418_v36  ;;  %v3422_v38 = vld [vmem:[%s16602_s7 + $0x2e60] sm:$0xff]  ;;  %v3424_v39 = vld [vmem:[%s16602_s7 + $0x2e70] sm:$0xff]  ;;  %3421 = vst [vmem:[%s16607_s8 + $0x1728] sm:$0xff] %v3420_v37 }
 0x18d   : > { %3423 = vst [vmem:[%s16607_s8 + $0x1730] sm:$0xff] %v3422_v38  ;;  %3425 = vst [vmem:[%s16607_s8 + $0x1738] sm:$0xff] %v3424_v39  ;;  %v3426_v40 = vld [vmem:[%s16602_s7 + $0x2e80] sm:$0xff]  ;;  %v3428_v41 = vld [vmem:[%s16602_s7 + $0x2e90] sm:$0xff] }
 0x18e   : > { %v3430_v42 = vld [vmem:[%s16602_s7 + $0x2ea0] sm:$0xff]  ;;  %3427 = vst [vmem:[%s16607_s8 + $0x1740] sm:$0xff] %v3426_v40  ;;  %3429 = vst [vmem:[%s16607_s8 + $0x1748] sm:$0xff] %v3428_v41  ;;  %v3432_v43 = vld [vmem:[%s16602_s7 + $0x2eb0] sm:$0xff] }
 0x18f   : > { %3431 = vst [vmem:[%s16607_s8 + $0x1750] sm:$0xff] %v3430_v42  ;;  %v3434_v44 = vld [vmem:[%s16602_s7 + $0x2ec0] sm:$0xff]  ;;  %v3436_v45 = vld [vmem:[%s16602_s7 + $0x2ed0] sm:$0xff]  ;;  %3433 = vst [vmem:[%s16607_s8 + $0x1758] sm:$0xff] %v3432_v43 }
 0x190   : > { %3435 = vst [vmem:[%s16607_s8 + $0x1760] sm:$0xff] %v3434_v44  ;;  %3437 = vst [vmem:[%s16607_s8 + $0x1768] sm:$0xff] %v3436_v45  ;;  %v3438_v46 = vld [vmem:[%s16602_s7 + $0x2ee0] sm:$0xff]  ;;  %v3440_v47 = vld [vmem:[%s16602_s7 + $0x2ef0] sm:$0xff] }
 0x191   : > { %v3442_v48 = vld [vmem:[%s16602_s7 + $0x2f00] sm:$0xff]  ;;  %3439 = vst [vmem:[%s16607_s8 + $0x1770] sm:$0xff] %v3438_v46  ;;  %3441 = vst [vmem:[%s16607_s8 + $0x1778] sm:$0xff] %v3440_v47  ;;  %v3444_v49 = vld [vmem:[%s16602_s7 + $0x2f10] sm:$0xff] }
 0x192   : > { %3443 = vst [vmem:[%s16607_s8 + $0x1780] sm:$0xff] %v3442_v48  ;;  %v3446_v50 = vld [vmem:[%s16602_s7 + $0x2f20] sm:$0xff]  ;;  %v3448_v51 = vld [vmem:[%s16602_s7 + $0x2f30] sm:$0xff]  ;;  %3445 = vst [vmem:[%s16607_s8 + $0x1788] sm:$0xff] %v3444_v49 }
 0x193   : > { %3447 = vst [vmem:[%s16607_s8 + $0x1790] sm:$0xff] %v3446_v50  ;;  %3449 = vst [vmem:[%s16607_s8 + $0x1798] sm:$0xff] %v3448_v51  ;;  %v3450_v52 = vld [vmem:[%s16602_s7 + $0x2f40] sm:$0xff]  ;;  %v3452_v53 = vld [vmem:[%s16602_s7 + $0x2f50] sm:$0xff] }
 0x194   : > { %v3454_v54 = vld [vmem:[%s16602_s7 + $0x2f60] sm:$0xff]  ;;  %3451 = vst [vmem:[%s16607_s8 + $0x17a0] sm:$0xff] %v3450_v52  ;;  %3453 = vst [vmem:[%s16607_s8 + $0x17a8] sm:$0xff] %v3452_v53  ;;  %v3456_v55 = vld [vmem:[%s16602_s7 + $0x2f70] sm:$0xff] }
 0x195   : > { %3455 = vst [vmem:[%s16607_s8 + $0x17b0] sm:$0xff] %v3454_v54  ;;  %v3458_v56 = vld [vmem:[%s16602_s7 + $0x2f80] sm:$0xff]  ;;  %v3460_v57 = vld [vmem:[%s16602_s7 + $0x2f90] sm:$0xff]  ;;  %3457 = vst [vmem:[%s16607_s8 + $0x17b8] sm:$0xff] %v3456_v55 }
 0x196   : > { %3459 = vst [vmem:[%s16607_s8 + $0x17c0] sm:$0xff] %v3458_v56  ;;  %3461 = vst [vmem:[%s16607_s8 + $0x17c8] sm:$0xff] %v3460_v57  ;;  %v3462_v58 = vld [vmem:[%s16602_s7 + $0x2fa0] sm:$0xff]  ;;  %v3464_v59 = vld [vmem:[%s16602_s7 + $0x2fb0] sm:$0xff] }
 0x197   : > { %v3466_v60 = vld [vmem:[%s16602_s7 + $0x2fc0] sm:$0xff]  ;;  %3463 = vst [vmem:[%s16607_s8 + $0x17d0] sm:$0xff] %v3462_v58  ;;  %3465 = vst [vmem:[%s16607_s8 + $0x17d8] sm:$0xff] %v3464_v59  ;;  %v3468_v61 = vld [vmem:[%s16602_s7 + $0x2fd0] sm:$0xff] }
 0x198   : > { %3467 = vst [vmem:[%s16607_s8 + $0x17e0] sm:$0xff] %v3466_v60  ;;  %v3470_v62 = vld [vmem:[%s16602_s7 + $0x2fe0] sm:$0xff]  ;;  %v3472_v63 = vld [vmem:[%s16602_s7 + $0x2ff0] sm:$0xff]  ;;  %3469 = vst [vmem:[%s16607_s8 + $0x17e8] sm:$0xff] %v3468_v61 }
 0x199   : > { %3471 = vst [vmem:[%s16607_s8 + $0x17f0] sm:$0xff] %v3470_v62  ;;  %3473 = vst [vmem:[%s16607_s8 + $0x17f8] sm:$0xff] %v3472_v63  ;;  %v3474_v0 = vld [vmem:[%s16602_s7 + $0x3000] sm:$0xff]  ;;  %v3476_v1 = vld [vmem:[%s16602_s7 + $0x3010] sm:$0xff] }
 0x19a   : > { %v3478_v2 = vld [vmem:[%s16602_s7 + $0x3020] sm:$0xff]  ;;  %3475 = vst [vmem:[%s16607_s8 + $0x1800] sm:$0xff] %v3474_v0  ;;  %3477 = vst [vmem:[%s16607_s8 + $0x1808] sm:$0xff] %v3476_v1  ;;  %v3480_v3 = vld [vmem:[%s16602_s7 + $0x3030] sm:$0xff] }
 0x19b   : > { %3479 = vst [vmem:[%s16607_s8 + $0x1810] sm:$0xff] %v3478_v2  ;;  %v3482_v4 = vld [vmem:[%s16602_s7 + $0x3040] sm:$0xff]  ;;  %v3484_v5 = vld [vmem:[%s16602_s7 + $0x3050] sm:$0xff]  ;;  %3481 = vst [vmem:[%s16607_s8 + $0x1818] sm:$0xff] %v3480_v3 }
 0x19c   : > { %3483 = vst [vmem:[%s16607_s8 + $0x1820] sm:$0xff] %v3482_v4  ;;  %3485 = vst [vmem:[%s16607_s8 + $0x1828] sm:$0xff] %v3484_v5  ;;  %v3486_v6 = vld [vmem:[%s16602_s7 + $0x3060] sm:$0xff]  ;;  %v3488_v7 = vld [vmem:[%s16602_s7 + $0x3070] sm:$0xff] }
 0x19d   : > { %v3490_v8 = vld [vmem:[%s16602_s7 + $0x3080] sm:$0xff]  ;;  %3487 = vst [vmem:[%s16607_s8 + $0x1830] sm:$0xff] %v3486_v6  ;;  %3489 = vst [vmem:[%s16607_s8 + $0x1838] sm:$0xff] %v3488_v7  ;;  %v3492_v9 = vld [vmem:[%s16602_s7 + $0x3090] sm:$0xff] }
 0x19e   : > { %3491 = vst [vmem:[%s16607_s8 + $0x1840] sm:$0xff] %v3490_v8  ;;  %v3494_v10 = vld [vmem:[%s16602_s7 + $0x30a0] sm:$0xff]  ;;  %v3496_v11 = vld [vmem:[%s16602_s7 + $0x30b0] sm:$0xff]  ;;  %3493 = vst [vmem:[%s16607_s8 + $0x1848] sm:$0xff] %v3492_v9 }
 0x19f   : > { %3495 = vst [vmem:[%s16607_s8 + $0x1850] sm:$0xff] %v3494_v10  ;;  %3497 = vst [vmem:[%s16607_s8 + $0x1858] sm:$0xff] %v3496_v11  ;;  %v3498_v12 = vld [vmem:[%s16602_s7 + $0x30c0] sm:$0xff]  ;;  %v3500_v13 = vld [vmem:[%s16602_s7 + $0x30d0] sm:$0xff] }
 0x1a0   : > { %v3502_v14 = vld [vmem:[%s16602_s7 + $0x30e0] sm:$0xff]  ;;  %3499 = vst [vmem:[%s16607_s8 + $0x1860] sm:$0xff] %v3498_v12  ;;  %3501 = vst [vmem:[%s16607_s8 + $0x1868] sm:$0xff] %v3500_v13  ;;  %v3504_v15 = vld [vmem:[%s16602_s7 + $0x30f0] sm:$0xff] }
 0x1a1   : > { %3503 = vst [vmem:[%s16607_s8 + $0x1870] sm:$0xff] %v3502_v14  ;;  %v3506_v16 = vld [vmem:[%s16602_s7 + $0x3100] sm:$0xff]  ;;  %v3508_v17 = vld [vmem:[%s16602_s7 + $0x3110] sm:$0xff]  ;;  %3505 = vst [vmem:[%s16607_s8 + $0x1878] sm:$0xff] %v3504_v15 }
 0x1a2   : > { %3507 = vst [vmem:[%s16607_s8 + $0x1880] sm:$0xff] %v3506_v16  ;;  %3509 = vst [vmem:[%s16607_s8 + $0x1888] sm:$0xff] %v3508_v17  ;;  %v3510_v18 = vld [vmem:[%s16602_s7 + $0x3120] sm:$0xff]  ;;  %v3512_v19 = vld [vmem:[%s16602_s7 + $0x3130] sm:$0xff] }
 0x1a3   : > { %v3514_v20 = vld [vmem:[%s16602_s7 + $0x3140] sm:$0xff]  ;;  %3511 = vst [vmem:[%s16607_s8 + $0x1890] sm:$0xff] %v3510_v18  ;;  %3513 = vst [vmem:[%s16607_s8 + $0x1898] sm:$0xff] %v3512_v19  ;;  %v3516_v21 = vld [vmem:[%s16602_s7 + $0x3150] sm:$0xff] }
 0x1a4   : > { %3515 = vst [vmem:[%s16607_s8 + $0x18a0] sm:$0xff] %v3514_v20  ;;  %v3518_v22 = vld [vmem:[%s16602_s7 + $0x3160] sm:$0xff]  ;;  %v3520_v23 = vld [vmem:[%s16602_s7 + $0x3170] sm:$0xff]  ;;  %3517 = vst [vmem:[%s16607_s8 + $0x18a8] sm:$0xff] %v3516_v21 }
 0x1a5   : > { %3519 = vst [vmem:[%s16607_s8 + $0x18b0] sm:$0xff] %v3518_v22  ;;  %3521 = vst [vmem:[%s16607_s8 + $0x18b8] sm:$0xff] %v3520_v23  ;;  %v3522_v24 = vld [vmem:[%s16602_s7 + $0x3180] sm:$0xff]  ;;  %v3524_v25 = vld [vmem:[%s16602_s7 + $0x3190] sm:$0xff] }
 0x1a6   : > { %v3526_v26 = vld [vmem:[%s16602_s7 + $0x31a0] sm:$0xff]  ;;  %3523 = vst [vmem:[%s16607_s8 + $0x18c0] sm:$0xff] %v3522_v24  ;;  %3525 = vst [vmem:[%s16607_s8 + $0x18c8] sm:$0xff] %v3524_v25  ;;  %v3528_v27 = vld [vmem:[%s16602_s7 + $0x31b0] sm:$0xff] }
 0x1a7   : > { %3527 = vst [vmem:[%s16607_s8 + $0x18d0] sm:$0xff] %v3526_v26  ;;  %v3530_v28 = vld [vmem:[%s16602_s7 + $0x31c0] sm:$0xff]  ;;  %v3532_v29 = vld [vmem:[%s16602_s7 + $0x31d0] sm:$0xff]  ;;  %3529 = vst [vmem:[%s16607_s8 + $0x18d8] sm:$0xff] %v3528_v27 }
 0x1a8   : > { %3531 = vst [vmem:[%s16607_s8 + $0x18e0] sm:$0xff] %v3530_v28  ;;  %3533 = vst [vmem:[%s16607_s8 + $0x18e8] sm:$0xff] %v3532_v29  ;;  %v3534_v30 = vld [vmem:[%s16602_s7 + $0x31e0] sm:$0xff]  ;;  %v3536_v31 = vld [vmem:[%s16602_s7 + $0x31f0] sm:$0xff] }
 0x1a9   : > { %v3538_v32 = vld [vmem:[%s16602_s7 + $0x3200] sm:$0xff]  ;;  %3535 = vst [vmem:[%s16607_s8 + $0x18f0] sm:$0xff] %v3534_v30  ;;  %3537 = vst [vmem:[%s16607_s8 + $0x18f8] sm:$0xff] %v3536_v31  ;;  %v3540_v33 = vld [vmem:[%s16602_s7 + $0x3210] sm:$0xff] }
 0x1aa   : > { %3539 = vst [vmem:[%s16607_s8 + $0x1900] sm:$0xff] %v3538_v32  ;;  %v3542_v34 = vld [vmem:[%s16602_s7 + $0x3220] sm:$0xff]  ;;  %v3544_v35 = vld [vmem:[%s16602_s7 + $0x3230] sm:$0xff]  ;;  %3541 = vst [vmem:[%s16607_s8 + $0x1908] sm:$0xff] %v3540_v33 }
 0x1ab   : > { %3543 = vst [vmem:[%s16607_s8 + $0x1910] sm:$0xff] %v3542_v34  ;;  %3545 = vst [vmem:[%s16607_s8 + $0x1918] sm:$0xff] %v3544_v35  ;;  %v3546_v36 = vld [vmem:[%s16602_s7 + $0x3240] sm:$0xff]  ;;  %v3548_v37 = vld [vmem:[%s16602_s7 + $0x3250] sm:$0xff] }
 0x1ac   : > { %v3550_v38 = vld [vmem:[%s16602_s7 + $0x3260] sm:$0xff]  ;;  %3547 = vst [vmem:[%s16607_s8 + $0x1920] sm:$0xff] %v3546_v36  ;;  %3549 = vst [vmem:[%s16607_s8 + $0x1928] sm:$0xff] %v3548_v37  ;;  %v3552_v39 = vld [vmem:[%s16602_s7 + $0x3270] sm:$0xff] }
 0x1ad   : > { %3551 = vst [vmem:[%s16607_s8 + $0x1930] sm:$0xff] %v3550_v38  ;;  %v3554_v40 = vld [vmem:[%s16602_s7 + $0x3280] sm:$0xff]  ;;  %v3556_v41 = vld [vmem:[%s16602_s7 + $0x3290] sm:$0xff]  ;;  %3553 = vst [vmem:[%s16607_s8 + $0x1938] sm:$0xff] %v3552_v39 }
 0x1ae   : > { %3555 = vst [vmem:[%s16607_s8 + $0x1940] sm:$0xff] %v3554_v40  ;;  %3557 = vst [vmem:[%s16607_s8 + $0x1948] sm:$0xff] %v3556_v41  ;;  %v3558_v42 = vld [vmem:[%s16602_s7 + $0x32a0] sm:$0xff]  ;;  %v3560_v43 = vld [vmem:[%s16602_s7 + $0x32b0] sm:$0xff] }
 0x1af   : > { %v3562_v44 = vld [vmem:[%s16602_s7 + $0x32c0] sm:$0xff]  ;;  %3559 = vst [vmem:[%s16607_s8 + $0x1950] sm:$0xff] %v3558_v42  ;;  %3561 = vst [vmem:[%s16607_s8 + $0x1958] sm:$0xff] %v3560_v43  ;;  %v3564_v45 = vld [vmem:[%s16602_s7 + $0x32d0] sm:$0xff] }
 0x1b0   : > { %3563 = vst [vmem:[%s16607_s8 + $0x1960] sm:$0xff] %v3562_v44  ;;  %v3566_v46 = vld [vmem:[%s16602_s7 + $0x32e0] sm:$0xff]  ;;  %v3568_v47 = vld [vmem:[%s16602_s7 + $0x32f0] sm:$0xff]  ;;  %3565 = vst [vmem:[%s16607_s8 + $0x1968] sm:$0xff] %v3564_v45 }
 0x1b1   : > { %3567 = vst [vmem:[%s16607_s8 + $0x1970] sm:$0xff] %v3566_v46  ;;  %3569 = vst [vmem:[%s16607_s8 + $0x1978] sm:$0xff] %v3568_v47  ;;  %v3570_v48 = vld [vmem:[%s16602_s7 + $0x3300] sm:$0xff]  ;;  %v3572_v49 = vld [vmem:[%s16602_s7 + $0x3310] sm:$0xff] }
 0x1b2   : > { %v3574_v50 = vld [vmem:[%s16602_s7 + $0x3320] sm:$0xff]  ;;  %3571 = vst [vmem:[%s16607_s8 + $0x1980] sm:$0xff] %v3570_v48  ;;  %3573 = vst [vmem:[%s16607_s8 + $0x1988] sm:$0xff] %v3572_v49  ;;  %v3576_v51 = vld [vmem:[%s16602_s7 + $0x3330] sm:$0xff] }
 0x1b3   : > { %3575 = vst [vmem:[%s16607_s8 + $0x1990] sm:$0xff] %v3574_v50  ;;  %v3578_v52 = vld [vmem:[%s16602_s7 + $0x3340] sm:$0xff]  ;;  %v3580_v53 = vld [vmem:[%s16602_s7 + $0x3350] sm:$0xff]  ;;  %3577 = vst [vmem:[%s16607_s8 + $0x1998] sm:$0xff] %v3576_v51 }
 0x1b4   : > { %3579 = vst [vmem:[%s16607_s8 + $0x19a0] sm:$0xff] %v3578_v52  ;;  %3581 = vst [vmem:[%s16607_s8 + $0x19a8] sm:$0xff] %v3580_v53  ;;  %v3582_v54 = vld [vmem:[%s16602_s7 + $0x3360] sm:$0xff]  ;;  %v3584_v55 = vld [vmem:[%s16602_s7 + $0x3370] sm:$0xff] }
 0x1b5   : > { %v3586_v56 = vld [vmem:[%s16602_s7 + $0x3380] sm:$0xff]  ;;  %3583 = vst [vmem:[%s16607_s8 + $0x19b0] sm:$0xff] %v3582_v54  ;;  %3585 = vst [vmem:[%s16607_s8 + $0x19b8] sm:$0xff] %v3584_v55  ;;  %v3588_v57 = vld [vmem:[%s16602_s7 + $0x3390] sm:$0xff] }
 0x1b6   : > { %3587 = vst [vmem:[%s16607_s8 + $0x19c0] sm:$0xff] %v3586_v56  ;;  %v3590_v58 = vld [vmem:[%s16602_s7 + $0x33a0] sm:$0xff]  ;;  %v3592_v59 = vld [vmem:[%s16602_s7 + $0x33b0] sm:$0xff]  ;;  %3589 = vst [vmem:[%s16607_s8 + $0x19c8] sm:$0xff] %v3588_v57 }
 0x1b7   : > { %3591 = vst [vmem:[%s16607_s8 + $0x19d0] sm:$0xff] %v3590_v58  ;;  %3593 = vst [vmem:[%s16607_s8 + $0x19d8] sm:$0xff] %v3592_v59  ;;  %v3594_v60 = vld [vmem:[%s16602_s7 + $0x33c0] sm:$0xff]  ;;  %v3596_v61 = vld [vmem:[%s16602_s7 + $0x33d0] sm:$0xff] }
 0x1b8   : > { %v3598_v62 = vld [vmem:[%s16602_s7 + $0x33e0] sm:$0xff]  ;;  %3595 = vst [vmem:[%s16607_s8 + $0x19e0] sm:$0xff] %v3594_v60  ;;  %3597 = vst [vmem:[%s16607_s8 + $0x19e8] sm:$0xff] %v3596_v61  ;;  %v3600_v63 = vld [vmem:[%s16602_s7 + $0x33f0] sm:$0xff] }
 0x1b9   : > { %3599 = vst [vmem:[%s16607_s8 + $0x19f0] sm:$0xff] %v3598_v62  ;;  %v3602_v0 = vld [vmem:[%s16602_s7 + $0x3400] sm:$0xff]  ;;  %v3604_v1 = vld [vmem:[%s16602_s7 + $0x3410] sm:$0xff]  ;;  %3601 = vst [vmem:[%s16607_s8 + $0x19f8] sm:$0xff] %v3600_v63 }
 0x1ba   : > { %3603 = vst [vmem:[%s16607_s8 + $0x1a00] sm:$0xff] %v3602_v0  ;;  %3605 = vst [vmem:[%s16607_s8 + $0x1a08] sm:$0xff] %v3604_v1  ;;  %v3606_v2 = vld [vmem:[%s16602_s7 + $0x3420] sm:$0xff]  ;;  %v3608_v3 = vld [vmem:[%s16602_s7 + $0x3430] sm:$0xff] }
 0x1bb   : > { %v3610_v4 = vld [vmem:[%s16602_s7 + $0x3440] sm:$0xff]  ;;  %3607 = vst [vmem:[%s16607_s8 + $0x1a10] sm:$0xff] %v3606_v2  ;;  %3609 = vst [vmem:[%s16607_s8 + $0x1a18] sm:$0xff] %v3608_v3  ;;  %v3612_v5 = vld [vmem:[%s16602_s7 + $0x3450] sm:$0xff] }
 0x1bc   : > { %3611 = vst [vmem:[%s16607_s8 + $0x1a20] sm:$0xff] %v3610_v4  ;;  %v3614_v6 = vld [vmem:[%s16602_s7 + $0x3460] sm:$0xff]  ;;  %v3616_v7 = vld [vmem:[%s16602_s7 + $0x3470] sm:$0xff]  ;;  %3613 = vst [vmem:[%s16607_s8 + $0x1a28] sm:$0xff] %v3612_v5 }
 0x1bd   : > { %3615 = vst [vmem:[%s16607_s8 + $0x1a30] sm:$0xff] %v3614_v6  ;;  %3617 = vst [vmem:[%s16607_s8 + $0x1a38] sm:$0xff] %v3616_v7  ;;  %v3618_v8 = vld [vmem:[%s16602_s7 + $0x3480] sm:$0xff]  ;;  %v3620_v9 = vld [vmem:[%s16602_s7 + $0x3490] sm:$0xff] }
 0x1be   : > { %v3622_v10 = vld [vmem:[%s16602_s7 + $0x34a0] sm:$0xff]  ;;  %3619 = vst [vmem:[%s16607_s8 + $0x1a40] sm:$0xff] %v3618_v8  ;;  %3621 = vst [vmem:[%s16607_s8 + $0x1a48] sm:$0xff] %v3620_v9  ;;  %v3624_v11 = vld [vmem:[%s16602_s7 + $0x34b0] sm:$0xff] }
 0x1bf   : > { %3623 = vst [vmem:[%s16607_s8 + $0x1a50] sm:$0xff] %v3622_v10  ;;  %v3626_v12 = vld [vmem:[%s16602_s7 + $0x34c0] sm:$0xff]  ;;  %v3628_v13 = vld [vmem:[%s16602_s7 + $0x34d0] sm:$0xff]  ;;  %3625 = vst [vmem:[%s16607_s8 + $0x1a58] sm:$0xff] %v3624_v11 }
 0x1c0   : > { %3627 = vst [vmem:[%s16607_s8 + $0x1a60] sm:$0xff] %v3626_v12  ;;  %3629 = vst [vmem:[%s16607_s8 + $0x1a68] sm:$0xff] %v3628_v13  ;;  %v3630_v14 = vld [vmem:[%s16602_s7 + $0x34e0] sm:$0xff]  ;;  %v3632_v15 = vld [vmem:[%s16602_s7 + $0x34f0] sm:$0xff] }
 0x1c1   : > { %v3634_v16 = vld [vmem:[%s16602_s7 + $0x3500] sm:$0xff]  ;;  %3631 = vst [vmem:[%s16607_s8 + $0x1a70] sm:$0xff] %v3630_v14  ;;  %3633 = vst [vmem:[%s16607_s8 + $0x1a78] sm:$0xff] %v3632_v15  ;;  %v3636_v17 = vld [vmem:[%s16602_s7 + $0x3510] sm:$0xff] }
 0x1c2   : > { %3635 = vst [vmem:[%s16607_s8 + $0x1a80] sm:$0xff] %v3634_v16  ;;  %v3638_v18 = vld [vmem:[%s16602_s7 + $0x3520] sm:$0xff]  ;;  %v3640_v19 = vld [vmem:[%s16602_s7 + $0x3530] sm:$0xff]  ;;  %3637 = vst [vmem:[%s16607_s8 + $0x1a88] sm:$0xff] %v3636_v17 }
 0x1c3   : > { %3639 = vst [vmem:[%s16607_s8 + $0x1a90] sm:$0xff] %v3638_v18  ;;  %3641 = vst [vmem:[%s16607_s8 + $0x1a98] sm:$0xff] %v3640_v19  ;;  %v3642_v20 = vld [vmem:[%s16602_s7 + $0x3540] sm:$0xff]  ;;  %v3644_v21 = vld [vmem:[%s16602_s7 + $0x3550] sm:$0xff] }
 0x1c4   : > { %v3646_v22 = vld [vmem:[%s16602_s7 + $0x3560] sm:$0xff]  ;;  %3643 = vst [vmem:[%s16607_s8 + $0x1aa0] sm:$0xff] %v3642_v20  ;;  %3645 = vst [vmem:[%s16607_s8 + $0x1aa8] sm:$0xff] %v3644_v21  ;;  %v3648_v23 = vld [vmem:[%s16602_s7 + $0x3570] sm:$0xff] }
 0x1c5   : > { %3647 = vst [vmem:[%s16607_s8 + $0x1ab0] sm:$0xff] %v3646_v22  ;;  %v3650_v24 = vld [vmem:[%s16602_s7 + $0x3580] sm:$0xff]  ;;  %v3652_v25 = vld [vmem:[%s16602_s7 + $0x3590] sm:$0xff]  ;;  %3649 = vst [vmem:[%s16607_s8 + $0x1ab8] sm:$0xff] %v3648_v23 }
 0x1c6   : > { %3651 = vst [vmem:[%s16607_s8 + $0x1ac0] sm:$0xff] %v3650_v24  ;;  %3653 = vst [vmem:[%s16607_s8 + $0x1ac8] sm:$0xff] %v3652_v25  ;;  %v3654_v26 = vld [vmem:[%s16602_s7 + $0x35a0] sm:$0xff]  ;;  %v3656_v27 = vld [vmem:[%s16602_s7 + $0x35b0] sm:$0xff] }
 0x1c7   : > { %v3658_v28 = vld [vmem:[%s16602_s7 + $0x35c0] sm:$0xff]  ;;  %3655 = vst [vmem:[%s16607_s8 + $0x1ad0] sm:$0xff] %v3654_v26  ;;  %3657 = vst [vmem:[%s16607_s8 + $0x1ad8] sm:$0xff] %v3656_v27  ;;  %v3660_v29 = vld [vmem:[%s16602_s7 + $0x35d0] sm:$0xff] }
 0x1c8   : > { %3659 = vst [vmem:[%s16607_s8 + $0x1ae0] sm:$0xff] %v3658_v28  ;;  %v3662_v30 = vld [vmem:[%s16602_s7 + $0x35e0] sm:$0xff]  ;;  %v3664_v31 = vld [vmem:[%s16602_s7 + $0x35f0] sm:$0xff]  ;;  %3661 = vst [vmem:[%s16607_s8 + $0x1ae8] sm:$0xff] %v3660_v29 }
 0x1c9   : > { %3663 = vst [vmem:[%s16607_s8 + $0x1af0] sm:$0xff] %v3662_v30  ;;  %3665 = vst [vmem:[%s16607_s8 + $0x1af8] sm:$0xff] %v3664_v31 }
 0x1ca PF: > { %p14123_p7 = scmp.ge.s32.totalorder %s16518_s18, 1  ;;  %p7170_p8 = scmp.lt.s32.totalorder %s16518_s18, 7 }
 0x1cc   : > { %p7171_p9 = pnand %p14123_p7, %p7170_p8 }
 0x1cd   : > { %s7177_s9 = sand.u32 (!%p7171_p9), 1, %s16494_s12   ;;  %s7216_s10 = smul.u32 (!%p7171_p9), 54, %s16502_s14 }
 0x1ce   : > { %7174 = sbr.rel (%p7171_p9) target bundleno = 1611 (0x64b), region = 80  ;;  %s14124_s21 = sshll.u32 (!%p7171_p9), %s16506_s15, 1 }
 0x1cf   : > { %s15100_s11 = smul.u32 (!%p7171_p9), 6912, %s7177_s9  ;;  %p7219_p10 = scmp.lt.s32.totalorder (!%p7171_p9), %s7216_s10, 161 }
 0x1d0   : > { %p7228_p11 = scmp.lt.s32.totalorder (!%p7171_p9), %s14124_s21, 3  ;;  %p14127_p12 = scmp.ne.s32.totalorder (!%p7171_p9), %s16502_s14, 0 }
 0x1d1   : > { %s18352_s15 = scalar_lea.vmem (!%p7171_p9), [#allocation2], %s15100_s11 }
 0x1d5   : > { %s19533_s10 = smov (!%p7219_p10, %s7216_s10), 161  ;;  %s19535_s21 = smov (!%p7228_p11, %s14124_s21), 3 }
 0x1d6   : > { %s18342_s24 = scalar_lea.vmem %s19516_s0, %s19533_s10  ;;  %s7230_s28 = scalar_lea.vmem %s19518_s2, %s19535_s21  ;;  %v7248_v32 = vlaneseq (!%p14127_p12) }
 0x1d7   : > { %s14126_s29 = sshll.u32 %s19535_s21, 1  ;;  %7245 = sbr.rel (%p14127_p12) target bundleno = 481 (0x1e1), region = 88  ;;  %v7246_v34 = vld [vmem:[%s7230_s28] sm:$0x3] (!%p14127_p12) }
 0x1d8   : > { %s18350_s12 = scalar_lea.vmem %s19519_s3, %s14126_s29  ;;  %v7249_v33 = vshrl.u32 (!%p14127_p12), %v7248_v32, 7 }
 0x1da   : > { %v7250_v35 = vsub.s32 (!%p14127_p12), 0, %v7249_v33  ;;  %v7254_v36 = vsub.s32 (!%p14127_p12), 1, %v7249_v33 }
 0x1dc   : > { %v7251_v37 = vrot.slane (!%p14127_p12), %v7246_v34, %v7250_v35  ;;  %v7255_v38 = vrot.slane (!%p14127_p12), %v7246_v34, %v7254_v36 }
 0x1de   : > { %v7256_v39 = vcombine.low %v7251_v37, %v7255_v38 }
 0x1e0   : > { %14128 = vst.sshfl [vmem:[%s18350_s12] sm:$0x33 pattern:$0x76325410] %v7256_v39 }
 0x1e1 PF: > { %v15159_v40 = vld [vmem:[%s18352_s15 + $0x4] ss:$8 sps:$4 sm:$0xff]   ;;  %v15163_v42 = vld [vmem:[%s18352_s15] ss:$8 sps:$4 sm:$0xff]   ;;  %v15165_v44 = vld [vmem:[%s18352_s15 + $0x14] ss:$8 sps:$4 sm:$0xff]   ;;  %v8149_v16 = vlaneseq }
 0x1e2   : > { %v15161_v41 = vld [vmem:[%s18352_s15 + $0xd04] ss:$8 sps:$4 sm:$0xff]   ;;  %12860 = vmatprep.subr.bf16.mxu1 %v15159_v40  ;;  %v15164_v43 = vld [vmem:[%s18352_s15 + $0xd00] ss:$8 sps:$4 sm:$0xff]   ;;  %v15167_v45 = vld [vmem:[%s18352_s15 + $0xd14] ss:$8 sps:$4 sm:$0xff]  }
 0x1e3   : > { %13393 = vmatprep.subr.bf16.mxu0 %v15161_v41  ;;  %12861 = vmatpush1.bf16.msra.mxu1 %v15163_v42  ;;  %v15169_v46 = vld [vmem:[%s18352_s15 + $0x10] ss:$8 sps:$4 sm:$0xff]   ;;  %v15171_v48 = vld [vmem:[%s18352_s15 + $0x24] ss:$8 sps:$4 sm:$0xff]   ;;  %v15175_v50 = vld [vmem:[%s18352_s15 + $0x20] ss:$8 sps:$4 sm:$0xff]  }
 0x1e4   : > { %13394 = vmatpush1.bf16.msra.mxu0 %v15164_v43  ;;  %12862 = vmatprep.subr.bf16.mxu1 %v15165_v44  ;;  %v15170_v47 = vld [vmem:[%s18352_s15 + $0xd10] ss:$8 sps:$4 sm:$0xff]   ;;  %v15173_v49 = vld [vmem:[%s18352_s15 + $0xd24] ss:$8 sps:$4 sm:$0xff]   ;;  %v15176_v51 = vld [vmem:[%s18352_s15 + $0xd20] ss:$8 sps:$4 sm:$0xff]  }
 0x1e5   : > { %13395 = vmatprep.subr.bf16.mxu0 %v15167_v45  ;;  %v15177_v52 = vld [vmem:[%s18352_s15 + $0x34] ss:$8 sps:$4 sm:$0xff]   ;;  %v15181_v54 = vld [vmem:[%s18352_s15 + $0x30] ss:$8 sps:$4 sm:$0xff]   ;;  %v15183_v56 = vld [vmem:[%s18352_s15 + $0x44] ss:$8 sps:$4 sm:$0xff]  }
 0x1e6   : > { %v15179_v53 = vld [vmem:[%s18352_s15 + $0xd34] ss:$8 sps:$4 sm:$0xff]   ;;  %v15182_v55 = vld [vmem:[%s18352_s15 + $0xd30] ss:$8 sps:$4 sm:$0xff]   ;;  %v15185_v57 = vld [vmem:[%s18352_s15 + $0xd44] ss:$8 sps:$4 sm:$0xff]  }
 0x1e7   : > { %12863 = vmatpush1.bf16.msra.mxu1 %v15169_v46  ;;  %v15187_v58 = vld [vmem:[%s18352_s15 + $0x40] ss:$8 sps:$4 sm:$0xff]   ;;  %v15189_v60 = vld [vmem:[%s18352_s15 + $0x54] ss:$8 sps:$4 sm:$0xff]   ;;  %v15193_v62 = vld [vmem:[%s18352_s15 + $0x50] ss:$8 sps:$4 sm:$0xff]  }
 0x1e8   : > { %13396 = vmatpush1.bf16.msra.mxu0 %v15170_v47  ;;  %12864 = vmatprep.subr.bf16.mxu1 %v15171_v48  ;;  %v15188_v59 = vld [vmem:[%s18352_s15 + $0xd40] ss:$8 sps:$4 sm:$0xff]   ;;  %v15191_v61 = vld [vmem:[%s18352_s15 + $0xd54] ss:$8 sps:$4 sm:$0xff]   ;;  %v15194_v63 = vld [vmem:[%s18352_s15 + $0xd50] ss:$8 sps:$4 sm:$0xff]  }
 0x1e9   : > { %13397 = vmatprep.subr.bf16.mxu0 %v15173_v49  ;;  %v15195_v0 = vld [vmem:[%s18352_s15 + $0x64] ss:$8 sps:$4 sm:$0xff]   ;;  %v15199_v2 = vld [vmem:[%s18352_s15 + $0x60] ss:$8 sps:$4 sm:$0xff]   ;;  %v15201_v4 = vld [vmem:[%s18352_s15 + $0x74] ss:$8 sps:$4 sm:$0xff]  }
 0x1ea   : > { %v15197_v1 = vld [vmem:[%s18352_s15 + $0xd64] ss:$8 sps:$4 sm:$0xff]   ;;  %v15200_v3 = vld [vmem:[%s18352_s15 + $0xd60] ss:$8 sps:$4 sm:$0xff]   ;;  %v15203_v5 = vld [vmem:[%s18352_s15 + $0xd74] ss:$8 sps:$4 sm:$0xff]  }
 0x1eb   : > { %12865 = vmatpush1.bf16.msra.mxu1 %v15175_v50  ;;  %v15205_v6 = vld [vmem:[%s18352_s15 + $0x70] ss:$8 sps:$4 sm:$0xff]   ;;  %v15207_v8 = vld [vmem:[%s18352_s15 + $0x84] ss:$8 sps:$4 sm:$0xff]   ;;  %v15211_v10 = vld [vmem:[%s18352_s15 + $0x80] ss:$8 sps:$4 sm:$0xff]  }
 0x1ec   : > { %13398 = vmatpush1.bf16.msra.mxu0 %v15176_v51  ;;  %12866 = vmatprep.subr.bf16.mxu1 %v15177_v52  ;;  %v15206_v7 = vld [vmem:[%s18352_s15 + $0xd70] ss:$8 sps:$4 sm:$0xff]   ;;  %v15209_v9 = vld [vmem:[%s18352_s15 + $0xd84] ss:$8 sps:$4 sm:$0xff]   ;;  %v15212_v11 = vld [vmem:[%s18352_s15 + $0xd80] ss:$8 sps:$4 sm:$0xff]  }
 0x1ed   : > { %13399 = vmatprep.subr.bf16.mxu0 %v15179_v53  ;;  %v15213_v12 = vld [vmem:[%s18352_s15 + $0x94] ss:$8 sps:$4 sm:$0xff]   ;;  %v16520_v14 = vmov 1966171168   ;;  %v15217_v17 = vld [vmem:[%s18352_s15 + $0x90] ss:$8 sps:$4 sm:$0xff]  }
 0x1ee   : > { %v15215_v13 = vld [vmem:[%s18352_s15 + $0xd94] ss:$8 sps:$4 sm:$0xff]   ;;  %v8147_v15 = vunpack.c.l.s4 %v16520_v14  ;;  %v15218_v18 = vld [vmem:[%s18352_s15 + $0xd90] ss:$8 sps:$4 sm:$0xff]   ;;  %v15219_v19 = vld [vmem:[%s18352_s15 + $0xa4] ss:$8 sps:$4 sm:$0xff]  }
 0x1ef   : > { %12867 = vmatpush1.bf16.msra.mxu1 %v15181_v54  ;;  %v15221_v20 = vld [vmem:[%s18352_s15 + $0xda4] ss:$8 sps:$4 sm:$0xff]   ;;  %v18398_v22 = vshrl.u32 %v8149_v16, 7  ;;  %v15223_v23 = vld [vmem:[%s18352_s15 + $0xa0] ss:$8 sps:$4 sm:$0xff]   ;;  %v7270_v32 = vld [vmem:[%s18342_s24 + $0x18] sm:$0xff] }
 0x1f0   : > { %13400 = vmatpush1.bf16.msra.mxu0 %v15182_v55  ;;  %12868 = vmatprep.subr.bf16.mxu1 %v15183_v56  ;;  %v8148_v21 = vunpack.c.0.s8 %v8147_v15  ;;  %v15224_v24 = vld [vmem:[%s18352_s15 + $0xda0] ss:$8 sps:$4 sm:$0xff]   ;;  %v15225_v25 = vld [vmem:[%s18352_s15 + $0xb4] ss:$8 sps:$4 sm:$0xff]   ;;  %v15229_v29 = vld [vmem:[%s18352_s15 + $0xb0] ss:$8 sps:$4 sm:$0xff]   ;;  %v8292_v49 = vcombine.high %v7270_v32, %v7270_v32 }
 0x1f1   : > { %13401 = vmatprep.subr.bf16.mxu0 %v15185_v57  ;;  %v15227_v26 = vld [vmem:[%s18352_s15 + $0xdb4] ss:$8 sps:$4 sm:$0xff]   ;;  %v18408_v28 = vld [vmem:[%s18342_s24] sm:$0xff]  ;;  %v15230_v31 = vld [vmem:[%s18352_s15 + $0xdb0] ss:$8 sps:$4 sm:$0xff]   ;;  %p14993_p13 = scmp.ne.s32.totalorder %s16502_s14, 2 }
 0x1f2   : > { %v18405_v27 = vsub.s32 %v8148_v21, %v18398_v22  ;;  %v15231_v33 = vld [vmem:[%s18352_s15 + $0xc4] ss:$8 sps:$4 sm:$0xff]   ;;  %v15235_v39 = vld [vmem:[%s18352_s15 + $0xc0] ss:$8 sps:$4 sm:$0xff]   ;;  %v15237_v41 = vld [vmem:[%s18352_s15 + $0xd4] ss:$8 sps:$4 sm:$0xff]  }
 0x1f3   : > { %12869 = vmatpush1.bf16.msra.mxu1 %v15187_v58  ;;  %v15233_v34 = vld [vmem:[%s18352_s15 + $0xdc4] ss:$8 sps:$4 sm:$0xff]   ;;  %v15236_v40 = vld [vmem:[%s18352_s15 + $0xdc0] ss:$8 sps:$4 sm:$0xff]   ;;  %v15239_v42 = vld [vmem:[%s18352_s15 + $0xdd4] ss:$8 sps:$4 sm:$0xff]  }
 0x1f4   : > { %13402 = vmatpush1.bf16.msra.mxu0 %v15188_v59  ;;  %12870 = vmatprep.subr.bf16.mxu1 %v15189_v60  ;;  %v8152_v30 = vrot.slane %v18408_v28, %v18405_v27  ;;  %v8299_v36 = vrot.slane %v7270_v32, %v18405_v27  ;;  %v15241_v45 = vld [vmem:[%s18352_s15 + $0xd0] ss:$8 sps:$4 sm:$0xff]   ;;  %v15243_v47 = vld [vmem:[%s18352_s15 + $0xe4] ss:$8 sps:$4 sm:$0xff]   ;;  %v15247_v50 = vld [vmem:[%s18352_s15 + $0xe0] ss:$8 sps:$4 sm:$0xff]   ;;  %v18440_v54 = vrot.slane %v8292_v49, %v18405_v27 }
 0x1f5   : > { %13403 = vmatprep.subr.bf16.mxu0 %v15191_v61  ;;  %v15242_v46 = vld [vmem:[%s18352_s15 + $0xdd0] ss:$8 sps:$4 sm:$0xff]   ;;  %v15245_v48 = vld [vmem:[%s18352_s15 + $0xde4] ss:$8 sps:$4 sm:$0xff]   ;;  %v15248_v51 = vld [vmem:[%s18352_s15 + $0xde0] ss:$8 sps:$4 sm:$0xff]  }
 0x1f6   : > { %v8160_v35 = vcombine.high %v8152_v30, %v8152_v30  ;;  %v8307_v38 = vcombine.high %v8299_v36, %v8299_v36  ;;  %v15249_v52 = vld [vmem:[%s18352_s15 + $0xf4] ss:$8 sps:$4 sm:$0xff]   ;;  %v18443_v55 = vrot.slane %v8299_v36, %v18405_v27  ;;  %v15253_v56 = vld [vmem:[%s18352_s15 + $0xf0] ss:$8 sps:$4 sm:$0xff]   ;;  %v15258_v58 = vld [vmem:[%s18352_s15 + $0x104] ss:$8 sps:$4 sm:$0xff]   ;;  %v8308_v60 = vcombine.high %v18440_v54, %v18440_v54 }
 0x1f7   : > { %12871 = vmatpush1.bf16.msra.mxu1 %v15193_v62  ;;  %v15251_v53 = vld [vmem:[%s18352_s15 + $0xdf4] ss:$8 sps:$4 sm:$0xff]   ;;  %v15254_v57 = vld [vmem:[%s18352_s15 + $0xdf0] ss:$8 sps:$4 sm:$0xff]   ;;  %v15262_v59 = vld [vmem:[%s18352_s15 + $0xe04] ss:$8 sps:$4 sm:$0xff]   ;;  %v18452_v61 = vrot.slane %v8152_v30, %v18405_v27 }
 0x1f8   : > { %13404 = vmatpush1.bf16.msra.mxu0 %v15194_v63  ;;  %12872 = vmatprep.subr.bf16.mxu1 %v15195_v0  ;;  %v18419_v37 = vrot.slane %v8160_v35, %v18405_v27  ;;  %v18426_v43 = vrot.slane %v8307_v38, %v18405_v27  ;;  %v8337_v62 = vcombine.high %v18443_v55, %v18443_v55  ;;  %v15256_v63 = vld [vmem:[%s18352_s15 + $0x100] ss:$8 sps:$4 sm:$0xff]   ;;  %v15278_v14 = vld [vmem:[%s18352_s15 + $0xe30] ss:$8 sps:$4 sm:$0xff]   ;;  %v15283_v15 = vld [vmem:[%s18352_s15 + $0x144] ss:$8 sps:$4 sm:$0xff]  }
 0x1f9   : > { %13405 = vmatprep.subr.bf16.mxu0 %v15197_v1  ;;  %v15260_v0 = vld [vmem:[%s18352_s15 + $0xe00] ss:$8 sps:$4 sm:$0xff]   ;;  %v15265_v1 = vld [vmem:[%s18352_s15 + $0x114] ss:$8 sps:$4 sm:$0xff]   ;;  %v15286_v16 = vld [vmem:[%s18352_s15 + $0xe44] ss:$8 sps:$4 sm:$0xff]  }
 0x1fa   : > { %12892 = vmatprep.mubr.bf16.mxu1 %v18419_v37  ;;  %v8339_v44 = vcombine.high %v18426_v43, %v18426_v43  ;;  %v15287_v21 = vld [vmem:[%s18352_s15 + $0x150] ss:$8 sps:$4 sm:$0xff]   ;;  %v15301_v30 = vld [vmem:[%s18352_s15 + $0x174] ss:$8 sps:$4 sm:$0xff]   ;;  %v15310_v35 = vld [vmem:[%s18352_s15 + $0xe84] ss:$8 sps:$4 sm:$0xff]  }
 0x1fb   : > { %12873 = vmatpush1.bf16.msra.mxu1 %v15199_v2  ;;  %v15268_v2 = vld [vmem:[%s18352_s15 + $0xe14] ss:$8 sps:$4 sm:$0xff]   ;;  %v15299_v32 = vld [vmem:[%s18352_s15 + $0x170] ss:$8 sps:$4 sm:$0xff]   ;;  %v15305_v36 = vld [vmem:[%s18352_s15 + $0x180] ss:$8 sps:$4 sm:$0xff]  }
 0x1fc   : > { %13406 = vmatpush1.bf16.msra.mxu0 %v15200_v3  ;;  %12874 = vmatprep.subr.bf16.mxu1 %v15201_v4  ;;  %v8192_v3 = vcombine.high %v18419_v37, %v18419_v37  ;;  %v18463_v4 = vrot.slane %v8308_v60, %v18405_v27  ;;  %v15308_v37 = vld [vmem:[%s18352_s15 + $0xe80] ss:$8 sps:$4 sm:$0xff]   ;;  %v15313_v38 = vld [vmem:[%s18352_s15 + $0x194] ss:$8 sps:$4 sm:$0xff]   ;;  %v15323_v49 = vld [vmem:[%s18352_s15 + $0x1b0] ss:$8 sps:$4 sm:$0xff]  }
 0x1fd   : > { %13407 = vmatprep.subr.bf16.mxu0 %v15203_v5  ;;  %13425 = vmatprep.mubr.bf16.mxu0 %v8339_v44  ;;  %v15263_v5 = vld [vmem:[%s18352_s15 + $0x110] ss:$8 sps:$4 sm:$0xff]   ;;  %v15322_v44 = vld [vmem:[%s18352_s15 + $0xea4] ss:$8 sps:$4 sm:$0xff]  }
 0x1fe   : > { %v15338_v60 = vld [vmem:[%s18352_s15 + $0xed0] ss:$8 sps:$4 sm:$0xff]  }
 0x1ff   : > { %12875 = vmatpush1.bf16.msra.mxu1 %v15205_v6  ;;  %v15266_v6 = vld [vmem:[%s18352_s15 + $0xe10] ss:$8 sps:$4 sm:$0xff]  }
 0x200   : > { %13408 = vmatpush1.bf16.msra.mxu0 %v15206_v7  ;;  %12876 = vmatprep.subr.bf16.mxu1 %v15207_v8  ;;  %v15271_v7 = vld [vmem:[%s18352_s15 + $0x124] ss:$8 sps:$4 sm:$0xff]  }
 0x201   : > { %13409 = vmatprep.subr.bf16.mxu0 %v15209_v9  ;;  %v15274_v8 = vld [vmem:[%s18352_s15 + $0xe24] ss:$8 sps:$4 sm:$0xff]   ;;  %v15269_v9 = vld [vmem:[%s18352_s15 + $0x120] ss:$8 sps:$4 sm:$0xff]  }
 0x203   : > { %12877 = vmatpush1.bf16.msra.mxu1 %v15211_v10  ;;  %v15272_v10 = vld [vmem:[%s18352_s15 + $0xe20] ss:$8 sps:$4 sm:$0xff]  }
 0x204   : > { %13410 = vmatpush1.bf16.msra.mxu0 %v15212_v11  ;;  %12878 = vmatprep.subr.bf16.mxu1 %v15213_v12  ;;  %v15277_v11 = vld [vmem:[%s18352_s15 + $0x134] ss:$8 sps:$4 sm:$0xff]  }
 0x205   : > { %13411 = vmatprep.subr.bf16.mxu0 %v15215_v13  ;;  %v15280_v12 = vld [vmem:[%s18352_s15 + $0xe34] ss:$8 sps:$4 sm:$0xff]   ;;  %v15275_v13 = vld [vmem:[%s18352_s15 + $0x130] ss:$8 sps:$4 sm:$0xff]  }
 0x207   : > { %12879 = vmatpush1.bf16.msra.mxu1 %v15217_v17  ;;  %v15281_v17 = vld [vmem:[%s18352_s15 + $0x140] ss:$8 sps:$4 sm:$0xff]  }
 0x208   : > { %13412 = vmatpush1.bf16.msra.mxu0 %v15218_v18  ;;  %12880 = vmatprep.subr.bf16.mxu1 %v15219_v19  ;;  %v15284_v18 = vld [vmem:[%s18352_s15 + $0xe40] ss:$8 sps:$4 sm:$0xff]   ;;  %v15289_v19 = vld [vmem:[%s18352_s15 + $0x154] ss:$8 sps:$4 sm:$0xff]  }
 0x209   : > { %13413 = vmatprep.subr.bf16.mxu0 %v15221_v20  ;;  %v15292_v20 = vld [vmem:[%s18352_s15 + $0xe54] ss:$8 sps:$4 sm:$0xff]  }
 0x20b   : > { %12881 = vmatpush1.bf16.msra.mxu1 %v15223_v23  ;;  %v15290_v23 = vld [vmem:[%s18352_s15 + $0xe50] ss:$8 sps:$4 sm:$0xff]  }
 0x20c   : > { %13414 = vmatpush1.bf16.msra.mxu0 %v15224_v24  ;;  %12882 = vmatprep.subr.bf16.mxu1 %v15225_v25  ;;  %v15295_v24 = vld [vmem:[%s18352_s15 + $0x164] ss:$8 sps:$4 sm:$0xff]  }
 0x20d   : > { %13415 = vmatprep.subr.bf16.mxu0 %v15227_v26  ;;  %v15298_v25 = vld [vmem:[%s18352_s15 + $0xe64] ss:$8 sps:$4 sm:$0xff]   ;;  %v15293_v26 = vld [vmem:[%s18352_s15 + $0x160] ss:$8 sps:$4 sm:$0xff]  }
 0x20f   : > { %12883 = vmatpush1.bf16.msra.mxu1 %v15229_v29  ;;  %v15296_v29 = vld [vmem:[%s18352_s15 + $0xe60] ss:$8 sps:$4 sm:$0xff]  }
 0x210   : > { %13416 = vmatpush1.bf16.msra.mxu0 %v15230_v31  ;;  %12884 = vmatprep.subr.bf16.mxu1 %v15231_v33  ;;  %v15304_v31 = vld [vmem:[%s18352_s15 + $0xe74] ss:$8 sps:$4 sm:$0xff]   ;;  %v15302_v33 = vld [vmem:[%s18352_s15 + $0xe70] ss:$8 sps:$4 sm:$0xff]  }
 0x211   : > { %13417 = vmatprep.subr.bf16.mxu0 %v15233_v34  ;;  %v15307_v34 = vld [vmem:[%s18352_s15 + $0x184] ss:$8 sps:$4 sm:$0xff]  }
 0x213   : > { %12885 = vmatpush1.bf16.msra.mxu1 %v15235_v39  ;;  %v15316_v39 = vld [vmem:[%s18352_s15 + $0xe94] ss:$8 sps:$4 sm:$0xff]  }
 0x214   : > { %13418 = vmatpush1.bf16.msra.mxu0 %v15236_v40  ;;  %12886 = vmatprep.subr.bf16.mxu1 %v15237_v41  ;;  %v15311_v40 = vld [vmem:[%s18352_s15 + $0x190] ss:$8 sps:$4 sm:$0xff]  }
 0x215   : > { %13419 = vmatprep.subr.bf16.mxu0 %v15239_v42  ;;  %v15314_v41 = vld [vmem:[%s18352_s15 + $0xe90] ss:$8 sps:$4 sm:$0xff]   ;;  %v15319_v42 = vld [vmem:[%s18352_s15 + $0x1a4] ss:$8 sps:$4 sm:$0xff]  }
 0x217   : > { %12887 = vmatpush1.bf16.msra.mxu1 %v15241_v45  ;;  %v15317_v45 = vld [vmem:[%s18352_s15 + $0x1a0] ss:$8 sps:$4 sm:$0xff]  }
 0x218   : > { %13420 = vmatpush1.bf16.msra.mxu0 %v15242_v46  ;;  %12888 = vmatprep.subr.bf16.mxu1 %v15243_v47  ;;  %v15320_v46 = vld [vmem:[%s18352_s15 + $0xea0] ss:$8 sps:$4 sm:$0xff]   ;;  %v15325_v47 = vld [vmem:[%s18352_s15 + $0x1b4] ss:$8 sps:$4 sm:$0xff]  }
 0x219   : > { %13421 = vmatprep.subr.bf16.mxu0 %v15245_v48  ;;  %v15328_v48 = vld [vmem:[%s18352_s15 + $0xeb4] ss:$8 sps:$4 sm:$0xff]  }
 0x21b   : > { %12889 = vmatpush1.bf16.msra.mxu1 %v15247_v50  ;;  %v15326_v50 = vld [vmem:[%s18352_s15 + $0xeb0] ss:$8 sps:$4 sm:$0xff]  }
 0x21c   : > { %13422 = vmatpush1.bf16.msra.mxu0 %v15248_v51  ;;  %12890 = vmatprep.subr.bf16.mxu1 %v15249_v52  ;;  %v15331_v51 = vld [vmem:[%s18352_s15 + $0x1c4] ss:$8 sps:$4 sm:$0xff]  }
 0x21d   : > { %13423 = vmatprep.subr.bf16.mxu0 %v15251_v53  ;;  %v15334_v52 = vld [vmem:[%s18352_s15 + $0xec4] ss:$8 sps:$4 sm:$0xff]   ;;  %v15329_v53 = vld [vmem:[%s18352_s15 + $0x1c0] ss:$8 sps:$4 sm:$0xff]  }
 0x21f   : > { %12891 = vmatpush1.bf16.msra.mxu1 %v15253_v56  ;;  %v15332_v56 = vld [vmem:[%s18352_s15 + $0xec0] ss:$8 sps:$4 sm:$0xff]  }
 0x220   : > { %13424 = vmatpush1.bf16.msra.mxu0 %v15254_v57  ;;  %12901 = vmatprep.subr.bf16.mxu1 %v15258_v58  ;;  %v15337_v57 = vld [vmem:[%s18352_s15 + $0x1d4] ss:$8 sps:$4 sm:$0xff]  }
 0x221   : > { %13434 = vmatprep.subr.bf16.mxu0 %v15262_v59  ;;  %v15340_v58 = vld [vmem:[%s18352_s15 + $0xed4] ss:$8 sps:$4 sm:$0xff]   ;;  %v15335_v59 = vld [vmem:[%s18352_s15 + $0x1d0] ss:$8 sps:$4 sm:$0xff]  }
 0x222   : > { %12893 = vmatmul.mubr.bf16.vlgmr.msra.gmra.mrb[0].mxu1 %v18452_v61 }
 0x223   : > { %13426 = vmatmul.mubr.bf16.vlgmr.msra.gmra.mrb[0].mxu0 %v8337_v62  ;;  %12902 = vmatpush1.bf16.msra.mxu1 %v15256_v63  ;;  %v15343_v62 = vld [vmem:[%s18352_s15 + $0x1e4] ss:$8 sps:$4 sm:$0xff]  }
 0x224   : > { %13435 = vmatpush1.bf16.msra.mxu0 %v15260_v0  ;;  %12903 = vmatprep.subr.bf16.mxu1 %v15265_v1  ;;  %v15346_v63 = vld [vmem:[%s18352_s15 + $0xee4] ss:$8 sps:$4 sm:$0xff]   ;;  %v8145_v0 = vcombine.high %v18408_v28, %v18408_v28  ;;  %v15341_v1 = vld [vmem:[%s18352_s15 + $0x1e0] ss:$8 sps:$4 sm:$0xff]   ;;  %v15350_v28 = vld [vmem:[%s18352_s15 + $0xef0] ss:$8 sps:$4 sm:$0xff]  }
 0x225   : > { %13436 = vmatprep.subr.bf16.mxu0 %v15268_v2  ;;  %12933 = vmatprep.mubr.bf16.mxu1 %v8192_v3  ;;  %v15344_v2 = vld [vmem:[%s18352_s15 + $0xee0] ss:$8 sps:$4 sm:$0xff]   ;;  %v15349_v3 = vld [vmem:[%s18352_s15 + $0x1f4] ss:$8 sps:$4 sm:$0xff]  }
 0x226   : > { %13466 = vmatprep.mubr.bf16.mxu0 %v18463_v4 }
 0x227   : > { %12904 = vmatpush1.bf16.msra.mxu1 %v15263_v5  ;;  %v15352_v5 = vld [vmem:[%s18352_s15 + $0xef4] ss:$8 sps:$4 sm:$0xff]  }
 0x228   : > { %13437 = vmatpush1.bf16.msra.mxu0 %v15266_v6  ;;  %12905 = vmatprep.subr.bf16.mxu1 %v15271_v7  ;;  %v18526_v6 = vrot.slane %v8145_v0, %v18405_v27  ;;  %v15347_v7 = vld [vmem:[%s18352_s15 + $0x1f0] ss:$8 sps:$4 sm:$0xff]  }
 0x229   : > { %13438 = vmatprep.subr.bf16.mxu0 %v15274_v8  ;;  %v15355_v8 = vld [vmem:[%s18352_s15 + $0x204] ss:$8 sps:$4 sm:$0xff]   ;;  %v15422_v0 = vld [vmem:[%s18352_s15 + $0xfb0] ss:$8 sps:$4 sm:$0xff]  }
 0x22b   : > { %12906 = vmatpush1.bf16.msra.mxu1 %v15269_v9  ;;  %v15358_v9 = vld [vmem:[%s18352_s15 + $0xf04] ss:$8 sps:$4 sm:$0xff]  }
 0x22c   : > { %13439 = vmatpush1.bf16.msra.mxu0 %v15272_v10  ;;  %12907 = vmatprep.subr.bf16.mxu1 %v15277_v11  ;;  %v8161_v10 = vcombine.high %v18526_v6, %v18526_v6  ;;  %v8190_v11 = vcombine.high %v18452_v61, %v18452_v61  ;;  %v8340_v61 = vcombine.high %v18463_v4, %v18463_v4  ;;  %v15365_v4 = vld [vmem:[%s18352_s15 + $0x220] ss:$8 sps:$4 sm:$0xff]  }
 0x22d   : > { %13440 = vmatprep.subr.bf16.mxu0 %v15280_v12  ;;  %v18538_v12 = vrot.slane %v18440_v54, %v18405_v27  ;;  %v15359_v54 = vld [vmem:[%s18352_s15 + $0x210] ss:$8 sps:$4 sm:$0xff]  }
 0x22f   : > { %12908 = vmatpush1.bf16.msra.mxu1 %v15275_v13  ;;  %v15353_v13 = vld [vmem:[%s18352_s15 + $0x200] ss:$8 sps:$4 sm:$0xff]  }
 0x230   : > { %13441 = vmatpush1.bf16.msra.mxu0 %v15278_v14  ;;  %12909 = vmatprep.subr.bf16.mxu1 %v15283_v15  ;;  %v15356_v14 = vld [vmem:[%s18352_s15 + $0xf00] ss:$8 sps:$4 sm:$0xff]   ;;  %v15361_v15 = vld [vmem:[%s18352_s15 + $0x214] ss:$8 sps:$4 sm:$0xff]  }
 0x231   : > { %13442 = vmatprep.subr.bf16.mxu0 %v15286_v16  ;;  %v15364_v16 = vld [vmem:[%s18352_s15 + $0xf14] ss:$8 sps:$4 sm:$0xff]  }
 0x233   : > { %12910 = vmatpush1.bf16.msra.mxu1 %v15281_v17  ;;  %v18545_v17 = vrot.slane %v8161_v10, %v18405_v27  ;;  %v15439_v10 = vld [vmem:[%s18352_s15 + $0x2e4] ss:$8 sps:$4 sm:$0xff]  }
 0x234   : > { %13443 = vmatpush1.bf16.msra.mxu0 %v15284_v18  ;;  %12911 = vmatprep.subr.bf16.mxu1 %v15289_v19  ;;  %v15362_v18 = vld [vmem:[%s18352_s15 + $0xf10] ss:$8 sps:$4 sm:$0xff]   ;;  %v15367_v19 = vld [vmem:[%s18352_s15 + $0x224] ss:$8 sps:$4 sm:$0xff]  }
 0x235   : > { %13444 = vmatprep.subr.bf16.mxu0 %v15292_v20  ;;  %v15370_v20 = vld [vmem:[%s18352_s15 + $0xf24] ss:$8 sps:$4 sm:$0xff]  }
 0x237   : > { %12912 = vmatpush1.bf16.msra.mxu1 %v15287_v21  ;;  %v15368_v21 = vld [vmem:[%s18352_s15 + $0xf20] ss:$8 sps:$4 sm:$0xff]  }
 0x238   : > { %13445 = vmatpush1.bf16.msra.mxu0 %v15290_v23  ;;  %12913 = vmatprep.subr.bf16.mxu1 %v15295_v24  ;;  %v15373_v23 = vld [vmem:[%s18352_s15 + $0x234] ss:$8 sps:$4 sm:$0xff]  }
 0x239   : > { %13446 = vmatprep.subr.bf16.mxu0 %v15298_v25  ;;  %v15376_v24 = vld [vmem:[%s18352_s15 + $0xf34] ss:$8 sps:$4 sm:$0xff]   ;;  %v15371_v25 = vld [vmem:[%s18352_s15 + $0x230] ss:$8 sps:$4 sm:$0xff]  }
 0x23b   : > { %12914 = vmatpush1.bf16.msra.mxu1 %v15293_v26  ;;  %v15374_v26 = vld [vmem:[%s18352_s15 + $0xf30] ss:$8 sps:$4 sm:$0xff]  }
 0x23c   : > { %13447 = vmatpush1.bf16.msra.mxu0 %v15296_v29  ;;  %12915 = vmatprep.subr.bf16.mxu1 %v15301_v30  ;;  %v15379_v29 = vld [vmem:[%s18352_s15 + $0x244] ss:$8 sps:$4 sm:$0xff]  }
 0x23d   : > { %13448 = vmatprep.subr.bf16.mxu0 %v15304_v31  ;;  %v15382_v30 = vld [vmem:[%s18352_s15 + $0xf44] ss:$8 sps:$4 sm:$0xff]   ;;  %v15377_v31 = vld [vmem:[%s18352_s15 + $0x240] ss:$8 sps:$4 sm:$0xff]  }
 0x23f   : > { %12916 = vmatpush1.bf16.msra.mxu1 %v15299_v32  ;;  %v15380_v32 = vld [vmem:[%s18352_s15 + $0xf40] ss:$8 sps:$4 sm:$0xff]  }
 0x240   : > { %13449 = vmatpush1.bf16.msra.mxu0 %v15302_v33  ;;  %12917 = vmatprep.subr.bf16.mxu1 %v15307_v34  ;;  %v15385_v33 = vld [vmem:[%s18352_s15 + $0x254] ss:$8 sps:$4 sm:$0xff]  }
 0x241   : > { %13450 = vmatprep.subr.bf16.mxu0 %v15310_v35  ;;  %v15388_v34 = vld [vmem:[%s18352_s15 + $0xf54] ss:$8 sps:$4 sm:$0xff]   ;;  %v15383_v35 = vld [vmem:[%s18352_s15 + $0x250] ss:$8 sps:$4 sm:$0xff]  }
 0x243   : > { %12918 = vmatpush1.bf16.msra.mxu1 %v15305_v36  ;;  %v15386_v36 = vld [vmem:[%s18352_s15 + $0xf50] ss:$8 sps:$4 sm:$0xff]  }
 0x244   : > { %13451 = vmatpush1.bf16.msra.mxu0 %v15308_v37  ;;  %12919 = vmatprep.subr.bf16.mxu1 %v15313_v38  ;;  %v15391_v37 = vld [vmem:[%s18352_s15 + $0x264] ss:$8 sps:$4 sm:$0xff]  }
 0x245   : > { %13452 = vmatprep.subr.bf16.mxu0 %v15316_v39  ;;  %v15394_v38 = vld [vmem:[%s18352_s15 + $0xf64] ss:$8 sps:$4 sm:$0xff]   ;;  %v15389_v39 = vld [vmem:[%s18352_s15 + $0x260] ss:$8 sps:$4 sm:$0xff]  }
 0x247   : > { %12920 = vmatpush1.bf16.msra.mxu1 %v15311_v40  ;;  %v15392_v40 = vld [vmem:[%s18352_s15 + $0xf60] ss:$8 sps:$4 sm:$0xff]  }
 0x248   : > { %13453 = vmatpush1.bf16.msra.mxu0 %v15314_v41  ;;  %12921 = vmatprep.subr.bf16.mxu1 %v15319_v42  ;;  %v15397_v41 = vld [vmem:[%s18352_s15 + $0x274] ss:$8 sps:$4 sm:$0xff]  }
 0x249   : > { %13454 = vmatprep.subr.bf16.mxu0 %v15322_v44  ;;  %v15400_v42 = vld [vmem:[%s18352_s15 + $0xf74] ss:$8 sps:$4 sm:$0xff]   ;;  %v15395_v44 = vld [vmem:[%s18352_s15 + $0x270] ss:$8 sps:$4 sm:$0xff]  }
 0x24b   : > { %12922 = vmatpush1.bf16.msra.mxu1 %v15317_v45  ;;  %v15398_v45 = vld [vmem:[%s18352_s15 + $0xf70] ss:$8 sps:$4 sm:$0xff]  }
 0x24c   : > { %13455 = vmatpush1.bf16.msra.mxu0 %v15320_v46  ;;  %12923 = vmatprep.subr.bf16.mxu1 %v15325_v47  ;;  %v15403_v46 = vld [vmem:[%s18352_s15 + $0x284] ss:$8 sps:$4 sm:$0xff]  }
 0x24d   : > { %13456 = vmatprep.subr.bf16.mxu0 %v15328_v48  ;;  %v15406_v47 = vld [vmem:[%s18352_s15 + $0xf84] ss:$8 sps:$4 sm:$0xff]   ;;  %v15401_v48 = vld [vmem:[%s18352_s15 + $0x280] ss:$8 sps:$4 sm:$0xff]  }
 0x24f   : > { %12924 = vmatpush1.bf16.msra.mxu1 %v15323_v49  ;;  %v15404_v49 = vld [vmem:[%s18352_s15 + $0xf80] ss:$8 sps:$4 sm:$0xff]  }
 0x250   : > { %13457 = vmatpush1.bf16.msra.mxu0 %v15326_v50  ;;  %12925 = vmatprep.subr.bf16.mxu1 %v15331_v51  ;;  %v15409_v50 = vld [vmem:[%s18352_s15 + $0x294] ss:$8 sps:$4 sm:$0xff]  }
 0x251   : > { %13458 = vmatprep.subr.bf16.mxu0 %v15334_v52  ;;  %v15412_v51 = vld [vmem:[%s18352_s15 + $0xf94] ss:$8 sps:$4 sm:$0xff]   ;;  %v15407_v52 = vld [vmem:[%s18352_s15 + $0x290] ss:$8 sps:$4 sm:$0xff]  }
 0x253   : > { %12926 = vmatpush1.bf16.msra.mxu1 %v15329_v53  ;;  %v15410_v53 = vld [vmem:[%s18352_s15 + $0xf90] ss:$8 sps:$4 sm:$0xff]  }
 0x254   : > { %13459 = vmatpush1.bf16.msra.mxu0 %v15332_v56  ;;  %12927 = vmatprep.subr.bf16.mxu1 %v15337_v57  ;;  %v15415_v56 = vld [vmem:[%s18352_s15 + $0x2a4] ss:$8 sps:$4 sm:$0xff]  }
 0x255   : > { %13460 = vmatprep.subr.bf16.mxu0 %v15340_v58  ;;  %v15418_v57 = vld [vmem:[%s18352_s15 + $0xfa4] ss:$8 sps:$4 sm:$0xff]   ;;  %v15413_v58 = vld [vmem:[%s18352_s15 + $0x2a0] ss:$8 sps:$4 sm:$0xff]  }
 0x257   : > { %12928 = vmatpush1.bf16.msra.mxu1 %v15335_v59  ;;  %v15416_v59 = vld [vmem:[%s18352_s15 + $0xfa0] ss:$8 sps:$4 sm:$0xff]  }
 0x258   : > { %13461 = vmatpush1.bf16.msra.mxu0 %v15338_v60  ;;  %12929 = vmatprep.subr.bf16.mxu1 %v15343_v62  ;;  %v15421_v60 = vld [vmem:[%s18352_s15 + $0x2b4] ss:$8 sps:$4 sm:$0xff]  }
 0x259   : > { %13462 = vmatprep.subr.bf16.mxu0 %v15346_v63  ;;  %v15424_v62 = vld [vmem:[%s18352_s15 + $0xfb4] ss:$8 sps:$4 sm:$0xff]   ;;  %v15419_v63 = vld [vmem:[%s18352_s15 + $0x2b0] ss:$8 sps:$4 sm:$0xff]  }
 0x25b   : > { %12930 = vmatpush1.bf16.msra.mxu1 %v15341_v1  ;;  %v15427_v1 = vld [vmem:[%s18352_s15 + $0x2c4] ss:$8 sps:$4 sm:$0xff]  }
 0x25c   : > { %13463 = vmatpush1.bf16.msra.mxu0 %v15344_v2  ;;  %12931 = vmatprep.subr.bf16.mxu1 %v15349_v3  ;;  %v15430_v2 = vld [vmem:[%s18352_s15 + $0xfc4] ss:$8 sps:$4 sm:$0xff]   ;;  %v15425_v3 = vld [vmem:[%s18352_s15 + $0x2c0] ss:$8 sps:$4 sm:$0xff]  }
 0x25d   : > { %13464 = vmatprep.subr.bf16.mxu0 %v15352_v5  ;;  %v15428_v5 = vld [vmem:[%s18352_s15 + $0xfc0] ss:$8 sps:$4 sm:$0xff]  }
 0x25f   : > { %12932 = vmatpush1.bf16.msra.mxu1 %v15347_v7  ;;  %v15433_v7 = vld [vmem:[%s18352_s15 + $0x2d4] ss:$8 sps:$4 sm:$0xff]  }
 0x260   : > { %13465 = vmatpush1.bf16.msra.mxu0 %v15350_v28  ;;  %12942 = vmatprep.subr.bf16.mxu1 %v15355_v8  ;;  %v15436_v28 = vld [vmem:[%s18352_s15 + $0xfd4] ss:$8 sps:$4 sm:$0xff]   ;;  %v15431_v8 = vld [vmem:[%s18352_s15 + $0x2d0] ss:$8 sps:$4 sm:$0xff]  }
 0x261   : > { %13475 = vmatprep.subr.bf16.mxu0 %v15358_v9  ;;  %v15434_v9 = vld [vmem:[%s18352_s15 + $0xfd0] ss:$8 sps:$4 sm:$0xff]  }
 0x262   : > { %12934 = vmatmul.mubr.bf16.vlgmr.msra.gmra.mrb[0].mxu1 %v8190_v11  ;;  %v15442_v11 = vld [vmem:[%s18352_s15 + $0xfe4] ss:$8 sps:$4 sm:$0xff]  }
 0x263   : > { %13467 = vmatmul.mubr.bf16.vlgmr.msra.gmra.mrb[0].mxu0 %v18538_v12  ;;  %12943 = vmatpush1.bf16.msra.mxu1 %v15353_v13  ;;  %v15437_v13 = vld [vmem:[%s18352_s15 + $0x2e0] ss:$8 sps:$4 sm:$0xff]  }
 0x264   : > { %13476 = vmatpush1.bf16.msra.mxu0 %v15356_v14  ;;  %12944 = vmatprep.subr.bf16.mxu1 %v15361_v15  ;;  %v18605_v14 = vld [vmem:[%s18342_s24 + $0x20] sm:$0xff] }
 0x265   : > { %13477 = vmatprep.subr.bf16.mxu0 %v15364_v16  ;;  %12974 = vmatprep.mubr.bf16.mxu1 %v18545_v17  ;;  %v15440_v15 = vld [vmem:[%s18352_s15 + $0xfe0] ss:$8 sps:$4 sm:$0xff]   ;;  %v15445_v16 = vld [vmem:[%s18352_s15 + $0x2f4] ss:$8 sps:$4 sm:$0xff]  }
 0x266   : > { %13507 = vmatprep.mubr.bf16.mxu0 %v8340_v61  ;;  %v15448_v61 = vld [vmem:[%s18352_s15 + $0xff4] ss:$8 sps:$4 sm:$0xff]  }
 0x267   : > { %12945 = vmatpush1.bf16.msra.mxu1 %v15359_v54  ;;  %v18612_v54 = vrot.slane %v18605_v14, %v18405_v27 }
 0x268   : > { %13478 = vmatpush1.bf16.msra.mxu0 %v15362_v18  ;;  %12946 = vmatprep.subr.bf16.mxu1 %v15367_v19  ;;  %v15443_v18 = vld [vmem:[%s18352_s15 + $0x2f0] ss:$8 sps:$4 sm:$0xff]  }
 0x269   : > { %13479 = vmatprep.subr.bf16.mxu0 %v15370_v20  ;;  %v15446_v19 = vld [vmem:[%s18352_s15 + $0xff0] ss:$8 sps:$4 sm:$0xff]   ;;  %v15451_v20 = vld [vmem:[%s18352_s15 + $0x304] ss:$8 sps:$4 sm:$0xff]  }
 0x26b   : > { %12947 = vmatpush1.bf16.msra.mxu1 %v15365_v4  ;;  %v15454_v4 = vld [vmem:[%s18352_s15 + $0x1004] ss:$8 sps:$4 sm:$0xff]  }
 0x26c   : > { %13480 = vmatpush1.bf16.msra.mxu0 %v15368_v21  ;;  %12948 = vmatprep.subr.bf16.mxu1 %v15373_v23  ;;  %v8356_v21 = vcombine.high %v18612_v54, %v18612_v54  ;;  %v15449_v23 = vld [vmem:[%s18352_s15 + $0x300] ss:$8 sps:$4 sm:$0xff]  }
 0x26d   : > { %13481 = vmatprep.subr.bf16.mxu0 %v15376_v24  ;;  %v18623_v24 = vrot.slane %v18526_v6, %v18405_v27 }
 0x26e   : > { %v18633_v6 = vrot.slane %v8356_v21, %v18405_v27  ;;  %v15530_v21 = vld [vmem:[%s18352_s15 + $0x10d0] ss:$8 sps:$4 sm:$0xff]  }
 0x26f   : > { %12949 = vmatpush1.bf16.msra.mxu1 %v15371_v25  ;;  %v8338_v25 = vcombine.high %v18538_v12, %v18538_v12  ;;  %v15455_v12 = vld [vmem:[%s18352_s15 + $0x310] ss:$8 sps:$4 sm:$0xff]  }
 0x270   : > { %13482 = vmatpush1.bf16.msra.mxu0 %v15374_v26  ;;  %12950 = vmatprep.subr.bf16.mxu1 %v15379_v29  ;;  %v15452_v26 = vld [vmem:[%s18352_s15 + $0x1000] ss:$8 sps:$4 sm:$0xff]   ;;  %v15457_v29 = vld [vmem:[%s18352_s15 + $0x314] ss:$8 sps:$4 sm:$0xff]  }
 0x271   : > { %13483 = vmatprep.subr.bf16.mxu0 %v15382_v30  ;;  %v15460_v30 = vld [vmem:[%s18352_s15 + $0x1014] ss:$8 sps:$4 sm:$0xff]  }
 0x273   : > { %12951 = vmatpush1.bf16.msra.mxu1 %v15377_v31  ;;  %v8193_v31 = vcombine.high %v18545_v17, %v18545_v17  ;;  %v15466_v17 = vld [vmem:[%s18352_s15 + $0x1024] ss:$8 sps:$4 sm:$0xff]  }
 0x274   : > { %13484 = vmatpush1.bf16.msra.mxu0 %v15380_v32  ;;  %12952 = vmatprep.subr.bf16.mxu1 %v15385_v33  ;;  %v15458_v32 = vld [vmem:[%s18352_s15 + $0x1010] ss:$8 sps:$4 sm:$0xff]   ;;  %v15463_v33 = vld [vmem:[%s18352_s15 + $0x324] ss:$8 sps:$4 sm:$0xff]  }
 0x275   : > { %13485 = vmatprep.subr.bf16.mxu0 %v15388_v34  ;;  %v15461_v34 = vld [vmem:[%s18352_s15 + $0x320] ss:$8 sps:$4 sm:$0xff]  }
 0x277   : > { %12953 = vmatpush1.bf16.msra.mxu1 %v15383_v35  ;;  %v15464_v35 = vld [vmem:[%s18352_s15 + $0x1020] ss:$8 sps:$4 sm:$0xff]  }
 0x278   : > { %13486 = vmatpush1.bf16.msra.mxu0 %v15386_v36  ;;  %12954 = vmatprep.subr.bf16.mxu1 %v15391_v37  ;;  %v15469_v36 = vld [vmem:[%s18352_s15 + $0x334] ss:$8 sps:$4 sm:$0xff]  }
 0x279   : > { %13487 = vmatprep.subr.bf16.mxu0 %v15394_v38  ;;  %v15472_v37 = vld [vmem:[%s18352_s15 + $0x1034] ss:$8 sps:$4 sm:$0xff]   ;;  %v15467_v38 = vld [vmem:[%s18352_s15 + $0x330] ss:$8 sps:$4 sm:$0xff]  }
 0x27b   : > { %12955 = vmatpush1.bf16.msra.mxu1 %v15389_v39  ;;  %v15470_v39 = vld [vmem:[%s18352_s15 + $0x1030] ss:$8 sps:$4 sm:$0xff]  }
 0x27c   : > { %13488 = vmatpush1.bf16.msra.mxu0 %v15392_v40  ;;  %12956 = vmatprep.subr.bf16.mxu1 %v15397_v41  ;;  %v15475_v40 = vld [vmem:[%s18352_s15 + $0x344] ss:$8 sps:$4 sm:$0xff]  }
 0x27d   : > { %13489 = vmatprep.subr.bf16.mxu0 %v15400_v42  ;;  %v15478_v41 = vld [vmem:[%s18352_s15 + $0x1044] ss:$8 sps:$4 sm:$0xff]   ;;  %v15473_v42 = vld [vmem:[%s18352_s15 + $0x340] ss:$8 sps:$4 sm:$0xff]  }
 0x27f   : > { %12957 = vmatpush1.bf16.msra.mxu1 %v15395_v44  ;;  %v15476_v44 = vld [vmem:[%s18352_s15 + $0x1040] ss:$8 sps:$4 sm:$0xff]  }
 0x280   : > { %13490 = vmatpush1.bf16.msra.mxu0 %v15398_v45  ;;  %12958 = vmatprep.subr.bf16.mxu1 %v15403_v46  ;;  %v15481_v45 = vld [vmem:[%s18352_s15 + $0x354] ss:$8 sps:$4 sm:$0xff]  }
 0x281   : > { %13491 = vmatprep.subr.bf16.mxu0 %v15406_v47  ;;  %v15484_v46 = vld [vmem:[%s18352_s15 + $0x1054] ss:$8 sps:$4 sm:$0xff]   ;;  %v15479_v47 = vld [vmem:[%s18352_s15 + $0x350] ss:$8 sps:$4 sm:$0xff]  }
 0x283   : > { %12959 = vmatpush1.bf16.msra.mxu1 %v15401_v48  ;;  %v15482_v48 = vld [vmem:[%s18352_s15 + $0x1050] ss:$8 sps:$4 sm:$0xff]  }
 0x284   : > { %13492 = vmatpush1.bf16.msra.mxu0 %v15404_v49  ;;  %12960 = vmatprep.subr.bf16.mxu1 %v15409_v50  ;;  %v15487_v49 = vld [vmem:[%s18352_s15 + $0x364] ss:$8 sps:$4 sm:$0xff]  }
 0x285   : > { %13493 = vmatprep.subr.bf16.mxu0 %v15412_v51  ;;  %v15490_v50 = vld [vmem:[%s18352_s15 + $0x1064] ss:$8 sps:$4 sm:$0xff]   ;;  %v15485_v51 = vld [vmem:[%s18352_s15 + $0x360] ss:$8 sps:$4 sm:$0xff]  }
 0x287   : > { %12961 = vmatpush1.bf16.msra.mxu1 %v15407_v52  ;;  %v15488_v52 = vld [vmem:[%s18352_s15 + $0x1060] ss:$8 sps:$4 sm:$0xff]  }
 0x288   : > { %13494 = vmatpush1.bf16.msra.mxu0 %v15410_v53  ;;  %12962 = vmatprep.subr.bf16.mxu1 %v15415_v56  ;;  %v15493_v53 = vld [vmem:[%s18352_s15 + $0x374] ss:$8 sps:$4 sm:$0xff]  }
 0x289   : > { %13495 = vmatprep.subr.bf16.mxu0 %v15418_v57  ;;  %v15496_v56 = vld [vmem:[%s18352_s15 + $0x1074] ss:$8 sps:$4 sm:$0xff]   ;;  %v15491_v57 = vld [vmem:[%s18352_s15 + $0x370] ss:$8 sps:$4 sm:$0xff]  }
 0x28b   : > { %12963 = vmatpush1.bf16.msra.mxu1 %v15413_v58  ;;  %v15494_v58 = vld [vmem:[%s18352_s15 + $0x1070] ss:$8 sps:$4 sm:$0xff]  }
 0x28c   : > { %13496 = vmatpush1.bf16.msra.mxu0 %v15416_v59  ;;  %12964 = vmatprep.subr.bf16.mxu1 %v15421_v60  ;;  %v15499_v59 = vld [vmem:[%s18352_s15 + $0x384] ss:$8 sps:$4 sm:$0xff]  }
 0x28d   : > { %13497 = vmatprep.subr.bf16.mxu0 %v15424_v62  ;;  %v15502_v60 = vld [vmem:[%s18352_s15 + $0x1084] ss:$8 sps:$4 sm:$0xff]   ;;  %v15497_v62 = vld [vmem:[%s18352_s15 + $0x380] ss:$8 sps:$4 sm:$0xff]  }
 0x28f   : > { %12965 = vmatpush1.bf16.msra.mxu1 %v15419_v63  ;;  %v15500_v63 = vld [vmem:[%s18352_s15 + $0x1080] ss:$8 sps:$4 sm:$0xff]  }
 0x290   : > { %13498 = vmatpush1.bf16.msra.mxu0 %v15422_v0  ;;  %12966 = vmatprep.subr.bf16.mxu1 %v15427_v1  ;;  %v15505_v0 = vld [vmem:[%s18352_s15 + $0x394] ss:$8 sps:$4 sm:$0xff]  }
 0x291   : > { %13499 = vmatprep.subr.bf16.mxu0 %v15430_v2  ;;  %v15508_v1 = vld [vmem:[%s18352_s15 + $0x1094] ss:$8 sps:$4 sm:$0xff]   ;;  %v15503_v2 = vld [vmem:[%s18352_s15 + $0x390] ss:$8 sps:$4 sm:$0xff]  }
 0x293   : > { %12967 = vmatpush1.bf16.msra.mxu1 %v15425_v3  ;;  %v15506_v3 = vld [vmem:[%s18352_s15 + $0x1090] ss:$8 sps:$4 sm:$0xff]  }
 0x294   : > { %13500 = vmatpush1.bf16.msra.mxu0 %v15428_v5  ;;  %12968 = vmatprep.subr.bf16.mxu1 %v15433_v7  ;;  %v15511_v5 = vld [vmem:[%s18352_s15 + $0x3a4] ss:$8 sps:$4 sm:$0xff]  }
 0x295   : > { %13501 = vmatprep.subr.bf16.mxu0 %v15436_v28  ;;  %v15514_v7 = vld [vmem:[%s18352_s15 + $0x10a4] ss:$8 sps:$4 sm:$0xff]   ;;  %v15509_v28 = vld [vmem:[%s18352_s15 + $0x3a0] ss:$8 sps:$4 sm:$0xff]  }
 0x297   : > { %12969 = vmatpush1.bf16.msra.mxu1 %v15431_v8  ;;  %v15512_v8 = vld [vmem:[%s18352_s15 + $0x10a0] ss:$8 sps:$4 sm:$0xff]  }
 0x298   : > { %13502 = vmatpush1.bf16.msra.mxu0 %v15434_v9  ;;  %12970 = vmatprep.subr.bf16.mxu1 %v15439_v10  ;;  %v15517_v9 = vld [vmem:[%s18352_s15 + $0x3b4] ss:$8 sps:$4 sm:$0xff]  }
 0x299   : > { %13503 = vmatprep.subr.bf16.mxu0 %v15442_v11  ;;  %v15520_v10 = vld [vmem:[%s18352_s15 + $0x10b4] ss:$8 sps:$4 sm:$0xff]   ;;  %v15515_v11 = vld [vmem:[%s18352_s15 + $0x3b0] ss:$8 sps:$4 sm:$0xff]  }
 0x29b   : > { %12971 = vmatpush1.bf16.msra.mxu1 %v15437_v13  ;;  %v15518_v13 = vld [vmem:[%s18352_s15 + $0x10b0] ss:$8 sps:$4 sm:$0xff]  }
 0x29c   : > { %13504 = vmatpush1.bf16.msra.mxu0 %v15440_v15  ;;  %12972 = vmatprep.subr.bf16.mxu1 %v15445_v16  ;;  %v15523_v15 = vld [vmem:[%s18352_s15 + $0x3c4] ss:$8 sps:$4 sm:$0xff]  }
 0x29d   : > { %13505 = vmatprep.subr.bf16.mxu0 %v15448_v61  ;;  %v15526_v16 = vld [vmem:[%s18352_s15 + $0x10c4] ss:$8 sps:$4 sm:$0xff]   ;;  %v15521_v61 = vld [vmem:[%s18352_s15 + $0x3c0] ss:$8 sps:$4 sm:$0xff]  }
 0x29f   : > { %12973 = vmatpush1.bf16.msra.mxu1 %v15443_v18  ;;  %v15524_v18 = vld [vmem:[%s18352_s15 + $0x10c0] ss:$8 sps:$4 sm:$0xff]  }
 0x2a0   : > { %13506 = vmatpush1.bf16.msra.mxu0 %v15446_v19  ;;  %12983 = vmatprep.subr.bf16.mxu1 %v15451_v20  ;;  %v15529_v19 = vld [vmem:[%s18352_s15 + $0x3d4] ss:$8 sps:$4 sm:$0xff]  }
 0x2a1   : > { %13516 = vmatprep.subr.bf16.mxu0 %v15454_v4  ;;  %v15532_v20 = vld [vmem:[%s18352_s15 + $0x10d4] ss:$8 sps:$4 sm:$0xff]   ;;  %v15527_v4 = vld [vmem:[%s18352_s15 + $0x3d0] ss:$8 sps:$4 sm:$0xff]  }
 0x2a2   : > { %12975 = vmatmul.mubr.bf16.vlgmr.msra.gmra.mrb[0].mxu1 %v18623_v24 }
 0x2a3   : > { %13508 = vmatmul.mubr.bf16.vlgmr.msra.gmra.mrb[0].mxu0 %v8338_v25  ;;  %12984 = vmatpush1.bf16.msra.mxu1 %v15449_v23  ;;  %v15535_v23 = vld [vmem:[%s18352_s15 + $0x3e4] ss:$8 sps:$4 sm:$0xff]  }
 0x2a4   : > { %13517 = vmatpush1.bf16.msra.mxu0 %v15452_v26  ;;  %12985 = vmatprep.subr.bf16.mxu1 %v15457_v29  ;;  %v15538_v25 = vld [vmem:[%s18352_s15 + $0x10e4] ss:$8 sps:$4 sm:$0xff]   ;;  %v15533_v26 = vld [vmem:[%s18352_s15 + $0x3e0] ss:$8 sps:$4 sm:$0xff]  }
 0x2a5   : > { %13518 = vmatprep.subr.bf16.mxu0 %v15460_v30  ;;  %13015 = vmatprep.mubr.bf16.mxu1 %v8193_v31  ;;  %v15536_v29 = vld [vmem:[%s18352_s15 + $0x10e0] ss:$8 sps:$4 sm:$0xff]   ;;  %v15541_v31 = vld [vmem:[%s18352_s15 + $0x3f4] ss:$8 sps:$4 sm:$0xff]  }
 0x2a6   : > { %13548 = vmatprep.mubr.bf16.mxu0 %v18633_v6  ;;  %v18692_v30 = vld.sshfl [vmem:[%s18342_s24 + $0x8] sm:$0xff pattern:$0x75316420] }
 0x2a7   : > { %12986 = vmatpush1.bf16.msra.mxu1 %v15455_v12  ;;  %v15544_v12 = vld [vmem:[%s18352_s15 + $0x10f4] ss:$8 sps:$4 sm:$0xff]  }
 0x2a8   : > { %13519 = vmatpush1.bf16.msra.mxu0 %v15458_v32  ;;  %12987 = vmatprep.subr.bf16.mxu1 %v15463_v33  ;;  %v15539_v32 = vld [vmem:[%s18352_s15 + $0x3f0] ss:$8 sps:$4 sm:$0xff]  }
 0x2a9   : > { %13520 = vmatprep.subr.bf16.mxu0 %v15466_v17  ;;  %v15542_v33 = vld [vmem:[%s18352_s15 + $0x10f0] ss:$8 sps:$4 sm:$0xff]   ;;  %v15547_v17 = vld [vmem:[%s18352_s15 + $0x404] ss:$8 sps:$4 sm:$0xff]  }
 0x2ab   : > { %12988 = vmatpush1.bf16.msra.mxu1 %v15461_v34  ;;  %v15550_v34 = vld [vmem:[%s18352_s15 + $0x1104] ss:$8 sps:$4 sm:$0xff]  }
 0x2ac   : > { %13521 = vmatpush1.bf16.msra.mxu0 %v15464_v35  ;;  %12989 = vmatprep.subr.bf16.mxu1 %v15469_v36  ;;  %v8209_v35 = vcombine.high %v18692_v30, %v18692_v30  ;;  %v15545_v36 = vld [vmem:[%s18352_s15 + $0x400] ss:$8 sps:$4 sm:$0xff]  }
 0x2ad   : > { %13522 = vmatprep.subr.bf16.mxu0 %v15472_v37  ;;  %v15548_v37 = vld [vmem:[%s18352_s15 + $0x1100] ss:$8 sps:$4 sm:$0xff]  }
 0x2af   : > { %12990 = vmatpush1.bf16.msra.mxu1 %v15467_v38  ;;  %v8191_v38 = vcombine.high %v18623_v24, %v18623_v24  ;;  %v15554_v24 = vld [vmem:[%s18352_s15 + $0x1110] ss:$8 sps:$4 sm:$0xff]  }
 0x2b0   : > { %13523 = vmatpush1.bf16.msra.mxu0 %v15470_v39  ;;  %12991 = vmatprep.subr.bf16.mxu1 %v15475_v40  ;;  %v18708_v39 = vrot.slane %v18612_v54, %v18405_v27  ;;  %v15553_v40 = vld [vmem:[%s18352_s15 + $0x414] ss:$8 sps:$4 sm:$0xff]   ;;  %v15551_v54 = vld [vmem:[%s18352_s15 + $0x410] ss:$8 sps:$4 sm:$0xff]  }
 0x2b1   : > { %13524 = vmatprep.subr.bf16.mxu0 %v15478_v41  ;;  %v15556_v41 = vld [vmem:[%s18352_s15 + $0x1114] ss:$8 sps:$4 sm:$0xff]  }
 0x2b3   : > { %12992 = vmatpush1.bf16.msra.mxu1 %v15473_v42  ;;  %v18713_v42 = vrot.slane %v8209_v35, %v18405_v27  ;;  %v15626_v35 = vld [vmem:[%s18352_s15 + $0x11d0] ss:$8 sps:$4 sm:$0xff]  }
 0x2b4   : > { %13525 = vmatpush1.bf16.msra.mxu0 %v15476_v44  ;;  %12993 = vmatprep.subr.bf16.mxu1 %v15481_v45  ;;  %v8388_v44 = vcombine.high %v18633_v6, %v18633_v6  ;;  %v15559_v45 = vld [vmem:[%s18352_s15 + $0x424] ss:$8 sps:$4 sm:$0xff]   ;;  %v15557_v6 = vld [vmem:[%s18352_s15 + $0x420] ss:$8 sps:$4 sm:$0xff]  }
 0x2b5   : > { %13526 = vmatprep.subr.bf16.mxu0 %v15484_v46  ;;  %v15562_v46 = vld [vmem:[%s18352_s15 + $0x1124] ss:$8 sps:$4 sm:$0xff]  }
 0x2b7   : > { %12994 = vmatpush1.bf16.msra.mxu1 %v15479_v47  ;;  %v15560_v47 = vld [vmem:[%s18352_s15 + $0x1120] ss:$8 sps:$4 sm:$0xff]  }
 0x2b8   : > { %13527 = vmatpush1.bf16.msra.mxu0 %v15482_v48  ;;  %12995 = vmatprep.subr.bf16.mxu1 %v15487_v49  ;;  %v15565_v48 = vld [vmem:[%s18352_s15 + $0x434] ss:$8 sps:$4 sm:$0xff]  }
 0x2b9   : > { %13528 = vmatprep.subr.bf16.mxu0 %v15490_v50  ;;  %v15568_v49 = vld [vmem:[%s18352_s15 + $0x1134] ss:$8 sps:$4 sm:$0xff]   ;;  %v15563_v50 = vld [vmem:[%s18352_s15 + $0x430] ss:$8 sps:$4 sm:$0xff]  }
 0x2bb   : > { %12996 = vmatpush1.bf16.msra.mxu1 %v15485_v51  ;;  %v15566_v51 = vld [vmem:[%s18352_s15 + $0x1130] ss:$8 sps:$4 sm:$0xff]  }
 0x2bc   : > { %13529 = vmatpush1.bf16.msra.mxu0 %v15488_v52  ;;  %12997 = vmatprep.subr.bf16.mxu1 %v15493_v53  ;;  %v15571_v52 = vld [vmem:[%s18352_s15 + $0x444] ss:$8 sps:$4 sm:$0xff]  }
 0x2bd   : > { %13530 = vmatprep.subr.bf16.mxu0 %v15496_v56  ;;  %v15574_v53 = vld [vmem:[%s18352_s15 + $0x1144] ss:$8 sps:$4 sm:$0xff]   ;;  %v15569_v56 = vld [vmem:[%s18352_s15 + $0x440] ss:$8 sps:$4 sm:$0xff]  }
 0x2bf   : > { %12998 = vmatpush1.bf16.msra.mxu1 %v15491_v57  ;;  %v15572_v57 = vld [vmem:[%s18352_s15 + $0x1140] ss:$8 sps:$4 sm:$0xff]  }
 0x2c0   : > { %13531 = vmatpush1.bf16.msra.mxu0 %v15494_v58  ;;  %12999 = vmatprep.subr.bf16.mxu1 %v15499_v59  ;;  %v15577_v58 = vld [vmem:[%s18352_s15 + $0x454] ss:$8 sps:$4 sm:$0xff]  }
 0x2c1   : > { %13532 = vmatprep.subr.bf16.mxu0 %v15502_v60  ;;  %v15580_v59 = vld [vmem:[%s18352_s15 + $0x1154] ss:$8 sps:$4 sm:$0xff]   ;;  %v15575_v60 = vld [vmem:[%s18352_s15 + $0x450] ss:$8 sps:$4 sm:$0xff]  }
 0x2c3   : > { %13000 = vmatpush1.bf16.msra.mxu1 %v15497_v62  ;;  %v15578_v62 = vld [vmem:[%s18352_s15 + $0x1150] ss:$8 sps:$4 sm:$0xff]  }
 0x2c4   : > { %13533 = vmatpush1.bf16.msra.mxu0 %v15500_v63  ;;  %13001 = vmatprep.subr.bf16.mxu1 %v15505_v0  ;;  %v15583_v63 = vld [vmem:[%s18352_s15 + $0x464] ss:$8 sps:$4 sm:$0xff]  }
 0x2c5   : > { %13534 = vmatprep.subr.bf16.mxu0 %v15508_v1  ;;  %v15586_v0 = vld [vmem:[%s18352_s15 + $0x1164] ss:$8 sps:$4 sm:$0xff]   ;;  %v15581_v1 = vld [vmem:[%s18352_s15 + $0x460] ss:$8 sps:$4 sm:$0xff]  }
 0x2c7   : > { %13002 = vmatpush1.bf16.msra.mxu1 %v15503_v2  ;;  %v15584_v2 = vld [vmem:[%s18352_s15 + $0x1160] ss:$8 sps:$4 sm:$0xff]  }
 0x2c8   : > { %13535 = vmatpush1.bf16.msra.mxu0 %v15506_v3  ;;  %13003 = vmatprep.subr.bf16.mxu1 %v15511_v5  ;;  %v15589_v3 = vld [vmem:[%s18352_s15 + $0x474] ss:$8 sps:$4 sm:$0xff]  }
 0x2c9   : > { %13536 = vmatprep.subr.bf16.mxu0 %v15514_v7  ;;  %v15592_v5 = vld [vmem:[%s18352_s15 + $0x1174] ss:$8 sps:$4 sm:$0xff]   ;;  %v15587_v7 = vld [vmem:[%s18352_s15 + $0x470] ss:$8 sps:$4 sm:$0xff]  }
 0x2cb   : > { %13004 = vmatpush1.bf16.msra.mxu1 %v15509_v28  ;;  %v15590_v28 = vld [vmem:[%s18352_s15 + $0x1170] ss:$8 sps:$4 sm:$0xff]  }
 0x2cc   : > { %13537 = vmatpush1.bf16.msra.mxu0 %v15512_v8  ;;  %13005 = vmatprep.subr.bf16.mxu1 %v15517_v9  ;;  %v15595_v8 = vld [vmem:[%s18352_s15 + $0x484] ss:$8 sps:$4 sm:$0xff]  }
 0x2cd   : > { %13538 = vmatprep.subr.bf16.mxu0 %v15520_v10  ;;  %v15598_v9 = vld [vmem:[%s18352_s15 + $0x1184] ss:$8 sps:$4 sm:$0xff]   ;;  %v15593_v10 = vld [vmem:[%s18352_s15 + $0x480] ss:$8 sps:$4 sm:$0xff]  }
 0x2cf   : > { %13006 = vmatpush1.bf16.msra.mxu1 %v15515_v11  ;;  %v15596_v11 = vld [vmem:[%s18352_s15 + $0x1180] ss:$8 sps:$4 sm:$0xff]  }
 0x2d0   : > { %13539 = vmatpush1.bf16.msra.mxu0 %v15518_v13  ;;  %13007 = vmatprep.subr.bf16.mxu1 %v15523_v15  ;;  %v15601_v13 = vld [vmem:[%s18352_s15 + $0x494] ss:$8 sps:$4 sm:$0xff]  }
 0x2d1   : > { %13540 = vmatprep.subr.bf16.mxu0 %v15526_v16  ;;  %v15604_v15 = vld [vmem:[%s18352_s15 + $0x1194] ss:$8 sps:$4 sm:$0xff]   ;;  %v15599_v16 = vld [vmem:[%s18352_s15 + $0x490] ss:$8 sps:$4 sm:$0xff]  }
 0x2d3   : > { %13008 = vmatpush1.bf16.msra.mxu1 %v15521_v61  ;;  %v15602_v61 = vld [vmem:[%s18352_s15 + $0x1190] ss:$8 sps:$4 sm:$0xff]  }
 0x2d4   : > { %13541 = vmatpush1.bf16.msra.mxu0 %v15524_v18  ;;  %13009 = vmatprep.subr.bf16.mxu1 %v15529_v19  ;;  %v15607_v18 = vld [vmem:[%s18352_s15 + $0x4a4] ss:$8 sps:$4 sm:$0xff]  }
 0x2d5   : > { %13542 = vmatprep.subr.bf16.mxu0 %v15532_v20  ;;  %v15610_v19 = vld [vmem:[%s18352_s15 + $0x11a4] ss:$8 sps:$4 sm:$0xff]   ;;  %v15605_v20 = vld [vmem:[%s18352_s15 + $0x4a0] ss:$8 sps:$4 sm:$0xff]  }
 0x2d7   : > { %13010 = vmatpush1.bf16.msra.mxu1 %v15527_v4  ;;  %v15608_v4 = vld [vmem:[%s18352_s15 + $0x11a0] ss:$8 sps:$4 sm:$0xff]  }
 0x2d8   : > { %13543 = vmatpush1.bf16.msra.mxu0 %v15530_v21  ;;  %13011 = vmatprep.subr.bf16.mxu1 %v15535_v23  ;;  %v15613_v21 = vld [vmem:[%s18352_s15 + $0x4b4] ss:$8 sps:$4 sm:$0xff]  }
 0x2d9   : > { %13544 = vmatprep.subr.bf16.mxu0 %v15538_v25  ;;  %v15616_v23 = vld [vmem:[%s18352_s15 + $0x11b4] ss:$8 sps:$4 sm:$0xff]   ;;  %v15611_v25 = vld [vmem:[%s18352_s15 + $0x4b0] ss:$8 sps:$4 sm:$0xff]  }
 0x2db   : > { %13012 = vmatpush1.bf16.msra.mxu1 %v15533_v26  ;;  %v15614_v26 = vld [vmem:[%s18352_s15 + $0x11b0] ss:$8 sps:$4 sm:$0xff]  }
 0x2dc   : > { %13545 = vmatpush1.bf16.msra.mxu0 %v15536_v29  ;;  %13013 = vmatprep.subr.bf16.mxu1 %v15541_v31  ;;  %v15619_v29 = vld [vmem:[%s18352_s15 + $0x4c4] ss:$8 sps:$4 sm:$0xff]  }
 0x2dd   : > { %13546 = vmatprep.subr.bf16.mxu0 %v15544_v12  ;;  %v15622_v31 = vld [vmem:[%s18352_s15 + $0x11c4] ss:$8 sps:$4 sm:$0xff]   ;;  %v15617_v12 = vld [vmem:[%s18352_s15 + $0x4c0] ss:$8 sps:$4 sm:$0xff]  }
 0x2df   : > { %13014 = vmatpush1.bf16.msra.mxu1 %v15539_v32  ;;  %v15620_v32 = vld [vmem:[%s18352_s15 + $0x11c0] ss:$8 sps:$4 sm:$0xff]  }
 0x2e0   : > { %13547 = vmatpush1.bf16.msra.mxu0 %v15542_v33  ;;  %13024 = vmatprep.subr.bf16.mxu1 %v15547_v17  ;;  %v15625_v33 = vld [vmem:[%s18352_s15 + $0x4d4] ss:$8 sps:$4 sm:$0xff]  }
 0x2e1   : > { %13557 = vmatprep.subr.bf16.mxu0 %v15550_v34  ;;  %v15628_v17 = vld [vmem:[%s18352_s15 + $0x11d4] ss:$8 sps:$4 sm:$0xff]   ;;  %v15623_v34 = vld [vmem:[%s18352_s15 + $0x4d0] ss:$8 sps:$4 sm:$0xff]  }
 0x2e2   : > { %13016 = vmatmul.mubr.bf16.vlgmr.msra.gmra.mrb[0].mxu1 %v8191_v38  ;;  %v8341_v38 = vcombine.high %v18605_v14, %v18605_v14  ;;  %v15638_v14 = vld [vmem:[%s18352_s15 + $0x11f0] ss:$8 sps:$4 sm:$0xff]  }
 0x2e3   : > { %13549 = vmatmul.mubr.bf16.vlgmr.msra.gmra.mrb[0].mxu0 %v18708_v39  ;;  %13025 = vmatpush1.bf16.msra.mxu1 %v15545_v36  ;;  %v15631_v36 = vld [vmem:[%s18352_s15 + $0x4e4] ss:$8 sps:$4 sm:$0xff]  }
 0x2e4   : > { %13558 = vmatpush1.bf16.msra.mxu0 %v15548_v37  ;;  %13026 = vmatprep.subr.bf16.mxu1 %v15553_v40  ;;  %v15634_v37 = vld [vmem:[%s18352_s15 + $0x11e4] ss:$8 sps:$4 sm:$0xff]   ;;  %v15629_v40 = vld [vmem:[%s18352_s15 + $0x4e0] ss:$8 sps:$4 sm:$0xff]  }
 0x2e5   : > { %13559 = vmatprep.subr.bf16.mxu0 %v15556_v41  ;;  %13056 = vmatprep.mubr.bf16.mxu1 %v18713_v42  ;;  %v15632_v41 = vld [vmem:[%s18352_s15 + $0x11e0] ss:$8 sps:$4 sm:$0xff]  }
 0x2e6   : > { %13589 = vmatprep.mubr.bf16.mxu0 %v8388_v44  ;;  %v15637_v44 = vld [vmem:[%s18352_s15 + $0x4f4] ss:$8 sps:$4 sm:$0xff]  }
 0x2e7   : > { %13027 = vmatpush1.bf16.msra.mxu1 %v15551_v54  ;;  %v15640_v54 = vld [vmem:[%s18352_s15 + $0x11f4] ss:$8 sps:$4 sm:$0xff]  }
 0x2e8   : > { %13560 = vmatpush1.bf16.msra.mxu0 %v15554_v24  ;;  %13028 = vmatprep.subr.bf16.mxu1 %v15559_v45  ;;  %v18778_v24 = vrot.slane %v8341_v38, %v18405_v27  ;;  %v15635_v45 = vld [vmem:[%s18352_s15 + $0x4f0] ss:$8 sps:$4 sm:$0xff]  }
 0x2e9   : > { %13561 = vmatprep.subr.bf16.mxu0 %v15562_v46  ;;  %v15643_v46 = vld [vmem:[%s18352_s15 + $0x504] ss:$8 sps:$4 sm:$0xff]   ;;  %v15710_v38 = vld [vmem:[%s18352_s15 + $0x12b0] ss:$8 sps:$4 sm:$0xff]  }
 0x2eb   : > { %13029 = vmatpush1.bf16.msra.mxu1 %v15557_v6  ;;  %v15646_v6 = vld [vmem:[%s18352_s15 + $0x1204] ss:$8 sps:$4 sm:$0xff]  }
 0x2ec   : > { %13562 = vmatpush1.bf16.msra.mxu0 %v15560_v47  ;;  %13030 = vmatprep.subr.bf16.mxu1 %v15565_v48  ;;  %v8357_v47 = vcombine.high %v18778_v24, %v18778_v24  ;;  %v18788_v48 = vrot.slane %v18692_v30, %v18405_v27 }
 0x2ed   : > { %13563 = vmatprep.subr.bf16.mxu0 %v15568_v49  ;;  %v8386_v49 = vcombine.high %v18708_v39, %v18708_v39  ;;  %v15647_v39 = vld [vmem:[%s18352_s15 + $0x510] ss:$8 sps:$4 sm:$0xff]  }
 0x2ee   : > { %v18799_v30 = vrot.slane %v8357_v47, %v18405_v27  ;;  %v15727_v47 = vld [vmem:[%s18352_s15 + $0x5e4] ss:$8 sps:$4 sm:$0xff]  }
 0x2ef   : > { %13031 = vmatpush1.bf16.msra.mxu1 %v15563_v50  ;;  %v15641_v50 = vld [vmem:[%s18352_s15 + $0x500] ss:$8 sps:$4 sm:$0xff]  }
 0x2f0   : > { %13564 = vmatpush1.bf16.msra.mxu0 %v15566_v51  ;;  %13032 = vmatprep.subr.bf16.mxu1 %v15571_v52  ;;  %v15644_v51 = vld [vmem:[%s18352_s15 + $0x1200] ss:$8 sps:$4 sm:$0xff]   ;;  %v15649_v52 = vld [vmem:[%s18352_s15 + $0x514] ss:$8 sps:$4 sm:$0xff]  }
 0x2f1   : > { %13565 = vmatprep.subr.bf16.mxu0 %v15574_v53  ;;  %v15652_v53 = vld [vmem:[%s18352_s15 + $0x1214] ss:$8 sps:$4 sm:$0xff]  }
 0x2f3   : > { %13033 = vmatpush1.bf16.msra.mxu1 %v15569_v56  ;;  %v8241_v56 = vcombine.high %v18713_v42, %v18713_v42  ;;  %v15658_v42 = vld [vmem:[%s18352_s15 + $0x1224] ss:$8 sps:$4 sm:$0xff]  }
 0x2f4   : > { %13566 = vmatpush1.bf16.msra.mxu0 %v15572_v57  ;;  %13034 = vmatprep.subr.bf16.mxu1 %v15577_v58  ;;  %v15650_v57 = vld [vmem:[%s18352_s15 + $0x1210] ss:$8 sps:$4 sm:$0xff]   ;;  %v15655_v58 = vld [vmem:[%s18352_s15 + $0x524] ss:$8 sps:$4 sm:$0xff]  }
 0x2f5   : > { %13567 = vmatprep.subr.bf16.mxu0 %v15580_v59  ;;  %v15653_v59 = vld [vmem:[%s18352_s15 + $0x520] ss:$8 sps:$4 sm:$0xff]  }
 0x2f7   : > { %13035 = vmatpush1.bf16.msra.mxu1 %v15575_v60  ;;  %v15656_v60 = vld [vmem:[%s18352_s15 + $0x1220] ss:$8 sps:$4 sm:$0xff]  }
 0x2f8   : > { %13568 = vmatpush1.bf16.msra.mxu0 %v15578_v62  ;;  %13036 = vmatprep.subr.bf16.mxu1 %v15583_v63  ;;  %v15661_v62 = vld [vmem:[%s18352_s15 + $0x534] ss:$8 sps:$4 sm:$0xff]  }
 0x2f9   : > { %13569 = vmatprep.subr.bf16.mxu0 %v15586_v0  ;;  %v15664_v63 = vld [vmem:[%s18352_s15 + $0x1234] ss:$8 sps:$4 sm:$0xff]   ;;  %v15659_v0 = vld [vmem:[%s18352_s15 + $0x530] ss:$8 sps:$4 sm:$0xff]  }
 0x2fb   : > { %13037 = vmatpush1.bf16.msra.mxu1 %v15581_v1  ;;  %v15662_v1 = vld [vmem:[%s18352_s15 + $0x1230] ss:$8 sps:$4 sm:$0xff]  }
 0x2fc   : > { %13570 = vmatpush1.bf16.msra.mxu0 %v15584_v2  ;;  %13038 = vmatprep.subr.bf16.mxu1 %v15589_v3  ;;  %v15667_v2 = vld [vmem:[%s18352_s15 + $0x544] ss:$8 sps:$4 sm:$0xff]  }
 0x2fd   : > { %13571 = vmatprep.subr.bf16.mxu0 %v15592_v5  ;;  %v15670_v3 = vld [vmem:[%s18352_s15 + $0x1244] ss:$8 sps:$4 sm:$0xff]   ;;  %v15665_v5 = vld [vmem:[%s18352_s15 + $0x540] ss:$8 sps:$4 sm:$0xff]  }
 0x2ff   : > { %13039 = vmatpush1.bf16.msra.mxu1 %v15587_v7  ;;  %v15668_v7 = vld [vmem:[%s18352_s15 + $0x1240] ss:$8 sps:$4 sm:$0xff]  }
 0x300   : > { %13572 = vmatpush1.bf16.msra.mxu0 %v15590_v28  ;;  %13040 = vmatprep.subr.bf16.mxu1 %v15595_v8  ;;  %v15673_v28 = vld [vmem:[%s18352_s15 + $0x554] ss:$8 sps:$4 sm:$0xff]  }
 0x301   : > { %13573 = vmatprep.subr.bf16.mxu0 %v15598_v9  ;;  %v15676_v8 = vld [vmem:[%s18352_s15 + $0x1254] ss:$8 sps:$4 sm:$0xff]   ;;  %v15671_v9 = vld [vmem:[%s18352_s15 + $0x550] ss:$8 sps:$4 sm:$0xff]  }
 0x303   : > { %13041 = vmatpush1.bf16.msra.mxu1 %v15593_v10  ;;  %v15674_v10 = vld [vmem:[%s18352_s15 + $0x1250] ss:$8 sps:$4 sm:$0xff]  }
 0x304   : > { %13574 = vmatpush1.bf16.msra.mxu0 %v15596_v11  ;;  %13042 = vmatprep.subr.bf16.mxu1 %v15601_v13  ;;  %v15679_v11 = vld [vmem:[%s18352_s15 + $0x564] ss:$8 sps:$4 sm:$0xff]  }
 0x305   : > { %13575 = vmatprep.subr.bf16.mxu0 %v15604_v15  ;;  %v15682_v13 = vld [vmem:[%s18352_s15 + $0x1264] ss:$8 sps:$4 sm:$0xff]   ;;  %v15677_v15 = vld [vmem:[%s18352_s15 + $0x560] ss:$8 sps:$4 sm:$0xff]  }
 0x307   : > { %13043 = vmatpush1.bf16.msra.mxu1 %v15599_v16  ;;  %v15680_v16 = vld [vmem:[%s18352_s15 + $0x1260] ss:$8 sps:$4 sm:$0xff]  }
 0x308   : > { %13576 = vmatpush1.bf16.msra.mxu0 %v15602_v61  ;;  %13044 = vmatprep.subr.bf16.mxu1 %v15607_v18  ;;  %v15685_v61 = vld [vmem:[%s18352_s15 + $0x574] ss:$8 sps:$4 sm:$0xff]  }
 0x309   : > { %13577 = vmatprep.subr.bf16.mxu0 %v15610_v19  ;;  %v15688_v18 = vld [vmem:[%s18352_s15 + $0x1274] ss:$8 sps:$4 sm:$0xff]   ;;  %v15683_v19 = vld [vmem:[%s18352_s15 + $0x570] ss:$8 sps:$4 sm:$0xff]  }
 0x30b   : > { %13045 = vmatpush1.bf16.msra.mxu1 %v15605_v20  ;;  %v15686_v20 = vld [vmem:[%s18352_s15 + $0x1270] ss:$8 sps:$4 sm:$0xff]  }
 0x30c   : > { %13578 = vmatpush1.bf16.msra.mxu0 %v15608_v4  ;;  %13046 = vmatprep.subr.bf16.mxu1 %v15613_v21  ;;  %v15691_v4 = vld [vmem:[%s18352_s15 + $0x584] ss:$8 sps:$4 sm:$0xff]  }
 0x30d   : > { %13579 = vmatprep.subr.bf16.mxu0 %v15616_v23  ;;  %v15694_v21 = vld [vmem:[%s18352_s15 + $0x1284] ss:$8 sps:$4 sm:$0xff]   ;;  %v15689_v23 = vld [vmem:[%s18352_s15 + $0x580] ss:$8 sps:$4 sm:$0xff]  }
 0x30f   : > { %13047 = vmatpush1.bf16.msra.mxu1 %v15611_v25  ;;  %v15692_v25 = vld [vmem:[%s18352_s15 + $0x1280] ss:$8 sps:$4 sm:$0xff]  }
 0x310   : > { %13580 = vmatpush1.bf16.msra.mxu0 %v15614_v26  ;;  %13048 = vmatprep.subr.bf16.mxu1 %v15619_v29  ;;  %v15697_v26 = vld [vmem:[%s18352_s15 + $0x594] ss:$8 sps:$4 sm:$0xff]  }
 0x311   : > { %13581 = vmatprep.subr.bf16.mxu0 %v15622_v31  ;;  %v15700_v29 = vld [vmem:[%s18352_s15 + $0x1294] ss:$8 sps:$4 sm:$0xff]   ;;  %v15695_v31 = vld [vmem:[%s18352_s15 + $0x590] ss:$8 sps:$4 sm:$0xff]  }
 0x313   : > { %13049 = vmatpush1.bf16.msra.mxu1 %v15617_v12  ;;  %v15698_v12 = vld [vmem:[%s18352_s15 + $0x1290] ss:$8 sps:$4 sm:$0xff]  }
 0x314   : > { %13582 = vmatpush1.bf16.msra.mxu0 %v15620_v32  ;;  %13050 = vmatprep.subr.bf16.mxu1 %v15625_v33  ;;  %v15703_v32 = vld [vmem:[%s18352_s15 + $0x5a4] ss:$8 sps:$4 sm:$0xff]  }
 0x315   : > { %13583 = vmatprep.subr.bf16.mxu0 %v15628_v17  ;;  %v15706_v33 = vld [vmem:[%s18352_s15 + $0x12a4] ss:$8 sps:$4 sm:$0xff]   ;;  %v15701_v17 = vld [vmem:[%s18352_s15 + $0x5a0] ss:$8 sps:$4 sm:$0xff]  }
 0x317   : > { %13051 = vmatpush1.bf16.msra.mxu1 %v15623_v34  ;;  %v15704_v34 = vld [vmem:[%s18352_s15 + $0x12a0] ss:$8 sps:$4 sm:$0xff]  }
 0x318   : > { %13584 = vmatpush1.bf16.msra.mxu0 %v15626_v35  ;;  %13052 = vmatprep.subr.bf16.mxu1 %v15631_v36  ;;  %v15709_v35 = vld [vmem:[%s18352_s15 + $0x5b4] ss:$8 sps:$4 sm:$0xff]  }
 0x319   : > { %13585 = vmatprep.subr.bf16.mxu0 %v15634_v37  ;;  %v15712_v36 = vld [vmem:[%s18352_s15 + $0x12b4] ss:$8 sps:$4 sm:$0xff]   ;;  %v15707_v37 = vld [vmem:[%s18352_s15 + $0x5b0] ss:$8 sps:$4 sm:$0xff]  }
 0x31b   : > { %13053 = vmatpush1.bf16.msra.mxu1 %v15629_v40  ;;  %v15715_v40 = vld [vmem:[%s18352_s15 + $0x5c4] ss:$8 sps:$4 sm:$0xff]  }
 0x31c   : > { %13586 = vmatpush1.bf16.msra.mxu0 %v15632_v41  ;;  %13054 = vmatprep.subr.bf16.mxu1 %v15637_v44  ;;  %v15718_v41 = vld [vmem:[%s18352_s15 + $0x12c4] ss:$8 sps:$4 sm:$0xff]   ;;  %v15713_v44 = vld [vmem:[%s18352_s15 + $0x5c0] ss:$8 sps:$4 sm:$0xff]  }
 0x31d   : > { %13587 = vmatprep.subr.bf16.mxu0 %v15640_v54  ;;  %v15716_v54 = vld [vmem:[%s18352_s15 + $0x12c0] ss:$8 sps:$4 sm:$0xff]  }
 0x31f   : > { %13055 = vmatpush1.bf16.msra.mxu1 %v15635_v45  ;;  %v15721_v45 = vld [vmem:[%s18352_s15 + $0x5d4] ss:$8 sps:$4 sm:$0xff]  }
 0x320   : > { %13588 = vmatpush1.bf16.msra.mxu0 %v15638_v14  ;;  %13065 = vmatprep.subr.bf16.mxu1 %v15643_v46  ;;  %v15724_v14 = vld [vmem:[%s18352_s15 + $0x12d4] ss:$8 sps:$4 sm:$0xff]   ;;  %v15719_v46 = vld [vmem:[%s18352_s15 + $0x5d0] ss:$8 sps:$4 sm:$0xff]  }
 0x321   : > { %13598 = vmatprep.subr.bf16.mxu0 %v15646_v6  ;;  %v15722_v6 = vld [vmem:[%s18352_s15 + $0x12d0] ss:$8 sps:$4 sm:$0xff]  }
 0x322   : > { %13057 = vmatmul.mubr.bf16.vlgmr.msra.gmra.mrb[0].mxu1 %v18788_v48 }
 0x323   : > { %13590 = vmatmul.mubr.bf16.vlgmr.msra.gmra.mrb[0].mxu0 %v8386_v49  ;;  %13066 = vmatpush1.bf16.msra.mxu1 %v15641_v50  ;;  %v15730_v49 = vld [vmem:[%s18352_s15 + $0x12e4] ss:$8 sps:$4 sm:$0xff]  }
 0x324   : > { %13599 = vmatpush1.bf16.msra.mxu0 %v15644_v51  ;;  %13067 = vmatprep.subr.bf16.mxu1 %v15649_v52  ;;  %v16462_v50 = vld [vmem:[%s18342_s24 + $0x8] sm:$0xff] }
 0x325   : > { %13600 = vmatprep.subr.bf16.mxu0 %v15652_v53  ;;  %13097 = vmatprep.mubr.bf16.mxu1 %v8241_v56  ;;  %v8194_v51 = vcombine.high %v16462_v50, %v16462_v50  ;;  %v15725_v52 = vld [vmem:[%s18352_s15 + $0x5e0] ss:$8 sps:$4 sm:$0xff]   ;;  %v15733_v56 = vld [vmem:[%s18352_s15 + $0x5f4] ss:$8 sps:$4 sm:$0xff]   ;;  %v15804_v50 = vld [vmem:[%s18352_s15 + $0x6b0] ss:$8 sps:$4 sm:$0xff]  }
 0x326   : > { %13630 = vmatprep.mubr.bf16.mxu0 %v18799_v30  ;;  %v15728_v53 = vld [vmem:[%s18352_s15 + $0x12e0] ss:$8 sps:$4 sm:$0xff]  }
 0x327   : > { %13068 = vmatpush1.bf16.msra.mxu1 %v15647_v39  ;;  %v15736_v39 = vld [vmem:[%s18352_s15 + $0x12f4] ss:$8 sps:$4 sm:$0xff]  }
 0x328   : > { %13601 = vmatpush1.bf16.msra.mxu0 %v15650_v57  ;;  %13069 = vmatprep.subr.bf16.mxu1 %v15655_v58  ;;  %v18861_v57 = vrot.slane %v8194_v51, %v18405_v27  ;;  %v15731_v58 = vld [vmem:[%s18352_s15 + $0x5f0] ss:$8 sps:$4 sm:$0xff]  }
 0x329   : > { %13602 = vmatprep.subr.bf16.mxu0 %v15658_v42  ;;  %v15734_v42 = vld [vmem:[%s18352_s15 + $0x12f0] ss:$8 sps:$4 sm:$0xff]  }
 0x32a   : > { %v15807_v51 = vld [vmem:[%s18352_s15 + $0x13b0] ss:$8 sps:$4 sm:$0xff]  }
 0x32b   : > { %13070 = vmatpush1.bf16.msra.mxu1 %v15653_v59  ;;  %v15739_v59 = vld [vmem:[%s18352_s15 + $0x604] ss:$8 sps:$4 sm:$0xff]  }
 0x32c   : > { %13603 = vmatpush1.bf16.msra.mxu0 %v15656_v60  ;;  %13071 = vmatprep.subr.bf16.mxu1 %v15661_v62  ;;  %v15743_v60 = vld [vmem:[%s18352_s15 + $0x1304] ss:$8 sps:$4 sm:$0xff]   ;;  %v8210_v62 = vcombine.high %v18861_v57, %v18861_v57 }
 0x32d   : > { %13604 = vmatprep.subr.bf16.mxu0 %v15664_v63  ;;  %v8239_v63 = vcombine.high %v18788_v48, %v18788_v48  ;;  %v8389_v48 = vcombine.high %v18799_v30, %v18799_v30  ;;  %v15750_v30 = vld [vmem:[%s18352_s15 + $0x620] ss:$8 sps:$4 sm:$0xff]  }
 0x32f   : > { %13072 = vmatpush1.bf16.msra.mxu1 %v15659_v0  ;;  %v18873_v0 = vrot.slane %v18778_v24, %v18405_v27  ;;  %v15744_v24 = vld [vmem:[%s18352_s15 + $0x610] ss:$8 sps:$4 sm:$0xff]  }
 0x330   : > { %13605 = vmatpush1.bf16.msra.mxu0 %v15662_v1  ;;  %13073 = vmatprep.subr.bf16.mxu1 %v15667_v2  ;;  %v15737_v1 = vld [vmem:[%s18352_s15 + $0x600] ss:$8 sps:$4 sm:$0xff]  }
 0x331   : > { %13606 = vmatprep.subr.bf16.mxu0 %v15670_v3  ;;  %v15741_v2 = vld [vmem:[%s18352_s15 + $0x1300] ss:$8 sps:$4 sm:$0xff]   ;;  %v15746_v3 = vld [vmem:[%s18352_s15 + $0x614] ss:$8 sps:$4 sm:$0xff]  }
 0x333   : > { %13074 = vmatpush1.bf16.msra.mxu1 %v15665_v5  ;;  %v15749_v5 = vld [vmem:[%s18352_s15 + $0x1314] ss:$8 sps:$4 sm:$0xff]  }
 0x334   : > { %13607 = vmatpush1.bf16.msra.mxu0 %v15668_v7  ;;  %13075 = vmatprep.subr.bf16.mxu1 %v15673_v28  ;;  %v18880_v7 = vrot.slane %v8210_v62, %v18405_v27  ;;  %v15747_v28 = vld [vmem:[%s18352_s15 + $0x1310] ss:$8 sps:$4 sm:$0xff]   ;;  %v15824_v62 = vld [vmem:[%s18352_s15 + $0x6e4] ss:$8 sps:$4 sm:$0xff]  }
 0x335   : > { %13608 = vmatprep.subr.bf16.mxu0 %v15676_v8  ;;  %v15752_v8 = vld [vmem:[%s18352_s15 + $0x624] ss:$8 sps:$4 sm:$0xff]  }
 0x337   : > { %13076 = vmatpush1.bf16.msra.mxu1 %v15671_v9  ;;  %v15755_v9 = vld [vmem:[%s18352_s15 + $0x1324] ss:$8 sps:$4 sm:$0xff]  }
 0x338   : > { %13609 = vmatpush1.bf16.msra.mxu0 %v15674_v10  ;;  %13077 = vmatprep.subr.bf16.mxu1 %v15679_v11  ;;  %v15753_v10 = vld [vmem:[%s18352_s15 + $0x1320] ss:$8 sps:$4 sm:$0xff]   ;;  %v15758_v11 = vld [vmem:[%s18352_s15 + $0x634] ss:$8 sps:$4 sm:$0xff]  }
 0x339   : > { %13610 = vmatprep.subr.bf16.mxu0 %v15682_v13  ;;  %v15761_v13 = vld [vmem:[%s18352_s15 + $0x1334] ss:$8 sps:$4 sm:$0xff]  }
 0x33b   : > { %13078 = vmatpush1.bf16.msra.mxu1 %v15677_v15  ;;  %v15756_v15 = vld [vmem:[%s18352_s15 + $0x630] ss:$8 sps:$4 sm:$0xff]  }
 0x33c   : > { %13611 = vmatpush1.bf16.msra.mxu0 %v15680_v16  ;;  %13079 = vmatprep.subr.bf16.mxu1 %v15685_v61  ;;  %v15759_v16 = vld [vmem:[%s18352_s15 + $0x1330] ss:$8 sps:$4 sm:$0xff]   ;;  %v15764_v61 = vld [vmem:[%s18352_s15 + $0x644] ss:$8 sps:$4 sm:$0xff]  }
 0x33d   : > { %13612 = vmatprep.subr.bf16.mxu0 %v15688_v18  ;;  %v15767_v18 = vld [vmem:[%s18352_s15 + $0x1344] ss:$8 sps:$4 sm:$0xff]  }
 0x33f   : > { %13080 = vmatpush1.bf16.msra.mxu1 %v15683_v19  ;;  %v15762_v19 = vld [vmem:[%s18352_s15 + $0x640] ss:$8 sps:$4 sm:$0xff]  }
 0x340   : > { %13613 = vmatpush1.bf16.msra.mxu0 %v15686_v20  ;;  %13081 = vmatprep.subr.bf16.mxu1 %v15691_v4  ;;  %v15765_v20 = vld [vmem:[%s18352_s15 + $0x1340] ss:$8 sps:$4 sm:$0xff]   ;;  %v15770_v4 = vld [vmem:[%s18352_s15 + $0x654] ss:$8 sps:$4 sm:$0xff]  }
 0x341   : > { %13614 = vmatprep.subr.bf16.mxu0 %v15694_v21  ;;  %v15773_v21 = vld [vmem:[%s18352_s15 + $0x1354] ss:$8 sps:$4 sm:$0xff]  }
 0x343   : > { %13082 = vmatpush1.bf16.msra.mxu1 %v15689_v23  ;;  %v15768_v23 = vld [vmem:[%s18352_s15 + $0x650] ss:$8 sps:$4 sm:$0xff]  }
 0x344   : > { %13615 = vmatpush1.bf16.msra.mxu0 %v15692_v25  ;;  %13083 = vmatprep.subr.bf16.mxu1 %v15697_v26  ;;  %v15771_v25 = vld [vmem:[%s18352_s15 + $0x1350] ss:$8 sps:$4 sm:$0xff]   ;;  %v15776_v26 = vld [vmem:[%s18352_s15 + $0x664] ss:$8 sps:$4 sm:$0xff]  }
 0x345   : > { %13616 = vmatprep.subr.bf16.mxu0 %v15700_v29  ;;  %v15779_v29 = vld [vmem:[%s18352_s15 + $0x1364] ss:$8 sps:$4 sm:$0xff]  }
 0x347   : > { %13084 = vmatpush1.bf16.msra.mxu1 %v15695_v31  ;;  %v15774_v31 = vld [vmem:[%s18352_s15 + $0x660] ss:$8 sps:$4 sm:$0xff]  }
 0x348   : > { %13617 = vmatpush1.bf16.msra.mxu0 %v15698_v12  ;;  %13085 = vmatprep.subr.bf16.mxu1 %v15703_v32  ;;  %v15777_v12 = vld [vmem:[%s18352_s15 + $0x1360] ss:$8 sps:$4 sm:$0xff]   ;;  %v15782_v32 = vld [vmem:[%s18352_s15 + $0x674] ss:$8 sps:$4 sm:$0xff]  }
 0x349   : > { %13618 = vmatprep.subr.bf16.mxu0 %v15706_v33  ;;  %v15785_v33 = vld [vmem:[%s18352_s15 + $0x1374] ss:$8 sps:$4 sm:$0xff]  }
 0x34b   : > { %13086 = vmatpush1.bf16.msra.mxu1 %v15701_v17  ;;  %v15780_v17 = vld [vmem:[%s18352_s15 + $0x670] ss:$8 sps:$4 sm:$0xff]  }
 0x34c   : > { %13619 = vmatpush1.bf16.msra.mxu0 %v15704_v34  ;;  %13087 = vmatprep.subr.bf16.mxu1 %v15709_v35  ;;  %v15783_v34 = vld [vmem:[%s18352_s15 + $0x1370] ss:$8 sps:$4 sm:$0xff]   ;;  %v15788_v35 = vld [vmem:[%s18352_s15 + $0x684] ss:$8 sps:$4 sm:$0xff]  }
 0x34d   : > { %13620 = vmatprep.subr.bf16.mxu0 %v15712_v36  ;;  %v15791_v36 = vld [vmem:[%s18352_s15 + $0x1384] ss:$8 sps:$4 sm:$0xff]  }
 0x34f   : > { %13088 = vmatpush1.bf16.msra.mxu1 %v15707_v37  ;;  %v15786_v37 = vld [vmem:[%s18352_s15 + $0x680] ss:$8 sps:$4 sm:$0xff]  }
 0x350   : > { %13621 = vmatpush1.bf16.msra.mxu0 %v15710_v38  ;;  %13089 = vmatprep.subr.bf16.mxu1 %v15715_v40  ;;  %v15789_v38 = vld [vmem:[%s18352_s15 + $0x1380] ss:$8 sps:$4 sm:$0xff]   ;;  %v15794_v40 = vld [vmem:[%s18352_s15 + $0x694] ss:$8 sps:$4 sm:$0xff]  }
 0x351   : > { %13622 = vmatprep.subr.bf16.mxu0 %v15718_v41  ;;  %v15797_v41 = vld [vmem:[%s18352_s15 + $0x1394] ss:$8 sps:$4 sm:$0xff]  }
 0x353   : > { %13090 = vmatpush1.bf16.msra.mxu1 %v15713_v44  ;;  %v15792_v44 = vld [vmem:[%s18352_s15 + $0x690] ss:$8 sps:$4 sm:$0xff]  }
 0x354   : > { %13623 = vmatpush1.bf16.msra.mxu0 %v15716_v54  ;;  %13091 = vmatprep.subr.bf16.mxu1 %v15721_v45  ;;  %v15795_v54 = vld [vmem:[%s18352_s15 + $0x1390] ss:$8 sps:$4 sm:$0xff]   ;;  %v15800_v45 = vld [vmem:[%s18352_s15 + $0x6a4] ss:$8 sps:$4 sm:$0xff]  }
 0x355   : > { %13624 = vmatprep.subr.bf16.mxu0 %v15724_v14  ;;  %v15803_v14 = vld [vmem:[%s18352_s15 + $0x13a4] ss:$8 sps:$4 sm:$0xff]  }
 0x357   : > { %13092 = vmatpush1.bf16.msra.mxu1 %v15719_v46  ;;  %v15798_v46 = vld [vmem:[%s18352_s15 + $0x6a0] ss:$8 sps:$4 sm:$0xff]  }
 0x358   : > { %13625 = vmatpush1.bf16.msra.mxu0 %v15722_v6  ;;  %13093 = vmatprep.subr.bf16.mxu1 %v15727_v47  ;;  %v15801_v6 = vld [vmem:[%s18352_s15 + $0x13a0] ss:$8 sps:$4 sm:$0xff]   ;;  %v15806_v47 = vld [vmem:[%s18352_s15 + $0x6b4] ss:$8 sps:$4 sm:$0xff]  }
 0x359   : > { %13626 = vmatprep.subr.bf16.mxu0 %v15730_v49  ;;  %v15809_v49 = vld [vmem:[%s18352_s15 + $0x13b4] ss:$8 sps:$4 sm:$0xff]  }
 0x35b   : > { %13094 = vmatpush1.bf16.msra.mxu1 %v15725_v52  ;;  %v15812_v52 = vld [vmem:[%s18352_s15 + $0x6c4] ss:$8 sps:$4 sm:$0xff]  }
 0x35c   : > { %13627 = vmatpush1.bf16.msra.mxu0 %v15728_v53  ;;  %13095 = vmatprep.subr.bf16.mxu1 %v15733_v56  ;;  %v15815_v53 = vld [vmem:[%s18352_s15 + $0x13c4] ss:$8 sps:$4 sm:$0xff]   ;;  %v15810_v56 = vld [vmem:[%s18352_s15 + $0x6c0] ss:$8 sps:$4 sm:$0xff]  }
 0x35d   : > { %13628 = vmatprep.subr.bf16.mxu0 %v15736_v39  ;;  %v15813_v39 = vld [vmem:[%s18352_s15 + $0x13c0] ss:$8 sps:$4 sm:$0xff]  }
 0x35f   : > { %13096 = vmatpush1.bf16.msra.mxu1 %v15731_v58  ;;  %v15818_v58 = vld [vmem:[%s18352_s15 + $0x6d4] ss:$8 sps:$4 sm:$0xff]  }
 0x360   : > { %13629 = vmatpush1.bf16.msra.mxu0 %v15734_v42  ;;  %13106 = vmatprep.subr.bf16.mxu1 %v15739_v59  ;;  %v15821_v42 = vld [vmem:[%s18352_s15 + $0x13d4] ss:$8 sps:$4 sm:$0xff]   ;;  %v15816_v59 = vld [vmem:[%s18352_s15 + $0x6d0] ss:$8 sps:$4 sm:$0xff]  }
 0x361   : > { %13639 = vmatprep.subr.bf16.mxu0 %v15743_v60  ;;  %v15819_v60 = vld [vmem:[%s18352_s15 + $0x13d0] ss:$8 sps:$4 sm:$0xff]  }
 0x362   : > { %13098 = vmatmul.mubr.bf16.vlgmr.msra.gmra.mrb[0].mxu1 %v8239_v63  ;;  %v15827_v63 = vld [vmem:[%s18352_s15 + $0x13e4] ss:$8 sps:$4 sm:$0xff]  }
 0x363   : > { %13631 = vmatmul.mubr.bf16.vlgmr.msra.gmra.mrb[0].mxu0 %v18873_v0  ;;  %13107 = vmatpush1.bf16.msra.mxu1 %v15737_v1  ;;  %v18939_v1 = vld [vmem:[%s18342_s24 + $0x28] sm:$0xff] }
 0x364   : > { %13640 = vmatpush1.bf16.msra.mxu0 %v15741_v2  ;;  %13108 = vmatprep.subr.bf16.mxu1 %v15746_v3  ;;  %v15822_v2 = vld [vmem:[%s18352_s15 + $0x6e0] ss:$8 sps:$4 sm:$0xff]  }
 0x365   : > { %13641 = vmatprep.subr.bf16.mxu0 %v15749_v5  ;;  %13138 = vmatprep.mubr.bf16.mxu1 %v18880_v7  ;;  %v15825_v3 = vld [vmem:[%s18352_s15 + $0x13e0] ss:$8 sps:$4 sm:$0xff]   ;;  %v15830_v5 = vld [vmem:[%s18352_s15 + $0x6f4] ss:$8 sps:$4 sm:$0xff]  }
 0x366   : > { %13671 = vmatprep.mubr.bf16.mxu0 %v8389_v48  ;;  %v15833_v48 = vld [vmem:[%s18352_s15 + $0x13f4] ss:$8 sps:$4 sm:$0xff]  }
 0x367   : > { %13109 = vmatpush1.bf16.msra.mxu1 %v15744_v24  ;;  %v18947_v24 = vrot.slane %v18939_v1, %v18405_v27 }
 0x368   : > { %13642 = vmatpush1.bf16.msra.mxu0 %v15747_v28  ;;  %13110 = vmatprep.subr.bf16.mxu1 %v15752_v8  ;;  %v15828_v28 = vld [vmem:[%s18352_s15 + $0x6f0] ss:$8 sps:$4 sm:$0xff]  }
 0x369   : > { %13643 = vmatprep.subr.bf16.mxu0 %v15755_v9  ;;  %v15831_v8 = vld [vmem:[%s18352_s15 + $0x13f0] ss:$8 sps:$4 sm:$0xff]   ;;  %v15837_v9 = vld [vmem:[%s18352_s15 + $0x704] ss:$8 sps:$4 sm:$0xff]  }
 0x36b   : > { %13111 = vmatpush1.bf16.msra.mxu1 %v15750_v30  ;;  %v15840_v30 = vld [vmem:[%s18352_s15 + $0x1404] ss:$8 sps:$4 sm:$0xff]  }
 0x36c   : > { %13644 = vmatpush1.bf16.msra.mxu0 %v15753_v10  ;;  %13112 = vmatprep.subr.bf16.mxu1 %v15758_v11  ;;  %v8405_v10 = vcombine.high %v18947_v24, %v18947_v24  ;;  %v18957_v11 = vrot.slane %v18861_v57, %v18405_v27 }
 0x36d   : > { %13645 = vmatprep.subr.bf16.mxu0 %v15761_v13  ;;  %v8387_v13 = vcombine.high %v18873_v0, %v18873_v0  ;;  %v15841_v0 = vld [vmem:[%s18352_s15 + $0x710] ss:$8 sps:$4 sm:$0xff]  }
 0x36e   : > { %v18968_v57 = vrot.slane %v8405_v10, %v18405_v27  ;;  %v15916_v10 = vld [vmem:[%s18352_s15 + $0x14d0] ss:$8 sps:$4 sm:$0xff]  }
 0x36f   : > { %13113 = vmatpush1.bf16.msra.mxu1 %v15756_v15  ;;  %v15835_v15 = vld [vmem:[%s18352_s15 + $0x700] ss:$8 sps:$4 sm:$0xff]  }
 0x370   : > { %13646 = vmatpush1.bf16.msra.mxu0 %v15759_v16  ;;  %13114 = vmatprep.subr.bf16.mxu1 %v15764_v61  ;;  %v15838_v16 = vld [vmem:[%s18352_s15 + $0x1400] ss:$8 sps:$4 sm:$0xff]   ;;  %v15843_v61 = vld [vmem:[%s18352_s15 + $0x714] ss:$8 sps:$4 sm:$0xff]  }
 0x371   : > { %13647 = vmatprep.subr.bf16.mxu0 %v15767_v18  ;;  %v15846_v18 = vld [vmem:[%s18352_s15 + $0x1414] ss:$8 sps:$4 sm:$0xff]  }
 0x373   : > { %13115 = vmatpush1.bf16.msra.mxu1 %v15762_v19  ;;  %v8242_v19 = vcombine.high %v18880_v7, %v18880_v7  ;;  %v15852_v7 = vld [vmem:[%s18352_s15 + $0x1424] ss:$8 sps:$4 sm:$0xff]  }
 0x374   : > { %13648 = vmatpush1.bf16.msra.mxu0 %v15765_v20  ;;  %13116 = vmatprep.subr.bf16.mxu1 %v15770_v4  ;;  %v15844_v20 = vld [vmem:[%s18352_s15 + $0x1410] ss:$8 sps:$4 sm:$0xff]   ;;  %v15849_v4 = vld [vmem:[%s18352_s15 + $0x724] ss:$8 sps:$4 sm:$0xff]  }
 0x375   : > { %13649 = vmatprep.subr.bf16.mxu0 %v15773_v21  ;;  %v15847_v21 = vld [vmem:[%s18352_s15 + $0x720] ss:$8 sps:$4 sm:$0xff]  }
 0x377   : > { %13117 = vmatpush1.bf16.msra.mxu1 %v15768_v23  ;;  %v15850_v23 = vld [vmem:[%s18352_s15 + $0x1420] ss:$8 sps:$4 sm:$0xff]  }
 0x378   : > { %13650 = vmatpush1.bf16.msra.mxu0 %v15771_v25  ;;  %13118 = vmatprep.subr.bf16.mxu1 %v15776_v26  ;;  %v15855_v25 = vld [vmem:[%s18352_s15 + $0x734] ss:$8 sps:$4 sm:$0xff]  }
 0x379   : > { %13651 = vmatprep.subr.bf16.mxu0 %v15779_v29  ;;  %v15858_v26 = vld [vmem:[%s18352_s15 + $0x1434] ss:$8 sps:$4 sm:$0xff]   ;;  %v15853_v29 = vld [vmem:[%s18352_s15 + $0x730] ss:$8 sps:$4 sm:$0xff]  }
 0x37b   : > { %13119 = vmatpush1.bf16.msra.mxu1 %v15774_v31  ;;  %v15856_v31 = vld [vmem:[%s18352_s15 + $0x1430] ss:$8 sps:$4 sm:$0xff]  }
 0x37c   : > { %13652 = vmatpush1.bf16.msra.mxu0 %v15777_v12  ;;  %13120 = vmatprep.subr.bf16.mxu1 %v15782_v32  ;;  %v15861_v12 = vld [vmem:[%s18352_s15 + $0x744] ss:$8 sps:$4 sm:$0xff]  }
 0x37d   : > { %13653 = vmatprep.subr.bf16.mxu0 %v15785_v33  ;;  %v15864_v32 = vld [vmem:[%s18352_s15 + $0x1444] ss:$8 sps:$4 sm:$0xff]   ;;  %v15859_v33 = vld [vmem:[%s18352_s15 + $0x740] ss:$8 sps:$4 sm:$0xff]  }
 0x37f   : > { %13121 = vmatpush1.bf16.msra.mxu1 %v15780_v17  ;;  %v15862_v17 = vld [vmem:[%s18352_s15 + $0x1440] ss:$8 sps:$4 sm:$0xff]  }
 0x380   : > { %13654 = vmatpush1.bf16.msra.mxu0 %v15783_v34  ;;  %13122 = vmatprep.subr.bf16.mxu1 %v15788_v35  ;;  %v15867_v34 = vld [vmem:[%s18352_s15 + $0x754] ss:$8 sps:$4 sm:$0xff]  }
 0x381   : > { %13655 = vmatprep.subr.bf16.mxu0 %v15791_v36  ;;  %v15870_v35 = vld [vmem:[%s18352_s15 + $0x1454] ss:$8 sps:$4 sm:$0xff]   ;;  %v15865_v36 = vld [vmem:[%s18352_s15 + $0x750] ss:$8 sps:$4 sm:$0xff]  }
 0x383   : > { %13123 = vmatpush1.bf16.msra.mxu1 %v15786_v37  ;;  %v15868_v37 = vld [vmem:[%s18352_s15 + $0x1450] ss:$8 sps:$4 sm:$0xff]  }
 0x384   : > { %13656 = vmatpush1.bf16.msra.mxu0 %v15789_v38  ;;  %13124 = vmatprep.subr.bf16.mxu1 %v15794_v40  ;;  %v15873_v38 = vld [vmem:[%s18352_s15 + $0x764] ss:$8 sps:$4 sm:$0xff]  }
 0x385   : > { %13657 = vmatprep.subr.bf16.mxu0 %v15797_v41  ;;  %v15876_v40 = vld [vmem:[%s18352_s15 + $0x1464] ss:$8 sps:$4 sm:$0xff]   ;;  %v15871_v41 = vld [vmem:[%s18352_s15 + $0x760] ss:$8 sps:$4 sm:$0xff]  }
 0x387   : > { %13125 = vmatpush1.bf16.msra.mxu1 %v15792_v44  ;;  %v15874_v44 = vld [vmem:[%s18352_s15 + $0x1460] ss:$8 sps:$4 sm:$0xff]  }
 0x388   : > { %13658 = vmatpush1.bf16.msra.mxu0 %v15795_v54  ;;  %13126 = vmatprep.subr.bf16.mxu1 %v15800_v45  ;;  %v15879_v54 = vld [vmem:[%s18352_s15 + $0x774] ss:$8 sps:$4 sm:$0xff]  }
 0x389   : > { %13659 = vmatprep.subr.bf16.mxu0 %v15803_v14  ;;  %v15882_v45 = vld [vmem:[%s18352_s15 + $0x1474] ss:$8 sps:$4 sm:$0xff]   ;;  %v15877_v14 = vld [vmem:[%s18352_s15 + $0x770] ss:$8 sps:$4 sm:$0xff]  }
 0x38b   : > { %13127 = vmatpush1.bf16.msra.mxu1 %v15798_v46  ;;  %v15880_v46 = vld [vmem:[%s18352_s15 + $0x1470] ss:$8 sps:$4 sm:$0xff]  }
 0x38c   : > { %13660 = vmatpush1.bf16.msra.mxu0 %v15801_v6  ;;  %13128 = vmatprep.subr.bf16.mxu1 %v15806_v47  ;;  %v15885_v6 = vld [vmem:[%s18352_s15 + $0x784] ss:$8 sps:$4 sm:$0xff]  }
 0x38d   : > { %13661 = vmatprep.subr.bf16.mxu0 %v15809_v49  ;;  %v15888_v47 = vld [vmem:[%s18352_s15 + $0x1484] ss:$8 sps:$4 sm:$0xff]   ;;  %v15883_v49 = vld [vmem:[%s18352_s15 + $0x780] ss:$8 sps:$4 sm:$0xff]  }
 0x38f   : > { %13129 = vmatpush1.bf16.msra.mxu1 %v15804_v50  ;;  %v15886_v50 = vld [vmem:[%s18352_s15 + $0x1480] ss:$8 sps:$4 sm:$0xff]  }
 0x390   : > { %13662 = vmatpush1.bf16.msra.mxu0 %v15807_v51  ;;  %13130 = vmatprep.subr.bf16.mxu1 %v15812_v52  ;;  %v15891_v51 = vld [vmem:[%s18352_s15 + $0x794] ss:$8 sps:$4 sm:$0xff]  }
 0x391   : > { %13663 = vmatprep.subr.bf16.mxu0 %v15815_v53  ;;  %v15894_v52 = vld [vmem:[%s18352_s15 + $0x1494] ss:$8 sps:$4 sm:$0xff]   ;;  %v15889_v53 = vld [vmem:[%s18352_s15 + $0x790] ss:$8 sps:$4 sm:$0xff]  }
 0x393   : > { %13131 = vmatpush1.bf16.msra.mxu1 %v15810_v56  ;;  %v15892_v56 = vld [vmem:[%s18352_s15 + $0x1490] ss:$8 sps:$4 sm:$0xff]  }
 0x394   : > { %13664 = vmatpush1.bf16.msra.mxu0 %v15813_v39  ;;  %13132 = vmatprep.subr.bf16.mxu1 %v15818_v58  ;;  %v15897_v39 = vld [vmem:[%s18352_s15 + $0x7a4] ss:$8 sps:$4 sm:$0xff]  }
 0x395   : > { %13665 = vmatprep.subr.bf16.mxu0 %v15821_v42  ;;  %v15900_v58 = vld [vmem:[%s18352_s15 + $0x14a4] ss:$8 sps:$4 sm:$0xff]   ;;  %v15895_v42 = vld [vmem:[%s18352_s15 + $0x7a0] ss:$8 sps:$4 sm:$0xff]  }
 0x397   : > { %13133 = vmatpush1.bf16.msra.mxu1 %v15816_v59  ;;  %v15898_v59 = vld [vmem:[%s18352_s15 + $0x14a0] ss:$8 sps:$4 sm:$0xff]  }
 0x398   : > { %13666 = vmatpush1.bf16.msra.mxu0 %v15819_v60  ;;  %13134 = vmatprep.subr.bf16.mxu1 %v15824_v62  ;;  %v15903_v60 = vld [vmem:[%s18352_s15 + $0x7b4] ss:$8 sps:$4 sm:$0xff]  }
 0x399   : > { %13667 = vmatprep.subr.bf16.mxu0 %v15827_v63  ;;  %v15906_v62 = vld [vmem:[%s18352_s15 + $0x14b4] ss:$8 sps:$4 sm:$0xff]   ;;  %v15901_v63 = vld [vmem:[%s18352_s15 + $0x7b0] ss:$8 sps:$4 sm:$0xff]  }
 0x39b   : > { %13135 = vmatpush1.bf16.msra.mxu1 %v15822_v2  ;;  %v15904_v2 = vld [vmem:[%s18352_s15 + $0x14b0] ss:$8 sps:$4 sm:$0xff]  }
 0x39c   : > { %13668 = vmatpush1.bf16.msra.mxu0 %v15825_v3  ;;  %13136 = vmatprep.subr.bf16.mxu1 %v15830_v5  ;;  %v15909_v3 = vld [vmem:[%s18352_s15 + $0x7c4] ss:$8 sps:$4 sm:$0xff]  }
 0x39d   : > { %13669 = vmatprep.subr.bf16.mxu0 %v15833_v48  ;;  %v15912_v5 = vld [vmem:[%s18352_s15 + $0x14c4] ss:$8 sps:$4 sm:$0xff]   ;;  %v15907_v48 = vld [vmem:[%s18352_s15 + $0x7c0] ss:$8 sps:$4 sm:$0xff]  }
 0x39f   : > { %13137 = vmatpush1.bf16.msra.mxu1 %v15828_v28  ;;  %v15910_v28 = vld [vmem:[%s18352_s15 + $0x14c0] ss:$8 sps:$4 sm:$0xff]  }
 0x3a0   : > { %13670 = vmatpush1.bf16.msra.mxu0 %v15831_v8  ;;  %13147 = vmatprep.subr.bf16.mxu1 %v15837_v9  ;;  %v15915_v8 = vld [vmem:[%s18352_s15 + $0x7d4] ss:$8 sps:$4 sm:$0xff]  }
 0x3a1   : > { %13680 = vmatprep.subr.bf16.mxu0 %v15840_v30  ;;  %v15918_v9 = vld [vmem:[%s18352_s15 + $0x14d4] ss:$8 sps:$4 sm:$0xff]   ;;  %v15913_v30 = vld [vmem:[%s18352_s15 + $0x7d0] ss:$8 sps:$4 sm:$0xff]  }
 0x3a2   : > { %13139 = vmatmul.mubr.bf16.vlgmr.msra.gmra.mrb[0].mxu1 %v18957_v11 }
 0x3a3   : > { %13672 = vmatmul.mubr.bf16.vlgmr.msra.gmra.mrb[0].mxu0 %v8387_v13  ;;  %13148 = vmatpush1.bf16.msra.mxu1 %v15835_v15  ;;  %v15921_v13 = vld [vmem:[%s18352_s15 + $0x7e4] ss:$8 sps:$4 sm:$0xff]  }
 0x3a4   : > { %13681 = vmatpush1.bf16.msra.mxu0 %v15838_v16  ;;  %13149 = vmatprep.subr.bf16.mxu1 %v15843_v61  ;;  %v15924_v15 = vld [vmem:[%s18352_s15 + $0x14e4] ss:$8 sps:$4 sm:$0xff]   ;;  %v19025_v16 = vld [vmem:[%s18342_s24 + $0x10] sm:$0xff]  ;;  %v15919_v61 = vld [vmem:[%s18352_s15 + $0x7e0] ss:$8 sps:$4 sm:$0xff]  }
 0x3a5   : > { %13682 = vmatprep.subr.bf16.mxu0 %v15846_v18  ;;  %13179 = vmatprep.mubr.bf16.mxu1 %v8242_v19  ;;  %v15922_v18 = vld [vmem:[%s18352_s15 + $0x14e0] ss:$8 sps:$4 sm:$0xff]   ;;  %v15927_v19 = vld [vmem:[%s18352_s15 + $0x7f4] ss:$8 sps:$4 sm:$0xff]  }
 0x3a6   : > { %13712 = vmatprep.mubr.bf16.mxu0 %v18968_v57 }
 0x3a7   : > { %13150 = vmatpush1.bf16.msra.mxu1 %v15841_v0  ;;  %v15930_v0 = vld [vmem:[%s18352_s15 + $0x14f4] ss:$8 sps:$4 sm:$0xff]  }
 0x3a8   : > { %13683 = vmatpush1.bf16.msra.mxu0 %v15844_v20  ;;  %13151 = vmatprep.subr.bf16.mxu1 %v15849_v4  ;;  %v19033_v20 = vrot.slane %v19025_v16, %v18405_v27  ;;  %v15925_v4 = vld [vmem:[%s18352_s15 + $0x7f0] ss:$8 sps:$4 sm:$0xff]  }
 0x3a9   : > { %13684 = vmatprep.subr.bf16.mxu0 %v15852_v7  ;;  %v15928_v7 = vld [vmem:[%s18352_s15 + $0x14f0] ss:$8 sps:$4 sm:$0xff]  }
 0x3ab   : > { %13152 = vmatpush1.bf16.msra.mxu1 %v15847_v21  ;;  %v15933_v21 = vld [vmem:[%s18352_s15 + $0x804] ss:$8 sps:$4 sm:$0xff]  }
 0x3ac   : > { %13685 = vmatpush1.bf16.msra.mxu0 %v15850_v23  ;;  %13153 = vmatprep.subr.bf16.mxu1 %v15855_v25  ;;  %v15936_v23 = vld [vmem:[%s18352_s15 + $0x1504] ss:$8 sps:$4 sm:$0xff]   ;;  %v8258_v25 = vcombine.high %v19033_v20, %v19033_v20 }
 0x3ad   : > { %13686 = vmatprep.subr.bf16.mxu0 %v15858_v26  ;;  %v8240_v26 = vcombine.high %v18957_v11, %v18957_v11  ;;  %v8437_v11 = vcombine.high %v18968_v57, %v18968_v57  ;;  %v15943_v57 = vld [vmem:[%s18352_s15 + $0x820] ss:$8 sps:$4 sm:$0xff]  }
 0x3af   : > { %13154 = vmatpush1.bf16.msra.mxu1 %v15853_v29  ;;  %v19045_v29 = vrot.slane %v18947_v24, %v18405_v27  ;;  %v15937_v24 = vld [vmem:[%s18352_s15 + $0x810] ss:$8 sps:$4 sm:$0xff]  }
 0x3b0   : > { %13687 = vmatpush1.bf16.msra.mxu0 %v15856_v31  ;;  %13155 = vmatprep.subr.bf16.mxu1 %v15861_v12  ;;  %v15931_v31 = vld [vmem:[%s18352_s15 + $0x800] ss:$8 sps:$4 sm:$0xff]  }
 0x3b1   : > { %13688 = vmatprep.subr.bf16.mxu0 %v15864_v32  ;;  %v15934_v12 = vld [vmem:[%s18352_s15 + $0x1500] ss:$8 sps:$4 sm:$0xff]   ;;  %v15939_v32 = vld [vmem:[%s18352_s15 + $0x814] ss:$8 sps:$4 sm:$0xff]  }
 0x3b3   : > { %13156 = vmatpush1.bf16.msra.mxu1 %v15859_v33  ;;  %v15942_v33 = vld [vmem:[%s18352_s15 + $0x1514] ss:$8 sps:$4 sm:$0xff]  }
 0x3b4   : > { %13689 = vmatpush1.bf16.msra.mxu0 %v15862_v17  ;;  %13157 = vmatprep.subr.bf16.mxu1 %v15867_v34  ;;  %v19052_v17 = vrot.slane %v8258_v25, %v18405_v27  ;;  %v15940_v34 = vld [vmem:[%s18352_s15 + $0x1510] ss:$8 sps:$4 sm:$0xff]  }
 0x3b5   : > { %13690 = vmatprep.subr.bf16.mxu0 %v15870_v35  ;;  %v15945_v35 = vld [vmem:[%s18352_s15 + $0x824] ss:$8 sps:$4 sm:$0xff]   ;;  %v16009_v25 = vld [vmem:[%s18352_s15 + $0x8d0] ss:$8 sps:$4 sm:$0xff]  }
 0x3b7   : > { %13158 = vmatpush1.bf16.msra.mxu1 %v15865_v36  ;;  %v15948_v36 = vld [vmem:[%s18352_s15 + $0x1524] ss:$8 sps:$4 sm:$0xff]  }
 0x3b8   : > { %13691 = vmatpush1.bf16.msra.mxu0 %v15868_v37  ;;  %13159 = vmatprep.subr.bf16.mxu1 %v15873_v38  ;;  %v15946_v37 = vld [vmem:[%s18352_s15 + $0x1520] ss:$8 sps:$4 sm:$0xff]   ;;  %v15951_v38 = vld [vmem:[%s18352_s15 + $0x834] ss:$8 sps:$4 sm:$0xff]  }
 0x3b9   : > { %13692 = vmatprep.subr.bf16.mxu0 %v15876_v40  ;;  %v15954_v40 = vld [vmem:[%s18352_s15 + $0x1534] ss:$8 sps:$4 sm:$0xff]  }
 0x3bb   : > { %13160 = vmatpush1.bf16.msra.mxu1 %v15871_v41  ;;  %v15949_v41 = vld [vmem:[%s18352_s15 + $0x830] ss:$8 sps:$4 sm:$0xff]  }
 0x3bc   : > { %13693 = vmatpush1.bf16.msra.mxu0 %v15874_v44  ;;  %13161 = vmatprep.subr.bf16.mxu1 %v15879_v54  ;;  %v15952_v44 = vld [vmem:[%s18352_s15 + $0x1530] ss:$8 sps:$4 sm:$0xff]   ;;  %v15957_v54 = vld [vmem:[%s18352_s15 + $0x844] ss:$8 sps:$4 sm:$0xff]  }
 0x3bd   : > { %13694 = vmatprep.subr.bf16.mxu0 %v15882_v45  ;;  %v15960_v45 = vld [vmem:[%s18352_s15 + $0x1544] ss:$8 sps:$4 sm:$0xff]  }
 0x3bf   : > { %13162 = vmatpush1.bf16.msra.mxu1 %v15877_v14  ;;  %v15955_v14 = vld [vmem:[%s18352_s15 + $0x840] ss:$8 sps:$4 sm:$0xff]  }
 0x3c0   : > { %13695 = vmatpush1.bf16.msra.mxu0 %v15880_v46  ;;  %13163 = vmatprep.subr.bf16.mxu1 %v15885_v6  ;;  %v15958_v46 = vld [vmem:[%s18352_s15 + $0x1540] ss:$8 sps:$4 sm:$0xff]   ;;  %v15963_v6 = vld [vmem:[%s18352_s15 + $0x854] ss:$8 sps:$4 sm:$0xff]  }
 0x3c1   : > { %13696 = vmatprep.subr.bf16.mxu0 %v15888_v47  ;;  %v15966_v47 = vld [vmem:[%s18352_s15 + $0x1554] ss:$8 sps:$4 sm:$0xff]  }
 0x3c3   : > { %13164 = vmatpush1.bf16.msra.mxu1 %v15883_v49  ;;  %v15961_v49 = vld [vmem:[%s18352_s15 + $0x850] ss:$8 sps:$4 sm:$0xff]  }
 0x3c4   : > { %13697 = vmatpush1.bf16.msra.mxu0 %v15886_v50  ;;  %13165 = vmatprep.subr.bf16.mxu1 %v15891_v51  ;;  %v15964_v50 = vld [vmem:[%s18352_s15 + $0x1550] ss:$8 sps:$4 sm:$0xff]   ;;  %v15969_v51 = vld [vmem:[%s18352_s15 + $0x864] ss:$8 sps:$4 sm:$0xff]  }
 0x3c5   : > { %13698 = vmatprep.subr.bf16.mxu0 %v15894_v52  ;;  %v15972_v52 = vld [vmem:[%s18352_s15 + $0x1564] ss:$8 sps:$4 sm:$0xff]  }
 0x3c7   : > { %13166 = vmatpush1.bf16.msra.mxu1 %v15889_v53  ;;  %v15967_v53 = vld [vmem:[%s18352_s15 + $0x860] ss:$8 sps:$4 sm:$0xff]  }
 0x3c8   : > { %13699 = vmatpush1.bf16.msra.mxu0 %v15892_v56  ;;  %13167 = vmatprep.subr.bf16.mxu1 %v15897_v39  ;;  %v15970_v56 = vld [vmem:[%s18352_s15 + $0x1560] ss:$8 sps:$4 sm:$0xff]   ;;  %v15975_v39 = vld [vmem:[%s18352_s15 + $0x874] ss:$8 sps:$4 sm:$0xff]  }
 0x3c9   : > { %13700 = vmatprep.subr.bf16.mxu0 %v15900_v58  ;;  %v15978_v58 = vld [vmem:[%s18352_s15 + $0x1574] ss:$8 sps:$4 sm:$0xff]  }
 0x3cb   : > { %13168 = vmatpush1.bf16.msra.mxu1 %v15895_v42  ;;  %v15973_v42 = vld [vmem:[%s18352_s15 + $0x870] ss:$8 sps:$4 sm:$0xff]  }
 0x3cc   : > { %13701 = vmatpush1.bf16.msra.mxu0 %v15898_v59  ;;  %13169 = vmatprep.subr.bf16.mxu1 %v15903_v60  ;;  %v15976_v59 = vld [vmem:[%s18352_s15 + $0x1570] ss:$8 sps:$4 sm:$0xff]   ;;  %v15981_v60 = vld [vmem:[%s18352_s15 + $0x884] ss:$8 sps:$4 sm:$0xff]  }
 0x3cd   : > { %13702 = vmatprep.subr.bf16.mxu0 %v15906_v62  ;;  %v15984_v62 = vld [vmem:[%s18352_s15 + $0x1584] ss:$8 sps:$4 sm:$0xff]  }
 0x3cf   : > { %13170 = vmatpush1.bf16.msra.mxu1 %v15901_v63  ;;  %v15979_v63 = vld [vmem:[%s18352_s15 + $0x880] ss:$8 sps:$4 sm:$0xff]  }
 0x3d0   : > { %13703 = vmatpush1.bf16.msra.mxu0 %v15904_v2  ;;  %13171 = vmatprep.subr.bf16.mxu1 %v15909_v3  ;;  %v15982_v2 = vld [vmem:[%s18352_s15 + $0x1580] ss:$8 sps:$4 sm:$0xff]   ;;  %v15987_v3 = vld [vmem:[%s18352_s15 + $0x894] ss:$8 sps:$4 sm:$0xff]  }
 0x3d1   : > { %13704 = vmatprep.subr.bf16.mxu0 %v15912_v5  ;;  %v15990_v5 = vld [vmem:[%s18352_s15 + $0x1594] ss:$8 sps:$4 sm:$0xff]  }
 0x3d3   : > { %13172 = vmatpush1.bf16.msra.mxu1 %v15907_v48  ;;  %v15985_v48 = vld [vmem:[%s18352_s15 + $0x890] ss:$8 sps:$4 sm:$0xff]  }
 0x3d4   : > { %13705 = vmatpush1.bf16.msra.mxu0 %v15910_v28  ;;  %13173 = vmatprep.subr.bf16.mxu1 %v15915_v8  ;;  %v15988_v28 = vld [vmem:[%s18352_s15 + $0x1590] ss:$8 sps:$4 sm:$0xff]   ;;  %v15993_v8 = vld [vmem:[%s18352_s15 + $0x8a4] ss:$8 sps:$4 sm:$0xff]  }
 0x3d5   : > { %13706 = vmatprep.subr.bf16.mxu0 %v15918_v9  ;;  %v15996_v9 = vld [vmem:[%s18352_s15 + $0x15a4] ss:$8 sps:$4 sm:$0xff]  }
 0x3d7   : > { %13174 = vmatpush1.bf16.msra.mxu1 %v15913_v30  ;;  %v15991_v30 = vld [vmem:[%s18352_s15 + $0x8a0] ss:$8 sps:$4 sm:$0xff]  }
 0x3d8   : > { %13707 = vmatpush1.bf16.msra.mxu0 %v15916_v10  ;;  %13175 = vmatprep.subr.bf16.mxu1 %v15921_v13  ;;  %v15994_v10 = vld [vmem:[%s18352_s15 + $0x15a0] ss:$8 sps:$4 sm:$0xff]   ;;  %v15999_v13 = vld [vmem:[%s18352_s15 + $0x8b4] ss:$8 sps:$4 sm:$0xff]  }
 0x3d9   : > { %13708 = vmatprep.subr.bf16.mxu0 %v15924_v15  ;;  %v16002_v15 = vld [vmem:[%s18352_s15 + $0x15b4] ss:$8 sps:$4 sm:$0xff]  }
 0x3db   : > { %13176 = vmatpush1.bf16.msra.mxu1 %v15919_v61  ;;  %v15997_v61 = vld [vmem:[%s18352_s15 + $0x8b0] ss:$8 sps:$4 sm:$0xff]  }
 0x3dc   : > { %13709 = vmatpush1.bf16.msra.mxu0 %v15922_v18  ;;  %13177 = vmatprep.subr.bf16.mxu1 %v15927_v19  ;;  %v16000_v18 = vld [vmem:[%s18352_s15 + $0x15b0] ss:$8 sps:$4 sm:$0xff]   ;;  %v16005_v19 = vld [vmem:[%s18352_s15 + $0x8c4] ss:$8 sps:$4 sm:$0xff]  }
 0x3dd   : > { %13710 = vmatprep.subr.bf16.mxu0 %v15930_v0  ;;  %v16008_v0 = vld [vmem:[%s18352_s15 + $0x15c4] ss:$8 sps:$4 sm:$0xff]  }
 0x3df   : > { %13178 = vmatpush1.bf16.msra.mxu1 %v15925_v4  ;;  %v16003_v4 = vld [vmem:[%s18352_s15 + $0x8c0] ss:$8 sps:$4 sm:$0xff]  }
 0x3e0   : > { %13711 = vmatpush1.bf16.msra.mxu0 %v15928_v7  ;;  %13188 = vmatprep.subr.bf16.mxu1 %v15933_v21  ;;  %v16006_v7 = vld [vmem:[%s18352_s15 + $0x15c0] ss:$8 sps:$4 sm:$0xff]   ;;  %v16011_v21 = vld [vmem:[%s18352_s15 + $0x8d4] ss:$8 sps:$4 sm:$0xff]  }
 0x3e1   : > { %13721 = vmatprep.subr.bf16.mxu0 %v15936_v23  ;;  %v16014_v23 = vld [vmem:[%s18352_s15 + $0x15d4] ss:$8 sps:$4 sm:$0xff]  }
 0x3e2   : > { %13180 = vmatmul.mubr.bf16.vlgmr.msra.gmra.mrb[0].mxu1 %v8240_v26  ;;  %v16012_v26 = vld [vmem:[%s18352_s15 + $0x15d0] ss:$8 sps:$4 sm:$0xff]  }
 0x3e3   : > { %13713 = vmatmul.mubr.bf16.vlgmr.msra.gmra.mrb[0].mxu0 %v19045_v29  ;;  %13189 = vmatpush1.bf16.msra.mxu1 %v15931_v31  ;;  %v16017_v31 = vld [vmem:[%s18352_s15 + $0x8e4] ss:$8 sps:$4 sm:$0xff]  }
 0x3e4   : > { %13722 = vmatpush1.bf16.msra.mxu0 %v15934_v12  ;;  %13190 = vmatprep.subr.bf16.mxu1 %v15939_v32  ;;  %v16020_v12 = vld [vmem:[%s18352_s15 + $0x15e4] ss:$8 sps:$4 sm:$0xff]   ;;  %v8390_v32 = vcombine.high %v18939_v1, %v18939_v1  ;;  %v16024_v1 = vld [vmem:[%s18352_s15 + $0x15f0] ss:$8 sps:$4 sm:$0xff]  }
 0x3e5   : > { %13723 = vmatprep.subr.bf16.mxu0 %v15942_v33  ;;  %13220 = vmatprep.mubr.bf16.mxu1 %v19052_v17  ;;  %v16015_v33 = vld [vmem:[%s18352_s15 + $0x8e0] ss:$8 sps:$4 sm:$0xff]  }
 0x3e6   : > { %13753 = vmatprep.mubr.bf16.mxu0 %v8437_v11  ;;  %v16018_v11 = vld [vmem:[%s18352_s15 + $0x15e0] ss:$8 sps:$4 sm:$0xff]  }
 0x3e7   : > { %13191 = vmatpush1.bf16.msra.mxu1 %v15937_v24  ;;  %v16023_v24 = vld [vmem:[%s18352_s15 + $0x8f4] ss:$8 sps:$4 sm:$0xff]  }
 0x3e8   : > { %13724 = vmatpush1.bf16.msra.mxu0 %v15940_v34  ;;  %13192 = vmatprep.subr.bf16.mxu1 %v15945_v35  ;;  %v16026_v34 = vld [vmem:[%s18352_s15 + $0x15f4] ss:$8 sps:$4 sm:$0xff]   ;;  %v19117_v35 = vrot.slane %v8390_v32, %v18405_v27  ;;  %v16093_v32 = vld [vmem:[%s18352_s15 + $0x9b0] ss:$8 sps:$4 sm:$0xff]  }
 0x3e9   : > { %13725 = vmatprep.subr.bf16.mxu0 %v15948_v36  ;;  %v16021_v36 = vld [vmem:[%s18352_s15 + $0x8f0] ss:$8 sps:$4 sm:$0xff]  }
 0x3eb   : > { %13193 = vmatpush1.bf16.msra.mxu1 %v15943_v57  ;;  %v16029_v57 = vld [vmem:[%s18352_s15 + $0x904] ss:$8 sps:$4 sm:$0xff]  }
 0x3ec   : > { %13726 = vmatpush1.bf16.msra.mxu0 %v15946_v37  ;;  %13194 = vmatprep.subr.bf16.mxu1 %v15951_v38  ;;  %v16032_v37 = vld [vmem:[%s18352_s15 + $0x1604] ss:$8 sps:$4 sm:$0xff]   ;;  %v8406_v38 = vcombine.high %v19117_v35, %v19117_v35 }
 0x3ed   : > { %13727 = vmatprep.subr.bf16.mxu0 %v15954_v40  ;;  %v19127_v40 = vrot.slane %v19033_v20, %v18405_v27 }
 0x3ee   : > { %v19138_v20 = vrot.slane %v8406_v38, %v18405_v27  ;;  %v16108_v38 = vld [vmem:[%s18352_s15 + $0x16d0] ss:$8 sps:$4 sm:$0xff]  }
 0x3ef   : > { %13195 = vmatpush1.bf16.msra.mxu1 %v15949_v41  ;;  %v8435_v41 = vcombine.high %v19045_v29, %v19045_v29  ;;  %v16033_v29 = vld [vmem:[%s18352_s15 + $0x910] ss:$8 sps:$4 sm:$0xff]  }
 0x3f0   : > { %13728 = vmatpush1.bf16.msra.mxu0 %v15952_v44  ;;  %13196 = vmatprep.subr.bf16.mxu1 %v15957_v54  ;;  %v16027_v44 = vld [vmem:[%s18352_s15 + $0x900] ss:$8 sps:$4 sm:$0xff]  }
 0x3f1   : > { %13729 = vmatprep.subr.bf16.mxu0 %v15960_v45  ;;  %v16030_v54 = vld [vmem:[%s18352_s15 + $0x1600] ss:$8 sps:$4 sm:$0xff]   ;;  %v16035_v45 = vld [vmem:[%s18352_s15 + $0x914] ss:$8 sps:$4 sm:$0xff]  }
 0x3f3   : > { %13197 = vmatpush1.bf16.msra.mxu1 %v15955_v14  ;;  %v16038_v14 = vld [vmem:[%s18352_s15 + $0x1614] ss:$8 sps:$4 sm:$0xff]  }
 0x3f4   : > { %13730 = vmatpush1.bf16.msra.mxu0 %v15958_v46  ;;  %13198 = vmatprep.subr.bf16.mxu1 %v15963_v6  ;;  %v8290_v46 = vcombine.high %v19052_v17, %v19052_v17  ;;  %v16036_v6 = vld [vmem:[%s18352_s15 + $0x1610] ss:$8 sps:$4 sm:$0xff]   ;;  %v16044_v17 = vld [vmem:[%s18352_s15 + $0x1624] ss:$8 sps:$4 sm:$0xff]  }
 0x3f5   : > { %13731 = vmatprep.subr.bf16.mxu0 %v15966_v47  ;;  %v16041_v47 = vld [vmem:[%s18352_s15 + $0x924] ss:$8 sps:$4 sm:$0xff]  }
 0x3f7   : > { %13199 = vmatpush1.bf16.msra.mxu1 %v15961_v49  ;;  %v16039_v49 = vld [vmem:[%s18352_s15 + $0x920] ss:$8 sps:$4 sm:$0xff]  }
 0x3f8   : > { %13732 = vmatpush1.bf16.msra.mxu0 %v15964_v50  ;;  %13200 = vmatprep.subr.bf16.mxu1 %v15969_v51  ;;  %v16042_v50 = vld [vmem:[%s18352_s15 + $0x1620] ss:$8 sps:$4 sm:$0xff]   ;;  %v16047_v51 = vld [vmem:[%s18352_s15 + $0x934] ss:$8 sps:$4 sm:$0xff]  }
 0x3f9   : > { %13733 = vmatprep.subr.bf16.mxu0 %v15972_v52  ;;  %v16050_v52 = vld [vmem:[%s18352_s15 + $0x1634] ss:$8 sps:$4 sm:$0xff]  }
 0x3fb   : > { %13201 = vmatpush1.bf16.msra.mxu1 %v15967_v53  ;;  %v16045_v53 = vld [vmem:[%s18352_s15 + $0x930] ss:$8 sps:$4 sm:$0xff]  }
 0x3fc   : > { %13734 = vmatpush1.bf16.msra.mxu0 %v15970_v56  ;;  %13202 = vmatprep.subr.bf16.mxu1 %v15975_v39  ;;  %v16048_v56 = vld [vmem:[%s18352_s15 + $0x1630] ss:$8 sps:$4 sm:$0xff]   ;;  %v16053_v39 = vld [vmem:[%s18352_s15 + $0x944] ss:$8 sps:$4 sm:$0xff]  }
 0x3fd   : > { %13735 = vmatprep.subr.bf16.mxu0 %v15978_v58  ;;  %v16056_v58 = vld [vmem:[%s18352_s15 + $0x1644] ss:$8 sps:$4 sm:$0xff]  }
 0x3ff   : > { %13203 = vmatpush1.bf16.msra.mxu1 %v15973_v42  ;;  %v16051_v42 = vld [vmem:[%s18352_s15 + $0x940] ss:$8 sps:$4 sm:$0xff]  }
 0x400   : > { %13736 = vmatpush1.bf16.msra.mxu0 %v15976_v59  ;;  %13204 = vmatprep.subr.bf16.mxu1 %v15981_v60  ;;  %v16054_v59 = vld [vmem:[%s18352_s15 + $0x1640] ss:$8 sps:$4 sm:$0xff]   ;;  %v16059_v60 = vld [vmem:[%s18352_s15 + $0x954] ss:$8 sps:$4 sm:$0xff]  }
 0x401   : > { %13737 = vmatprep.subr.bf16.mxu0 %v15984_v62  ;;  %v16062_v62 = vld [vmem:[%s18352_s15 + $0x1654] ss:$8 sps:$4 sm:$0xff]  }
 0x403   : > { %13205 = vmatpush1.bf16.msra.mxu1 %v15979_v63  ;;  %v16057_v63 = vld [vmem:[%s18352_s15 + $0x950] ss:$8 sps:$4 sm:$0xff]  }
 0x404   : > { %13738 = vmatpush1.bf16.msra.mxu0 %v15982_v2  ;;  %13206 = vmatprep.subr.bf16.mxu1 %v15987_v3  ;;  %v16060_v2 = vld [vmem:[%s18352_s15 + $0x1650] ss:$8 sps:$4 sm:$0xff]   ;;  %v16065_v3 = vld [vmem:[%s18352_s15 + $0x964] ss:$8 sps:$4 sm:$0xff]  }
 0x405   : > { %13739 = vmatprep.subr.bf16.mxu0 %v15990_v5  ;;  %v16068_v5 = vld [vmem:[%s18352_s15 + $0x1664] ss:$8 sps:$4 sm:$0xff]  }
 0x407   : > { %13207 = vmatpush1.bf16.msra.mxu1 %v15985_v48  ;;  %v16063_v48 = vld [vmem:[%s18352_s15 + $0x960] ss:$8 sps:$4 sm:$0xff]  }
 0x408   : > { %13740 = vmatpush1.bf16.msra.mxu0 %v15988_v28  ;;  %13208 = vmatprep.subr.bf16.mxu1 %v15993_v8  ;;  %v16066_v28 = vld [vmem:[%s18352_s15 + $0x1660] ss:$8 sps:$4 sm:$0xff]   ;;  %v16071_v8 = vld [vmem:[%s18352_s15 + $0x974] ss:$8 sps:$4 sm:$0xff]  }
 0x409   : > { %13741 = vmatprep.subr.bf16.mxu0 %v15996_v9  ;;  %v16074_v9 = vld [vmem:[%s18352_s15 + $0x1674] ss:$8 sps:$4 sm:$0xff]  }
 0x40b   : > { %13209 = vmatpush1.bf16.msra.mxu1 %v15991_v30  ;;  %v16069_v30 = vld [vmem:[%s18352_s15 + $0x970] ss:$8 sps:$4 sm:$0xff]  }
 0x40c   : > { %13742 = vmatpush1.bf16.msra.mxu0 %v15994_v10  ;;  %13210 = vmatprep.subr.bf16.mxu1 %v15999_v13  ;;  %v16072_v10 = vld [vmem:[%s18352_s15 + $0x1670] ss:$8 sps:$4 sm:$0xff]   ;;  %v16077_v13 = vld [vmem:[%s18352_s15 + $0x984] ss:$8 sps:$4 sm:$0xff]  }
 0x40d   : > { %13743 = vmatprep.subr.bf16.mxu0 %v16002_v15  ;;  %v16080_v15 = vld [vmem:[%s18352_s15 + $0x1684] ss:$8 sps:$4 sm:$0xff]  }
 0x40f   : > { %13211 = vmatpush1.bf16.msra.mxu1 %v15997_v61  ;;  %v16075_v61 = vld [vmem:[%s18352_s15 + $0x980] ss:$8 sps:$4 sm:$0xff]  }
 0x410   : > { %13744 = vmatpush1.bf16.msra.mxu0 %v16000_v18  ;;  %13212 = vmatprep.subr.bf16.mxu1 %v16005_v19  ;;  %v16078_v18 = vld [vmem:[%s18352_s15 + $0x1680] ss:$8 sps:$4 sm:$0xff]   ;;  %v16083_v19 = vld [vmem:[%s18352_s15 + $0x994] ss:$8 sps:$4 sm:$0xff]  }
 0x411   : > { %13745 = vmatprep.subr.bf16.mxu0 %v16008_v0  ;;  %v16086_v0 = vld [vmem:[%s18352_s15 + $0x1694] ss:$8 sps:$4 sm:$0xff]  }
 0x413   : > { %13213 = vmatpush1.bf16.msra.mxu1 %v16003_v4  ;;  %v16081_v4 = vld [vmem:[%s18352_s15 + $0x990] ss:$8 sps:$4 sm:$0xff]  }
 0x414   : > { %13746 = vmatpush1.bf16.msra.mxu0 %v16006_v7  ;;  %13214 = vmatprep.subr.bf16.mxu1 %v16011_v21  ;;  %v16084_v7 = vld [vmem:[%s18352_s15 + $0x1690] ss:$8 sps:$4 sm:$0xff]   ;;  %v16089_v21 = vld [vmem:[%s18352_s15 + $0x9a4] ss:$8 sps:$4 sm:$0xff]  }
 0x415   : > { %13747 = vmatprep.subr.bf16.mxu0 %v16014_v23  ;;  %v16092_v23 = vld [vmem:[%s18352_s15 + $0x16a4] ss:$8 sps:$4 sm:$0xff]  }
 0x417   : > { %13215 = vmatpush1.bf16.msra.mxu1 %v16009_v25  ;;  %v16087_v25 = vld [vmem:[%s18352_s15 + $0x9a0] ss:$8 sps:$4 sm:$0xff]  }
 0x418   : > { %13748 = vmatpush1.bf16.msra.mxu0 %v16012_v26  ;;  %13216 = vmatprep.subr.bf16.mxu1 %v16017_v31  ;;  %v16090_v26 = vld [vmem:[%s18352_s15 + $0x16a0] ss:$8 sps:$4 sm:$0xff]   ;;  %v16095_v31 = vld [vmem:[%s18352_s15 + $0x9b4] ss:$8 sps:$4 sm:$0xff]  }
 0x419   : > { %13749 = vmatprep.subr.bf16.mxu0 %v16020_v12  ;;  %v16098_v12 = vld [vmem:[%s18352_s15 + $0x16b4] ss:$8 sps:$4 sm:$0xff]  }
 0x41b   : > { %13217 = vmatpush1.bf16.msra.mxu1 %v16015_v33  ;;  %v16096_v33 = vld [vmem:[%s18352_s15 + $0x16b0] ss:$8 sps:$4 sm:$0xff]  }
 0x41c   : > { %13750 = vmatpush1.bf16.msra.mxu0 %v16018_v11  ;;  %13218 = vmatprep.subr.bf16.mxu1 %v16023_v24  ;;  %v16101_v11 = vld [vmem:[%s18352_s15 + $0x9c4] ss:$8 sps:$4 sm:$0xff]  }
 0x41d   : > { %13751 = vmatprep.subr.bf16.mxu0 %v16026_v34  ;;  %v16104_v24 = vld [vmem:[%s18352_s15 + $0x16c4] ss:$8 sps:$4 sm:$0xff]   ;;  %v16099_v34 = vld [vmem:[%s18352_s15 + $0x9c0] ss:$8 sps:$4 sm:$0xff]  }
 0x41f   : > { %13219 = vmatpush1.bf16.msra.mxu1 %v16021_v36  ;;  %v16102_v36 = vld [vmem:[%s18352_s15 + $0x16c0] ss:$8 sps:$4 sm:$0xff]  }
 0x420   : > { %13752 = vmatpush1.bf16.msra.mxu0 %v16024_v1  ;;  %13229 = vmatprep.subr.bf16.mxu1 %v16029_v57  ;;  %v16107_v1 = vld [vmem:[%s18352_s15 + $0x9d4] ss:$8 sps:$4 sm:$0xff]  }
 0x421   : > { %13762 = vmatprep.subr.bf16.mxu0 %v16032_v37  ;;  %v16110_v57 = vld [vmem:[%s18352_s15 + $0x16d4] ss:$8 sps:$4 sm:$0xff]   ;;  %v16105_v37 = vld [vmem:[%s18352_s15 + $0x9d0] ss:$8 sps:$4 sm:$0xff]  }
 0x422   : > { %13221 = vmatmul.mubr.bf16.vlgmr.msra.gmra.mrb[0].mxu1 %v19127_v40 }
 0x423   : > { %13754 = vmatmul.mubr.bf16.vlgmr.msra.gmra.mrb[0].mxu0 %v8435_v41  ;;  %13230 = vmatpush1.bf16.msra.mxu1 %v16027_v44  ;;  %v16113_v41 = vld [vmem:[%s18352_s15 + $0x9e4] ss:$8 sps:$4 sm:$0xff]  }
 0x424   : > { %13763 = vmatpush1.bf16.msra.mxu0 %v16030_v54  ;;  %13231 = vmatprep.subr.bf16.mxu1 %v16035_v45  ;;  %v16116_v44 = vld [vmem:[%s18352_s15 + $0x16e4] ss:$8 sps:$4 sm:$0xff]   ;;  %v8243_v54 = vcombine.high %v19025_v16, %v19025_v16  ;;  %v16111_v45 = vld [vmem:[%s18352_s15 + $0x9e0] ss:$8 sps:$4 sm:$0xff]   ;;  %v16120_v16 = vld [vmem:[%s18352_s15 + $0x16f0] ss:$8 sps:$4 sm:$0xff]  }
 0x425   : > { %13764 = vmatprep.subr.bf16.mxu0 %v16038_v14  ;;  %13261 = vmatprep.mubr.bf16.mxu1 %v8290_v46  ;;  %v16114_v14 = vld [vmem:[%s18352_s15 + $0x16e0] ss:$8 sps:$4 sm:$0xff]   ;;  %v16119_v46 = vld [vmem:[%s18352_s15 + $0x9f4] ss:$8 sps:$4 sm:$0xff]  }
 0x426   : > { %13794 = vmatprep.mubr.bf16.mxu0 %v19138_v20 }
 0x427   : > { %13232 = vmatpush1.bf16.msra.mxu1 %v16033_v29  ;;  %v16122_v29 = vld [vmem:[%s18352_s15 + $0x16f4] ss:$8 sps:$4 sm:$0xff]  }
 0x428   : > { %13765 = vmatpush1.bf16.msra.mxu0 %v16036_v6  ;;  %13233 = vmatprep.subr.bf16.mxu1 %v16041_v47  ;;  %v19201_v6 = vrot.slane %v8243_v54, %v18405_v27  ;;  %v16117_v47 = vld [vmem:[%s18352_s15 + $0x9f0] ss:$8 sps:$4 sm:$0xff]  }
 0x429   : > { %13766 = vmatprep.subr.bf16.mxu0 %v16044_v17  ;;  %v16125_v17 = vld [vmem:[%s18352_s15 + $0xa04] ss:$8 sps:$4 sm:$0xff]   ;;  %v16193_v54 = vld [vmem:[%s18352_s15 + $0x17b0] ss:$8 sps:$4 sm:$0xff]  }
 0x42b   : > { %13234 = vmatpush1.bf16.msra.mxu1 %v16039_v49  ;;  %v16129_v49 = vld [vmem:[%s18352_s15 + $0x1704] ss:$8 sps:$4 sm:$0xff]  }
 0x42c   : > { %13767 = vmatpush1.bf16.msra.mxu0 %v16042_v50  ;;  %13235 = vmatprep.subr.bf16.mxu1 %v16047_v51  ;;  %v8259_v50 = vcombine.high %v19201_v6, %v19201_v6  ;;  %v8288_v51 = vcombine.high %v19127_v40, %v19127_v40  ;;  %v8438_v40 = vcombine.high %v19138_v20, %v19138_v20  ;;  %v16136_v20 = vld [vmem:[%s18352_s15 + $0xa20] ss:$8 sps:$4 sm:$0xff]  }
 0x42d   : > { %13768 = vmatprep.subr.bf16.mxu0 %v16050_v52  ;;  %v19213_v52 = vrot.slane %v19117_v35, %v18405_v27  ;;  %v16130_v35 = vld [vmem:[%s18352_s15 + $0xa10] ss:$8 sps:$4 sm:$0xff]  }
 0x42f   : > { %13236 = vmatpush1.bf16.msra.mxu1 %v16045_v53  ;;  %v16123_v53 = vld [vmem:[%s18352_s15 + $0xa00] ss:$8 sps:$4 sm:$0xff]  }
 0x430   : > { %13769 = vmatpush1.bf16.msra.mxu0 %v16048_v56  ;;  %13237 = vmatprep.subr.bf16.mxu1 %v16053_v39  ;;  %v16127_v56 = vld [vmem:[%s18352_s15 + $0x1700] ss:$8 sps:$4 sm:$0xff]   ;;  %v16132_v39 = vld [vmem:[%s18352_s15 + $0xa14] ss:$8 sps:$4 sm:$0xff]  }
 0x431   : > { %13770 = vmatprep.subr.bf16.mxu0 %v16056_v58  ;;  %v16135_v58 = vld [vmem:[%s18352_s15 + $0x1714] ss:$8 sps:$4 sm:$0xff]  }
 0x433   : > { %13238 = vmatpush1.bf16.msra.mxu1 %v16051_v42  ;;  %v19220_v42 = vrot.slane %v8259_v50, %v18405_v27  ;;  %v16210_v50 = vld [vmem:[%s18352_s15 + $0xae4] ss:$8 sps:$4 sm:$0xff]  }
 0x434   : > { %13771 = vmatpush1.bf16.msra.mxu0 %v16054_v59  ;;  %13239 = vmatprep.subr.bf16.mxu1 %v16059_v60  ;;  %v16133_v59 = vld [vmem:[%s18352_s15 + $0x1710] ss:$8 sps:$4 sm:$0xff]   ;;  %v16138_v60 = vld [vmem:[%s18352_s15 + $0xa24] ss:$8 sps:$4 sm:$0xff]  }
 0x435   : > { %13772 = vmatprep.subr.bf16.mxu0 %v16062_v62  ;;  %v16141_v62 = vld [vmem:[%s18352_s15 + $0x1724] ss:$8 sps:$4 sm:$0xff]  }
 0x437   : > { %13240 = vmatpush1.bf16.msra.mxu1 %v16057_v63  ;;  %v16139_v63 = vld [vmem:[%s18352_s15 + $0x1720] ss:$8 sps:$4 sm:$0xff]  }
 0x438   : > { %13773 = vmatpush1.bf16.msra.mxu0 %v16060_v2  ;;  %13241 = vmatprep.subr.bf16.mxu1 %v16065_v3  ;;  %v16144_v2 = vld [vmem:[%s18352_s15 + $0xa34] ss:$8 sps:$4 sm:$0xff]  }
 0x439   : > { %13774 = vmatprep.subr.bf16.mxu0 %v16068_v5  ;;  %v16147_v3 = vld [vmem:[%s18352_s15 + $0x1734] ss:$8 sps:$4 sm:$0xff]   ;;  %v16142_v5 = vld [vmem:[%s18352_s15 + $0xa30] ss:$8 sps:$4 sm:$0xff]  }
 0x43b   : > { %13242 = vmatpush1.bf16.msra.mxu1 %v16063_v48  ;;  %v16145_v48 = vld [vmem:[%s18352_s15 + $0x1730] ss:$8 sps:$4 sm:$0xff]  }
 0x43c   : > { %13775 = vmatpush1.bf16.msra.mxu0 %v16066_v28  ;;  %13243 = vmatprep.subr.bf16.mxu1 %v16071_v8  ;;  %v16150_v28 = vld [vmem:[%s18352_s15 + $0xa44] ss:$8 sps:$4 sm:$0xff]  }
 0x43d   : > { %13776 = vmatprep.subr.bf16.mxu0 %v16074_v9  ;;  %v16153_v8 = vld [vmem:[%s18352_s15 + $0x1744] ss:$8 sps:$4 sm:$0xff]   ;;  %v16148_v9 = vld [vmem:[%s18352_s15 + $0xa40] ss:$8 sps:$4 sm:$0xff]  }
 0x43f   : > { %13244 = vmatpush1.bf16.msra.mxu1 %v16069_v30  ;;  %v16151_v30 = vld [vmem:[%s18352_s15 + $0x1740] ss:$8 sps:$4 sm:$0xff]  }
 0x440   : > { %13777 = vmatpush1.bf16.msra.mxu0 %v16072_v10  ;;  %13245 = vmatprep.subr.bf16.mxu1 %v16077_v13  ;;  %v16156_v10 = vld [vmem:[%s18352_s15 + $0xa54] ss:$8 sps:$4 sm:$0xff]  }
 0x441   : > { %13778 = vmatprep.subr.bf16.mxu0 %v16080_v15  ;;  %v16159_v13 = vld [vmem:[%s18352_s15 + $0x1754] ss:$8 sps:$4 sm:$0xff]   ;;  %v16154_v15 = vld [vmem:[%s18352_s15 + $0xa50] ss:$8 sps:$4 sm:$0xff]  }
 0x443   : > { %13246 = vmatpush1.bf16.msra.mxu1 %v16075_v61  ;;  %v16157_v61 = vld [vmem:[%s18352_s15 + $0x1750] ss:$8 sps:$4 sm:$0xff]  }
 0x444   : > { %13779 = vmatpush1.bf16.msra.mxu0 %v16078_v18  ;;  %13247 = vmatprep.subr.bf16.mxu1 %v16083_v19  ;;  %v16162_v18 = vld [vmem:[%s18352_s15 + $0xa64] ss:$8 sps:$4 sm:$0xff]  }
 0x445   : > { %13780 = vmatprep.subr.bf16.mxu0 %v16086_v0  ;;  %v16165_v19 = vld [vmem:[%s18352_s15 + $0x1764] ss:$8 sps:$4 sm:$0xff]   ;;  %v16160_v0 = vld [vmem:[%s18352_s15 + $0xa60] ss:$8 sps:$4 sm:$0xff]  }
 0x447   : > { %13248 = vmatpush1.bf16.msra.mxu1 %v16081_v4  ;;  %v16163_v4 = vld [vmem:[%s18352_s15 + $0x1760] ss:$8 sps:$4 sm:$0xff]  }
 0x448   : > { %13781 = vmatpush1.bf16.msra.mxu0 %v16084_v7  ;;  %13249 = vmatprep.subr.bf16.mxu1 %v16089_v21  ;;  %v16168_v7 = vld [vmem:[%s18352_s15 + $0xa74] ss:$8 sps:$4 sm:$0xff]  }
 0x449   : > { %13782 = vmatprep.subr.bf16.mxu0 %v16092_v23  ;;  %v16171_v21 = vld [vmem:[%s18352_s15 + $0x1774] ss:$8 sps:$4 sm:$0xff]   ;;  %v16166_v23 = vld [vmem:[%s18352_s15 + $0xa70] ss:$8 sps:$4 sm:$0xff]  }
 0x44b   : > { %13250 = vmatpush1.bf16.msra.mxu1 %v16087_v25  ;;  %v16169_v25 = vld [vmem:[%s18352_s15 + $0x1770] ss:$8 sps:$4 sm:$0xff]  }
 0x44c   : > { %13783 = vmatpush1.bf16.msra.mxu0 %v16090_v26  ;;  %13251 = vmatprep.subr.bf16.mxu1 %v16095_v31  ;;  %v16174_v26 = vld [vmem:[%s18352_s15 + $0xa84] ss:$8 sps:$4 sm:$0xff]  }
 0x44d   : > { %13784 = vmatprep.subr.bf16.mxu0 %v16098_v12  ;;  %v16177_v31 = vld [vmem:[%s18352_s15 + $0x1784] ss:$8 sps:$4 sm:$0xff]   ;;  %v16172_v12 = vld [vmem:[%s18352_s15 + $0xa80] ss:$8 sps:$4 sm:$0xff]  }
 0x44f   : > { %13252 = vmatpush1.bf16.msra.mxu1 %v16093_v32  ;;  %v16175_v32 = vld [vmem:[%s18352_s15 + $0x1780] ss:$8 sps:$4 sm:$0xff]  }
 0x450   : > { %13785 = vmatpush1.bf16.msra.mxu0 %v16096_v33  ;;  %13253 = vmatprep.subr.bf16.mxu1 %v16101_v11  ;;  %v16180_v33 = vld [vmem:[%s18352_s15 + $0xa94] ss:$8 sps:$4 sm:$0xff]  }
 0x451   : > { %13786 = vmatprep.subr.bf16.mxu0 %v16104_v24  ;;  %v16183_v11 = vld [vmem:[%s18352_s15 + $0x1794] ss:$8 sps:$4 sm:$0xff]   ;;  %v16178_v24 = vld [vmem:[%s18352_s15 + $0xa90] ss:$8 sps:$4 sm:$0xff]  }
 0x453   : > { %13254 = vmatpush1.bf16.msra.mxu1 %v16099_v34  ;;  %v16181_v34 = vld [vmem:[%s18352_s15 + $0x1790] ss:$8 sps:$4 sm:$0xff]  }
 0x454   : > { %13787 = vmatpush1.bf16.msra.mxu0 %v16102_v36  ;;  %13255 = vmatprep.subr.bf16.mxu1 %v16107_v1  ;;  %v16186_v36 = vld [vmem:[%s18352_s15 + $0xaa4] ss:$8 sps:$4 sm:$0xff]  }
 0x455   : > { %13788 = vmatprep.subr.bf16.mxu0 %v16110_v57  ;;  %v16189_v1 = vld [vmem:[%s18352_s15 + $0x17a4] ss:$8 sps:$4 sm:$0xff]   ;;  %v16184_v57 = vld [vmem:[%s18352_s15 + $0xaa0] ss:$8 sps:$4 sm:$0xff]  }
 0x457   : > { %13256 = vmatpush1.bf16.msra.mxu1 %v16105_v37  ;;  %v16187_v37 = vld [vmem:[%s18352_s15 + $0x17a0] ss:$8 sps:$4 sm:$0xff]  }
 0x458   : > { %13789 = vmatpush1.bf16.msra.mxu0 %v16108_v38  ;;  %13257 = vmatprep.subr.bf16.mxu1 %v16113_v41  ;;  %v16192_v38 = vld [vmem:[%s18352_s15 + $0xab4] ss:$8 sps:$4 sm:$0xff]  }
 0x459   : > { %13790 = vmatprep.subr.bf16.mxu0 %v16116_v44  ;;  %v16195_v41 = vld [vmem:[%s18352_s15 + $0x17b4] ss:$8 sps:$4 sm:$0xff]   ;;  %v16190_v44 = vld [vmem:[%s18352_s15 + $0xab0] ss:$8 sps:$4 sm:$0xff]  }
 0x45b   : > { %13258 = vmatpush1.bf16.msra.mxu1 %v16111_v45  ;;  %v16198_v45 = vld [vmem:[%s18352_s15 + $0xac4] ss:$8 sps:$4 sm:$0xff]  }
 0x45c   : > { %13791 = vmatpush1.bf16.msra.mxu0 %v16114_v14  ;;  %13259 = vmatprep.subr.bf16.mxu1 %v16119_v46  ;;  %v16201_v14 = vld [vmem:[%s18352_s15 + $0x17c4] ss:$8 sps:$4 sm:$0xff]   ;;  %v16196_v46 = vld [vmem:[%s18352_s15 + $0xac0] ss:$8 sps:$4 sm:$0xff]  }
 0x45d   : > { %13792 = vmatprep.subr.bf16.mxu0 %v16122_v29  ;;  %v16199_v29 = vld [vmem:[%s18352_s15 + $0x17c0] ss:$8 sps:$4 sm:$0xff]  }
 0x45f   : > { %13260 = vmatpush1.bf16.msra.mxu1 %v16117_v47  ;;  %v16204_v47 = vld [vmem:[%s18352_s15 + $0xad4] ss:$8 sps:$4 sm:$0xff]  }
 0x460   : > { %13793 = vmatpush1.bf16.msra.mxu0 %v16120_v16  ;;  %13270 = vmatprep.subr.bf16.mxu1 %v16125_v17  ;;  %v16207_v16 = vld [vmem:[%s18352_s15 + $0x17d4] ss:$8 sps:$4 sm:$0xff]   ;;  %v16202_v17 = vld [vmem:[%s18352_s15 + $0xad0] ss:$8 sps:$4 sm:$0xff]  }
 0x461   : > { %13803 = vmatprep.subr.bf16.mxu0 %v16129_v49  ;;  %v16205_v49 = vld [vmem:[%s18352_s15 + $0x17d0] ss:$8 sps:$4 sm:$0xff]  }
 0x462   : > { %13262 = vmatmul.mubr.bf16.vlgmr.msra.gmra.mrb[0].mxu1 %v8288_v51  ;;  %v16213_v51 = vld [vmem:[%s18352_s15 + $0x17e4] ss:$8 sps:$4 sm:$0xff]  }
 0x463   : > { %13795 = vmatmul.mubr.bf16.vlgmr.msra.gmra.mrb[0].mxu0 %v19213_v52  ;;  %13271 = vmatpush1.bf16.msra.mxu1 %v16123_v53  ;;  %v19279_v53 = vld [vmem:[%s18342_s24 + $0x30] sm:$0x3f] }
 0x464   : > { %13804 = vmatpush1.bf16.msra.mxu0 %v16127_v56  ;;  %13272 = vmatprep.subr.bf16.mxu1 %v16132_v39  ;;  %v16208_v56 = vld [vmem:[%s18352_s15 + $0xae0] ss:$8 sps:$4 sm:$0xff]  }
 0x465   : > { %13805 = vmatprep.subr.bf16.mxu0 %v16135_v58  ;;  %13302 = vmatprep.mubr.bf16.mxu1 %v19220_v42  ;;  %v16211_v39 = vld [vmem:[%s18352_s15 + $0x17e0] ss:$8 sps:$4 sm:$0xff]   ;;  %v16216_v58 = vld [vmem:[%s18352_s15 + $0xaf4] ss:$8 sps:$4 sm:$0xff]  }
 0x466   : > { %13835 = vmatprep.mubr.bf16.mxu0 %v8438_v40  ;;  %v16219_v40 = vld [vmem:[%s18352_s15 + $0x17f4] ss:$8 sps:$4 sm:$0xff]  }
 0x467   : > { %13273 = vmatpush1.bf16.msra.mxu1 %v16130_v35  ;;  %v19287_v35 = vrot.slane %v19279_v53, %v18405_v27 }
 0x468   : > { %13806 = vmatpush1.bf16.msra.mxu0 %v16133_v59  ;;  %13274 = vmatprep.subr.bf16.mxu1 %v16138_v60  ;;  %v16214_v59 = vld [vmem:[%s18352_s15 + $0xaf0] ss:$8 sps:$4 sm:$0xff]  }
 0x469   : > { %13807 = vmatprep.subr.bf16.mxu0 %v16141_v62  ;;  %v16217_v60 = vld [vmem:[%s18352_s15 + $0x17f0] ss:$8 sps:$4 sm:$0xff]   ;;  %v16223_v62 = vld [vmem:[%s18352_s15 + $0xb04] ss:$8 sps:$4 sm:$0xff]  }
 0x46b   : > { %13275 = vmatpush1.bf16.msra.mxu1 %v16136_v20  ;;  %v16226_v20 = vld [vmem:[%s18352_s15 + $0x1804] ss:$8 sps:$4 sm:$0xff]  }
 0x46c   : > { %13808 = vmatpush1.bf16.msra.mxu0 %v16139_v63  ;;  %13276 = vmatprep.subr.bf16.mxu1 %v16144_v2  ;;  %v8454_v63 = vcombine.high %v19287_v35, %v19287_v35  ;;  %v19297_v2 = vrot.slane %v19201_v6, %v18405_v27 }
 0x46d   : > { %13809 = vmatprep.subr.bf16.mxu0 %v16147_v3  ;;  %v8436_v3 = vcombine.high %v19213_v52, %v19213_v52  ;;  %v16227_v52 = vld [vmem:[%s18352_s15 + $0xb10] ss:$8 sps:$4 sm:$0xff]  }
 0x46e   : > { %v19308_v6 = vrot.slane %v8454_v63, %v18405_v27  ;;  %v16302_v63 = vld [vmem:[%s18352_s15 + $0x18d0] ss:$8 sps:$4 sm:$0xff]  }
 0x46f   : > { %13277 = vmatpush1.bf16.msra.mxu1 %v16142_v5  ;;  %v16221_v5 = vld [vmem:[%s18352_s15 + $0xb00] ss:$8 sps:$4 sm:$0xff]  }
 0x470   : > { %13810 = vmatpush1.bf16.msra.mxu0 %v16145_v48  ;;  %13278 = vmatprep.subr.bf16.mxu1 %v16150_v28  ;;  %v16224_v48 = vld [vmem:[%s18352_s15 + $0x1800] ss:$8 sps:$4 sm:$0xff]   ;;  %v16229_v28 = vld [vmem:[%s18352_s15 + $0xb14] ss:$8 sps:$4 sm:$0xff]  }
 0x471   : > { %13811 = vmatprep.subr.bf16.mxu0 %v16153_v8  ;;  %v16232_v8 = vld [vmem:[%s18352_s15 + $0x1814] ss:$8 sps:$4 sm:$0xff]  }
 0x473   : > { %13279 = vmatpush1.bf16.msra.mxu1 %v16148_v9  ;;  %v8291_v9 = vcombine.high %v19220_v42, %v19220_v42  ;;  %v16238_v42 = vld [vmem:[%s18352_s15 + $0x1824] ss:$8 sps:$4 sm:$0xff]  }
 0x474   : > { %13812 = vmatpush1.bf16.msra.mxu0 %v16151_v30  ;;  %13280 = vmatprep.subr.bf16.mxu1 %v16156_v10  ;;  %v16230_v30 = vld [vmem:[%s18352_s15 + $0x1810] ss:$8 sps:$4 sm:$0xff]   ;;  %v16235_v10 = vld [vmem:[%s18352_s15 + $0xb24] ss:$8 sps:$4 sm:$0xff]  }
 0x475   : > { %13813 = vmatprep.subr.bf16.mxu0 %v16159_v13  ;;  %v16233_v13 = vld [vmem:[%s18352_s15 + $0xb20] ss:$8 sps:$4 sm:$0xff]  }
 0x477   : > { %13281 = vmatpush1.bf16.msra.mxu1 %v16154_v15  ;;  %v16236_v15 = vld [vmem:[%s18352_s15 + $0x1820] ss:$8 sps:$4 sm:$0xff]  }
 0x478   : > { %13814 = vmatpush1.bf16.msra.mxu0 %v16157_v61  ;;  %13282 = vmatprep.subr.bf16.mxu1 %v16162_v18  ;;  %v16241_v61 = vld [vmem:[%s18352_s15 + $0xb34] ss:$8 sps:$4 sm:$0xff]  }
 0x479   : > { %13815 = vmatprep.subr.bf16.mxu0 %v16165_v19  ;;  %v16244_v18 = vld [vmem:[%s18352_s15 + $0x1834] ss:$8 sps:$4 sm:$0xff]   ;;  %v16239_v19 = vld [vmem:[%s18352_s15 + $0xb30] ss:$8 sps:$4 sm:$0xff]  }
 0x47b   : > { %13283 = vmatpush1.bf16.msra.mxu1 %v16160_v0  ;;  %v16242_v0 = vld [vmem:[%s18352_s15 + $0x1830] ss:$8 sps:$4 sm:$0xff]  }
 0x47c   : > { %13816 = vmatpush1.bf16.msra.mxu0 %v16163_v4  ;;  %13284 = vmatprep.subr.bf16.mxu1 %v16168_v7  ;;  %v16247_v4 = vld [vmem:[%s18352_s15 + $0xb44] ss:$8 sps:$4 sm:$0xff]  }
 0x47d   : > { %13817 = vmatprep.subr.bf16.mxu0 %v16171_v21  ;;  %v16250_v7 = vld [vmem:[%s18352_s15 + $0x1844] ss:$8 sps:$4 sm:$0xff]   ;;  %v16245_v21 = vld [vmem:[%s18352_s15 + $0xb40] ss:$8 sps:$4 sm:$0xff]  }
 0x47f   : > { %13285 = vmatpush1.bf16.msra.mxu1 %v16166_v23  ;;  %v16248_v23 = vld [vmem:[%s18352_s15 + $0x1840] ss:$8 sps:$4 sm:$0xff]  }
 0x480   : > { %13818 = vmatpush1.bf16.msra.mxu0 %v16169_v25  ;;  %13286 = vmatprep.subr.bf16.mxu1 %v16174_v26  ;;  %v16253_v25 = vld [vmem:[%s18352_s15 + $0xb54] ss:$8 sps:$4 sm:$0xff]  }
 0x481   : > { %13819 = vmatprep.subr.bf16.mxu0 %v16177_v31  ;;  %v16256_v26 = vld [vmem:[%s18352_s15 + $0x1854] ss:$8 sps:$4 sm:$0xff]   ;;  %v16251_v31 = vld [vmem:[%s18352_s15 + $0xb50] ss:$8 sps:$4 sm:$0xff]  }
 0x483   : > { %13287 = vmatpush1.bf16.msra.mxu1 %v16172_v12  ;;  %v16254_v12 = vld [vmem:[%s18352_s15 + $0x1850] ss:$8 sps:$4 sm:$0xff]  }
 0x484   : > { %13820 = vmatpush1.bf16.msra.mxu0 %v16175_v32  ;;  %13288 = vmatprep.subr.bf16.mxu1 %v16180_v33  ;;  %v16259_v32 = vld [vmem:[%s18352_s15 + $0xb64] ss:$8 sps:$4 sm:$0xff]  }
 0x485   : > { %13821 = vmatprep.subr.bf16.mxu0 %v16183_v11  ;;  %v16262_v33 = vld [vmem:[%s18352_s15 + $0x1864] ss:$8 sps:$4 sm:$0xff]   ;;  %v16257_v11 = vld [vmem:[%s18352_s15 + $0xb60] ss:$8 sps:$4 sm:$0xff]  }
 0x487   : > { %13289 = vmatpush1.bf16.msra.mxu1 %v16178_v24  ;;  %v16260_v24 = vld [vmem:[%s18352_s15 + $0x1860] ss:$8 sps:$4 sm:$0xff]  }
 0x488   : > { %13822 = vmatpush1.bf16.msra.mxu0 %v16181_v34  ;;  %13290 = vmatprep.subr.bf16.mxu1 %v16186_v36  ;;  %v16265_v34 = vld [vmem:[%s18352_s15 + $0xb74] ss:$8 sps:$4 sm:$0xff]  }
 0x489   : > { %13823 = vmatprep.subr.bf16.mxu0 %v16189_v1  ;;  %v16268_v36 = vld [vmem:[%s18352_s15 + $0x1874] ss:$8 sps:$4 sm:$0xff]   ;;  %v16263_v1 = vld [vmem:[%s18352_s15 + $0xb70] ss:$8 sps:$4 sm:$0xff]  }
 0x48b   : > { %13291 = vmatpush1.bf16.msra.mxu1 %v16184_v57  ;;  %v16266_v57 = vld [vmem:[%s18352_s15 + $0x1870] ss:$8 sps:$4 sm:$0xff]  }
 0x48c   : > { %13824 = vmatpush1.bf16.msra.mxu0 %v16187_v37  ;;  %13292 = vmatprep.subr.bf16.mxu1 %v16192_v38  ;;  %v16271_v37 = vld [vmem:[%s18352_s15 + $0xb84] ss:$8 sps:$4 sm:$0xff]  }
 0x48d   : > { %13825 = vmatprep.subr.bf16.mxu0 %v16195_v41  ;;  %v16274_v38 = vld [vmem:[%s18352_s15 + $0x1884] ss:$8 sps:$4 sm:$0xff]   ;;  %v16269_v41 = vld [vmem:[%s18352_s15 + $0xb80] ss:$8 sps:$4 sm:$0xff]  }
 0x48f   : > { %13293 = vmatpush1.bf16.msra.mxu1 %v16190_v44  ;;  %v16272_v44 = vld [vmem:[%s18352_s15 + $0x1880] ss:$8 sps:$4 sm:$0xff]  }
 0x490   : > { %13826 = vmatpush1.bf16.msra.mxu0 %v16193_v54  ;;  %13294 = vmatprep.subr.bf16.mxu1 %v16198_v45  ;;  %v16277_v54 = vld [vmem:[%s18352_s15 + $0xb94] ss:$8 sps:$4 sm:$0xff]  }
 0x491   : > { %13827 = vmatprep.subr.bf16.mxu0 %v16201_v14  ;;  %v16280_v45 = vld [vmem:[%s18352_s15 + $0x1894] ss:$8 sps:$4 sm:$0xff]   ;;  %v16275_v14 = vld [vmem:[%s18352_s15 + $0xb90] ss:$8 sps:$4 sm:$0xff]  }
 0x493   : > { %13295 = vmatpush1.bf16.msra.mxu1 %v16196_v46  ;;  %v16278_v46 = vld [vmem:[%s18352_s15 + $0x1890] ss:$8 sps:$4 sm:$0xff]  }
 0x494   : > { %13828 = vmatpush1.bf16.msra.mxu0 %v16199_v29  ;;  %13296 = vmatprep.subr.bf16.mxu1 %v16204_v47  ;;  %v16283_v29 = vld [vmem:[%s18352_s15 + $0xba4] ss:$8 sps:$4 sm:$0xff]  }
 0x495   : > { %13829 = vmatprep.subr.bf16.mxu0 %v16207_v16  ;;  %v16286_v47 = vld [vmem:[%s18352_s15 + $0x18a4] ss:$8 sps:$4 sm:$0xff]   ;;  %v16281_v16 = vld [vmem:[%s18352_s15 + $0xba0] ss:$8 sps:$4 sm:$0xff]  }
 0x497   : > { %13297 = vmatpush1.bf16.msra.mxu1 %v16202_v17  ;;  %v16284_v17 = vld [vmem:[%s18352_s15 + $0x18a0] ss:$8 sps:$4 sm:$0xff]  }
 0x498   : > { %13830 = vmatpush1.bf16.msra.mxu0 %v16205_v49  ;;  %13298 = vmatprep.subr.bf16.mxu1 %v16210_v50  ;;  %v16289_v49 = vld [vmem:[%s18352_s15 + $0xbb4] ss:$8 sps:$4 sm:$0xff]  }
 0x499   : > { %13831 = vmatprep.subr.bf16.mxu0 %v16213_v51  ;;  %v16292_v50 = vld [vmem:[%s18352_s15 + $0x18b4] ss:$8 sps:$4 sm:$0xff]   ;;  %v16287_v51 = vld [vmem:[%s18352_s15 + $0xbb0] ss:$8 sps:$4 sm:$0xff]  }
 0x49b   : > { %13299 = vmatpush1.bf16.msra.mxu1 %v16208_v56  ;;  %v16290_v56 = vld [vmem:[%s18352_s15 + $0x18b0] ss:$8 sps:$4 sm:$0xff]  }
 0x49c   : > { %13832 = vmatpush1.bf16.msra.mxu0 %v16211_v39  ;;  %13300 = vmatprep.subr.bf16.mxu1 %v16216_v58  ;;  %v16295_v39 = vld [vmem:[%s18352_s15 + $0xbc4] ss:$8 sps:$4 sm:$0xff]  }
 0x49d   : > { %13833 = vmatprep.subr.bf16.mxu0 %v16219_v40  ;;  %v16298_v58 = vld [vmem:[%s18352_s15 + $0x18c4] ss:$8 sps:$4 sm:$0xff]   ;;  %v16293_v40 = vld [vmem:[%s18352_s15 + $0xbc0] ss:$8 sps:$4 sm:$0xff]  }
 0x49f   : > { %13301 = vmatpush1.bf16.msra.mxu1 %v16214_v59  ;;  %v16296_v59 = vld [vmem:[%s18352_s15 + $0x18c0] ss:$8 sps:$4 sm:$0xff]  }
 0x4a0   : > { %13834 = vmatpush1.bf16.msra.mxu0 %v16217_v60  ;;  %13311 = vmatprep.subr.bf16.mxu1 %v16223_v62  ;;  %v16301_v60 = vld [vmem:[%s18352_s15 + $0xbd4] ss:$8 sps:$4 sm:$0xff]  }
 0x4a1   : > { %13844 = vmatprep.subr.bf16.mxu0 %v16226_v20  ;;  %v16304_v62 = vld [vmem:[%s18352_s15 + $0x18d4] ss:$8 sps:$4 sm:$0xff]   ;;  %v16299_v20 = vld [vmem:[%s18352_s15 + $0xbd0] ss:$8 sps:$4 sm:$0xff]  }
 0x4a2   : > { %13303 = vmatmul.mubr.bf16.vlgmr.msra.gmra.mrb[0].mxu1 %v19297_v2 }
 0x4a3   : > { %13836 = vmatmul.mubr.bf16.vlgmr.msra.gmra.mrb[0].mxu0 %v8436_v3  ;;  %13312 = vmatpush1.bf16.msra.mxu1 %v16221_v5  ;;  %v16307_v3 = vld [vmem:[%s18352_s15 + $0xbe4] ss:$8 sps:$4 sm:$0xff]  }
 0x4a4   : > { %13845 = vmatpush1.bf16.msra.mxu0 %v16224_v48  ;;  %13313 = vmatprep.subr.bf16.mxu1 %v16229_v28  ;;  %v16310_v5 = vld [vmem:[%s18352_s15 + $0x18e4] ss:$8 sps:$4 sm:$0xff]   ;;  %v16305_v48 = vld [vmem:[%s18352_s15 + $0xbe0] ss:$8 sps:$4 sm:$0xff]  }
 0x4a5   : > { %13846 = vmatprep.subr.bf16.mxu0 %v16232_v8  ;;  %13343 = vmatprep.mubr.bf16.mxu1 %v8291_v9  ;;  %v16308_v28 = vld [vmem:[%s18352_s15 + $0x18e0] ss:$8 sps:$4 sm:$0xff]   ;;  %v16313_v8 = vld [vmem:[%s18352_s15 + $0xbf4] ss:$8 sps:$4 sm:$0xff]  }
 0x4a6   : > { %13876 = vmatprep.mubr.bf16.mxu0 %v19308_v6  ;;  %v16316_v9 = vld [vmem:[%s18352_s15 + $0x18f4] ss:$8 sps:$4 sm:$0xff]  }
 0x4a7   : > { %13314 = vmatpush1.bf16.msra.mxu1 %v16227_v52  ;;  %v16311_v52 = vld [vmem:[%s18352_s15 + $0xbf0] ss:$8 sps:$4 sm:$0xff]  }
 0x4a8   : > { %13847 = vmatpush1.bf16.msra.mxu0 %v16230_v30  ;;  %13315 = vmatprep.subr.bf16.mxu1 %v16235_v10  ;;  %v16314_v30 = vld [vmem:[%s18352_s15 + $0x18f0] ss:$8 sps:$4 sm:$0xff]   ;;  %v16319_v10 = vld [vmem:[%s18352_s15 + $0xc04] ss:$8 sps:$4 sm:$0xff]  }
 0x4a9   : > { %13848 = vmatprep.subr.bf16.mxu0 %v16238_v42  ;;  %v16322_v42 = vld [vmem:[%s18352_s15 + $0x1904] ss:$8 sps:$4 sm:$0xff]  }
 0x4ab   : > { %13316 = vmatpush1.bf16.msra.mxu1 %v16233_v13  ;;  %v8289_v13 = vcombine.high %v19297_v2, %v19297_v2  ;;  %v16326_v2 = vld [vmem:[%s18352_s15 + $0x1910] ss:$8 sps:$4 sm:$0xff]  }
 0x4ac   : > { %13849 = vmatpush1.bf16.msra.mxu0 %v16236_v15  ;;  %13317 = vmatprep.subr.bf16.mxu1 %v16241_v61  ;;  %v19376_v15 = vrot.slane %v19287_v35, %v18405_v27  ;;  %v16317_v61 = vld [vmem:[%s18352_s15 + $0xc00] ss:$8 sps:$4 sm:$0xff]   ;;  %v16323_v35 = vld [vmem:[%s18352_s15 + $0xc10] ss:$8 sps:$4 sm:$0xff]  }
 0x4ad   : > { %13850 = vmatprep.subr.bf16.mxu0 %v16244_v18  ;;  %v16320_v18 = vld [vmem:[%s18352_s15 + $0x1900] ss:$8 sps:$4 sm:$0xff]  }
 0x4af   : > { %13318 = vmatpush1.bf16.msra.mxu1 %v16239_v19  ;;  %v16325_v19 = vld [vmem:[%s18352_s15 + $0xc14] ss:$8 sps:$4 sm:$0xff]  }
 0x4b0   : > { %13851 = vmatpush1.bf16.msra.mxu0 %v16242_v0  ;;  %13319 = vmatprep.subr.bf16.mxu1 %v16247_v4  ;;  %v16328_v0 = vld [vmem:[%s18352_s15 + $0x1914] ss:$8 sps:$4 sm:$0xff]   ;;  %v8485_v4 = vcombine.high %v19308_v6, %v19308_v6  ;;  %v16329_v6 = vld [vmem:[%s18352_s15 + $0xc20] ss:$8 sps:$4 sm:$0xff]  }
 0x4b1   : > { %13852 = vmatprep.subr.bf16.mxu0 %v16250_v7  ;;  %v16331_v7 = vld [vmem:[%s18352_s15 + $0xc24] ss:$8 sps:$4 sm:$0xff]  }
 0x4b3   : > { %13320 = vmatpush1.bf16.msra.mxu1 %v16245_v21  ;;  %v16334_v21 = vld [vmem:[%s18352_s15 + $0x1924] ss:$8 sps:$4 sm:$0xff]  }
 0x4b4   : > { %13853 = vmatpush1.bf16.msra.mxu0 %v16248_v23  ;;  %13321 = vmatprep.subr.bf16.mxu1 %v16253_v25  ;;  %v16332_v23 = vld [vmem:[%s18352_s15 + $0x1920] ss:$8 sps:$4 sm:$0xff]   ;;  %v16337_v25 = vld [vmem:[%s18352_s15 + $0xc34] ss:$8 sps:$4 sm:$0xff]  }
 0x4b5   : > { %13854 = vmatprep.subr.bf16.mxu0 %v16256_v26  ;;  %v16340_v26 = vld [vmem:[%s18352_s15 + $0x1934] ss:$8 sps:$4 sm:$0xff]  }
 0x4b7   : > { %13322 = vmatpush1.bf16.msra.mxu1 %v16251_v31  ;;  %v16335_v31 = vld [vmem:[%s18352_s15 + $0xc30] ss:$8 sps:$4 sm:$0xff]  }
 0x4b8   : > { %13855 = vmatpush1.bf16.msra.mxu0 %v16254_v12  ;;  %13323 = vmatprep.subr.bf16.mxu1 %v16259_v32  ;;  %v16343_v12 = vld [vmem:[%s18352_s15 + $0xc44] ss:$8 sps:$4 sm:$0xff]  }
 0x4b9   : > { %13856 = vmatprep.subr.bf16.mxu0 %v16262_v33  ;;  %v16346_v32 = vld [vmem:[%s18352_s15 + $0x1944] ss:$8 sps:$4 sm:$0xff]   ;;  %v16341_v33 = vld [vmem:[%s18352_s15 + $0xc40] ss:$8 sps:$4 sm:$0xff]  }
 0x4bb   : > { %13324 = vmatpush1.bf16.msra.mxu1 %v16257_v11  ;;  %v16344_v11 = vld [vmem:[%s18352_s15 + $0x1940] ss:$8 sps:$4 sm:$0xff]  }
 0x4bc   : > { %13857 = vmatpush1.bf16.msra.mxu0 %v16260_v24  ;;  %13325 = vmatprep.subr.bf16.mxu1 %v16265_v34  ;;  %v16349_v24 = vld [vmem:[%s18352_s15 + $0xc54] ss:$8 sps:$4 sm:$0xff]  }
 0x4bd   : > { %13858 = vmatprep.subr.bf16.mxu0 %v16268_v36  ;;  %v16352_v34 = vld [vmem:[%s18352_s15 + $0x1954] ss:$8 sps:$4 sm:$0xff]   ;;  %v16347_v36 = vld [vmem:[%s18352_s15 + $0xc50] ss:$8 sps:$4 sm:$0xff]  }
 0x4bf   : > { %13326 = vmatpush1.bf16.msra.mxu1 %v16263_v1  ;;  %v16350_v1 = vld [vmem:[%s18352_s15 + $0x1950] ss:$8 sps:$4 sm:$0xff]  }
 0x4c0   : > { %13859 = vmatpush1.bf16.msra.mxu0 %v16266_v57  ;;  %13327 = vmatprep.subr.bf16.mxu1 %v16271_v37  ;;  %v16355_v57 = vld [vmem:[%s18352_s15 + $0xc64] ss:$8 sps:$4 sm:$0xff]  }
 0x4c1   : > { %13860 = vmatprep.subr.bf16.mxu0 %v16274_v38  ;;  %v16358_v37 = vld [vmem:[%s18352_s15 + $0x1964] ss:$8 sps:$4 sm:$0xff]   ;;  %v16353_v38 = vld [vmem:[%s18352_s15 + $0xc60] ss:$8 sps:$4 sm:$0xff]  }
 0x4c3   : > { %13328 = vmatpush1.bf16.msra.mxu1 %v16269_v41  ;;  %v16356_v41 = vld [vmem:[%s18352_s15 + $0x1960] ss:$8 sps:$4 sm:$0xff]  }
 0x4c4   : > { %13861 = vmatpush1.bf16.msra.mxu0 %v16272_v44  ;;  %13329 = vmatprep.subr.bf16.mxu1 %v16277_v54  ;;  %v16361_v44 = vld [vmem:[%s18352_s15 + $0xc74] ss:$8 sps:$4 sm:$0xff]  }
 0x4c5   : > { %13862 = vmatprep.subr.bf16.mxu0 %v16280_v45  ;;  %v16364_v54 = vld [vmem:[%s18352_s15 + $0x1974] ss:$8 sps:$4 sm:$0xff]   ;;  %v16359_v45 = vld [vmem:[%s18352_s15 + $0xc70] ss:$8 sps:$4 sm:$0xff]  }
 0x4c7   : > { %13330 = vmatpush1.bf16.msra.mxu1 %v16275_v14  ;;  %v16362_v14 = vld [vmem:[%s18352_s15 + $0x1970] ss:$8 sps:$4 sm:$0xff]  }
 0x4c8   : > { %13863 = vmatpush1.bf16.msra.mxu0 %v16278_v46  ;;  %13331 = vmatprep.subr.bf16.mxu1 %v16283_v29  ;;  %v16367_v46 = vld [vmem:[%s18352_s15 + $0xc84] ss:$8 sps:$4 sm:$0xff]  }
 0x4c9   : > { %13864 = vmatprep.subr.bf16.mxu0 %v16286_v47  ;;  %v16370_v29 = vld [vmem:[%s18352_s15 + $0x1984] ss:$8 sps:$4 sm:$0xff]   ;;  %v16365_v47 = vld [vmem:[%s18352_s15 + $0xc80] ss:$8 sps:$4 sm:$0xff]  }
 0x4cb   : > { %13332 = vmatpush1.bf16.msra.mxu1 %v16281_v16  ;;  %v16368_v16 = vld [vmem:[%s18352_s15 + $0x1980] ss:$8 sps:$4 sm:$0xff]  }
 0x4cc   : > { %13865 = vmatpush1.bf16.msra.mxu0 %v16284_v17  ;;  %13333 = vmatprep.subr.bf16.mxu1 %v16289_v49  ;;  %v16373_v17 = vld [vmem:[%s18352_s15 + $0xc94] ss:$8 sps:$4 sm:$0xff]  }
 0x4cd   : > { %13866 = vmatprep.subr.bf16.mxu0 %v16292_v50  ;;  %v16376_v49 = vld [vmem:[%s18352_s15 + $0x1994] ss:$8 sps:$4 sm:$0xff]   ;;  %v16371_v50 = vld [vmem:[%s18352_s15 + $0xc90] ss:$8 sps:$4 sm:$0xff]  }
 0x4cf   : > { %13334 = vmatpush1.bf16.msra.mxu1 %v16287_v51  ;;  %v16374_v51 = vld [vmem:[%s18352_s15 + $0x1990] ss:$8 sps:$4 sm:$0xff]  }
 0x4d0   : > { %13867 = vmatpush1.bf16.msra.mxu0 %v16290_v56  ;;  %13335 = vmatprep.subr.bf16.mxu1 %v16295_v39  ;;  %v16379_v56 = vld [vmem:[%s18352_s15 + $0xca4] ss:$8 sps:$4 sm:$0xff]  }
 0x4d1   : > { %13868 = vmatprep.subr.bf16.mxu0 %v16298_v58  ;;  %v16382_v39 = vld [vmem:[%s18352_s15 + $0x19a4] ss:$8 sps:$4 sm:$0xff]   ;;  %v16377_v58 = vld [vmem:[%s18352_s15 + $0xca0] ss:$8 sps:$4 sm:$0xff]  }
 0x4d3   : > { %13336 = vmatpush1.bf16.msra.mxu1 %v16293_v40  ;;  %v16380_v40 = vld [vmem:[%s18352_s15 + $0x19a0] ss:$8 sps:$4 sm:$0xff]  }
 0x4d4   : > { %13869 = vmatpush1.bf16.msra.mxu0 %v16296_v59  ;;  %13337 = vmatprep.subr.bf16.mxu1 %v16301_v60  ;;  %v16385_v59 = vld [vmem:[%s18352_s15 + $0xcb4] ss:$8 sps:$4 sm:$0xff]  }
 0x4d5   : > { %13870 = vmatprep.subr.bf16.mxu0 %v16304_v62  ;;  %v16388_v60 = vld [vmem:[%s18352_s15 + $0x19b4] ss:$8 sps:$4 sm:$0xff]   ;;  %v16383_v62 = vld [vmem:[%s18352_s15 + $0xcb0] ss:$8 sps:$4 sm:$0xff]  }
 0x4d7   : > { %13338 = vmatpush1.bf16.msra.mxu1 %v16299_v20  ;;  %v16386_v20 = vld [vmem:[%s18352_s15 + $0x19b0] ss:$8 sps:$4 sm:$0xff]  }
 0x4d8   : > { %13871 = vmatpush1.bf16.msra.mxu0 %v16302_v63  ;;  %13339 = vmatprep.subr.bf16.mxu1 %v16307_v3  ;;  %v16391_v63 = vld [vmem:[%s18352_s15 + $0xcc4] ss:$8 sps:$4 sm:$0xff]  }
 0x4d9   : > { %13872 = vmatprep.subr.bf16.mxu0 %v16310_v5  ;;  %v16394_v3 = vld [vmem:[%s18352_s15 + $0x19c4] ss:$8 sps:$4 sm:$0xff]   ;;  %v16389_v5 = vld [vmem:[%s18352_s15 + $0xcc0] ss:$8 sps:$4 sm:$0xff]  }
 0x4db   : > { %13340 = vmatpush1.bf16.msra.mxu1 %v16305_v48  ;;  %v16392_v48 = vld [vmem:[%s18352_s15 + $0x19c0] ss:$8 sps:$4 sm:$0xff]  }
 0x4dc   : > { %13873 = vmatpush1.bf16.msra.mxu0 %v16308_v28  ;;  %13341 = vmatprep.subr.bf16.mxu1 %v16313_v8  ;;  %v16397_v28 = vld [vmem:[%s18352_s15 + $0xcd4] ss:$8 sps:$4 sm:$0xff]  }
 0x4dd   : > { %13874 = vmatprep.subr.bf16.mxu0 %v16316_v9  ;;  %v16400_v8 = vld [vmem:[%s18352_s15 + $0x19d4] ss:$8 sps:$4 sm:$0xff]   ;;  %v16395_v9 = vld [vmem:[%s18352_s15 + $0xcd0] ss:$8 sps:$4 sm:$0xff]  }
 0x4df   : > { %13342 = vmatpush1.bf16.msra.mxu1 %v16311_v52  ;;  %v16398_v52 = vld [vmem:[%s18352_s15 + $0x19d0] ss:$8 sps:$4 sm:$0xff]  }
 0x4e0   : > { %13875 = vmatpush1.bf16.msra.mxu0 %v16314_v30  ;;  %13352 = vmatprep.subr.bf16.mxu1 %v16319_v10  ;;  %v8439_v30 = vcombine.high %v19279_v53, %v19279_v53  ;;  %v16403_v10 = vld [vmem:[%s18352_s15 + $0xce4] ss:$8 sps:$4 sm:$0xff]   ;;  %v16412_v53 = vld [vmem:[%s18352_s15 + $0x19f4] ss:$8 sps:$4 sm:$0xff]  }
 0x4e1   : > { %13885 = vmatprep.subr.bf16.mxu0 %v16322_v42  ;;  %v16406_v42 = vld [vmem:[%s18352_s15 + $0x19e4] ss:$8 sps:$4 sm:$0xff]  }
 0x4e2   : > { %13344 = vmatmul.mubr.bf16.vlgmr.msra.gmra.mrb[0].mxu1 %v8289_v13  ;;  %v16401_v13 = vld [vmem:[%s18352_s15 + $0xce0] ss:$8 sps:$4 sm:$0xff]  }
 0x4e3   : > { %13877 = vmatmul.mubr.bf16.vlgmr.msra.gmra.mrb[0].mxu0 %v19376_v15  ;;  %13353 = vmatpush1.bf16.msra.mxu1 %v16317_v61  ;;  %v16404_v61 = vld [vmem:[%s18352_s15 + $0x19e0] ss:$8 sps:$4 sm:$0xff]  }
 0x4e4   : > { %13886 = vmatpush1.bf16.msra.mxu0 %v16320_v18  ;;  %13354 = vmatprep.subr.bf16.mxu1 %v16325_v19  ;;  %v19443_v18 = vrot.slane %v8439_v30, %v18405_v27  ;;  %v16409_v19 = vld [vmem:[%s18352_s15 + $0xcf4] ss:$8 sps:$4 sm:$0xff]  }
 0x4e5   : > { %13887 = vmatprep.subr.bf16.mxu0 %v16328_v0  ;;  %13384 = vmatprep.mubr.bf16.mxu1 %v18426_v43  ;;  %v16338_v43 = vld [vmem:[%s18352_s15 + $0x1930] ss:$8 sps:$4 sm:$0xff]  }
 0x4e6   : > { %13917 = vmatprep.mubr.bf16.mxu0 %v8485_v4  ;;  %v16407_v0 = vld [vmem:[%s18352_s15 + $0xcf0] ss:$8 sps:$4 sm:$0xff]  }
 0x4e7   : > { %13355 = vmatpush1.bf16.msra.mxu1 %v16323_v35  ;;  %v16410_v4 = vld [vmem:[%s18352_s15 + $0x19f0] ss:$8 sps:$4 sm:$0xff]   ;;  %v8455_v35 = vcombine.high %v19443_v18, %v19443_v18 }
 0x4e8   : > { %13888 = vmatpush1.bf16.msra.mxu0 %v16326_v2  ;;  %13356 = vmatprep.subr.bf16.mxu1 %v16331_v7  ;;  %v16415_v2 = vld [vmem:[%s18352_s15 + $0x1a04] ss:$8 sps:$4 sm:$0xff]   ;;  %v8484_v7 = vcombine.high %v19376_v15, %v19376_v15 }
 0x4e9   : > { %13889 = vmatprep.subr.bf16.mxu0 %v16334_v21  ;;  %v16413_v21 = vld [vmem:[%s18352_s15 + $0x1a00] ss:$8 sps:$4 sm:$0xff]   ;;  %v16421_v15 = vld [vmem:[%s18352_s15 + $0x1a24] ss:$8 sps:$4 sm:$0xff]  }
 0x4eb   : > { %13357 = vmatpush1.bf16.msra.mxu1 %v16329_v6  ;;  %v8483_v6 = vrot.slane %v8455_v35, %v18405_v27 }
 0x4ec   : > { %13890 = vmatpush1.bf16.msra.mxu0 %v16332_v23  ;;  %13358 = vmatprep.subr.bf16.mxu1 %v16337_v25  ;;  %v16418_v23 = vld [vmem:[%s18352_s15 + $0x1a14] ss:$8 sps:$4 sm:$0xff]   ;;  %v16416_v25 = vld [vmem:[%s18352_s15 + $0x1a10] ss:$8 sps:$4 sm:$0xff]  }
 0x4ed   : > { %13891 = vmatprep.subr.bf16.mxu0 %v16340_v26  ;;  %v16419_v26 = vld [vmem:[%s18352_s15 + $0x1a20] ss:$8 sps:$4 sm:$0xff]  }
 0x4ef   : > { %13359 = vmatpush1.bf16.msra.mxu1 %v16335_v31  ;;  %v16424_v31 = vld [vmem:[%s18352_s15 + $0x1a34] ss:$8 sps:$4 sm:$0xff]  }
 0x4f0   : > { %13892 = vmatpush1.bf16.msra.mxu0 %v16338_v43  ;;  %13360 = vmatprep.subr.bf16.mxu1 %v16343_v12  ;;  %v16422_v43 = vld [vmem:[%s18352_s15 + $0x1a30] ss:$8 sps:$4 sm:$0xff]   ;;  %v16425_v12 = vld [vmem:[%s18352_s15 + $0x1a40] ss:$8 sps:$4 sm:$0xff]  }
 0x4f1   : > { %13893 = vmatprep.subr.bf16.mxu0 %v16346_v32  ;;  %v16430_v32 = vld [vmem:[%s18352_s15 + $0x1a54] ss:$8 sps:$4 sm:$0xff]  }
 0x4f3   : > { %13361 = vmatpush1.bf16.msra.mxu1 %v16341_v33  ;;  %v16428_v33 = vld [vmem:[%s18352_s15 + $0x1a50] ss:$8 sps:$4 sm:$0xff]  }
 0x4f4   : > { %13894 = vmatpush1.bf16.msra.mxu0 %v16344_v11  ;;  %13362 = vmatprep.subr.bf16.mxu1 %v16349_v24  ;;  %v16433_v11 = vld [vmem:[%s18352_s15 + $0x1a64] ss:$8 sps:$4 sm:$0xff]   ;;  %v16431_v24 = vld [vmem:[%s18352_s15 + $0x1a60] ss:$8 sps:$4 sm:$0xff]  }
 0x4f5   : > { %13895 = vmatprep.subr.bf16.mxu0 %v16352_v34  ;;  %v16436_v34 = vld [vmem:[%s18352_s15 + $0x1a74] ss:$8 sps:$4 sm:$0xff]  }
 0x4f7   : > { %13363 = vmatpush1.bf16.msra.mxu1 %v16347_v36  ;;  %v16434_v36 = vld [vmem:[%s18352_s15 + $0x1a70] ss:$8 sps:$4 sm:$0xff]  }
 0x4f8   : > { %13896 = vmatpush1.bf16.msra.mxu0 %v16350_v1  ;;  %13364 = vmatprep.subr.bf16.mxu1 %v16355_v57  ;;  %v16439_v1 = vld [vmem:[%s18352_s15 + $0x1a84] ss:$8 sps:$4 sm:$0xff]   ;;  %v16437_v57 = vld [vmem:[%s18352_s15 + $0x1a80] ss:$8 sps:$4 sm:$0xff]  }
 0x4f9   : > { %13897 = vmatprep.subr.bf16.mxu0 %v16358_v37  ;;  %v16442_v37 = vld [vmem:[%s18352_s15 + $0x1a94] ss:$8 sps:$4 sm:$0xff]  }
 0x4fb   : > { %13365 = vmatpush1.bf16.msra.mxu1 %v16353_v38  ;;  %v16440_v38 = vld [vmem:[%s18352_s15 + $0x1a90] ss:$8 sps:$4 sm:$0xff]  }
 0x4fc   : > { %13898 = vmatpush1.bf16.msra.mxu0 %v16356_v41  ;;  %13366 = vmatprep.subr.bf16.mxu1 %v16361_v44  ;;  %v16445_v41 = vld [vmem:[%s18352_s15 + $0x1aa4] ss:$8 sps:$4 sm:$0xff]   ;;  %v16443_v44 = vld [vmem:[%s18352_s15 + $0x1aa0] ss:$8 sps:$4 sm:$0xff]  }
 0x4fd   : > { %13899 = vmatprep.subr.bf16.mxu0 %v16364_v54  ;;  %v16448_v54 = vld [vmem:[%s18352_s15 + $0x1ab4] ss:$8 sps:$4 sm:$0xff]  }
 0x4ff   : > { %13367 = vmatpush1.bf16.msra.mxu1 %v16359_v45  ;;  %v16446_v45 = vld [vmem:[%s18352_s15 + $0x1ab0] ss:$8 sps:$4 sm:$0xff]  }
 0x500   : > { %13900 = vmatpush1.bf16.msra.mxu0 %v16362_v14  ;;  %13368 = vmatprep.subr.bf16.mxu1 %v16367_v46  ;;  %v16451_v14 = vld [vmem:[%s18352_s15 + $0x1ac4] ss:$8 sps:$4 sm:$0xff]   ;;  %v16449_v46 = vld [vmem:[%s18352_s15 + $0x1ac0] ss:$8 sps:$4 sm:$0xff]  }
 0x501   : > { %13901 = vmatprep.subr.bf16.mxu0 %v16370_v29  ;;  %v16454_v29 = vld [vmem:[%s18352_s15 + $0x1ad4] ss:$8 sps:$4 sm:$0xff]  }
 0x503   : > { %13369 = vmatpush1.bf16.msra.mxu1 %v16365_v47  ;;  %v16452_v47 = vld [vmem:[%s18352_s15 + $0x1ad0] ss:$8 sps:$4 sm:$0xff]  }
 0x504   : > { %13902 = vmatpush1.bf16.msra.mxu0 %v16368_v16  ;;  %13370 = vmatprep.subr.bf16.mxu1 %v16373_v17  ;;  %v16457_v16 = vld [vmem:[%s18352_s15 + $0x1ae4] ss:$8 sps:$4 sm:$0xff]   ;;  %v16455_v17 = vld [vmem:[%s18352_s15 + $0x1ae0] ss:$8 sps:$4 sm:$0xff]  }
 0x505   : > { %13903 = vmatprep.subr.bf16.mxu0 %v16376_v49  ;;  %v16460_v49 = vld [vmem:[%s18352_s15 + $0x1af4] ss:$8 sps:$4 sm:$0xff]  }
 0x507   : > { %13371 = vmatpush1.bf16.msra.mxu1 %v16371_v50  ;;  %v16458_v50 = vld [vmem:[%s18352_s15 + $0x1af0] ss:$8 sps:$4 sm:$0xff]  }
 0x508   : > { %13904 = vmatpush1.bf16.msra.mxu0 %v16374_v51  ;;  %13372 = vmatprep.subr.bf16.mxu1 %v16379_v56  ;;  %v8469_v51 = vrot.slane %v19443_v18, %v18405_v27 }
 0x509   : > { %13905 = vmatprep.subr.bf16.mxu0 %v16382_v39 }
 0x50b   : > { %13373 = vmatpush1.bf16.msra.mxu1 %v16377_v58 }
 0x50c   : > { %13906 = vmatpush1.bf16.msra.mxu0 %v16380_v40  ;;  %13374 = vmatprep.subr.bf16.mxu1 %v16385_v59  ;;  %v16521_v59 = vmov 1983009808  }
 0x50d   : > { %13907 = vmatprep.subr.bf16.mxu0 %v16388_v60  ;;  %v13971_v60 = vunpack.c.l.s4 %v16521_v59 }
 0x50f   : > { %13375 = vmatpush1.bf16.msra.mxu1 %v16383_v62  ;;  %v13972_v62 = vunpack.c.0.s8 %v13971_v60 }
 0x510   : > { %13908 = vmatpush1.bf16.msra.mxu0 %v16386_v20  ;;  %13376 = vmatprep.subr.bf16.mxu1 %v16391_v63 }
 0x511   : > { %13909 = vmatprep.subr.bf16.mxu0 %v16394_v3 }
 0x513   : > { %13377 = vmatpush1.bf16.msra.mxu1 %v16389_v5 }
 0x514   : > { %13910 = vmatpush1.bf16.msra.mxu0 %v16392_v48  ;;  %13378 = vmatprep.subr.bf16.mxu1 %v16397_v28  ;;  %v13975_v48 = vsub.s32 %v13972_v62, %v18398_v22 }
 0x515   : > { %13911 = vmatprep.subr.bf16.mxu0 %v16400_v8 }
 0x517   : > { %13379 = vmatpush1.bf16.msra.mxu1 %v16395_v9  ;;  %v7266_v9 = vld [vmem:[%s18350_s12] sm:$0xf] }
 0x518   : > { %13912 = vmatpush1.bf16.msra.mxu0 %v16398_v52  ;;  %13380 = vmatprep.subr.bf16.mxu1 %v16403_v10 }
 0x519   : > { %13913 = vmatprep.subr.bf16.mxu0 %v16406_v42 }
 0x51b   : > { %13381 = vmatpush1.bf16.msra.mxu1 %v16401_v13 }
 0x51c   : > { %13914 = vmatpush1.bf16.msra.mxu0 %v16404_v61  ;;  %13382 = vmatprep.subr.bf16.mxu1 %v16409_v19 }
 0x51d   : > { %13915 = vmatprep.subr.bf16.mxu0 %v16412_v53 }
 0x51f   : > { %13383 = vmatpush1.bf16.msra.mxu1 %v16407_v0 }
 0x520   : > { %13916 = vmatpush1.bf16.msra.mxu0 %v16410_v4 }
 0x521   : > { %13926 = vmatprep.subr.bf16.mxu0 %v16415_v2 }
 0x522   : > { %13385 = vmatmul.mubr.bf16.vlgmr.msra.gmra.mrb[0].mxu1 %v18443_v55  ;;  %v16427_v55 = vld [vmem:[%s18352_s15 + $0x1a44] ss:$8 sps:$4 sm:$0xff]  }
 0x523   : > { %13918 = vmatmul.mubr.bf16.vlgmr.msra.gmra.mrb[0].mxu0 %v8484_v7 }
 0x524   : > { %13927 = vmatpush1.bf16.msra.mxu0 %v16413_v21  ;;  %13958 = vmatprep.mubr.bf16.mxu0 %v8483_v6 }
 0x525   : > { %13928 = vmatprep.subr.bf16.mxu0 %v16418_v23 }
 0x528   : > { %13929 = vmatpush1.bf16.msra.mxu0 %v16416_v25 }
 0x529   : > { %13930 = vmatprep.subr.bf16.mxu0 %v16421_v15 }
 0x52c   : > { %13931 = vmatpush1.bf16.msra.mxu0 %v16419_v26 }
 0x52d   : > { %13932 = vmatprep.subr.bf16.mxu0 %v16424_v31 }
 0x530   : > { %13933 = vmatpush1.bf16.msra.mxu0 %v16422_v43 }
 0x531   : > { %13934 = vmatprep.subr.bf16.mxu0 %v16427_v55 }
 0x534   : > { %13935 = vmatpush1.bf16.msra.mxu0 %v16425_v12 }
 0x535   : > { %13936 = vmatprep.subr.bf16.mxu0 %v16430_v32 }
 0x538   : > { %13937 = vmatpush1.bf16.msra.mxu0 %v16428_v33 }
 0x539   : > { %13938 = vmatprep.subr.bf16.mxu0 %v16433_v11 }
 0x53c   : > { %13939 = vmatpush1.bf16.msra.mxu0 %v16431_v24 }
 0x53d   : > { %13940 = vmatprep.subr.bf16.mxu0 %v16436_v34 }
 0x540   : > { %13941 = vmatpush1.bf16.msra.mxu0 %v16434_v36 }
 0x541   : > { %13942 = vmatprep.subr.bf16.mxu0 %v16439_v1 }
 0x544   : > { %13943 = vmatpush1.bf16.msra.mxu0 %v16437_v57 }
 0x545   : > { %13944 = vmatprep.subr.bf16.mxu0 %v16442_v37 }
 0x548   : > { %13945 = vmatpush1.bf16.msra.mxu0 %v16440_v38 }
 0x549   : > { %13946 = vmatprep.subr.bf16.mxu0 %v16445_v41 }
 0x54c   : > { %13947 = vmatpush1.bf16.msra.mxu0 %v16443_v44 }
 0x54d   : > { %13948 = vmatprep.subr.bf16.mxu0 %v16448_v54 }
 0x550   : > { %13949 = vmatpush1.bf16.msra.mxu0 %v16446_v45 }
 0x551   : > { %13950 = vmatprep.subr.bf16.mxu0 %v16451_v14 }
 0x554   : > { %13951 = vmatpush1.bf16.msra.mxu0 %v16449_v46 }
 0x555   : > { %13952 = vmatprep.subr.bf16.mxu0 %v16454_v29 }
 0x558   : > { %13953 = vmatpush1.bf16.msra.mxu0 %v16452_v47 }
 0x559   : > { %13954 = vmatprep.subr.bf16.mxu0 %v16457_v16 }
 0x55c   : > { %13955 = vmatpush1.bf16.msra.mxu0 %v16455_v17 }
 0x55d   : > { %13956 = vmatprep.subr.bf16.mxu0 %v16460_v49 }
 0x560   : > { %13957 = vmatpush1.bf16.msra.mxu0 %v16458_v50 }
 0x563   : > { %13959 = vmatmul.mubr.bf16.vlgmr.msra.gmra.mrb[0].mxu0 %v8469_v51 }
 0x5f5   : > { %v13386_v56 = vpop.f32.mrb[0].mxu1 }
 0x5f6   : > { %v13388_v39 = vpop.f32.mrb[1].mxu1 }
 0x5f7   : > { %v13390_v58 = vpop.f32.mrb[2].mxu1 }
 0x5f8   : > { %v13391_v40 = vpop.f32.mrb[3].mxu1 }
 0x636   : > { %v13960_v20 = vpop.f32.mrb[0].mxu0 }
 0x637   : > { %v14997_v63 = vadd.f32 %v13960_v20, %v13386_v56  ;;  %v13962_v3 = vpop.f32.mrb[1].mxu0 }
 0x638   : > { %v14998_v5 = vadd.f32 %v13962_v3, %v13388_v39  ;;  %v13964_v28 = vpop.f32.mrb[2].mxu0 }
 0x639   : > { %v13965_v8 = vpop.f32.mrb[3].mxu0 }
 0x63a   : > { %v13969_v27 = vcombine.low %v14997_v63, %v14998_v5  ;;  %13983 = sbr.rel (%p14993_p13) target bundleno = 1611 (0x64b), region = 92 }
 0x63c   : > { %v13976_v52 = vrot.slane %v13969_v27, %v13975_v48 }
 0x63e   : > { %v13978_v30 = vadd.f32 %v13976_v52, %v7266_v9 }
 0x640   : > { %13979 = vst [vmem:[%s18350_s12] sm:$0xf] %v13978_v30 }
 0x647   : > { %v13984_v10 = vld [vmem:[%s18350_s12] sm:$0xf] }
 0x648   : > { %v13985_v42 = vmax.f32 %v13984_v10, 0.0 }
 0x64a   : > { %13986 = vst [vmem:[%s18350_s12] sm:$0xf] %v13985_v42 }
 0x64b PF: > { %s13_s18 = sadd.s32 1, %s16518_s18   ;;  %s19520_s12 = smov %s16498_s13 }
 0x64c   : > { %p10_p0 = scmp.ge.s32.totalorder %s13_s18, 8   ;;  %s19521_s13 = smov %s16593_s25 }
 0x64d   : > { %s19522_s14 = smov %s16510_s16  ;;  %s19523_s15 = smov %s16514_s17 }
 0x64e   : > { %s19524_s16 = smov %s19527_s19  ;;  %s19525_s17 = smov %s19531_s20 }
 0x64f   :  { %12 = sbr.rel (!%p10_p0) target bundleno = 4 (0x4), region = 139 }

// kernel: forward.5
= control target key start
LH: loop header
LB: loop body
LE: loop exit
PB: predicated region body
PF: predicated region fallthrough
CT: control target
= control target key end

     0   :  { %v7307_v0 = vmov 0   ;;  %vm7309_vm0 = vmmov 0   ;;  %vm5081_vm1 = vcmask 519168   ;;  %s9400_s1 = inlined_call_operand.vmem [shape: bf16[1152,64], index: 1, kind: input, shape index: {}]   ;;  %s9401_s0 = inlined_call_operand.vmem [shape: bf16[648,1152], index: 0, kind: input, shape index: {}]   ;;  %s9402_s2 = inlined_call_operand.vmem [shape: f32[1,64], index: 2, kind: input, shape index: {}]   ;;  %s9403_s3 = inlined_call_operand.vmem [shape: bf16[648,64], index: 3, kind: output, shape index: {}]  }
   0x1   :  { %2875 = vmatprep.subr.bf16.mxu1 %v7307_v0  ;;  %3595 = vmatprep.subr.bf16.mxu0 %v7307_v0  ;;  %v6689_v1 = vld [vmem:[%s9400_s1] sm:$0xff]   ;;  %v6691_v3 = vld [vmem:[%s9400_s1 + $0x8] sm:$0xff]   ;;  %v6693_v5 = vld [vmem:[%s9400_s1 + $0x10] sm:$0xff]  }
   0x2   :  { %v6690_v2 = vld [vmem:[%s9400_s1 + $0x100] sm:$0xff]   ;;  %2876 = vmatpush1.bf16.msra.mxu1 %v6689_v1  ;;  %v6692_v4 = vld [vmem:[%s9400_s1 + $0x108] sm:$0xff]   ;;  %v6694_v6 = vld [vmem:[%s9400_s1 + $0x110] sm:$0xff]  }
   0x3   :  { %3596 = vmatpush1.bf16.msra.mxu0 %v6690_v2  ;;  %2877 = vmatprep.subr.bf16.mxu1 %v7307_v0  ;;  %v6695_v7 = vld [vmem:[%s9400_s1 + $0x18] sm:$0xff]   ;;  %v6697_v9 = vld [vmem:[%s9400_s1 + $0x20] sm:$0xff]   ;;  %v6699_v11 = vld [vmem:[%s9400_s1 + $0x28] sm:$0xff]  }
   0x4   :  { %3597 = vmatprep.subr.bf16.mxu0 %v7307_v0  ;;  %v6696_v8 = vld [vmem:[%s9400_s1 + $0x118] sm:$0xff]   ;;  %v6698_v10 = vld [vmem:[%s9400_s1 + $0x120] sm:$0xff]   ;;  %v6700_v12 = vld [vmem:[%s9400_s1 + $0x128] sm:$0xff]  }
   0x5   :  { %v6701_v13 = vld [vmem:[%s9400_s1 + $0x30] sm:$0xff]   ;;  %v6703_v15 = vld [vmem:[%s9400_s1 + $0x38] sm:$0xff]   ;;  %v6705_v17 = vld [vmem:[%s9400_s1 + $0x40] sm:$0xff]  }
   0x6   :  { %2878 = vmatpush1.bf16.msra.mxu1 %v6691_v3  ;;  %v6702_v14 = vld [vmem:[%s9400_s1 + $0x130] sm:$0xff]   ;;  %v6704_v16 = vld [vmem:[%s9400_s1 + $0x138] sm:$0xff]   ;;  %v6706_v18 = vld [vmem:[%s9400_s1 + $0x140] sm:$0xff]  }
   0x7   :  { %3598 = vmatpush1.bf16.msra.mxu0 %v6692_v4  ;;  %2879 = vmatprep.subr.bf16.mxu1 %v7307_v0  ;;  %v6723_v19 = vld [vmem:[%s9401_s0 + $0x4] ss:$36 sps:$4 sm:$0xff]   ;;  %v6726_v21 = vld [vmem:[%s9401_s0 + $0x14] ss:$36 sps:$4 sm:$0xff]   ;;  %v6728_v38 = vld [vmem:[%s9401_s0 + $0x4c] ss:$36 sps:$4 sm:$0xff]  }
   0x8   :  { %3599 = vmatprep.subr.bf16.mxu0 %v7307_v0  ;;  %v6707_v20 = vld [vmem:[%s9400_s1 + $0x48] sm:$0xff]   ;;  %2907 = vmatprep.mubr.bf16.mxu1 %v6723_v19  ;;  %v6709_v23 = vld [vmem:[%s9400_s1 + $0x50] sm:$0xff]   ;;  %v6711_v25 = vld [vmem:[%s9400_s1 + $0x58] sm:$0xff]  }
   0x9   :  { %v6708_v22 = vld [vmem:[%s9400_s1 + $0x148] sm:$0xff]   ;;  %3627 = vmatprep.mubr.bf16.mxu0 %v6726_v21  ;;  %v6710_v24 = vld [vmem:[%s9400_s1 + $0x150] sm:$0xff]   ;;  %v6712_v26 = vld [vmem:[%s9400_s1 + $0x158] sm:$0xff]  }
   0xa   :  { %2880 = vmatpush1.bf16.msra.mxu1 %v6693_v5  ;;  %v6713_v27 = vld [vmem:[%s9400_s1 + $0x60] sm:$0xff]   ;;  %v6715_v29 = vld [vmem:[%s9400_s1 + $0x68] sm:$0xff]   ;;  %v6717_v31 = vld [vmem:[%s9400_s1 + $0x70] sm:$0xff]  }
   0xb   :  { %3600 = vmatpush1.bf16.msra.mxu0 %v6694_v6  ;;  %2881 = vmatprep.subr.bf16.mxu1 %v7307_v0  ;;  %v6714_v28 = vld [vmem:[%s9400_s1 + $0x160] sm:$0xff]   ;;  %v6716_v30 = vld [vmem:[%s9400_s1 + $0x168] sm:$0xff]   ;;  %v6718_v32 = vld [vmem:[%s9400_s1 + $0x170] sm:$0xff]  }
   0xc   :  { %3601 = vmatprep.subr.bf16.mxu0 %v7307_v0  ;;  %v6719_v33 = vld [vmem:[%s9400_s1 + $0x78] sm:$0xff]   ;;  %v6721_v35 = vld [vmem:[%s9401_s0] ss:$36 sps:$4 sm:$0xff]   ;;  %v6724_v36 = vld [vmem:[%s9401_s0 + $0x10] ss:$36 sps:$4 sm:$0xff]  }
   0xd   :  { %v6720_v34 = vld [vmem:[%s9400_s1 + $0x178] sm:$0xff]   ;;  %v6727_v37 = vld [vmem:[%s9400_s1 + $0x180] sm:$0xff]   ;;  %v6735_v41 = vld [vmem:[%s9400_s1 + $0x188] sm:$0xff]  }
   0xe   :  { %2882 = vmatpush1.bf16.msra.mxu1 %v6695_v7  ;;  %v6730_v39 = vld [vmem:[%s9400_s1 + $0x80] sm:$0xff]   ;;  %v6749_v42 = vld [vmem:[%s9400_s1 + $0x88] sm:$0xff]   ;;  %v6734_v44 = vld [vmem:[%s9401_s0 + $0x58] ss:$36 sps:$4 sm:$0xff]  }
   0xf   :  { %3602 = vmatpush1.bf16.msra.mxu0 %v6696_v8  ;;  %2883 = vmatprep.subr.bf16.mxu1 %v7307_v0  ;;  %v6731_v40 = vld [vmem:[%s9401_s0 + $0x5c] ss:$36 sps:$4 sm:$0xff]   ;;  %v6733_v43 = vld [vmem:[%s9401_s0 + $0x48] ss:$36 sps:$4 sm:$0xff]   ;;  %v6736_v45 = vld [vmem:[%s9401_s0 + $0x94] ss:$36 sps:$4 sm:$0xff]  }
  0x10   :  { %3603 = vmatprep.subr.bf16.mxu0 %v7307_v0  ;;  %v6738_v46 = vld [vmem:[%s9401_s0 + $0xa4] ss:$36 sps:$4 sm:$0xff]   ;;  %v6742_v47 = vld [vmem:[%s9400_s1 + $0x190] sm:$0xff]   ;;  %v6756_v49 = vld [vmem:[%s9400_s1 + $0x198] sm:$0xff]  }
  0x11   :  { %v6769_v48 = vld [vmem:[%s9400_s1 + $0x90] sm:$0xff]   ;;  %v6741_v51 = vld [vmem:[%s9401_s0 + $0xa0] ss:$36 sps:$4 sm:$0xff]   ;;  %v6785_v52 = vld [vmem:[%s9400_s1 + $0x98] sm:$0xff]  }
  0x12   :  { %2884 = vmatpush1.bf16.msra.mxu1 %v6697_v9  ;;  %v6740_v50 = vld [vmem:[%s9401_s0 + $0x90] ss:$36 sps:$4 sm:$0xff]   ;;  %v6743_v53 = vld [vmem:[%s9401_s0 + $0xdc] ss:$36 sps:$4 sm:$0xff]   ;;  %v6771_v58 = vld [vmem:[%s9400_s1 + $0x1a8] sm:$0xff]  }
  0x13   :  { %3604 = vmatpush1.bf16.msra.mxu0 %v6698_v10  ;;  %2885 = vmatprep.subr.bf16.mxu1 %v7307_v0  ;;  %v6745_v54 = vld [vmem:[%s9401_s0 + $0xec] ss:$36 sps:$4 sm:$0xff]   ;;  %v6763_v55 = vld [vmem:[%s9400_s1 + $0x1a0] sm:$0xff]   ;;  %v6747_v57 = vld [vmem:[%s9401_s0 + $0xd8] ss:$36 sps:$4 sm:$0xff]  }
  0x14   :  { %3605 = vmatprep.subr.bf16.mxu0 %v7307_v0  ;;  %v6806_v56 = vld [vmem:[%s9400_s1 + $0xa0] sm:$0xff]   ;;  %v6748_v59 = vld [vmem:[%s9401_s0 + $0xe8] ss:$36 sps:$4 sm:$0xff]   ;;  %v6752_v61 = vld [vmem:[%s9401_s0 + $0x134] ss:$36 sps:$4 sm:$0xff]  }
  0x15   :  { %v6750_v60 = vld [vmem:[%s9401_s0 + $0x124] ss:$36 sps:$4 sm:$0xff]   ;;  %v6784_v63 = vld [vmem:[%s9400_s1 + $0x1b0] sm:$0xff]   ;;  %v6792_v1 = vld [vmem:[%s9400_s1 + $0x1b8] sm:$0xff]  }
  0x16   :  { %2886 = vmatpush1.bf16.msra.mxu1 %v6699_v11  ;;  %v6821_v62 = vld [vmem:[%s9400_s1 + $0xa8] sm:$0xff]   ;;  %v6754_v2 = vld [vmem:[%s9401_s0 + $0x120] ss:$36 sps:$4 sm:$0xff]   ;;  %v6755_v3 = vld [vmem:[%s9401_s0 + $0x130] ss:$36 sps:$4 sm:$0xff]  }
  0x17   :  { %3606 = vmatpush1.bf16.msra.mxu0 %v6700_v12  ;;  %2887 = vmatprep.subr.bf16.mxu1 %v7307_v0  ;;  %v6757_v4 = vld [vmem:[%s9401_s0 + $0x16c] ss:$36 sps:$4 sm:$0xff]   ;;  %v6759_v5 = vld [vmem:[%s9401_s0 + $0x17c] ss:$36 sps:$4 sm:$0xff]   ;;  %v6764_v11 = vld [vmem:[%s9401_s0 + $0x1b4] ss:$36 sps:$4 sm:$0xff]  }
  0x18   :  { %3607 = vmatprep.subr.bf16.mxu0 %v7307_v0  ;;  %v6799_v6 = vld [vmem:[%s9400_s1 + $0x1c0] sm:$0xff]   ;;  %v6842_v7 = vld [vmem:[%s9400_s1 + $0xb0] sm:$0xff]   ;;  %v6813_v8 = vld [vmem:[%s9400_s1 + $0x1c8] sm:$0xff]  }
  0x19   :  { %v6761_v9 = vld [vmem:[%s9401_s0 + $0x168] ss:$36 sps:$4 sm:$0xff]   ;;  %v6762_v10 = vld [vmem:[%s9401_s0 + $0x178] ss:$36 sps:$4 sm:$0xff]  }
  0x1a   :  { %2888 = vmatpush1.bf16.msra.mxu1 %v6701_v13  ;;  %v6766_v12 = vld [vmem:[%s9401_s0 + $0x1c4] ss:$36 sps:$4 sm:$0xff]   ;;  %v6820_v13 = vld [vmem:[%s9400_s1 + $0x1d0] sm:$0xff]   ;;  %v6776_v21 = vld [vmem:[%s9401_s0 + $0x1f8] ss:$36 sps:$4 sm:$0xff]  }
  0x1b   :  { %3608 = vmatpush1.bf16.msra.mxu0 %v6702_v14  ;;  %2889 = vmatprep.subr.bf16.mxu1 %v7307_v0  ;;  %v6859_v14 = vld [vmem:[%s9400_s1 + $0xb8] sm:$0xff]   ;;  %v6774_v19 = vld [vmem:[%s9401_s0 + $0x20c] ss:$36 sps:$4 sm:$0xff]  }
  0x1c   :  { %3609 = vmatprep.subr.bf16.mxu0 %v7307_v0 }
  0x1e   :  { %2890 = vmatpush1.bf16.msra.mxu1 %v6703_v15  ;;  %v6828_v15 = vld [vmem:[%s9400_s1 + $0x1d8] sm:$0xff]  }
  0x1f   :  { %3610 = vmatpush1.bf16.msra.mxu0 %v6704_v16  ;;  %2891 = vmatprep.subr.bf16.mxu1 %v7307_v0  ;;  %v6768_v16 = vld [vmem:[%s9401_s0 + $0x1b0] ss:$36 sps:$4 sm:$0xff]  }
  0x20   :  { %3611 = vmatprep.subr.bf16.mxu0 %v7307_v0 }
  0x22   :  { %2892 = vmatpush1.bf16.msra.mxu1 %v6705_v17  ;;  %v6770_v17 = vld [vmem:[%s9401_s0 + $0x1c0] ss:$36 sps:$4 sm:$0xff]  }
  0x23   :  { %3612 = vmatpush1.bf16.msra.mxu0 %v6706_v18  ;;  %2893 = vmatprep.subr.bf16.mxu1 %v7307_v0  ;;  %v6772_v18 = vld [vmem:[%s9401_s0 + $0x1fc] ss:$36 sps:$4 sm:$0xff]  }
  0x24   :  { %3613 = vmatprep.subr.bf16.mxu0 %v7307_v0 }
  0x26   :  { %2894 = vmatpush1.bf16.msra.mxu1 %v6707_v20  ;;  %v6839_v20 = vld [vmem:[%s9400_s1 + $0x1e0] sm:$0xff]  }
  0x27   :  { %3614 = vmatpush1.bf16.msra.mxu0 %v6708_v22  ;;  %2895 = vmatprep.subr.bf16.mxu1 %v7307_v0  ;;  %v6849_v22 = vld [vmem:[%s9400_s1 + $0x1e8] sm:$0xff]  }
  0x28   :  { %3615 = vmatprep.subr.bf16.mxu0 %v7307_v0 }
  0x2a   :  { %2896 = vmatpush1.bf16.msra.mxu1 %v6709_v23  ;;  %v6878_v23 = vld [vmem:[%s9400_s1 + $0xc0] sm:$0xff]  }
  0x2b   :  { %3616 = vmatpush1.bf16.msra.mxu0 %v6710_v24  ;;  %2897 = vmatprep.subr.bf16.mxu1 %v7307_v0  ;;  %v6777_v24 = vld [vmem:[%s9401_s0 + $0x208] ss:$36 sps:$4 sm:$0xff]  }
  0x2c   :  { %3617 = vmatprep.subr.bf16.mxu0 %v7307_v0 }
  0x2e   :  { %2898 = vmatpush1.bf16.msra.mxu1 %v6711_v25  ;;  %v6778_v25 = vld [vmem:[%s9401_s0 + $0x244] ss:$36 sps:$4 sm:$0xff]  }
  0x2f   :  { %3618 = vmatpush1.bf16.msra.mxu0 %v6712_v26  ;;  %2899 = vmatprep.subr.bf16.mxu1 %v7307_v0  ;;  %v6780_v26 = vld [vmem:[%s9401_s0 + $0x254] ss:$36 sps:$4 sm:$0xff]  }
  0x30   :  { %3619 = vmatprep.subr.bf16.mxu0 %v7307_v0 }
  0x32   :  { %2900 = vmatpush1.bf16.msra.mxu1 %v6713_v27  ;;  %v6856_v27 = vld [vmem:[%s9400_s1 + $0x1f0] sm:$0xff]  }
  0x33   :  { %3620 = vmatpush1.bf16.msra.mxu0 %v6714_v28  ;;  %2901 = vmatprep.subr.bf16.mxu1 %v7307_v0  ;;  %v6782_v28 = vld [vmem:[%s9401_s0 + $0x240] ss:$36 sps:$4 sm:$0xff]  }
  0x34   :  { %3621 = vmatprep.subr.bf16.mxu0 %v7307_v0 }
  0x36   :  { %2902 = vmatpush1.bf16.msra.mxu1 %v6715_v29  ;;  %v6868_v29 = vld [vmem:[%s9400_s1 + $0x1f8] sm:$0xff]  }
  0x37   :  { %3622 = vmatpush1.bf16.msra.mxu0 %v6716_v30  ;;  %2903 = vmatprep.subr.bf16.mxu1 %v7307_v0  ;;  %v6783_v30 = vld [vmem:[%s9401_s0 + $0x250] ss:$36 sps:$4 sm:$0xff]  }
  0x38   :  { %3623 = vmatprep.subr.bf16.mxu0 %v7307_v0 }
  0x3a   :  { %2904 = vmatpush1.bf16.msra.mxu1 %v6717_v31  ;;  %v6786_v31 = vld [vmem:[%s9401_s0 + $0x28c] ss:$36 sps:$4 sm:$0xff]  }
  0x3b   :  { %3624 = vmatpush1.bf16.msra.mxu0 %v6718_v32  ;;  %2905 = vmatprep.subr.bf16.mxu1 %v7307_v0  ;;  %v6788_v32 = vld [vmem:[%s9401_s0 + $0x29c] ss:$36 sps:$4 sm:$0xff]  }
  0x3c   :  { %3625 = vmatprep.subr.bf16.mxu0 %v7307_v0 }
  0x3e   :  { %2906 = vmatpush1.bf16.msra.mxu1 %v6719_v33  ;;  %v7308_v33 = vmov 0.0  }
  0x3f   :  { %3626 = vmatpush1.bf16.msra.mxu0 %v6720_v34  ;;  %3235 = vmatprep.subr.bf16.mxu1 %v7307_v0  ;;  %v6896_v34 = vld [vmem:[%s9400_s1 + $0xc8] sm:$0xff]  }
  0x40   :  { %3955 = vmatprep.subr.bf16.mxu0 %v7307_v0 }
  0x41   :  { %2908 = vmatmul.mubr.bf16.vlgmr.msra.gmra.mrb[0].mxu1 %v6721_v35  ;;  %v6790_v35 = vld [vmem:[%s9401_s0 + $0x288] ss:$36 sps:$4 sm:$0xff]  }
  0x42   :  { %3628 = vmatmul.mubr.bf16.vlgmr.msra.gmra.mrb[0].mxu0 %v6724_v36  ;;  %2915 = vmatprep.mubr.bf16.mxu1 %v6728_v38  ;;  %v6791_v36 = vld [vmem:[%s9401_s0 + $0x298] ss:$36 sps:$4 sm:$0xff]   ;;  %v6795_v38 = vld [vmem:[%s9401_s0 + $0x2e4] ss:$36 sps:$4 sm:$0xff]  }
  0x43   :  { %3956 = vmatpush1.bf16.msra.mxu0 %v6727_v37  ;;  %3236 = vmatpush1.bf16.msra.mxu1 %v6730_v39  ;;  %v6793_v37 = vld [vmem:[%s9401_s0 + $0x2d4] ss:$36 sps:$4 sm:$0xff]  }
  0x44   :  { %3635 = vmatprep.mubr.bf16.mxu0 %v6731_v40  ;;  %3957 = vmatprep.subr.bf16.mxu0 %v7307_v0  ;;  %v6797_v39 = vld [vmem:[%s9401_s0 + $0x2d0] ss:$36 sps:$4 sm:$0xff]   ;;  %v6798_v40 = vld [vmem:[%s9401_s0 + $0x2e0] ss:$36 sps:$4 sm:$0xff]  }
  0x45   :  { %3237 = vmatprep.subr.bf16.mxu1 %v7307_v0 }
  0x47   :  { %3958 = vmatpush1.bf16.msra.mxu0 %v6735_v41  ;;  %3238 = vmatpush1.bf16.msra.mxu1 %v6749_v42  ;;  %v6800_v41 = vld [vmem:[%s9401_s0 + $0x31c] ss:$36 sps:$4 sm:$0xff]   ;;  %v6802_v42 = vld [vmem:[%s9401_s0 + $0x32c] ss:$36 sps:$4 sm:$0xff]  }
  0x48   :  { %3959 = vmatprep.subr.bf16.mxu0 %v7307_v0  ;;  %3239 = vmatprep.subr.bf16.mxu1 %v7307_v0 }
  0x49   :  { %2916 = vmatmul.mubr.bf16.gmra.mrb[4].mxu1 %v6733_v43  ;;  %v6911_v43 = vld [vmem:[%s9400_s1 + $0xd0] sm:$0xff]  }
  0x4a   :  { %3636 = vmatmul.mubr.bf16.gmra.mrb[4].mxu0 %v6734_v44  ;;  %2923 = vmatprep.mubr.bf16.mxu1 %v6736_v45  ;;  %v6804_v44 = vld [vmem:[%s9401_s0 + $0x318] ss:$36 sps:$4 sm:$0xff]   ;;  %v6805_v45 = vld [vmem:[%s9401_s0 + $0x328] ss:$36 sps:$4 sm:$0xff]  }
  0x4b   :  { %3643 = vmatprep.mubr.bf16.mxu0 %v6738_v46  ;;  %3960 = vmatpush1.bf16.msra.mxu0 %v6742_v47  ;;  %v6807_v46 = vld [vmem:[%s9401_s0 + $0x364] ss:$36 sps:$4 sm:$0xff]   ;;  %v6809_v47 = vld [vmem:[%s9401_s0 + $0x374] ss:$36 sps:$4 sm:$0xff]  }
  0x4c   :  { %3961 = vmatprep.subr.bf16.mxu0 %v7307_v0  ;;  %3240 = vmatpush1.bf16.msra.mxu1 %v6769_v48  ;;  %v6811_v48 = vld [vmem:[%s9401_s0 + $0x360] ss:$36 sps:$4 sm:$0xff]  }
  0x4d   :  { %3241 = vmatprep.subr.bf16.mxu1 %v7307_v0 }
  0x4f   :  { %3962 = vmatpush1.bf16.msra.mxu0 %v6756_v49  ;;  %v6812_v49 = vld [vmem:[%s9401_s0 + $0x370] ss:$36 sps:$4 sm:$0xff]  }
  0x50   :  { %3963 = vmatprep.subr.bf16.mxu0 %v7307_v0  ;;  %3242 = vmatpush1.bf16.msra.mxu1 %v6785_v52  ;;  %v6818_v52 = vld [vmem:[%s9401_s0 + $0x3a8] ss:$36 sps:$4 sm:$0xff]  }
  0x51   :  { %2924 = vmatmul.mubr.bf16.gmra.mrb[8].mxu1 %v6740_v50  ;;  %3243 = vmatprep.subr.bf16.mxu1 %v7307_v0  ;;  %v6814_v50 = vld [vmem:[%s9401_s0 + $0x3ac] ss:$36 sps:$4 sm:$0xff]  }
  0x52   :  { %3644 = vmatmul.mubr.bf16.gmra.mrb[8].mxu0 %v6741_v51  ;;  %2931 = vmatprep.mubr.bf16.mxu1 %v6743_v53  ;;  %v6816_v51 = vld [vmem:[%s9401_s0 + $0x3bc] ss:$36 sps:$4 sm:$0xff]  }
  0x53   :  { %3651 = vmatprep.mubr.bf16.mxu0 %v6745_v54  ;;  %3964 = vmatpush1.bf16.msra.mxu0 %v6763_v55  ;;  %v6819_v53 = vld [vmem:[%s9401_s0 + $0x3b8] ss:$36 sps:$4 sm:$0xff]   ;;  %v6824_v55 = vld [vmem:[%s9401_s0 + $0x404] ss:$36 sps:$4 sm:$0xff]  }
  0x54   :  { %3965 = vmatprep.subr.bf16.mxu0 %v7307_v0  ;;  %3244 = vmatpush1.bf16.msra.mxu1 %v6806_v56  ;;  %v6822_v54 = vld [vmem:[%s9401_s0 + $0x3f4] ss:$36 sps:$4 sm:$0xff]  }
  0x55   :  { %3245 = vmatprep.subr.bf16.mxu1 %v7307_v0  ;;  %v6930_v56 = vld [vmem:[%s9400_s1 + $0xd8] sm:$0xff]  }
  0x57   :  { %3966 = vmatpush1.bf16.msra.mxu0 %v6771_v58  ;;  %v6827_v58 = vld [vmem:[%s9401_s0 + $0x400] ss:$36 sps:$4 sm:$0xff]  }
  0x58   :  { %3967 = vmatprep.subr.bf16.mxu0 %v7307_v0  ;;  %3246 = vmatpush1.bf16.msra.mxu1 %v6821_v62  ;;  %v6834_v62 = vld [vmem:[%s9401_s0 + $0x448] ss:$36 sps:$4 sm:$0xff]  }
  0x59   :  { %2932 = vmatmul.mubr.bf16.gmra.mrb[12].mxu1 %v6747_v57  ;;  %3247 = vmatprep.subr.bf16.mxu1 %v7307_v0  ;;  %v6826_v57 = vld [vmem:[%s9401_s0 + $0x3f0] ss:$36 sps:$4 sm:$0xff]  }
  0x5a   :  { %3652 = vmatmul.mubr.bf16.gmra.mrb[12].mxu0 %v6748_v59  ;;  %2939 = vmatprep.mubr.bf16.mxu1 %v6750_v60  ;;  %v6829_v59 = vld [vmem:[%s9401_s0 + $0x43c] ss:$36 sps:$4 sm:$0xff]   ;;  %v6831_v60 = vld [vmem:[%s9401_s0 + $0x44c] ss:$36 sps:$4 sm:$0xff]  }
  0x5b   :  { %3659 = vmatprep.mubr.bf16.mxu0 %v6752_v61  ;;  %3968 = vmatpush1.bf16.msra.mxu0 %v6784_v63  ;;  %v6833_v61 = vld [vmem:[%s9401_s0 + $0x438] ss:$36 sps:$4 sm:$0xff]   ;;  %v6835_v63 = vld [vmem:[%s9401_s0 + $0x484] ss:$36 sps:$4 sm:$0xff]  }
  0x5c   :  { %3969 = vmatprep.subr.bf16.mxu0 %v7307_v0  ;;  %3248 = vmatpush1.bf16.msra.mxu1 %v6842_v7  ;;  %v6847_v7 = vld [vmem:[%s9401_s0 + $0x4c8] ss:$36 sps:$4 sm:$0xff]  }
  0x5d   :  { %3249 = vmatprep.subr.bf16.mxu1 %v7307_v0 }
  0x5f   :  { %3970 = vmatpush1.bf16.msra.mxu0 %v6792_v1  ;;  %v6837_v1 = vld [vmem:[%s9401_s0 + $0x494] ss:$36 sps:$4 sm:$0xff]  }
  0x60   :  { %3971 = vmatprep.subr.bf16.mxu0 %v7307_v0  ;;  %3250 = vmatpush1.bf16.msra.mxu1 %v6859_v14  ;;  %v6860_v14 = vld [vmem:[%s9401_s0 + $0x56c] ss:$36 sps:$4 sm:$0xff]  }
  0x61   :  { %2940 = vmatmul.mubr.bf16.gmra.mrb[16].mxu1 %v6754_v2  ;;  %3251 = vmatprep.subr.bf16.mxu1 %v7307_v0  ;;  %v6944_v2 = vld [vmem:[%s9400_s1 + $0xe0] sm:$0xff]  }
  0x62   :  { %3660 = vmatmul.mubr.bf16.gmra.mrb[16].mxu0 %v6755_v3  ;;  %2947 = vmatprep.mubr.bf16.mxu1 %v6757_v4  ;;  %v6840_v3 = vld [vmem:[%s9401_s0 + $0x480] ss:$36 sps:$4 sm:$0xff]   ;;  %v6841_v4 = vld [vmem:[%s9401_s0 + $0x490] ss:$36 sps:$4 sm:$0xff]  }
  0x63   :  { %3667 = vmatprep.mubr.bf16.mxu0 %v6759_v5  ;;  %3972 = vmatpush1.bf16.msra.mxu0 %v6799_v6  ;;  %v6843_v5 = vld [vmem:[%s9401_s0 + $0x4cc] ss:$36 sps:$4 sm:$0xff]   ;;  %v6845_v6 = vld [vmem:[%s9401_s0 + $0x4dc] ss:$36 sps:$4 sm:$0xff]  }
  0x64   :  { %3973 = vmatprep.subr.bf16.mxu0 %v7307_v0  ;;  %3252 = vmatpush1.bf16.msra.mxu1 %v6878_v23  ;;  %v6875_v23 = vld [vmem:[%s9401_s0 + $0x1c] ss:$36 sps:$4 sm:$0xff]  }
  0x65   :  { %3253 = vmatprep.subr.bf16.mxu1 %v7307_v0 }
  0x67   :  { %3974 = vmatpush1.bf16.msra.mxu0 %v6813_v8  ;;  %v6848_v8 = vld [vmem:[%s9401_s0 + $0x4d8] ss:$36 sps:$4 sm:$0xff]  }
  0x68   :  { %3975 = vmatprep.subr.bf16.mxu0 %v7307_v0  ;;  %3254 = vmatpush1.bf16.msra.mxu1 %v6896_v34  ;;  %v6885_v34 = vld [vmem:[%s9401_s0 + $0x67c] ss:$36 sps:$4 sm:$0xff]  }
  0x69   :  { %2948 = vmatmul.mubr.bf16.gmra.mrb[20].mxu1 %v6761_v9  ;;  %3255 = vmatprep.subr.bf16.mxu1 %v7307_v0  ;;  %v6850_v9 = vld [vmem:[%s9401_s0 + $0x514] ss:$36 sps:$4 sm:$0xff]  }
  0x6a   :  { %3668 = vmatmul.mubr.bf16.gmra.mrb[20].mxu0 %v6762_v10  ;;  %2955 = vmatprep.mubr.bf16.mxu1 %v6764_v11  ;;  %v6852_v10 = vld [vmem:[%s9401_s0 + $0x524] ss:$36 sps:$4 sm:$0xff]   ;;  %v6854_v11 = vld [vmem:[%s9401_s0 + $0x510] ss:$36 sps:$4 sm:$0xff]  }
  0x6b   :  { %3675 = vmatprep.mubr.bf16.mxu0 %v6766_v12  ;;  %3976 = vmatpush1.bf16.msra.mxu0 %v6820_v13  ;;  %v6855_v12 = vld [vmem:[%s9401_s0 + $0x520] ss:$36 sps:$4 sm:$0xff]  }
  0x6c   :  { %3977 = vmatprep.subr.bf16.mxu0 %v7307_v0  ;;  %3256 = vmatpush1.bf16.msra.mxu1 %v6911_v43  ;;  %v6857_v13 = vld [vmem:[%s9401_s0 + $0x55c] ss:$36 sps:$4 sm:$0xff]  }
  0x6d   :  { %3257 = vmatprep.subr.bf16.mxu1 %v7307_v0  ;;  %v6895_v43 = vld [vmem:[%s9401_s0 + $0x6c0] ss:$36 sps:$4 sm:$0xff]  }
  0x6f   :  { %3978 = vmatpush1.bf16.msra.mxu0 %v6828_v15  ;;  %v6963_v15 = vld [vmem:[%s9400_s1 + $0xe8] sm:$0xff]  }
  0x70   :  { %3979 = vmatprep.subr.bf16.mxu0 %v7307_v0  ;;  %3258 = vmatpush1.bf16.msra.mxu1 %v6930_v56  ;;  %v6916_v56 = vld [vmem:[%s9401_s0 + $0x798] ss:$36 sps:$4 sm:$0xff]  }
  0x71   :  { %2956 = vmatmul.mubr.bf16.gmra.mrb[24].mxu1 %v6768_v16  ;;  %3259 = vmatprep.subr.bf16.mxu1 %v7307_v0  ;;  %v6862_v16 = vld [vmem:[%s9401_s0 + $0x558] ss:$36 sps:$4 sm:$0xff]  }
  0x72   :  { %3676 = vmatmul.mubr.bf16.gmra.mrb[24].mxu0 %v6770_v17  ;;  %2963 = vmatprep.mubr.bf16.mxu1 %v6772_v18  ;;  %v6863_v17 = vld [vmem:[%s9401_s0 + $0x568] ss:$36 sps:$4 sm:$0xff]  }
  0x73   :  { %3683 = vmatprep.mubr.bf16.mxu0 %v6774_v19  ;;  %3980 = vmatpush1.bf16.msra.mxu0 %v6839_v20  ;;  %v6864_v18 = vld [vmem:[%s9401_s0 + $0x5a4] ss:$36 sps:$4 sm:$0xff]   ;;  %v6866_v19 = vld [vmem:[%s9401_s0 + $0x5b4] ss:$36 sps:$4 sm:$0xff]  }
  0x74   :  { %3981 = vmatprep.subr.bf16.mxu0 %v7307_v0  ;;  %3260 = vmatpush1.bf16.msra.mxu1 %v6944_v2  ;;  %v6869_v20 = vld [vmem:[%s9401_s0 + $0x5a0] ss:$36 sps:$4 sm:$0xff]   ;;  %v6929_v2 = vld [vmem:[%s9401_s0 + $0x258] ss:$36 sps:$4 sm:$0xff]  }
  0x75   :  { %3261 = vmatprep.subr.bf16.mxu1 %v7307_v0 }
  0x77   :  { %3982 = vmatpush1.bf16.msra.mxu0 %v6849_v22  ;;  %v6871_v22 = vld [vmem:[%s9401_s0 + $0x5ec] ss:$36 sps:$4 sm:$0xff]  }
  0x78   :  { %3983 = vmatprep.subr.bf16.mxu0 %v7307_v0  ;;  %3262 = vmatpush1.bf16.msra.mxu1 %v6963_v15  ;;  %v6950_v15 = vld [vmem:[%s9401_s0 + $0x330] ss:$36 sps:$4 sm:$0xff]  }
  0x79   :  { %2964 = vmatmul.mubr.bf16.gmra.mrb[28].mxu1 %v6776_v21  ;;  %3263 = vmatprep.subr.bf16.mxu1 %v7307_v0  ;;  %v6870_v21 = vld [vmem:[%s9401_s0 + $0x5b0] ss:$36 sps:$4 sm:$0xff]  }
  0x7a   :  { %3684 = vmatmul.mubr.bf16.gmra.mrb[28].mxu0 %v6777_v24  ;;  %2971 = vmatprep.mubr.bf16.mxu1 %v6778_v25  ;;  %v6977_v24 = vld [vmem:[%s9400_s1 + $0xf0] sm:$0xff]   ;;  %v6876_v25 = vld [vmem:[%s9401_s0 + $0x5e8] ss:$36 sps:$4 sm:$0xff]  }
  0x7b   :  { %3691 = vmatprep.mubr.bf16.mxu0 %v6780_v26  ;;  %3984 = vmatpush1.bf16.msra.mxu0 %v6856_v27  ;;  %v6873_v26 = vld [vmem:[%s9401_s0 + $0x18] ss:$36 sps:$4 sm:$0xff]  }
  0x7c   :  { %3985 = vmatprep.subr.bf16.mxu0 %v7307_v0  ;;  %v6879_v27 = vld [vmem:[%s9401_s0 + $0x634] ss:$36 sps:$4 sm:$0xff]   ;;  %3264 = vmatpush1.bf16.msra.mxu1 %v6977_v24  ;;  %v6964_v24 = vld [vmem:[%s9401_s0 + $0x9dc] ss:$36 sps:$4 sm:$0xff]  }
  0x7d   :  { %3265 = vmatprep.subr.bf16.mxu1 %v7307_v0 }
  0x7f   :  { %3986 = vmatpush1.bf16.msra.mxu0 %v6868_v29  ;;  %v6881_v29 = vld [vmem:[%s9401_s0 + $0x64] ss:$36 sps:$4 sm:$0xff]  }
  0x80   :  { %5820 = vmatprep.subr.bf16.mxu0 %v7308_v33 }
  0x81   :  { %2972 = vmatmul.mubr.bf16.gmra.mrb[32].mxu1 %v6782_v28  ;;  %v6877_v28 = vld [vmem:[%s9400_s1 + $0x200] sm:$0xff]  }
  0x82   :  { %3692 = vmatmul.mubr.bf16.gmra.mrb[32].mxu0 %v6783_v30  ;;  %2979 = vmatprep.mubr.bf16.mxu1 %v6786_v31  ;;  %v6883_v30 = vld [vmem:[%s9401_s0 + $0x630] ss:$36 sps:$4 sm:$0xff]   ;;  %v6910_v31 = vld [vmem:[%s9400_s1 + $0x208] sm:$0xff]  }
  0x83   :  { %3699 = vmatprep.mubr.bf16.mxu0 %v6788_v32  ;;  %v6884_v32 = vld [vmem:[%s9401_s0 + $0x60] ss:$36 sps:$4 sm:$0xff]  }
  0x89   :  { %2980 = vmatmul.mubr.bf16.gmra.mrb[36].mxu1 %v6790_v35  ;;  %v6887_v35 = vld [vmem:[%s9401_s0 + $0xac] ss:$36 sps:$4 sm:$0xff]  }
  0x8a   :  { %3700 = vmatmul.mubr.bf16.gmra.mrb[36].mxu0 %v6791_v36  ;;  %2987 = vmatprep.mubr.bf16.mxu1 %v6793_v37  ;;  %v6943_v36 = vld [vmem:[%s9400_s1 + $0x210] sm:$0xff]   ;;  %v6889_v37 = vld [vmem:[%s9401_s0 + $0x678] ss:$36 sps:$4 sm:$0xff]  }
  0x8b   :  { %3707 = vmatprep.mubr.bf16.mxu0 %v6795_v38  ;;  %v6976_v38 = vld [vmem:[%s9400_s1 + $0x218] sm:$0xff]  }
  0x91   :  { %2988 = vmatmul.mubr.bf16.gmra.mrb[40].mxu1 %v6797_v39  ;;  %v6890_v39 = vld [vmem:[%s9401_s0 + $0xa8] ss:$36 sps:$4 sm:$0xff]  }
  0x92   :  { %3708 = vmatmul.mubr.bf16.gmra.mrb[40].mxu0 %v6798_v40  ;;  %2995 = vmatprep.mubr.bf16.mxu1 %v6800_v41  ;;  %v6891_v40 = vld [vmem:[%s9401_s0 + $0x6c4] ss:$36 sps:$4 sm:$0xff]   ;;  %v6893_v41 = vld [vmem:[%s9401_s0 + $0xf4] ss:$36 sps:$4 sm:$0xff]  }
  0x93   :  { %3715 = vmatprep.mubr.bf16.mxu0 %v6802_v42  ;;  %v6996_v42 = vld [vmem:[%s9400_s1 + $0xf8] sm:$0xff]  }
  0x94   :  { %3266 = vmatpush1.bf16.msra.mxu1 %v6996_v42  ;;  %v6990_v42 = vld [vmem:[%s9401_s0 + $0xafc] ss:$36 sps:$4 sm:$0xff]  }
  0x95   :  { %6000 = vmatprep.subr.bf16.mxu1 %v7307_v0 }
  0x99   :  { %2996 = vmatmul.mubr.bf16.gmra.mrb[44].mxu1 %v6804_v44  ;;  %v6897_v44 = vld [vmem:[%s9401_s0 + $0xf0] ss:$36 sps:$4 sm:$0xff]  }
  0x9a   :  { %3716 = vmatmul.mubr.bf16.gmra.mrb[44].mxu0 %v6805_v45  ;;  %3003 = vmatprep.mubr.bf16.mxu1 %v6807_v46  ;;  %v6898_v45 = vld [vmem:[%s9401_s0 + $0x70c] ss:$36 sps:$4 sm:$0xff]   ;;  %v6900_v46 = vld [vmem:[%s9401_s0 + $0x13c] ss:$36 sps:$4 sm:$0xff]  }
  0x9b   :  { %3723 = vmatprep.mubr.bf16.mxu0 %v6809_v47  ;;  %v6902_v47 = vld [vmem:[%s9401_s0 + $0x708] ss:$36 sps:$4 sm:$0xff]  }
  0xa1   :  { %3004 = vmatmul.mubr.bf16.gmra.mrb[48].mxu1 %v6811_v48  ;;  %v6903_v48 = vld [vmem:[%s9401_s0 + $0x138] ss:$36 sps:$4 sm:$0xff]  }
  0xa2   :  { %3724 = vmatmul.mubr.bf16.gmra.mrb[48].mxu0 %v6812_v49  ;;  %3011 = vmatprep.mubr.bf16.mxu1 %v6814_v50  ;;  %v6904_v49 = vld [vmem:[%s9401_s0 + $0x754] ss:$36 sps:$4 sm:$0xff]   ;;  %v6906_v50 = vld [vmem:[%s9401_s0 + $0x184] ss:$36 sps:$4 sm:$0xff]  }
  0xa3   :  { %3731 = vmatprep.mubr.bf16.mxu0 %v6816_v51  ;;  %v7008_v51 = vld [vmem:[%s9400_s1 + $0x220] sm:$0xff]  }
  0xa9   :  { %3012 = vmatmul.mubr.bf16.gmra.mrb[52].mxu1 %v6818_v52  ;;  %v6908_v52 = vld [vmem:[%s9401_s0 + $0x750] ss:$36 sps:$4 sm:$0xff]  }
  0xaa   :  { %3732 = vmatmul.mubr.bf16.gmra.mrb[52].mxu0 %v6819_v53  ;;  %3019 = vmatprep.mubr.bf16.mxu1 %v6822_v54  ;;  %v6909_v53 = vld [vmem:[%s9401_s0 + $0x180] ss:$36 sps:$4 sm:$0xff]  }
  0xab   :  { %3739 = vmatprep.mubr.bf16.mxu0 %v6824_v55  ;;  %v6912_v54 = vld [vmem:[%s9401_s0 + $0x79c] ss:$36 sps:$4 sm:$0xff]   ;;  %v6914_v55 = vld [vmem:[%s9401_s0 + $0x1cc] ss:$36 sps:$4 sm:$0xff]  }
  0xb1   :  { %3020 = vmatmul.mubr.bf16.gmra.mrb[56].mxu1 %v6826_v57  ;;  %v6917_v57 = vld [vmem:[%s9401_s0 + $0x1c8] ss:$36 sps:$4 sm:$0xff]  }
  0xb2   :  { %3740 = vmatmul.mubr.bf16.gmra.mrb[56].mxu0 %v6827_v58  ;;  %3027 = vmatprep.mubr.bf16.mxu1 %v6829_v59  ;;  %v6918_v58 = vld [vmem:[%s9401_s0 + $0x7e4] ss:$36 sps:$4 sm:$0xff]   ;;  %v6920_v59 = vld [vmem:[%s9401_s0 + $0x214] ss:$36 sps:$4 sm:$0xff]  }
  0xb3   :  { %3747 = vmatprep.mubr.bf16.mxu0 %v6831_v60  ;;  %v6922_v60 = vld [vmem:[%s9401_s0 + $0x7e0] ss:$36 sps:$4 sm:$0xff]  }
  0xb9   :  { %3028 = vmatmul.mubr.bf16.gmra.mrb[60].mxu1 %v6833_v61  ;;  %v6923_v61 = vld [vmem:[%s9401_s0 + $0x210] ss:$36 sps:$4 sm:$0xff]  }
  0xba   :  { %3748 = vmatmul.mubr.bf16.gmra.mrb[60].mxu0 %v6834_v62  ;;  %3035 = vmatprep.mubr.bf16.mxu1 %v6835_v63  ;;  %v6924_v62 = vld [vmem:[%s9401_s0 + $0x82c] ss:$36 sps:$4 sm:$0xff]   ;;  %v6926_v63 = vld [vmem:[%s9401_s0 + $0x25c] ss:$36 sps:$4 sm:$0xff]  }
  0xbb   :  { %3755 = vmatprep.mubr.bf16.mxu0 %v6837_v1  ;;  %v6928_v1 = vld [vmem:[%s9401_s0 + $0x828] ss:$36 sps:$4 sm:$0xff]  }
  0xc1   :  { %3036 = vmatmul.mubr.bf16.gmra.mrb[64].mxu1 %v6840_v3  ;;  %v6931_v3 = vld [vmem:[%s9401_s0 + $0x874] ss:$36 sps:$4 sm:$0xff]  }
  0xc2   :  { %3756 = vmatmul.mubr.bf16.gmra.mrb[64].mxu0 %v6841_v4  ;;  %3043 = vmatprep.mubr.bf16.mxu1 %v6843_v5  ;;  %v6933_v4 = vld [vmem:[%s9401_s0 + $0x2a4] ss:$36 sps:$4 sm:$0xff]   ;;  %v6935_v5 = vld [vmem:[%s9401_s0 + $0x870] ss:$36 sps:$4 sm:$0xff]  }
  0xc3   :  { %3763 = vmatprep.mubr.bf16.mxu0 %v6845_v6  ;;  %v6936_v6 = vld [vmem:[%s9401_s0 + $0x2a0] ss:$36 sps:$4 sm:$0xff]  }
  0xc9   :  { %3044 = vmatmul.mubr.bf16.gmra.mrb[68].mxu1 %v6847_v7  ;;  %v6937_v7 = vld [vmem:[%s9401_s0 + $0x8bc] ss:$36 sps:$4 sm:$0xff]  }
  0xca   :  { %3764 = vmatmul.mubr.bf16.gmra.mrb[68].mxu0 %v6848_v8  ;;  %3051 = vmatprep.mubr.bf16.mxu1 %v6850_v9  ;;  %v6939_v8 = vld [vmem:[%s9401_s0 + $0x2ec] ss:$36 sps:$4 sm:$0xff]  }
  0xcb   :  { %3771 = vmatprep.mubr.bf16.mxu0 %v6852_v10  ;;  %v7039_v9 = vld [vmem:[%s9400_s1 + $0x228] sm:$0xff]   ;;  %v6941_v10 = vld [vmem:[%s9401_s0 + $0x8b8] ss:$36 sps:$4 sm:$0xff]  }
  0xd1   :  { %3052 = vmatmul.mubr.bf16.gmra.mrb[72].mxu1 %v6854_v11  ;;  %v6942_v11 = vld [vmem:[%s9401_s0 + $0x2e8] ss:$36 sps:$4 sm:$0xff]  }
  0xd2   :  { %3772 = vmatmul.mubr.bf16.gmra.mrb[72].mxu0 %v6855_v12  ;;  %3059 = vmatprep.mubr.bf16.mxu1 %v6857_v13  ;;  %v6945_v12 = vld [vmem:[%s9401_s0 + $0x904] ss:$36 sps:$4 sm:$0xff]   ;;  %v6947_v13 = vld [vmem:[%s9401_s0 + $0x334] ss:$36 sps:$4 sm:$0xff]  }
  0xd3   :  { %3779 = vmatprep.mubr.bf16.mxu0 %v6860_v14  ;;  %v6949_v14 = vld [vmem:[%s9401_s0 + $0x900] ss:$36 sps:$4 sm:$0xff]  }
  0xd9   :  { %3060 = vmatmul.mubr.bf16.gmra.mrb[76].mxu1 %v6862_v16  ;;  %v6951_v16 = vld [vmem:[%s9401_s0 + $0x94c] ss:$36 sps:$4 sm:$0xff]  }
  0xda   :  { %3780 = vmatmul.mubr.bf16.gmra.mrb[76].mxu0 %v6863_v17  ;;  %3067 = vmatprep.mubr.bf16.mxu1 %v6864_v18  ;;  %v6953_v17 = vld [vmem:[%s9401_s0 + $0x37c] ss:$36 sps:$4 sm:$0xff]   ;;  %v6955_v18 = vld [vmem:[%s9401_s0 + $0x948] ss:$36 sps:$4 sm:$0xff]  }
  0xdb   :  { %3787 = vmatprep.mubr.bf16.mxu0 %v6866_v19  ;;  %v6956_v19 = vld [vmem:[%s9401_s0 + $0x378] ss:$36 sps:$4 sm:$0xff]  }
  0xe1   :  { %3068 = vmatmul.mubr.bf16.gmra.mrb[80].mxu1 %v6869_v20  ;;  %v6957_v20 = vld [vmem:[%s9401_s0 + $0x994] ss:$36 sps:$4 sm:$0xff]  }
  0xe2   :  { %3788 = vmatmul.mubr.bf16.gmra.mrb[80].mxu0 %v6870_v21  ;;  %3075 = vmatprep.mubr.bf16.mxu1 %v6871_v22  ;;  %v6959_v21 = vld [vmem:[%s9401_s0 + $0x3c4] ss:$36 sps:$4 sm:$0xff]   ;;  %v6961_v22 = vld [vmem:[%s9401_s0 + $0x990] ss:$36 sps:$4 sm:$0xff]  }
  0xe3   :  { %3987 = vmatprep.mubr.bf16.mxu0 %v6875_v23  ;;  %v6962_v23 = vld [vmem:[%s9401_s0 + $0x3c0] ss:$36 sps:$4 sm:$0xff]  }
  0xe9   :  { %3076 = vmatmul.mubr.bf16.gmra.mrb[84].mxu1 %v6876_v25  ;;  %v6966_v25 = vld [vmem:[%s9401_s0 + $0x40c] ss:$36 sps:$4 sm:$0xff]  }
  0xea   :  { %3988 = vmatmul.mubr.bf16.vlgmr.msra.gmra.mrb[0].mxu0 %v6873_v26  ;;  %3083 = vmatprep.mubr.bf16.mxu1 %v6879_v27  ;;  %v6968_v26 = vld [vmem:[%s9401_s0 + $0x9d8] ss:$36 sps:$4 sm:$0xff]   ;;  %v6969_v27 = vld [vmem:[%s9401_s0 + $0x408] ss:$36 sps:$4 sm:$0xff]  }
  0xeb   :  { %5821 = vmatpush3.bf16.msra.mxu0 %v6877_v28  ;;  %3995 = vmatprep.mubr.bf16.mxu0 %v6881_v29  ;;  %v6970_v28 = vld [vmem:[%s9401_s0 + $0xa24] ss:$36 sps:$4 sm:$0xff]   ;;  %v6972_v29 = vld [vmem:[%s9401_s0 + $0x454] ss:$36 sps:$4 sm:$0xff]  }
  0xec   :  { %5822 = vmatprep.subr.bf16.mxu0 %v7308_v33 }
  0xef   :  { %5823 = vmatpush3.bf16.msra.mxu0 %v6910_v31  ;;  %v6974_v31 = vld [vmem:[%s9401_s0 + $0xa20] ss:$36 sps:$4 sm:$0xff]  }
  0xf0   :  { %5824 = vmatprep.subr.bf16.mxu0 %v7308_v33 }
  0xf1   :  { %3084 = vmatmul.mubr.bf16.gmra.mrb[88].mxu1 %v6883_v30  ;;  %v7074_v30 = vld [vmem:[%s9400_s1 + $0x230] sm:$0xff]  }
  0xf2   :  { %3996 = vmatmul.mubr.bf16.gmra.mrb[4].mxu0 %v6884_v32  ;;  %3091 = vmatprep.mubr.bf16.mxu1 %v6885_v34  ;;  %v6975_v32 = vld [vmem:[%s9401_s0 + $0x450] ss:$36 sps:$4 sm:$0xff]  }
  0xf3   :  { %4003 = vmatprep.mubr.bf16.mxu0 %v6887_v35  ;;  %5825 = vmatpush3.bf16.msra.mxu0 %v6943_v36  ;;  %v6978_v34 = vld [vmem:[%s9401_s0 + $0xa6c] ss:$36 sps:$4 sm:$0xff]   ;;  %v6980_v35 = vld [vmem:[%s9401_s0 + $0x49c] ss:$36 sps:$4 sm:$0xff]  }
  0xf4   :  { %5826 = vmatprep.subr.bf16.mxu0 %v7308_v33  ;;  %v6982_v36 = vld [vmem:[%s9401_s0 + $0xa68] ss:$36 sps:$4 sm:$0xff]  }
  0xf7   :  { %5827 = vmatpush3.bf16.msra.mxu0 %v6976_v38  ;;  %v6984_v38 = vld [vmem:[%s9401_s0 + $0xab4] ss:$36 sps:$4 sm:$0xff]  }
  0xf8   :  { %5828 = vmatprep.subr.bf16.mxu0 %v7308_v33 }
  0xf9   :  { %3092 = vmatmul.mubr.bf16.gmra.mrb[92].mxu1 %v6889_v37  ;;  %v6983_v37 = vld [vmem:[%s9401_s0 + $0x498] ss:$36 sps:$4 sm:$0xff]  }
  0xfa   :  { %4004 = vmatmul.mubr.bf16.gmra.mrb[8].mxu0 %v6890_v39  ;;  %3099 = vmatprep.mubr.bf16.mxu1 %v6891_v40  ;;  %v6986_v39 = vld [vmem:[%s9401_s0 + $0x4e4] ss:$36 sps:$4 sm:$0xff]   ;;  %v6988_v40 = vld [vmem:[%s9401_s0 + $0xab0] ss:$36 sps:$4 sm:$0xff]  }
  0xfb   :  { %4011 = vmatprep.mubr.bf16.mxu0 %v6893_v41  ;;  %5829 = vmatpush3.bf16.msra.mxu0 %v7008_v51  ;;  %v6989_v41 = vld [vmem:[%s9401_s0 + $0x4e0] ss:$36 sps:$4 sm:$0xff]   ;;  %v7004_v51 = vld [vmem:[%s9401_s0 + $0xc] ss:$36 sps:$4 sm:$0xff]  }
  0xfc   :  { %5830 = vmatprep.subr.bf16.mxu0 %v7308_v33 }
  0xff   :  { %5831 = vmatpush3.bf16.msra.mxu0 %v7039_v9  ;;  %v7026_v9 = vld [vmem:[%s9401_s0 + $0x690] ss:$36 sps:$4 sm:$0xff]  }
 0x100   :  { %5832 = vmatprep.subr.bf16.mxu0 %v7308_v33 }
 0x101   :  { %3100 = vmatmul.mubr.bf16.gmra.mrb[96].mxu1 %v6895_v43  ;;  %v6992_v43 = vld [vmem:[%s9401_s0 + $0x52c] ss:$36 sps:$4 sm:$0xff]  }
 0x102   :  { %4012 = vmatmul.mubr.bf16.gmra.mrb[12].mxu0 %v6897_v44  ;;  %3107 = vmatprep.mubr.bf16.mxu1 %v6898_v45  ;;  %v415_v44 = vld [vmem:[%s9401_s0 + $0xb40] sm:$0xff]  ;;  %v6994_v45 = vld [vmem:[%s9401_s0 + $0xaf8] ss:$36 sps:$4 sm:$0xff]  }
 0x103   :  { %4019 = vmatprep.mubr.bf16.mxu0 %v6900_v46  ;;  %5833 = vmatpush3.bf16.msra.mxu0 %v7074_v30  ;;  %v6995_v46 = vld [vmem:[%s9401_s0 + $0x528] ss:$36 sps:$4 sm:$0xff]   ;;  %v7301_v30 = vld [vmem:[%s9400_s1 + $0x158] sm:$0xff]  }
 0x104   :  { %5834 = vmatprep.subr.bf16.mxu0 %v7308_v33 }
 0x109   :  { %3108 = vmatmul.mubr.bf16.gmra.mrb[100].mxu1 %v6902_v47  ;;  %v5529_v47 = vcombine.high %v415_v44, %v415_v44 }
 0x10a   :  { %4020 = vmatmul.mubr.bf16.gmra.mrb[16].mxu0 %v6903_v48  ;;  %3115 = vmatprep.mubr.bf16.mxu1 %v6904_v49  ;;  %v6998_v48 = vld [vmem:[%s9401_s0 + $0x574] ss:$36 sps:$4 sm:$0xff]   ;;  %v5528_v49 = vcombine.low %v415_v44, %v415_v44  ;;  %v7063_v44 = vld [vmem:[%s9401_s0 + $0x840] ss:$36 sps:$4 sm:$0xff]  }
 0x10b   :  { %4027 = vmatprep.mubr.bf16.mxu0 %v6906_v50  ;;  %v7001_v50 = vld [vmem:[%s9401_s0 + $0x570] ss:$36 sps:$4 sm:$0xff]  }
 0x111   :  { %3116 = vmatmul.mubr.bf16.gmra.mrb[104].mxu1 %v6908_v52  ;;  %v7005_v52 = vld [vmem:[%s9401_s0 + $0x5bc] ss:$36 sps:$4 sm:$0xff]  }
 0x112   :  { %4028 = vmatmul.mubr.bf16.gmra.mrb[20].mxu0 %v6909_v53  ;;  %3123 = vmatprep.mubr.bf16.mxu1 %v6912_v54  ;;  %v7002_v53 = vld [vmem:[%s9401_s0 + $0x8] ss:$36 sps:$4 sm:$0xff]   ;;  %v7007_v54 = vld [vmem:[%s9401_s0 + $0x5b8] ss:$36 sps:$4 sm:$0xff]  }
 0x113   :  { %4035 = vmatprep.mubr.bf16.mxu0 %v6914_v55  ;;  %v7009_v55 = vld [vmem:[%s9401_s0 + $0x54] ss:$36 sps:$4 sm:$0xff]  }
 0x119   :  { %3124 = vmatmul.mubr.bf16.gmra.mrb[108].mxu1 %v6916_v56  ;;  %v7011_v56 = vld [vmem:[%s9401_s0 + $0x604] ss:$36 sps:$4 sm:$0xff]  }
 0x11a   :  { %4036 = vmatmul.mubr.bf16.gmra.mrb[24].mxu0 %v6917_v57  ;;  %3131 = vmatprep.mubr.bf16.mxu1 %v6918_v58  ;;  %v7107_v57 = vld [vmem:[%s9400_s1 + $0x238] sm:$0xff]   ;;  %v7290_v58 = vld [vmem:[%s9400_s1 + $0x100] sm:$0xff]  }
 0x11b   :  { %4043 = vmatprep.mubr.bf16.mxu0 %v6920_v59  ;;  %5835 = vmatpush3.bf16.msra.mxu0 %v7107_v57  ;;  %v7013_v59 = vld [vmem:[%s9401_s0 + $0x50] ss:$36 sps:$4 sm:$0xff]  }
 0x11c   :  { %v7083_v57 = vld [vmem:[%s9401_s0 + $0x3b4] ss:$36 sps:$4 sm:$0xff]  }
 0x121   :  { %3132 = vmatmul.mubr.bf16.gmra.mrb[112].mxu1 %v6922_v60  ;;  %v7014_v60 = vld [vmem:[%s9401_s0 + $0x600] ss:$36 sps:$4 sm:$0xff]  }
 0x122   :  { %4044 = vmatmul.mubr.bf16.gmra.mrb[28].mxu0 %v6923_v61  ;;  %3139 = vmatprep.mubr.bf16.mxu1 %v6924_v62  ;;  %v7015_v61 = vld [vmem:[%s9401_s0 + $0x9c] ss:$36 sps:$4 sm:$0xff]   ;;  %v7017_v62 = vld [vmem:[%s9401_s0 + $0x64c] ss:$36 sps:$4 sm:$0xff]  }
 0x123   :  { %4051 = vmatprep.mubr.bf16.mxu0 %v6926_v63  ;;  %v7291_v63 = vld [vmem:[%s9400_s1 + $0x108] sm:$0xff]  }
 0x129   :  { %3140 = vmatmul.mubr.bf16.gmra.mrb[116].mxu1 %v6928_v1  ;;  %v7292_v1 = vld [vmem:[%s9400_s1 + $0x110] sm:$0xff]  }
 0x12a   :  { %4052 = vmatmul.mubr.bf16.gmra.mrb[32].mxu0 %v6929_v2  ;;  %3147 = vmatprep.mubr.bf16.mxu1 %v6931_v3  ;;  %v7019_v2 = vld [vmem:[%s9401_s0 + $0x98] ss:$36 sps:$4 sm:$0xff]   ;;  %v7020_v3 = vld [vmem:[%s9401_s0 + $0x648] ss:$36 sps:$4 sm:$0xff]  }
 0x12b   :  { %4059 = vmatprep.mubr.bf16.mxu0 %v6933_v4  ;;  %v7021_v4 = vld [vmem:[%s9401_s0 + $0xe4] ss:$36 sps:$4 sm:$0xff]  }
 0x131   :  { %3148 = vmatmul.mubr.bf16.gmra.mrb[120].mxu1 %v6935_v5  ;;  %v7023_v5 = vld [vmem:[%s9401_s0 + $0x694] ss:$36 sps:$4 sm:$0xff]  }
 0x132   :  { %4060 = vmatmul.mubr.bf16.gmra.mrb[36].mxu0 %v6936_v6  ;;  %3155 = vmatprep.mubr.bf16.mxu1 %v6937_v7  ;;  %v7293_v6 = vld [vmem:[%s9400_s1 + $0x118] sm:$0xff]   ;;  %v7294_v7 = vld [vmem:[%s9400_s1 + $0x120] sm:$0xff]  }
 0x133   :  { %4067 = vmatprep.mubr.bf16.mxu0 %v6939_v8  ;;  %v7025_v8 = vld [vmem:[%s9401_s0 + $0xe0] ss:$36 sps:$4 sm:$0xff]  }
 0x139   :  { %3156 = vmatmul.mubr.bf16.gmra.mrb[124].mxu1 %v6941_v10  ;;  %v7027_v10 = vld [vmem:[%s9401_s0 + $0x12c] ss:$36 sps:$4 sm:$0xff]  }
 0x13a   :  { %4068 = vmatmul.mubr.bf16.gmra.mrb[40].mxu0 %v6942_v11  ;;  %3163 = vmatprep.mubr.bf16.mxu1 %v6945_v12  ;;  %v7029_v11 = vld [vmem:[%s9401_s0 + $0x6dc] ss:$36 sps:$4 sm:$0xff]   ;;  %v7295_v12 = vld [vmem:[%s9400_s1 + $0x128] sm:$0xff]  }
 0x13b   :  { %4075 = vmatprep.mubr.bf16.mxu0 %v6947_v13  ;;  %v7296_v13 = vld [vmem:[%s9400_s1 + $0x130] sm:$0xff]  }
 0x141   :  { %3164 = vmatmul.mubr.bf16.gmra.mrb[128].mxu1 %v6949_v14  ;;  %v7031_v14 = vld [vmem:[%s9401_s0 + $0x128] ss:$36 sps:$4 sm:$0xff]  }
 0x142   :  { %4076 = vmatmul.mubr.bf16.gmra.mrb[44].mxu0 %v6950_v15  ;;  %3171 = vmatprep.mubr.bf16.mxu1 %v6951_v16  ;;  %v7032_v15 = vld [vmem:[%s9401_s0 + $0x6d8] ss:$36 sps:$4 sm:$0xff]  }
 0x143   :  { %4083 = vmatprep.mubr.bf16.mxu0 %v6953_v17  ;;  %v7033_v16 = vld [vmem:[%s9401_s0 + $0x174] ss:$36 sps:$4 sm:$0xff]   ;;  %v7035_v17 = vld [vmem:[%s9401_s0 + $0x724] ss:$36 sps:$4 sm:$0xff]  }
 0x149   :  { %3172 = vmatmul.mubr.bf16.gmra.mrb[132].mxu1 %v6955_v18  ;;  %v7297_v18 = vld [vmem:[%s9400_s1 + $0x138] sm:$0xff]  }
 0x14a   :  { %4084 = vmatmul.mubr.bf16.gmra.mrb[48].mxu0 %v6956_v19  ;;  %3179 = vmatprep.mubr.bf16.mxu1 %v6957_v20  ;;  %v7298_v19 = vld [vmem:[%s9400_s1 + $0x140] sm:$0xff]   ;;  %v7037_v20 = vld [vmem:[%s9401_s0 + $0x170] ss:$36 sps:$4 sm:$0xff]  }
 0x14b   :  { %4091 = vmatprep.mubr.bf16.mxu0 %v6959_v21  ;;  %v7038_v21 = vld [vmem:[%s9401_s0 + $0x720] ss:$36 sps:$4 sm:$0xff]  }
 0x151   :  { %3180 = vmatmul.mubr.bf16.gmra.mrb[136].mxu1 %v6961_v22  ;;  %v7040_v22 = vld [vmem:[%s9401_s0 + $0x1bc] ss:$36 sps:$4 sm:$0xff]  }
 0x152   :  { %4092 = vmatmul.mubr.bf16.gmra.mrb[52].mxu0 %v6962_v23  ;;  %3187 = vmatprep.mubr.bf16.mxu1 %v6964_v24  ;;  %v7042_v23 = vld [vmem:[%s9401_s0 + $0x76c] ss:$36 sps:$4 sm:$0xff]  }
 0x153   :  { %4099 = vmatprep.mubr.bf16.mxu0 %v6966_v25  ;;  %v7299_v24 = vld [vmem:[%s9400_s1 + $0x148] sm:$0xff]   ;;  %v7300_v25 = vld [vmem:[%s9400_s1 + $0x150] sm:$0xff]  }
 0x159   :  { %3188 = vmatmul.mubr.bf16.gmra.mrb[140].mxu1 %v6968_v26  ;;  %v7044_v26 = vld [vmem:[%s9401_s0 + $0x1b8] ss:$36 sps:$4 sm:$0xff]  }
 0x15a   :  { %4100 = vmatmul.mubr.bf16.gmra.mrb[56].mxu0 %v6969_v27  ;;  %3195 = vmatprep.mubr.bf16.mxu1 %v6970_v28  ;;  %v7045_v27 = vld [vmem:[%s9401_s0 + $0x768] ss:$36 sps:$4 sm:$0xff]  }
 0x15b   :  { %4107 = vmatprep.mubr.bf16.mxu0 %v6972_v29  ;;  %v7046_v28 = vld [vmem:[%s9401_s0 + $0x204] ss:$36 sps:$4 sm:$0xff]   ;;  %v7048_v29 = vld [vmem:[%s9401_s0 + $0x7b4] ss:$36 sps:$4 sm:$0xff]  }
 0x161   :  { %3196 = vmatmul.mubr.bf16.gmra.mrb[144].mxu1 %v6974_v31  ;;  %v7302_v31 = vld [vmem:[%s9400_s1 + $0x160] sm:$0xff]  }
 0x162   :  { %4108 = vmatmul.mubr.bf16.gmra.mrb[60].mxu0 %v6975_v32  ;;  %3203 = vmatprep.mubr.bf16.mxu1 %v6978_v34  ;;  %v7050_v32 = vld [vmem:[%s9401_s0 + $0x200] ss:$36 sps:$4 sm:$0xff]   ;;  %v7051_v34 = vld [vmem:[%s9401_s0 + $0x7b0] ss:$36 sps:$4 sm:$0xff]  }
 0x163   :  { %4115 = vmatprep.mubr.bf16.mxu0 %v6980_v35  ;;  %v7052_v35 = vld [vmem:[%s9401_s0 + $0x24c] ss:$36 sps:$4 sm:$0xff]  }
 0x169   :  { %3204 = vmatmul.mubr.bf16.gmra.mrb[148].mxu1 %v6982_v36  ;;  %v7054_v36 = vld [vmem:[%s9401_s0 + $0x7fc] ss:$36 sps:$4 sm:$0xff]  }
 0x16a   :  { %4116 = vmatmul.mubr.bf16.gmra.mrb[64].mxu0 %v6983_v37  ;;  %3211 = vmatprep.mubr.bf16.mxu1 %v6984_v38  ;;  %v7303_v37 = vld [vmem:[%s9400_s1 + $0x168] sm:$0xff]   ;;  %v7304_v38 = vld [vmem:[%s9400_s1 + $0x170] sm:$0xff]  }
 0x16b   :  { %4123 = vmatprep.mubr.bf16.mxu0 %v6986_v39  ;;  %v7056_v39 = vld [vmem:[%s9401_s0 + $0x248] ss:$36 sps:$4 sm:$0xff]  }
 0x171   :  { %3212 = vmatmul.mubr.bf16.gmra.mrb[152].mxu1 %v6988_v40  ;;  %v7057_v40 = vld [vmem:[%s9401_s0 + $0x7f8] ss:$36 sps:$4 sm:$0xff]  }
 0x172   :  { %4124 = vmatmul.mubr.bf16.gmra.mrb[68].mxu0 %v6989_v41  ;;  %3219 = vmatprep.mubr.bf16.mxu1 %v6990_v42  ;;  %v7058_v41 = vld [vmem:[%s9401_s0 + $0x294] ss:$36 sps:$4 sm:$0xff]   ;;  %v7060_v42 = vld [vmem:[%s9401_s0 + $0x844] ss:$36 sps:$4 sm:$0xff]  }
 0x173   :  { %4131 = vmatprep.mubr.bf16.mxu0 %v6992_v43  ;;  %v7062_v43 = vld [vmem:[%s9401_s0 + $0x290] ss:$36 sps:$4 sm:$0xff]  }
 0x179   :  { %3220 = vmatmul.mubr.bf16.gmra.mrb[156].mxu1 %v6994_v45  ;;  %v7064_v45 = vld [vmem:[%s9401_s0 + $0x2dc] ss:$36 sps:$4 sm:$0xff]  }
 0x17a   :  { %4132 = vmatmul.mubr.bf16.gmra.mrb[72].mxu0 %v6995_v46  ;;  %3227 = vmatprep.mubr.bf16.mxu1 %v5529_v47  ;;  %v7066_v46 = vld [vmem:[%s9401_s0 + $0x88c] ss:$36 sps:$4 sm:$0xff]   ;;  %v7068_v47 = vld [vmem:[%s9401_s0 + $0x2d8] ss:$36 sps:$4 sm:$0xff]  }
 0x17b   :  { %4139 = vmatprep.mubr.bf16.mxu0 %v6998_v48  ;;  %v7069_v48 = vld [vmem:[%s9401_s0 + $0x888] ss:$36 sps:$4 sm:$0xff]  }
 0x181   :  { %3228 = vmatmul.mubr.bf16.gmra.mrb[160].mxu1 %v5528_v49  ;;  %v7070_v49 = vld [vmem:[%s9401_s0 + $0x324] ss:$36 sps:$4 sm:$0xff]  }
 0x182   :  { %4140 = vmatmul.mubr.bf16.gmra.mrb[76].mxu0 %v7001_v50  ;;  %3267 = vmatprep.mubr.bf16.mxu1 %v7004_v51  ;;  %v7072_v50 = vld [vmem:[%s9401_s0 + $0x8d4] ss:$36 sps:$4 sm:$0xff]   ;;  %v7075_v51 = vld [vmem:[%s9401_s0 + $0x320] ss:$36 sps:$4 sm:$0xff]  }
 0x183   :  { %4147 = vmatprep.mubr.bf16.mxu0 %v7005_v52  ;;  %v7076_v52 = vld [vmem:[%s9401_s0 + $0x8d0] ss:$36 sps:$4 sm:$0xff]  }
 0x189   :  { %3268 = vmatmul.mubr.bf16.vlgmr.msra.gmra.mrb[0].mxu1 %v7002_v53  ;;  %v7077_v53 = vld [vmem:[%s9401_s0 + $0x36c] ss:$36 sps:$4 sm:$0xff]  }
 0x18a   :  { %4148 = vmatmul.mubr.bf16.gmra.mrb[80].mxu0 %v7007_v54  ;;  %3275 = vmatprep.mubr.bf16.mxu1 %v7009_v55  ;;  %v7079_v54 = vld [vmem:[%s9401_s0 + $0x91c] ss:$36 sps:$4 sm:$0xff]   ;;  %v7081_v55 = vld [vmem:[%s9401_s0 + $0x368] ss:$36 sps:$4 sm:$0xff]  }
 0x18b   :  { %6016 = vmatpush1.bf16.msra.mxu1 %v7290_v58  ;;  %4155 = vmatprep.mubr.bf16.mxu0 %v7011_v56  ;;  %v7082_v56 = vld [vmem:[%s9401_s0 + $0x918] ss:$36 sps:$4 sm:$0xff]   ;;  %v7085_v58 = vld [vmem:[%s9401_s0 + $0x964] ss:$36 sps:$4 sm:$0xff]  }
 0x18c   :  { %6001 = vmatprep.subr.bf16.mxu1 %v7307_v0 }
 0x18f   :  { %6017 = vmatpush1.bf16.msra.mxu1 %v7291_v63  ;;  %v7093_v63 = vld [vmem:[%s9401_s0 + $0x3f8] ss:$36 sps:$4 sm:$0xff]  }
 0x190   :  { %6002 = vmatprep.subr.bf16.mxu1 %v7307_v0 }
 0x191   :  { %3276 = vmatmul.mubr.bf16.gmra.mrb[4].mxu1 %v7013_v59  ;;  %v7087_v59 = vld [vmem:[%s9401_s0 + $0x3b0] ss:$36 sps:$4 sm:$0xff]  }
 0x192   :  { %4156 = vmatmul.mubr.bf16.gmra.mrb[84].mxu0 %v7014_v60  ;;  %3283 = vmatprep.mubr.bf16.mxu1 %v7015_v61  ;;  %v7088_v60 = vld [vmem:[%s9401_s0 + $0x960] ss:$36 sps:$4 sm:$0xff]  }
 0x193   :  { %4163 = vmatprep.mubr.bf16.mxu0 %v7017_v62  ;;  %6018 = vmatpush1.bf16.msra.mxu1 %v7292_v1  ;;  %v7089_v61 = vld [vmem:[%s9401_s0 + $0x3fc] ss:$36 sps:$4 sm:$0xff]   ;;  %v7091_v62 = vld [vmem:[%s9401_s0 + $0x9ac] ss:$36 sps:$4 sm:$0xff]  }
 0x194   :  { %6003 = vmatprep.subr.bf16.mxu1 %v7307_v0  ;;  %v7094_v1 = vld [vmem:[%s9401_s0 + $0x9a8] ss:$36 sps:$4 sm:$0xff]  }
 0x197   :  { %6019 = vmatpush1.bf16.msra.mxu1 %v7293_v6  ;;  %v7101_v6 = vld [vmem:[%s9401_s0 + $0x48c] ss:$36 sps:$4 sm:$0xff]  }
 0x198   :  { %6004 = vmatprep.subr.bf16.mxu1 %v7307_v0 }
 0x199   :  { %3284 = vmatmul.mubr.bf16.gmra.mrb[8].mxu1 %v7019_v2  ;;  %v7095_v2 = vld [vmem:[%s9401_s0 + $0x444] ss:$36 sps:$4 sm:$0xff]  }
 0x19a   :  { %4164 = vmatmul.mubr.bf16.gmra.mrb[88].mxu0 %v7020_v3  ;;  %3291 = vmatprep.mubr.bf16.mxu1 %v7021_v4  ;;  %v7097_v3 = vld [vmem:[%s9401_s0 + $0x9f4] ss:$36 sps:$4 sm:$0xff]   ;;  %v7099_v4 = vld [vmem:[%s9401_s0 + $0x440] ss:$36 sps:$4 sm:$0xff]  }
 0x19b   :  { %4171 = vmatprep.mubr.bf16.mxu0 %v7023_v5  ;;  %6020 = vmatpush1.bf16.msra.mxu1 %v7294_v7  ;;  %v7100_v5 = vld [vmem:[%s9401_s0 + $0x9f0] ss:$36 sps:$4 sm:$0xff]   ;;  %v7103_v7 = vld [vmem:[%s9401_s0 + $0xa3c] ss:$36 sps:$4 sm:$0xff]  }
 0x19c   :  { %6005 = vmatprep.subr.bf16.mxu1 %v7307_v0 }
 0x19f   :  { %6021 = vmatpush1.bf16.msra.mxu1 %v7295_v12  ;;  %v7112_v12 = vld [vmem:[%s9401_s0 + $0x4d0] ss:$36 sps:$4 sm:$0xff]  }
 0x1a0   :  { %6006 = vmatprep.subr.bf16.mxu1 %v7307_v0 }
 0x1a1   :  { %3292 = vmatmul.mubr.bf16.gmra.mrb[12].mxu1 %v7025_v8  ;;  %v7105_v8 = vld [vmem:[%s9401_s0 + $0x488] ss:$36 sps:$4 sm:$0xff]  }
 0x1a2   :  { %4172 = vmatmul.mubr.bf16.gmra.mrb[92].mxu0 %v7026_v9  ;;  %3299 = vmatprep.mubr.bf16.mxu1 %v7027_v10  ;;  %v7106_v9 = vld [vmem:[%s9401_s0 + $0xa38] ss:$36 sps:$4 sm:$0xff]  }
 0x1a3   :  { %4179 = vmatprep.mubr.bf16.mxu0 %v7029_v11  ;;  %6022 = vmatpush1.bf16.msra.mxu1 %v7296_v13  ;;  %v7108_v10 = vld [vmem:[%s9401_s0 + $0x4d4] ss:$36 sps:$4 sm:$0xff]   ;;  %v7110_v11 = vld [vmem:[%s9401_s0 + $0xa84] ss:$36 sps:$4 sm:$0xff]  }
 0x1a4   :  { %6007 = vmatprep.subr.bf16.mxu1 %v7307_v0  ;;  %v7113_v13 = vld [vmem:[%s9401_s0 + $0xa80] ss:$36 sps:$4 sm:$0xff]  }
 0x1a7   :  { %6023 = vmatpush1.bf16.msra.mxu1 %v7297_v18  ;;  %v7120_v18 = vld [vmem:[%s9401_s0 + $0x564] ss:$36 sps:$4 sm:$0xff]  }
 0x1a8   :  { %6008 = vmatprep.subr.bf16.mxu1 %v7307_v0 }
 0x1a9   :  { %3300 = vmatmul.mubr.bf16.gmra.mrb[16].mxu1 %v7031_v14  ;;  %v7114_v14 = vld [vmem:[%s9401_s0 + $0x51c] ss:$36 sps:$4 sm:$0xff]  }
 0x1aa   :  { %4180 = vmatmul.mubr.bf16.gmra.mrb[96].mxu0 %v7032_v15  ;;  %3307 = vmatprep.mubr.bf16.mxu1 %v7033_v16  ;;  %v7116_v15 = vld [vmem:[%s9401_s0 + $0xacc] ss:$36 sps:$4 sm:$0xff]   ;;  %v7118_v16 = vld [vmem:[%s9401_s0 + $0x518] ss:$36 sps:$4 sm:$0xff]  }
 0x1ab   :  { %4187 = vmatprep.mubr.bf16.mxu0 %v7035_v17  ;;  %6024 = vmatpush1.bf16.msra.mxu1 %v7298_v19  ;;  %v7119_v17 = vld [vmem:[%s9401_s0 + $0xac8] ss:$36 sps:$4 sm:$0xff]   ;;  %v7122_v19 = vld [vmem:[%s9401_s0 + $0xb14] ss:$36 sps:$4 sm:$0xff]  }
 0x1ac   :  { %6009 = vmatprep.subr.bf16.mxu1 %v7307_v0 }
 0x1af   :  { %6025 = vmatpush1.bf16.msra.mxu1 %v7299_v24 }
 0x1b0   :  { %6010 = vmatprep.subr.bf16.mxu1 %v7307_v0 }
 0x1b1   :  { %3308 = vmatmul.mubr.bf16.gmra.mrb[20].mxu1 %v7037_v20  ;;  %v418_v20 = vld [vmem:[%s9401_s0 + $0xb58] sm:$0xff] }
 0x1b2   :  { %4188 = vmatmul.mubr.bf16.gmra.mrb[100].mxu0 %v7038_v21  ;;  %3315 = vmatprep.mubr.bf16.mxu1 %v7040_v22  ;;  %v7124_v21 = vld [vmem:[%s9401_s0 + $0x560] ss:$36 sps:$4 sm:$0xff]   ;;  %v7125_v22 = vld [vmem:[%s9401_s0 + $0xb10] ss:$36 sps:$4 sm:$0xff]   ;;  %v5535_v24 = vcombine.high %v418_v20, %v418_v20 }
 0x1b3   :  { %4195 = vmatprep.mubr.bf16.mxu0 %v7042_v23  ;;  %6026 = vmatpush1.bf16.msra.mxu1 %v7300_v25  ;;  %v7126_v23 = vld [vmem:[%s9401_s0 + $0x5ac] ss:$36 sps:$4 sm:$0xff]  }
 0x1b4   :  { %6011 = vmatprep.subr.bf16.mxu1 %v7307_v0  ;;  %v7129_v25 = vld [vmem:[%s9401_s0 + $0x5a8] ss:$36 sps:$4 sm:$0xff]  }
 0x1b7   :  { %6027 = vmatpush1.bf16.msra.mxu1 %v7301_v30  ;;  %v7135_v30 = vld [vmem:[%s9401_s0 + $0x63c] ss:$36 sps:$4 sm:$0xff]  }
 0x1b8   :  { %6012 = vmatprep.subr.bf16.mxu1 %v7307_v0 }
 0x1b9   :  { %3316 = vmatmul.mubr.bf16.gmra.mrb[24].mxu1 %v7044_v26  ;;  %v5534_v26 = vcombine.low %v418_v20, %v418_v20  ;;  %v7177_v20 = vld [vmem:[%s9401_s0 + $0x908] ss:$36 sps:$4 sm:$0xff]  }
 0x1ba   :  { %4196 = vmatmul.mubr.bf16.gmra.mrb[104].mxu0 %v7045_v27  ;;  %3323 = vmatprep.mubr.bf16.mxu1 %v7046_v28  ;;  %v7131_v27 = vld [vmem:[%s9401_s0 + $0x5f4] ss:$36 sps:$4 sm:$0xff]  }
 0x1bb   :  { %4203 = vmatprep.mubr.bf16.mxu0 %v7048_v29  ;;  %6028 = vmatpush1.bf16.msra.mxu1 %v7302_v31  ;;  %v7133_v28 = vld [vmem:[%s9401_s0 + $0x5f0] ss:$36 sps:$4 sm:$0xff]   ;;  %v7134_v29 = vld [vmem:[%s9401_s0 + $0x20] ss:$36 sps:$4 sm:$0xff]   ;;  %v7137_v31 = vld [vmem:[%s9401_s0 + $0x638] ss:$36 sps:$4 sm:$0xff]  }
 0x1bc   :  { %6013 = vmatprep.subr.bf16.mxu1 %v7307_v0 }
 0x1bf   :  { %6029 = vmatpush1.bf16.msra.mxu1 %v7303_v37  ;;  %v7143_v37 = vld [vmem:[%s9401_s0 + $0x6cc] ss:$36 sps:$4 sm:$0xff]  }
 0x1c0   :  { %6014 = vmatprep.subr.bf16.mxu1 %v7307_v0 }
 0x1c1   :  { %3324 = vmatmul.mubr.bf16.gmra.mrb[28].mxu1 %v7050_v32  ;;  %v7138_v32 = vld [vmem:[%s9401_s0 + $0x68] ss:$36 sps:$4 sm:$0xff]  }
 0x1c2   :  { %4204 = vmatmul.mubr.bf16.gmra.mrb[108].mxu0 %v7051_v34  ;;  %3331 = vmatprep.mubr.bf16.mxu1 %v7052_v35  ;;  %v7139_v34 = vld [vmem:[%s9401_s0 + $0x684] ss:$36 sps:$4 sm:$0xff]  }
 0x1c3   :  { %4211 = vmatprep.mubr.bf16.mxu0 %v7054_v36  ;;  %6030 = vmatpush1.bf16.msra.mxu1 %v7304_v38  ;;  %v7141_v35 = vld [vmem:[%s9401_s0 + $0x680] ss:$36 sps:$4 sm:$0xff]   ;;  %v7142_v36 = vld [vmem:[%s9401_s0 + $0xb0] ss:$36 sps:$4 sm:$0xff]   ;;  %v7145_v38 = vld [vmem:[%s9401_s0 + $0x6c8] ss:$36 sps:$4 sm:$0xff]  }
 0x1c4   :  { %6015 = vmatprep.subr.bf16.mxu1 %v7307_v0  ;;  %v7305_v0 = vld [vmem:[%s9400_s1 + $0x178] sm:$0xff]  }
 0x1c7   :  { %6031 = vmatpush1.bf16.msra.mxu1 %v7305_v0  ;;  %v7151_v0 = vld [vmem:[%s9401_s0 + $0x75c] ss:$36 sps:$4 sm:$0xff]  }
 0x1c9   :  { %3332 = vmatmul.mubr.bf16.gmra.mrb[32].mxu1 %v7056_v39  ;;  %v7146_v39 = vld [vmem:[%s9401_s0 + $0xf8] ss:$36 sps:$4 sm:$0xff]  }
 0x1ca   :  { %4212 = vmatmul.mubr.bf16.gmra.mrb[112].mxu0 %v7057_v40  ;;  %3339 = vmatprep.mubr.bf16.mxu1 %v7058_v41  ;;  %v7147_v40 = vld [vmem:[%s9401_s0 + $0x714] ss:$36 sps:$4 sm:$0xff]  }
 0x1cb   :  { %4219 = vmatprep.mubr.bf16.mxu0 %v7060_v42  ;;  %v7149_v41 = vld [vmem:[%s9401_s0 + $0x710] ss:$36 sps:$4 sm:$0xff]   ;;  %v7150_v42 = vld [vmem:[%s9401_s0 + $0x140] ss:$36 sps:$4 sm:$0xff]  }
 0x1d1   :  { %3340 = vmatmul.mubr.bf16.gmra.mrb[36].mxu1 %v7062_v43  ;;  %v7153_v43 = vld [vmem:[%s9401_s0 + $0x758] ss:$36 sps:$4 sm:$0xff]  }
 0x1d2   :  { %4220 = vmatmul.mubr.bf16.gmra.mrb[116].mxu0 %v7063_v44  ;;  %3347 = vmatprep.mubr.bf16.mxu1 %v7064_v45  ;;  %v7154_v44 = vld [vmem:[%s9401_s0 + $0x188] ss:$36 sps:$4 sm:$0xff]  }
 0x1d3   :  { %4227 = vmatprep.mubr.bf16.mxu0 %v7066_v46  ;;  %v7155_v45 = vld [vmem:[%s9401_s0 + $0x7a4] ss:$36 sps:$4 sm:$0xff]  }
 0x1d9   :  { %3348 = vmatmul.mubr.bf16.gmra.mrb[40].mxu1 %v7068_v47 }
 0x1da   :  { %4228 = vmatmul.mubr.bf16.gmra.mrb[120].mxu0 %v7069_v48  ;;  %3355 = vmatprep.mubr.bf16.mxu1 %v7070_v49  ;;  %v7157_v48 = vld [vmem:[%s9401_s0 + $0x7a0] ss:$36 sps:$4 sm:$0xff]  }
 0x1db   :  { %4235 = vmatprep.mubr.bf16.mxu0 %v7072_v50  ;;  %v7158_v50 = vld [vmem:[%s9401_s0 + $0x1d0] ss:$36 sps:$4 sm:$0xff]  }
 0x1e1   :  { %3356 = vmatmul.mubr.bf16.gmra.mrb[44].mxu1 %v7075_v51  ;;  %v7159_v51 = vld [vmem:[%s9401_s0 + $0x7ec] ss:$36 sps:$4 sm:$0xff]  }
 0x1e2   :  { %4236 = vmatmul.mubr.bf16.gmra.mrb[124].mxu0 %v7076_v52  ;;  %3363 = vmatprep.mubr.bf16.mxu1 %v7077_v53 }
 0x1e3   :  { %4243 = vmatprep.mubr.bf16.mxu0 %v7079_v54 }
 0x1e9   :  { %3364 = vmatmul.mubr.bf16.gmra.mrb[48].mxu1 %v7081_v55  ;;  %v7161_v55 = vld [vmem:[%s9401_s0 + $0x7e8] ss:$36 sps:$4 sm:$0xff]  }
 0x1ea   :  { %4244 = vmatmul.mubr.bf16.gmra.mrb[128].mxu0 %v7082_v56  ;;  %3371 = vmatprep.mubr.bf16.mxu1 %v7083_v57  ;;  %v7162_v57 = vld [vmem:[%s9401_s0 + $0x218] ss:$36 sps:$4 sm:$0xff]  }
 0x1eb   :  { %4251 = vmatprep.mubr.bf16.mxu0 %v7085_v58  ;;  %v7163_v58 = vld [vmem:[%s9401_s0 + $0x834] ss:$36 sps:$4 sm:$0xff]  }
 0x1f1   :  { %3372 = vmatmul.mubr.bf16.gmra.mrb[52].mxu1 %v7087_v59 }
 0x1f2   :  { %4252 = vmatmul.mubr.bf16.gmra.mrb[132].mxu0 %v7088_v60  ;;  %3379 = vmatprep.mubr.bf16.mxu1 %v7089_v61 }
 0x1f3   :  { %4259 = vmatprep.mubr.bf16.mxu0 %v7091_v62  ;;  %v7165_v62 = vld [vmem:[%s9401_s0 + $0x830] ss:$36 sps:$4 sm:$0xff]  }
 0x1f9   :  { %3380 = vmatmul.mubr.bf16.gmra.mrb[56].mxu1 %v7093_v63 }
 0x1fa   :  { %4260 = vmatmul.mubr.bf16.gmra.mrb[136].mxu0 %v7094_v1  ;;  %3387 = vmatprep.mubr.bf16.mxu1 %v7095_v2  ;;  %v7166_v1 = vld [vmem:[%s9401_s0 + $0x260] ss:$36 sps:$4 sm:$0xff]  }
 0x1fb   :  { %4267 = vmatprep.mubr.bf16.mxu0 %v7097_v3  ;;  %v7167_v2 = vld [vmem:[%s9401_s0 + $0x87c] ss:$36 sps:$4 sm:$0xff]  }
 0x201   :  { %3388 = vmatmul.mubr.bf16.gmra.mrb[60].mxu1 %v7099_v4 }
 0x202   :  { %4268 = vmatmul.mubr.bf16.gmra.mrb[140].mxu0 %v7100_v5  ;;  %3395 = vmatprep.mubr.bf16.mxu1 %v7101_v6  ;;  %v7169_v6 = vld [vmem:[%s9401_s0 + $0x878] ss:$36 sps:$4 sm:$0xff]  }
 0x203   :  { %4275 = vmatprep.mubr.bf16.mxu0 %v7103_v7 }
 0x209   :  { %3396 = vmatmul.mubr.bf16.gmra.mrb[64].mxu1 %v7105_v8  ;;  %v7170_v8 = vld [vmem:[%s9401_s0 + $0x2a8] ss:$36 sps:$4 sm:$0xff]  }
 0x20a   :  { %4276 = vmatmul.mubr.bf16.gmra.mrb[144].mxu0 %v7106_v9  ;;  %3403 = vmatprep.mubr.bf16.mxu1 %v7108_v10  ;;  %v7171_v9 = vld [vmem:[%s9401_s0 + $0x8c4] ss:$36 sps:$4 sm:$0xff]  }
 0x20b   :  { %4283 = vmatprep.mubr.bf16.mxu0 %v7110_v11 }
 0x211   :  { %3404 = vmatmul.mubr.bf16.gmra.mrb[68].mxu1 %v7112_v12 }
 0x212   :  { %4284 = vmatmul.mubr.bf16.gmra.mrb[148].mxu0 %v7113_v13  ;;  %3411 = vmatprep.mubr.bf16.mxu1 %v7114_v14  ;;  %v7173_v13 = vld [vmem:[%s9401_s0 + $0x8c0] ss:$36 sps:$4 sm:$0xff]  }
 0x213   :  { %4291 = vmatprep.mubr.bf16.mxu0 %v7116_v15  ;;  %v7174_v15 = vld [vmem:[%s9401_s0 + $0x2f0] ss:$36 sps:$4 sm:$0xff]  }
 0x219   :  { %3412 = vmatmul.mubr.bf16.gmra.mrb[72].mxu1 %v7118_v16  ;;  %v7175_v16 = vld [vmem:[%s9401_s0 + $0x90c] ss:$36 sps:$4 sm:$0xff]  }
 0x21a   :  { %4292 = vmatmul.mubr.bf16.gmra.mrb[152].mxu0 %v7119_v17  ;;  %3419 = vmatprep.mubr.bf16.mxu1 %v7120_v18 }
 0x21b   :  { %4299 = vmatprep.mubr.bf16.mxu0 %v7122_v19 }
 0x221   :  { %3420 = vmatmul.mubr.bf16.gmra.mrb[76].mxu1 %v7124_v21 }
 0x222   :  { %4300 = vmatmul.mubr.bf16.gmra.mrb[156].mxu0 %v7125_v22  ;;  %3427 = vmatprep.mubr.bf16.mxu1 %v7126_v23  ;;  %v7178_v22 = vld [vmem:[%s9401_s0 + $0x338] ss:$36 sps:$4 sm:$0xff]  }
 0x223   :  { %4307 = vmatprep.mubr.bf16.mxu0 %v5535_v24  ;;  %v7179_v23 = vld [vmem:[%s9401_s0 + $0x954] ss:$36 sps:$4 sm:$0xff]  }
 0x229   :  { %3428 = vmatmul.mubr.bf16.gmra.mrb[80].mxu1 %v7129_v25 }
 0x22a   :  { %4308 = vmatmul.mubr.bf16.gmra.mrb[160].mxu0 %v5534_v26  ;;  %3435 = vmatprep.mubr.bf16.mxu1 %v7131_v27  ;;  %v7181_v27 = vld [vmem:[%s9401_s0 + $0x950] ss:$36 sps:$4 sm:$0xff]  }
 0x22b   :  { %5836 = vmatprep.mubr.msk.bf16.mxu0 %vm7309_vm0, %v7308_v33 }
 0x231   :  { %3436 = vmatmul.mubr.bf16.gmra.mrb[84].mxu1 %v7133_v28 }
 0x232   :  { %5837 = vmatmul.mubr.bf16.vlgmr.msra.gmra.mrb[0].mxu0 %v7134_v29  ;;  %3443 = vmatprep.mubr.bf16.mxu1 %v7135_v30  ;;  %v7182_v29 = vld [vmem:[%s9401_s0 + $0x380] ss:$36 sps:$4 sm:$0xff]  }
 0x233   :  { %5840 = vmatprep.mubr.msk.bf16.mxu0 %vm7309_vm0, %v7308_v33  ;;  %v7183_v30 = vld [vmem:[%s9401_s0 + $0x99c] ss:$36 sps:$4 sm:$0xff]  }
 0x239   :  { %3444 = vmatmul.mubr.bf16.gmra.mrb[88].mxu1 %v7137_v31 }
 0x23a   :  { %5841 = vmatmul.mubr.bf16.gmra.mrb[4].mxu0 %v7138_v32  ;;  %3451 = vmatprep.mubr.bf16.mxu1 %v7139_v34 }
 0x23b   :  { %5844 = vmatprep.mubr.msk.bf16.mxu0 %vm7309_vm0, %v7308_v33 }
 0x241   :  { %3452 = vmatmul.mubr.bf16.gmra.mrb[92].mxu1 %v7141_v35  ;;  %v7185_v35 = vld [vmem:[%s9401_s0 + $0x998] ss:$36 sps:$4 sm:$0xff]  }
 0x242   :  { %5845 = vmatmul.mubr.bf16.gmra.mrb[8].mxu0 %v7142_v36  ;;  %3459 = vmatprep.mubr.bf16.mxu1 %v7143_v37  ;;  %v7186_v37 = vld [vmem:[%s9401_s0 + $0x3c8] ss:$36 sps:$4 sm:$0xff]  }
 0x243   :  { %5848 = vmatprep.mubr.msk.bf16.mxu0 %vm7309_vm0, %v7308_v33 }
 0x249   :  { %3460 = vmatmul.mubr.bf16.gmra.mrb[96].mxu1 %v7145_v38  ;;  %v7187_v38 = vld [vmem:[%s9401_s0 + $0x9e4] ss:$36 sps:$4 sm:$0xff]  }
 0x24a   :  { %5849 = vmatmul.mubr.bf16.gmra.mrb[12].mxu0 %v7146_v39  ;;  %3467 = vmatprep.mubr.bf16.mxu1 %v7147_v40 }
 0x24b   :  { %5852 = vmatprep.mubr.msk.bf16.mxu0 %vm7309_vm0, %v7308_v33 }
 0x251   :  { %3468 = vmatmul.mubr.bf16.gmra.mrb[100].mxu1 %v7149_v41 }
 0x252   :  { %5853 = vmatmul.mubr.bf16.gmra.mrb[16].mxu0 %v7150_v42  ;;  %3475 = vmatprep.mubr.bf16.mxu1 %v7151_v0  ;;  %v7189_v42 = vld [vmem:[%s9401_s0 + $0x9e0] ss:$36 sps:$4 sm:$0xff]  }
 0x253   :  { %5856 = vmatprep.mubr.msk.bf16.mxu0 %vm7309_vm0, %v7308_v33 }
 0x259   :  { %3476 = vmatmul.mubr.bf16.gmra.mrb[104].mxu1 %v7153_v43  ;;  %v7190_v43 = vld [vmem:[%s9401_s0 + $0x410] ss:$36 sps:$4 sm:$0xff]  }
 0x25a   :  { %5857 = vmatmul.mubr.bf16.gmra.mrb[20].mxu0 %v7154_v44  ;;  %3483 = vmatprep.mubr.bf16.mxu1 %v7155_v45  ;;  %v7191_v44 = vld [vmem:[%s9401_s0 + $0xa2c] ss:$36 sps:$4 sm:$0xff]  }
 0x25b   :  { %5860 = vmatprep.mubr.msk.bf16.mxu0 %vm7309_vm0, %v7308_v33 }
 0x25c   :  { %v8491_v46 = vpop.f32.mrb[0].mxu1 }
 0x25d   :  { %v3271_v47 = vpop.f32.mrb[1].mxu1 }
 0x25e   :  { %v8496_v49 = vpop.f32.mrb[2].mxu1 }
 0x25f   :  { %v3274_v52 = vpop.f32.mrb[3].mxu1 }
 0x260   :  { %v7194_v52 = vld [vmem:[%s9401_s0 + $0x458] ss:$36 sps:$4 sm:$0xff]  }
 0x261   :  { %3484 = vmatmul.mubr.bf16.gmra.mrb[108].mxu1 %v7157_v48 }
 0x262   :  { %5861 = vmatmul.mubr.bf16.gmra.mrb[24].mxu0 %v7158_v50  ;;  %3491 = vmatprep.mubr.bf16.mxu1 %v7159_v51  ;;  %v7193_v50 = vld [vmem:[%s9401_s0 + $0xa28] ss:$36 sps:$4 sm:$0xff]  }
 0x263   :  { %5864 = vmatprep.mubr.msk.bf16.mxu0 %vm7309_vm0, %v7308_v33 }
 0x264   :  { %v8506_v53 = vpop.f32.mrb[4].mxu1 }
 0x265   :  { %v3279_v54 = vpop.f32.mrb[5].mxu1 }
 0x266   :  { %v8511_v56 = vpop.f32.mrb[6].mxu1  ;;  %v7195_v54 = vld [vmem:[%s9401_s0 + $0xa74] ss:$36 sps:$4 sm:$0xff]  }
 0x267   :  { %v3282_v59 = vpop.f32.mrb[7].mxu1 }
 0x268   :  { %v7197_v59 = vld [vmem:[%s9401_s0 + $0xa70] ss:$36 sps:$4 sm:$0xff]  }
 0x269   :  { %3492 = vmatmul.mubr.bf16.gmra.mrb[112].mxu1 %v7161_v55 }
 0x26a   :  { %5865 = vmatmul.mubr.bf16.gmra.mrb[28].mxu0 %v7162_v57  ;;  %3499 = vmatprep.mubr.bf16.mxu1 %v7163_v58 }
 0x26b   :  { %5868 = vmatprep.mubr.msk.bf16.mxu0 %vm7309_vm0, %v7308_v33 }
 0x26c   :  { %v8521_v60 = vpop.f32.mrb[8].mxu1 }
 0x26d   :  { %v3287_v61 = vpop.f32.mrb[9].mxu1 }
 0x26e   :  { %v8526_v63 = vpop.f32.mrb[10].mxu1 }
 0x26f   :  { %v3290_v3 = vpop.f32.mrb[11].mxu1 }
 0x271   :  { %3500 = vmatmul.mubr.bf16.gmra.mrb[116].mxu1 %v7165_v62  ;;  %v7198_v62 = vld [vmem:[%s9401_s0 + $0x4a0] ss:$36 sps:$4 sm:$0xff]  }
 0x272   :  { %5869 = vmatmul.mubr.bf16.gmra.mrb[32].mxu0 %v7166_v1  ;;  %3507 = vmatprep.mubr.bf16.mxu1 %v7167_v2  ;;  %v7199_v1 = vld [vmem:[%s9401_s0 + $0xabc] ss:$36 sps:$4 sm:$0xff]  }
 0x273   :  { %5872 = vmatprep.mubr.msk.bf16.mxu0 %vm7309_vm0, %v7308_v33 }
 0x274   :  { %v8536_v4 = vpop.f32.mrb[12].mxu1 }
 0x275   :  { %v3295_v5 = vpop.f32.mrb[13].mxu1 }
 0x276   :  { %v8541_v7 = vpop.f32.mrb[14].mxu1 }
 0x277   :  { %v3298_v10 = vpop.f32.mrb[15].mxu1 }
 0x278   :  { %v7203_v10 = vld [vmem:[%s9401_s0 + $0xb04] ss:$36 sps:$4 sm:$0xff]  }
 0x279   :  { %3508 = vmatmul.mubr.bf16.gmra.mrb[120].mxu1 %v7169_v6  ;;  %v7201_v6 = vld [vmem:[%s9401_s0 + $0xab8] ss:$36 sps:$4 sm:$0xff]  }
 0x27a   :  { %5873 = vmatmul.mubr.bf16.gmra.mrb[36].mxu0 %v7170_v8  ;;  %3515 = vmatprep.mubr.bf16.mxu1 %v7171_v9  ;;  %v7202_v9 = vld [vmem:[%s9401_s0 + $0x4e8] ss:$36 sps:$4 sm:$0xff]  }
 0x27b   :  { %5876 = vmatprep.mubr.msk.bf16.mxu0 %vm7309_vm0, %v7308_v33 }
 0x27c   :  { %v8551_v11 = vpop.f32.mrb[16].mxu1 }
 0x27d   :  { %v3303_v12 = vpop.f32.mrb[17].mxu1 }
 0x27e   :  { %v8556_v14 = vpop.f32.mrb[18].mxu1 }
 0x27f   :  { %v3306_v17 = vpop.f32.mrb[19].mxu1 }
 0x280   :  { %v7205_v17 = vld [vmem:[%s9401_s0 + $0xb00] ss:$36 sps:$4 sm:$0xff]  }
 0x281   :  { %3516 = vmatmul.mubr.bf16.gmra.mrb[124].mxu1 %v7173_v13  ;;  %v416_v13 = vld [vmem:[%s9401_s0 + $0xb48] sm:$0xff] }
 0x282   :  { %5877 = vmatmul.mubr.bf16.gmra.mrb[40].mxu0 %v7174_v15  ;;  %3523 = vmatprep.mubr.bf16.mxu1 %v7175_v16 }
 0x283   :  { %5880 = vmatprep.mubr.msk.bf16.mxu0 %vm7309_vm0, %v7308_v33 }
 0x284   :  { %v8566_v18 = vpop.f32.mrb[20].mxu1 }
 0x285   :  { %v3311_v19 = vpop.f32.mrb[21].mxu1 }
 0x286   :  { %v8571_v21 = vpop.f32.mrb[22].mxu1 }
 0x287   :  { %v3314_v24 = vpop.f32.mrb[23].mxu1 }
 0x289   :  { %3524 = vmatmul.mubr.bf16.gmra.mrb[128].mxu1 %v7177_v20  ;;  %v7206_v20 = vld [vmem:[%s9401_s0 + $0x530] ss:$36 sps:$4 sm:$0xff]  }
 0x28a   :  { %5881 = vmatmul.mubr.bf16.gmra.mrb[44].mxu0 %v7178_v22  ;;  %3531 = vmatprep.mubr.bf16.mxu1 %v7179_v23  ;;  %v5531_v22 = vcombine.high %v416_v13, %v416_v13 }
 0x28b   :  { %5884 = vmatprep.mubr.msk.bf16.mxu0 %vm7309_vm0, %v7308_v33 }
 0x28c   :  { %v8581_v25 = vpop.f32.mrb[24].mxu1 }
 0x28d   :  { %v3319_v26 = vpop.f32.mrb[25].mxu1 }
 0x28e   :  { %v8586_v28 = vpop.f32.mrb[26].mxu1 }
 0x28f   :  { %v3322_v31 = vpop.f32.mrb[27].mxu1 }
 0x290   :  { %v7212_v31 = vld [vmem:[%s9401_s0 + $0x5fc] ss:$36 sps:$4 sm:$0xff]  }
 0x291   :  { %3532 = vmatmul.mubr.bf16.gmra.mrb[132].mxu1 %v7181_v27  ;;  %v5530_v27 = vcombine.low %v416_v13, %v416_v13 }
 0x292   :  { %5885 = vmatmul.mubr.bf16.gmra.mrb[48].mxu0 %v7182_v29  ;;  %3539 = vmatprep.mubr.bf16.mxu1 %v7183_v30  ;;  %v7209_v30 = vld [vmem:[%s9401_s0 + $0x578] ss:$36 sps:$4 sm:$0xff]  }
 0x293   :  { %5888 = vmatprep.mubr.msk.bf16.mxu0 %vm7309_vm0, %v7308_v33 }
 0x294   :  { %v8596_v32 = vpop.f32.mrb[28].mxu1 }
 0x295   :  { %v3327_v34 = vpop.f32.mrb[29].mxu1 }
 0x296   :  { %v8601_v36 = vpop.f32.mrb[30].mxu1 }
 0x297   :  { %v3330_v39 = vpop.f32.mrb[31].mxu1 }
 0x299   :  { %3540 = vmatmul.mubr.bf16.gmra.mrb[136].mxu1 %v7185_v35 }
 0x29a   :  { %5889 = vmatmul.mubr.bf16.gmra.mrb[52].mxu0 %v7186_v37  ;;  %3547 = vmatprep.mubr.bf16.mxu1 %v7187_v38  ;;  %v7210_v38 = vld [vmem:[%s9401_s0 + $0x5f8] ss:$36 sps:$4 sm:$0xff]  }
 0x29b   :  { %5892 = vmatprep.mubr.msk.bf16.mxu0 %vm7309_vm0, %v7308_v33 }
 0x29c   :  { %v8611_v40 = vpop.f32.mrb[32].mxu1 }
 0x29d   :  { %v3335_v41 = vpop.f32.mrb[33].mxu1 }
 0x29e   :  { %v8616_v0 = vpop.f32.mrb[34].mxu1  ;;  %v7213_v41 = vld [vmem:[%s9401_s0 + $0x5c0] ss:$36 sps:$4 sm:$0xff]  }
 0x29f   :  { %v3338_v45 = vpop.f32.mrb[35].mxu1 }
 0x2a1   :  { %3548 = vmatmul.mubr.bf16.gmra.mrb[140].mxu1 %v7189_v42  ;;  %v7214_v42 = vld [vmem:[%s9401_s0 + $0x644] ss:$36 sps:$4 sm:$0xff]  }
 0x2a2   :  { %5893 = vmatmul.mubr.bf16.gmra.mrb[56].mxu0 %v7190_v43  ;;  %3555 = vmatprep.mubr.bf16.mxu1 %v7191_v44 }
 0x2a3   :  { %5896 = vmatprep.mubr.msk.bf16.mxu0 %vm7309_vm0, %v7308_v33 }
 0x2a4   :  { %v8626_v47 = vpop.f32.mrb[36].mxu1 }
 0x2a5   :  { %v3343_v48 = vpop.f32.mrb[37].mxu1 }
 0x2a6   :  { %v8631_v51 = vpop.f32.mrb[38].mxu1  ;;  %v7216_v48 = vld [vmem:[%s9401_s0 + $0x640] ss:$36 sps:$4 sm:$0xff]  }
 0x2a7   :  { %v3346_v55 = vpop.f32.mrb[39].mxu1 }
 0x2a9   :  { %3556 = vmatmul.mubr.bf16.gmra.mrb[144].mxu1 %v7193_v50 }
 0x2aa   :  { %5897 = vmatmul.mubr.bf16.gmra.mrb[60].mxu0 %v7194_v52  ;;  %3563 = vmatprep.mubr.bf16.mxu1 %v7195_v54  ;;  %v7217_v52 = vld [vmem:[%s9401_s0 + $0x608] ss:$36 sps:$4 sm:$0xff]  }
 0x2ab   :  { %5900 = vmatprep.mubr.msk.bf16.mxu0 %vm7309_vm0, %v7308_v33  ;;  %v7218_v54 = vld [vmem:[%s9401_s0 + $0x68c] ss:$36 sps:$4 sm:$0xff]  }
 0x2ac   :  { %v8641_v57 = vpop.f32.mrb[40].mxu1 }
 0x2ad   :  { %v3351_v58 = vpop.f32.mrb[41].mxu1 }
 0x2ae   :  { %v8646_v61 = vpop.f32.mrb[42].mxu1 }
 0x2af   :  { %v3354_v2 = vpop.f32.mrb[43].mxu1 }
 0x2b0   :  { %v7221_v2 = vld [vmem:[%s9401_s0 + $0x650] ss:$36 sps:$4 sm:$0xff]  }
 0x2b1   :  { %3564 = vmatmul.mubr.bf16.gmra.mrb[148].mxu1 %v7197_v59 }
 0x2b2   :  { %5901 = vmatmul.mubr.bf16.gmra.mrb[64].mxu0 %v7198_v62  ;;  %3571 = vmatprep.mubr.bf16.mxu1 %v7199_v1  ;;  %v7220_v62 = vld [vmem:[%s9401_s0 + $0x688] ss:$36 sps:$4 sm:$0xff]  }
 0x2b3   :  { %5904 = vmatprep.mubr.msk.bf16.mxu0 %vm7309_vm0, %v7308_v33 }
 0x2b4   :  { %v8656_v3 = vpop.f32.mrb[44].mxu1 }
 0x2b5   :  { %v3359_v5 = vpop.f32.mrb[45].mxu1 }
 0x2b6   :  { %v8661_v8 = vpop.f32.mrb[46].mxu1  ;;  %v7222_v5 = vld [vmem:[%s9401_s0 + $0x6d4] ss:$36 sps:$4 sm:$0xff]  }
 0x2b7   :  { %v3362_v12 = vpop.f32.mrb[47].mxu1 }
 0x2b8   :  { %v7224_v12 = vld [vmem:[%s9401_s0 + $0x6d0] ss:$36 sps:$4 sm:$0xff]  }
 0x2b9   :  { %3572 = vmatmul.mubr.bf16.gmra.mrb[152].mxu1 %v7201_v6 }
 0x2ba   :  { %5905 = vmatmul.mubr.bf16.gmra.mrb[68].mxu0 %v7202_v9  ;;  %3579 = vmatprep.mubr.bf16.mxu1 %v7203_v10 }
 0x2bb   :  { %5908 = vmatprep.mubr.msk.bf16.mxu0 %vm7309_vm0, %v7308_v33 }
 0x2bc   :  { %v8674_v15 = vpop.f32.mrb[48].mxu1 }
 0x2bd   :  { %v3367_v16 = vpop.f32.mrb[49].mxu1 }
 0x2be   :  { %v8679_v19 = vpop.f32.mrb[50].mxu1  ;;  %v7225_v16 = vld [vmem:[%s9401_s0 + $0x698] ss:$36 sps:$4 sm:$0xff]  }
 0x2bf   :  { %v3370_v23 = vpop.f32.mrb[51].mxu1 }
 0x2c1   :  { %3580 = vmatmul.mubr.bf16.gmra.mrb[156].mxu1 %v7205_v17  ;;  %v7226_v17 = vld [vmem:[%s9401_s0 + $0x71c] ss:$36 sps:$4 sm:$0xff]  }
 0x2c2   :  { %5909 = vmatmul.mubr.bf16.gmra.mrb[72].mxu0 %v7206_v20  ;;  %3587 = vmatprep.mubr.bf16.mxu1 %v5531_v22 }
 0x2c3   :  { %5912 = vmatprep.mubr.msk.bf16.mxu0 %vm7309_vm0, %v7308_v33 }
 0x2c4   :  { %v8686_v24 = vpop.f32.mrb[52].mxu1 }
 0x2c5   :  { %v3375_v26 = vpop.f32.mrb[53].mxu1 }
 0x2c6   :  { %v8688_v29 = vpop.f32.mrb[54].mxu1  ;;  %v7228_v26 = vld [vmem:[%s9401_s0 + $0x718] ss:$36 sps:$4 sm:$0xff]  }
 0x2c7   :  { %v3378_v34 = vpop.f32.mrb[55].mxu1 }
 0x2c9   :  { %3588 = vmatmul.mubr.bf16.gmra.mrb[160].mxu1 %v5530_v27 }
 0x2ca   :  { %5913 = vmatmul.mubr.bf16.gmra.mrb[76].mxu0 %v7209_v30  ;;  %3795 = vmatprep.mubr.bf16.mxu1 %v7212_v31  ;;  %v7229_v30 = vld [vmem:[%s9401_s0 + $0x6e0] ss:$36 sps:$4 sm:$0xff]  }
 0x2cb   :  { %5916 = vmatprep.mubr.msk.bf16.mxu0 %vm7309_vm0, %v7308_v33  ;;  %v7230_v31 = vld [vmem:[%s9401_s0 + $0x764] ss:$36 sps:$4 sm:$0xff]  }
 0x2cc   :  { %v8698_v35 = vpop.f32.mrb[56].mxu1 }
 0x2cd   :  { %v3383_v37 = vpop.f32.mrb[57].mxu1 }
 0x2ce   :  { %v8703_v39 = vpop.f32.mrb[58].mxu1 }
 0x2cf   :  { %v3386_v43 = vpop.f32.mrb[59].mxu1 }
 0x2d0   :  { %v7233_v43 = vld [vmem:[%s9401_s0 + $0x728] ss:$36 sps:$4 sm:$0xff]  }
 0x2d1   :  { %3796 = vmatmul.mubr.bf16.vlgmr.msra.gmra.mrb[84].mxu1 %v7210_v38 }
 0x2d2   :  { %5917 = vmatmul.mubr.bf16.gmra.mrb[80].mxu0 %v7213_v41  ;;  %3803 = vmatprep.mubr.bf16.mxu1 %v7214_v42  ;;  %v7232_v41 = vld [vmem:[%s9401_s0 + $0x760] ss:$36 sps:$4 sm:$0xff]  }
 0x2d3   :  { %5920 = vmatprep.mubr.msk.bf16.mxu0 %vm7309_vm0, %v7308_v33 }
 0x2d4   :  { %v8713_v44 = vpop.f32.mrb[60].mxu1 }
 0x2d5   :  { %v3391_v45 = vpop.f32.mrb[61].mxu1 }
 0x2d6   :  { %v8718_v50 = vpop.f32.mrb[62].mxu1  ;;  %v7234_v45 = vld [vmem:[%s9401_s0 + $0x7ac] ss:$36 sps:$4 sm:$0xff]  }
 0x2d7   :  { %v3394_v55 = vpop.f32.mrb[63].mxu1 }
 0x2d8   :  { %v7236_v55 = vld [vmem:[%s9401_s0 + $0x7a8] ss:$36 sps:$4 sm:$0xff]  }
 0x2d9   :  { %3804 = vmatmul.mubr.bf16.gmra.mrb[88].mxu1 %v7216_v48 }
 0x2da   :  { %5921 = vmatmul.mubr.bf16.gmra.mrb[84].mxu0 %v7217_v52  ;;  %3811 = vmatprep.mubr.bf16.mxu1 %v7218_v54 }
 0x2db   :  { %5924 = vmatprep.mubr.msk.bf16.mxu0 %vm7309_vm0, %v7308_v33 }
 0x2dc   :  { %v8728_v58 = vpop.f32.mrb[64].mxu1 }
 0x2dd   :  { %v3399_v59 = vpop.f32.mrb[65].mxu1 }
 0x2de   :  { %v8733_v1 = vpop.f32.mrb[66].mxu1 }
 0x2df   :  { %v3402_v6 = vpop.f32.mrb[67].mxu1 }
 0x2e0   :  { %v8804_v6 = vld [vmem:[%s9402_s2] ss:$0 sm:$0xff] }
 0x2e1   :  { %3812 = vmatmul.mubr.bf16.gmra.mrb[92].mxu1 %v7220_v62  ;;  %v7237_v62 = vld [vmem:[%s9401_s0 + $0x770] ss:$36 sps:$4 sm:$0xff]  }
 0x2e2   :  { %5925 = vmatmul.mubr.bf16.gmra.mrb[88].mxu0 %v7221_v2  ;;  %3819 = vmatprep.mubr.bf16.mxu1 %v7222_v5  ;;  %v7238_v2 = vld [vmem:[%s9401_s0 + $0x7f4] ss:$36 sps:$4 sm:$0xff]  }
 0x2e3   :  { %5928 = vmatprep.mubr.msk.bf16.mxu0 %vm7309_vm0, %v7308_v33 }
 0x2e4   :  { %v8743_v9 = vpop.f32.mrb[68].mxu1 }
 0x2e5   :  { %v3407_v10 = vpop.f32.mrb[69].mxu1 }
 0x2e6   :  { %v8748_v13 = vpop.f32.mrb[70].mxu1  ;;  %v6032_v10 = vadd.f32 %v8804_v6, %v8491_v46 }
 0x2e7   :  { %v3410_v20 = vpop.f32.mrb[71].mxu1 }
 0x2e9   :  { %3820 = vmatmul.mubr.bf16.gmra.mrb[96].mxu1 %v7224_v12 }
 0x2ea   :  { %5929 = vmatmul.mubr.bf16.gmra.mrb[92].mxu0 %v7225_v16  ;;  %3827 = vmatprep.mubr.bf16.mxu1 %v7226_v17  ;;  %v7240_v16 = vld [vmem:[%s9401_s0 + $0x7f0] ss:$36 sps:$4 sm:$0xff]   ;;  %v6034_v17 = vadd.f32 %v8804_v6, %v8496_v49  ;;  %v6036_v49 = vadd.f32 %v8804_v6, %v8506_v53 }
 0x2eb   :  { %5932 = vmatprep.mubr.msk.bf16.mxu0 %vm7309_vm0, %v7308_v33 }
 0x2ec   :  { %v8758_v22 = vpop.f32.mrb[72].mxu1 }
 0x2ed   :  { %v3415_v23 = vpop.f32.mrb[73].mxu1 }
 0x2ee   :  { %v8763_v27 = vpop.f32.mrb[74].mxu1 }
 0x2ef   :  { %v3418_v34 = vpop.f32.mrb[75].mxu1 }
 0x2f1   :  { %3828 = vmatmul.mubr.bf16.gmra.mrb[100].mxu1 %v7228_v26  ;;  %v7241_v26 = vld [vmem:[%s9401_s0 + $0x7b8] ss:$36 sps:$4 sm:$0xff]  }
 0x2f2   :  { %5933 = vmatmul.mubr.bf16.gmra.mrb[96].mxu0 %v7229_v30  ;;  %3835 = vmatprep.mubr.bf16.mxu1 %v7230_v31  ;;  %v7242_v30 = vld [vmem:[%s9401_s0 + $0x83c] ss:$36 sps:$4 sm:$0xff]  }
 0x2f3   :  { %5936 = vmatprep.mubr.msk.bf16.mxu0 %vm7309_vm0, %v7308_v33 }
 0x2f4   :  { %v8773_v37 = vpop.f32.mrb[76].mxu1 }
 0x2f5   :  { %v3423_v38 = vpop.f32.mrb[77].mxu1 }
 0x2f6   :  { %v8778_v42 = vpop.f32.mrb[78].mxu1 }
 0x2f7   :  { %v3426_v48 = vpop.f32.mrb[79].mxu1 }
 0x2f9   :  { %3836 = vmatmul.mubr.bf16.gmra.mrb[104].mxu1 %v7232_v41 }
 0x2fa   :  { %5937 = vmatmul.mubr.bf16.gmra.mrb[100].mxu0 %v7233_v43  ;;  %3843 = vmatprep.mubr.bf16.mxu1 %v7234_v45 }
 0x2fb   :  { %5940 = vmatprep.mubr.msk.bf16.mxu0 %vm7309_vm0, %v7308_v33 }
 0x2fc   :  { %v8788_v52 = vpop.f32.mrb[80].mxu1 }
 0x2fd   :  { %v3431_v54 = vpop.f32.mrb[81].mxu1 }
 0x2fe   :  { %v8793_v59 = vpop.f32.mrb[82].mxu1  ;;  %v7244_v54 = vld [vmem:[%s9401_s0 + $0x838] ss:$36 sps:$4 sm:$0xff]  }
 0x2ff   :  { %v3434_v5 = vpop.f32.mrb[83].mxu1 }
 0x300   :  { %v7246_v5 = vld [vmem:[%s9401_s0 + $0x884] ss:$36 sps:$4 sm:$0xff]  }
 0x301   :  { %3844 = vmatmul.mubr.bf16.gmra.mrb[108].mxu1 %v7236_v55  ;;  %v6038_v55 = vadd.f32 %v8804_v6, %v8511_v56 }
 0x302   :  { %5941 = vmatmul.mubr.bf16.gmra.mrb[104].mxu0 %v7237_v62  ;;  %3851 = vmatprep.mubr.bf16.mxu1 %v7238_v2  ;;  %v7245_v2 = vld [vmem:[%s9401_s0 + $0x800] ss:$36 sps:$4 sm:$0xff]  }
 0x303   :  { %5944 = vmatprep.mubr.msk.bf16.mxu0 %vm7309_vm0, %v7308_v33 }
 0x305   :  { %v4349_v12 = vpop.f32.mrb[0].mxu0 }
 0x306   :  { %v6033_v20 = vadd.f32 %v6032_v10, %v4349_v12  ;;  %v5838_v23 = vpop.f32.mrb[1].mxu0 }
 0x307   :  { %v4352_v31 = vpop.f32.mrb[2].mxu0  ;;  %v6040_v23 = vadd.f32 %v8804_v6, %v8521_v60 }
 0x308   :  { %v4675_v46 = vmax.f32 %v6033_v20, 0.0  ;;  %v6035_v34 = vadd.f32 %v6034_v17, %v4352_v31  ;;  %v5839_v38 = vpop.f32.mrb[3].mxu0  ;;  %v7248_v31 = vld [vmem:[%s9401_s0 + $0x880] ss:$36 sps:$4 sm:$0xff]  }
 0x309   :  { %3852 = vmatmul.mubr.bf16.gmra.mrb[112].mxu1 %v7240_v16  ;;  %v7249_v38 = vld [vmem:[%s9401_s0 + $0x848] ss:$36 sps:$4 sm:$0xff]  }
 0x30a   :  { %v5690_v41 = vpack.c.bf16 %v4675_v46, %v4675_v46  ;;  %v4676_v43 = vmax.f32 %v6035_v34, 0.0  ;;  %5945 = vmatmul.mubr.bf16.gmra.mrb[108].mxu0 %v7241_v26  ;;  %3859 = vmatprep.mubr.bf16.mxu1 %v7242_v30  ;;  %v6042_v46 = vadd.f32 %v8804_v6, %v8526_v63 }
 0x30b   :  { %5948 = vmatprep.mubr.msk.bf16.mxu0 %vm7309_vm0, %v7308_v33 }
 0x30c   :  { %5082 = vst.msk [vmem:[%s9403_s3] sm:$0xf] %vm5081_vm1, %v5690_v41  ;;  %v5691_v45 = vpack.c.bf16 %v4676_v43, %v4676_v43  ;;  %v7250_v41 = vld [vmem:[%s9401_s0 + $0x8cc] ss:$36 sps:$4 sm:$0xff]  }
 0x30d   :  { %v4357_v48 = vpop.f32.mrb[4].mxu0 }
 0x30e   :  { %5083 = vst.msk [vmem:[%s9403_s3 + $0x4] sm:$0xf] %vm5081_vm1, %v5691_v45  ;;  %v6037_v53 = vadd.f32 %v6036_v49, %v4357_v48  ;;  %v5842_v62 = vpop.f32.mrb[5].mxu0 }
 0x30f   :  { %v4360_v10 = vpop.f32.mrb[6].mxu0 }
 0x310   :  { %v4677_v12 = vmax.f32 %v6037_v53, 0.0  ;;  %v6039_v16 = vadd.f32 %v6038_v55, %v4360_v10  ;;  %v5843_v17 = vpop.f32.mrb[7].mxu0  ;;  %v6044_v55 = vadd.f32 %v8804_v6, %v8536_v4 }
 0x311   :  { %3860 = vmatmul.mubr.bf16.gmra.mrb[116].mxu1 %v7244_v54 }
 0x312   :  { %v5692_v56 = vpack.c.bf16 %v4677_v12, %v4677_v12  ;;  %v4678_v20 = vmax.f32 %v6039_v16, 0.0  ;;  %5949 = vmatmul.mubr.bf16.gmra.mrb[112].mxu0 %v7245_v2  ;;  %3867 = vmatprep.mubr.bf16.mxu1 %v7246_v5  ;;  %v7252_v2 = vld [vmem:[%s9401_s0 + $0x8c8] ss:$36 sps:$4 sm:$0xff]   ;;  %v6046_v5 = vadd.f32 %v8804_v6, %v8541_v7  ;;  %v7253_v12 = vld [vmem:[%s9401_s0 + $0x890] ss:$36 sps:$4 sm:$0xff]  }
 0x313   :  { %5952 = vmatprep.mubr.msk.bf16.mxu0 %vm7309_vm0, %v7308_v33  ;;  %v7254_v16 = vld [vmem:[%s9401_s0 + $0x914] ss:$36 sps:$4 sm:$0xff]  }
 0x314   :  { %5084 = vst.msk [vmem:[%s9403_s3 + $0x8] sm:$0xf] %vm5081_vm1, %v5692_v56  ;;  %v5693_v26 = vpack.c.bf16 %v4678_v20, %v4678_v20 }
 0x315   :  { %v4365_v30 = vpop.f32.mrb[8].mxu0 }
 0x316   :  { %5085 = vst.msk [vmem:[%s9403_s3 + $0xc] sm:$0xf] %vm5081_vm1, %v5693_v26  ;;  %v6041_v60 = vadd.f32 %v6040_v23, %v4365_v30  ;;  %v5846_v34 = vpop.f32.mrb[9].mxu0  ;;  %v6048_v30 = vadd.f32 %v8804_v6, %v8551_v11 }
 0x317   :  { %v4368_v43 = vpop.f32.mrb[10].mxu0  ;;  %v6050_v34 = vadd.f32 %v8804_v6, %v8556_v14 }
 0x318   :  { %v4679_v49 = vmax.f32 %v6041_v60, 0.0  ;;  %v6043_v45 = vadd.f32 %v6042_v46, %v4368_v43  ;;  %v5847_v48 = vpop.f32.mrb[11].mxu0  ;;  %v7256_v60 = vld [vmem:[%s9401_s0 + $0x910] ss:$36 sps:$4 sm:$0xff]   ;;  %v7258_v43 = vld [vmem:[%s9401_s0 + $0x95c] ss:$36 sps:$4 sm:$0xff]  }
 0x319   :  { %3868 = vmatmul.mubr.bf16.gmra.mrb[120].mxu1 %v7248_v31 }
 0x31a   :  { %v5694_v63 = vpack.c.bf16 %v4679_v49, %v4679_v49  ;;  %v4680_v54 = vmax.f32 %v6043_v45, 0.0  ;;  %5953 = vmatmul.mubr.bf16.gmra.mrb[116].mxu0 %v7249_v38  ;;  %3875 = vmatprep.mubr.bf16.mxu1 %v7250_v41  ;;  %v7257_v41 = vld [vmem:[%s9401_s0 + $0x8d8] ss:$36 sps:$4 sm:$0xff]  }
 0x31b   :  { %5956 = vmatprep.mubr.msk.bf16.mxu0 %vm7309_vm0, %v7308_v33 }
 0x31c   :  { %5086 = vst.msk [vmem:[%s9403_s3 + $0x10] sm:$0xf] %vm5081_vm1, %v5694_v63  ;;  %v5695_v53 = vpack.c.bf16 %v4680_v54, %v4680_v54 }
 0x31d   :  { %v4373_v62 = vpop.f32.mrb[12].mxu0 }
 0x31e   :  { %5087 = vst.msk [vmem:[%s9403_s3 + $0x14] sm:$0xf] %vm5081_vm1, %v5695_v53  ;;  %v6045_v4 = vadd.f32 %v6044_v55, %v4373_v62  ;;  %v5850_v10 = vpop.f32.mrb[13].mxu0  ;;  %v6052_v55 = vadd.f32 %v8804_v6, %v8566_v18 }
 0x31f   :  { %v4376_v17 = vpop.f32.mrb[14].mxu0  ;;  %v7261_v10 = vld [vmem:[%s9401_s0 + $0x920] ss:$36 sps:$4 sm:$0xff]  }
 0x320   :  { %v4681_v56 = vmax.f32 %v6045_v4, 0.0  ;;  %v6047_v20 = vadd.f32 %v6046_v5, %v4376_v17  ;;  %v5851_v23 = vpop.f32.mrb[15].mxu0  ;;  %v6054_v5 = vadd.f32 %v8804_v6, %v8571_v21 }
 0x321   :  { %3876 = vmatmul.mubr.bf16.gmra.mrb[124].mxu1 %v7252_v2  ;;  %v7260_v2 = vld [vmem:[%s9401_s0 + $0x958] ss:$36 sps:$4 sm:$0xff]  }
 0x322   :  { %v5696_v7 = vpack.c.bf16 %v4681_v56, %v4681_v56  ;;  %v4682_v26 = vmax.f32 %v6047_v20, 0.0  ;;  %5957 = vmatmul.mubr.bf16.gmra.mrb[120].mxu0 %v7253_v12  ;;  %3883 = vmatprep.mubr.bf16.mxu1 %v7254_v16  ;;  %v7262_v12 = vld [vmem:[%s9401_s0 + $0x9a4] ss:$36 sps:$4 sm:$0xff]  }
 0x323   :  { %5960 = vmatprep.mubr.msk.bf16.mxu0 %vm7309_vm0, %v7308_v33 }
 0x324   :  { %5088 = vst.msk [vmem:[%s9403_s3 + $0x18] sm:$0xf] %vm5081_vm1, %v5696_v7  ;;  %v5697_v31 = vpack.c.bf16 %v4682_v26, %v4682_v26  ;;  %v6056_v7 = vadd.f32 %v8804_v6, %v8581_v25 }
 0x325   :  { %v4381_v46 = vpop.f32.mrb[16].mxu0 }
 0x326   :  { %5089 = vst.msk [vmem:[%s9403_s3 + $0x1c] sm:$0xf] %vm5081_vm1, %v5697_v31  ;;  %v6049_v11 = vadd.f32 %v6048_v30, %v4381_v46  ;;  %v5854_v38 = vpop.f32.mrb[17].mxu0  ;;  %v7264_v31 = vld [vmem:[%s9401_s0 + $0x9a0] ss:$36 sps:$4 sm:$0xff]   ;;  %v6058_v46 = vadd.f32 %v8804_v6, %v8586_v28 }
 0x327   :  { %v4384_v49 = vpop.f32.mrb[18].mxu0 }
 0x328   :  { %v4683_v45 = vmax.f32 %v6049_v11, 0.0  ;;  %v6051_v48 = vadd.f32 %v6050_v34, %v4384_v49  ;;  %v5855_v63 = vpop.f32.mrb[19].mxu0  ;;  %v7265_v34 = vld [vmem:[%s9401_s0 + $0x968] ss:$36 sps:$4 sm:$0xff]  }
 0x329   :  { %3884 = vmatmul.mubr.bf16.gmra.mrb[128].mxu1 %v7256_v60  ;;  %v7266_v11 = vld [vmem:[%s9401_s0 + $0x9ec] ss:$36 sps:$4 sm:$0xff]  }
 0x32a   :  { %v5698_v14 = vpack.c.bf16 %v4683_v45, %v4683_v45  ;;  %v4684_v54 = vmax.f32 %v6051_v48, 0.0  ;;  %5961 = vmatmul.mubr.bf16.gmra.mrb[124].mxu0 %v7257_v41  ;;  %3891 = vmatprep.mubr.bf16.mxu1 %v7258_v43  ;;  %v6060_v48 = vadd.f32 %v8804_v6, %v8596_v32 }
 0x32b   :  { %5964 = vmatprep.mubr.msk.bf16.mxu0 %vm7309_vm0, %v7308_v33 }
 0x32c   :  { %5090 = vst.msk [vmem:[%s9403_s3 + $0x20] sm:$0xf] %vm5081_vm1, %v5698_v14  ;;  %v5699_v53 = vpack.c.bf16 %v4684_v54, %v4684_v54  ;;  %v7268_v54 = vld [vmem:[%s9401_s0 + $0x9e8] ss:$36 sps:$4 sm:$0xff]  }
 0x32d   :  { %v4389_v62 = vpop.f32.mrb[20].mxu0 }
 0x32e   :  { %5091 = vst.msk [vmem:[%s9403_s3 + $0x24] sm:$0xf] %vm5081_vm1, %v5699_v53  ;;  %v6053_v18 = vadd.f32 %v6052_v55, %v4389_v62  ;;  %v5858_v4 = vpop.f32.mrb[21].mxu0  ;;  %v6062_v55 = vadd.f32 %v8804_v6, %v8601_v36  ;;  %v7269_v62 = vld [vmem:[%s9401_s0 + $0x9b0] ss:$36 sps:$4 sm:$0xff]  }
 0x32f   :  { %v4392_v16 = vpop.f32.mrb[22].mxu0 }
 0x330   :  { %v4685_v17 = vmax.f32 %v6053_v18, 0.0  ;;  %v6055_v56 = vadd.f32 %v6054_v5, %v4392_v16  ;;  %v5859_v20 = vpop.f32.mrb[23].mxu0  ;;  %v6064_v16 = vadd.f32 %v8804_v6, %v8611_v40 }
 0x331   :  { %3892 = vmatmul.mubr.bf16.gmra.mrb[132].mxu1 %v7260_v2  ;;  %v7270_v2 = vld [vmem:[%s9401_s0 + $0xa34] ss:$36 sps:$4 sm:$0xff]  }
 0x332   :  { %v5700_v21 = vpack.c.bf16 %v4685_v17, %v4685_v17  ;;  %v4686_v23 = vmax.f32 %v6055_v56, 0.0  ;;  %5965 = vmatmul.mubr.bf16.gmra.mrb[128].mxu0 %v7261_v10  ;;  %3899 = vmatprep.mubr.bf16.mxu1 %v7262_v12  ;;  %v7272_v20 = vld [vmem:[%s9401_s0 + $0xa30] ss:$36 sps:$4 sm:$0xff]  }
 0x333   :  { %5968 = vmatprep.mubr.msk.bf16.mxu0 %vm7309_vm0, %v7308_v33 }
 0x334   :  { %5092 = vst.msk [vmem:[%s9403_s3 + $0x28] sm:$0xf] %vm5081_vm1, %v5700_v21  ;;  %v5701_v26 = vpack.c.bf16 %v4686_v23, %v4686_v23  ;;  %v6066_v21 = vadd.f32 %v8804_v6, %v8616_v0 }
 0x335   :  { %v4397_v30 = vpop.f32.mrb[24].mxu0 }
 0x336   :  { %5093 = vst.msk [vmem:[%s9403_s3 + $0x2c] sm:$0xf] %vm5081_vm1, %v5701_v26  ;;  %v6057_v25 = vadd.f32 %v6056_v7, %v4397_v30  ;;  %v5862_v60 = vpop.f32.mrb[25].mxu0  ;;  %v7273_v7 = vld [vmem:[%s9401_s0 + $0x9f8] ss:$36 sps:$4 sm:$0xff]  }
 0x337   :  { %v4400_v38 = vpop.f32.mrb[26].mxu0  ;;  %v7274_v26 = vld [vmem:[%s9401_s0 + $0xa7c] ss:$36 sps:$4 sm:$0xff]  }
 0x338   :  { %v4687_v41 = vmax.f32 %v6057_v25, 0.0  ;;  %v6059_v43 = vadd.f32 %v6058_v46, %v4400_v38  ;;  %v5863_v49 = vpop.f32.mrb[27].mxu0 }
 0x339   :  { %3900 = vmatmul.mubr.bf16.gmra.mrb[136].mxu1 %v7264_v31 }
 0x33a   :  { %v5702_v28 = vpack.c.bf16 %v4687_v41, %v4687_v41  ;;  %v4688_v45 = vmax.f32 %v6059_v43, 0.0  ;;  %5969 = vmatmul.mubr.bf16.gmra.mrb[132].mxu0 %v7265_v34  ;;  %3907 = vmatprep.mubr.bf16.mxu1 %v7266_v11  ;;  %v6068_v34 = vadd.f32 %v8804_v6, %v8626_v47  ;;  %v7276_v41 = vld [vmem:[%s9401_s0 + $0xa78] ss:$36 sps:$4 sm:$0xff]   ;;  %v6070_v43 = vadd.f32 %v8804_v6, %v8631_v51 }
 0x33b   :  { %5972 = vmatprep.mubr.msk.bf16.mxu0 %vm7309_vm0, %v7308_v33 }
 0x33c   :  { %5094 = vst.msk [vmem:[%s9403_s3 + $0x30] sm:$0xf] %vm5081_vm1, %v5702_v28  ;;  %v5703_v63 = vpack.c.bf16 %v4688_v45, %v4688_v45  ;;  %v7277_v28 = vld [vmem:[%s9401_s0 + $0xa40] ss:$36 sps:$4 sm:$0xff]  }
 0x33d   :  { %v4405_v14 = vpop.f32.mrb[28].mxu0  ;;  %v7278_v45 = vld [vmem:[%s9401_s0 + $0xac4] ss:$36 sps:$4 sm:$0xff]  }
 0x33e   :  { %5095 = vst.msk [vmem:[%s9403_s3 + $0x34] sm:$0xf] %vm5081_vm1, %v5703_v63  ;;  %v6061_v32 = vadd.f32 %v6060_v48, %v4405_v14  ;;  %v5866_v53 = vpop.f32.mrb[29].mxu0 }
 0x33f   :  { %v4408_v5 = vpop.f32.mrb[30].mxu0 }
 0x340   :  { %v4689_v18 = vmax.f32 %v6061_v32, 0.0  ;;  %v6063_v4 = vadd.f32 %v6062_v55, %v4408_v5  ;;  %v5867_v10 = vpop.f32.mrb[31].mxu0  ;;  %v6072_v32 = vadd.f32 %v8804_v6, %v8641_v57  ;;  %v6074_v5 = vadd.f32 %v8804_v6, %v8646_v61 }
 0x341   :  { %3908 = vmatmul.mubr.bf16.gmra.mrb[140].mxu1 %v7268_v54  ;;  %v7282_v10 = vld [vmem:[%s9401_s0 + $0xb0c] ss:$36 sps:$4 sm:$0xff]  }
 0x342   :  { %v5704_v36 = vpack.c.bf16 %v4689_v18, %v4689_v18  ;;  %v4690_v12 = vmax.f32 %v6063_v4, 0.0  ;;  %5973 = vmatmul.mubr.bf16.gmra.mrb[136].mxu0 %v7269_v62  ;;  %3915 = vmatprep.mubr.bf16.mxu1 %v7270_v2  ;;  %v7280_v2 = vld [vmem:[%s9401_s0 + $0xac0] ss:$36 sps:$4 sm:$0xff]   ;;  %v7281_v4 = vld [vmem:[%s9401_s0 + $0xa88] ss:$36 sps:$4 sm:$0xff]  }
 0x343   :  { %5976 = vmatprep.mubr.msk.bf16.mxu0 %vm7309_vm0, %v7308_v33 }
 0x344   :  { %5096 = vst.msk [vmem:[%s9403_s3 + $0x38] sm:$0xf] %vm5081_vm1, %v5704_v36  ;;  %v5705_v17 = vpack.c.bf16 %v4690_v12, %v4690_v12 }
 0x345   :  { %v4413_v56 = vpop.f32.mrb[32].mxu0 }
 0x346   :  { %5097 = vst.msk [vmem:[%s9403_s3 + $0x3c] sm:$0xf] %vm5081_vm1, %v5705_v17  ;;  %v6065_v40 = vadd.f32 %v6064_v16, %v4413_v56  ;;  %v5870_v23 = vpop.f32.mrb[33].mxu0 }
 0x347   :  { %v4416_v30 = vpop.f32.mrb[34].mxu0 }
 0x348   :  { %v4691_v31 = vmax.f32 %v6065_v40, 0.0  ;;  %v6067_v46 = vadd.f32 %v6066_v21, %v4416_v30  ;;  %v5871_v25 = vpop.f32.mrb[35].mxu0  ;;  %v6076_v21 = vadd.f32 %v8804_v6, %v8656_v3 }
 0x349   :  { %3916 = vmatmul.mubr.bf16.gmra.mrb[144].mxu1 %v7272_v20  ;;  %v417_v20 = vld [vmem:[%s9401_s0 + $0xb50] sm:$0xff] }
 0x34a   :  { %v5706_v0 = vpack.c.bf16 %v4691_v31, %v4691_v31  ;;  %v4692_v60 = vmax.f32 %v6067_v46, 0.0  ;;  %5977 = vmatmul.mubr.bf16.gmra.mrb[140].mxu0 %v7273_v7  ;;  %3923 = vmatprep.mubr.bf16.mxu1 %v7274_v26  ;;  %v7284_v7 = vld [vmem:[%s9401_s0 + $0xb08] ss:$36 sps:$4 sm:$0xff]   ;;  %v6078_v26 = vadd.f32 %v8804_v6, %v8661_v8  ;;  %v7285_v31 = vld [vmem:[%s9401_s0 + $0xad0] ss:$36 sps:$4 sm:$0xff]   ;;  %v5533_v46 = vcombine.high %v417_v20, %v417_v20 }
 0x34b   :  { %5980 = vmatprep.mubr.msk.bf16.mxu0 %vm7309_vm0, %v7308_v33  ;;  %v6080_v8 = vadd.f32 %v8804_v6, %v8674_v15  ;;  %v7288_v15 = vld [vmem:[%s9401_s0 + $0xb18] ss:$36 sps:$4 sm:$0xff]  }
 0x34c   :  { %5098 = vst.msk [vmem:[%s9403_s3 + $0x40] sm:$0xf] %vm5081_vm1, %v5706_v0  ;;  %v5707_v11 = vpack.c.bf16 %v4692_v60, %v4692_v60 }
 0x34d   :  { %v4421_v38 = vpop.f32.mrb[36].mxu0 }
 0x34e   :  { %5099 = vst.msk [vmem:[%s9403_s3 + $0x44] sm:$0xf] %vm5081_vm1, %v5707_v11  ;;  %v6069_v47 = vadd.f32 %v6068_v34, %v4421_v38  ;;  %v5874_v49 = vpop.f32.mrb[37].mxu0 }
 0x34f   :  { %v4424_v48 = vpop.f32.mrb[38].mxu0  ;;  %v6082_v49 = vadd.f32 %v8804_v6, %v8679_v19  ;;  %v6084_v19 = vadd.f32 %v8804_v6, %v8686_v24  ;;  %v7289_v24 = vld [vmem:[%s9401_s0 + $0xb60] ss:$0 sps:$4 sm:$0xff]  }
 0x350   :  { %v4693_v63 = vmax.f32 %v6069_v47, 0.0  ;;  %v6071_v14 = vadd.f32 %v6070_v43, %v4424_v48  ;;  %v5875_v54 = vpop.f32.mrb[39].mxu0  ;;  %v5532_v47 = vcombine.low %v417_v20, %v417_v20 }
 0x351   :  { %3924 = vmatmul.mubr.bf16.gmra.mrb[148].mxu1 %v7276_v41 }
 0x352   :  { %v5708_v51 = vpack.c.bf16 %v4693_v63, %v4693_v63  ;;  %v4694_v55 = vmax.f32 %v6071_v14, 0.0  ;;  %5981 = vmatmul.mubr.bf16.gmra.mrb[144].mxu0 %v7277_v28  ;;  %3931 = vmatprep.mubr.bf16.mxu1 %v7278_v45 }
 0x353   :  { %5984 = vmatprep.mubr.msk.bf16.mxu0 %vm7309_vm0, %v7308_v33 }
 0x354   :  { %5100 = vst.msk [vmem:[%s9403_s3 + $0x48] sm:$0xf] %vm5081_vm1, %v5708_v51  ;;  %v5709_v53 = vpack.c.bf16 %v4694_v55, %v4694_v55 }
 0x355   :  { %v4429_v62 = vpop.f32.mrb[40].mxu0 }
 0x356   :  { %5101 = vst.msk [vmem:[%s9403_s3 + $0x4c] sm:$0xf] %vm5081_vm1, %v5709_v53  ;;  %v6073_v57 = vadd.f32 %v6072_v32, %v4429_v62  ;;  %v5878_v18 = vpop.f32.mrb[41].mxu0  ;;  %v6086_v62 = vadd.f32 %v8804_v6, %v8688_v29  ;;  %v6088_v29 = vadd.f32 %v8804_v6, %v8698_v35 }
 0x357   :  { %v4432_v36 = vpop.f32.mrb[42].mxu0 }
 0x358   :  { %v4695_v12 = vmax.f32 %v6073_v57, 0.0  ;;  %v6075_v16 = vadd.f32 %v6074_v5, %v4432_v36  ;;  %v5879_v17 = vpop.f32.mrb[43].mxu0 }
 0x359   :  { %3932 = vmatmul.mubr.bf16.gmra.mrb[152].mxu1 %v7280_v2  ;;  %v6090_v17 = vadd.f32 %v8804_v6, %v8703_v39 }
 0x35a   :  { %v5710_v61 = vpack.c.bf16 %v4695_v12, %v4695_v12  ;;  %v4696_v56 = vmax.f32 %v6075_v16, 0.0  ;;  %5985 = vmatmul.mubr.bf16.gmra.mrb[148].mxu0 %v7281_v4  ;;  %3939 = vmatprep.mubr.bf16.mxu1 %v7282_v10 }
 0x35b   :  { %5988 = vmatprep.mubr.msk.bf16.mxu0 %vm7309_vm0, %v7308_v33 }
 0x35c   :  { %5102 = vst.msk [vmem:[%s9403_s3 + $0x50] sm:$0xf] %vm5081_vm1, %v5710_v61  ;;  %v5711_v40 = vpack.c.bf16 %v4696_v56, %v4696_v56 }
 0x35d   :  { %v4437_v23 = vpop.f32.mrb[44].mxu0 }
 0x35e   :  { %5103 = vst.msk [vmem:[%s9403_s3 + $0x54] sm:$0xf] %vm5081_vm1, %v5711_v40  ;;  %v6077_v3 = vadd.f32 %v6076_v21, %v4437_v23  ;;  %v5882_v30 = vpop.f32.mrb[45].mxu0 }
 0x35f   :  { %v4440_v25 = vpop.f32.mrb[46].mxu0  ;;  %v6094_v30 = vadd.f32 %v8804_v6, %v8718_v50 }
 0x360   :  { %v4697_v0 = vmax.f32 %v6077_v3, 0.0  ;;  %v6079_v60 = vadd.f32 %v6078_v26, %v4440_v25  ;;  %v5883_v34 = vpop.f32.mrb[47].mxu0  ;;  %v6092_v26 = vadd.f32 %v8804_v6, %v8713_v44 }
 0x361   :  { %3940 = vmatmul.mubr.bf16.gmra.mrb[156].mxu1 %v7284_v7 }
 0x362   :  { %v5712_v11 = vpack.c.bf16 %v4697_v0, %v4697_v0  ;;  %v4698_v38 = vmax.f32 %v6079_v60, 0.0  ;;  %5989 = vmatmul.mubr.bf16.gmra.mrb[152].mxu0 %v7285_v31  ;;  %3947 = vmatprep.mubr.bf16.mxu1 %v5533_v46 }
 0x363   :  { %5992 = vmatprep.mubr.msk.bf16.mxu0 %vm7309_vm0, %v7308_v33 }
 0x364   :  { %5104 = vst.msk [vmem:[%s9403_s3 + $0x58] sm:$0xf] %vm5081_vm1, %v5712_v11  ;;  %v5713_v41 = vpack.c.bf16 %v4698_v38, %v4698_v38  ;;  %v6096_v38 = vadd.f32 %v8804_v6, %v8728_v58 }
 0x365   :  { %v4445_v43 = vpop.f32.mrb[48].mxu0 }
 0x366   :  { %5105 = vst.msk [vmem:[%s9403_s3 + $0x5c] sm:$0xf] %vm5081_vm1, %v5713_v41  ;;  %v6081_v28 = vadd.f32 %v6080_v8, %v4445_v43  ;;  %v5886_v45 = vpop.f32.mrb[49].mxu0  ;;  %v6098_v41 = vadd.f32 %v8804_v6, %v8733_v1 }
 0x367   :  { %v4448_v48 = vpop.f32.mrb[50].mxu0 }
 0x368   :  { %v4699_v63 = vmax.f32 %v6081_v28, 0.0  ;;  %v6083_v14 = vadd.f32 %v6082_v49, %v4448_v48  ;;  %v5887_v54 = vpop.f32.mrb[51].mxu0 }
 0x369   :  { %3948 = vmatmul.mubr.bf16.gmra.mrb[160].mxu1 %v5532_v47  ;;  %v6102_v54 = vadd.f32 %v8804_v6, %v8748_v13 }
 0x36a   :  { %v5714_v51 = vpack.c.bf16 %v4699_v63, %v4699_v63  ;;  %v4700_v55 = vmax.f32 %v6083_v14, 0.0  ;;  %5993 = vmatmul.mubr.bf16.gmra.mrb[156].mxu0 %v7288_v15  ;;  %v6100_v63 = vadd.f32 %v8804_v6, %v8743_v9 }
 0x36b   :  { %5996 = vmatprep.mubr.msk.bf16.mxu0 %vm7309_vm0, %v7308_v33 }
 0x36c   :  { %5106 = vst.msk [vmem:[%s9403_s3 + $0x60] sm:$0xf] %vm5081_vm1, %v5714_v51  ;;  %v5715_v32 = vpack.c.bf16 %v4700_v55, %v4700_v55 }
 0x36d   :  { %v4453_v53 = vpop.f32.mrb[52].mxu0 }
 0x36e   :  { %5107 = vst.msk [vmem:[%s9403_s3 + $0x64] sm:$0xf] %vm5081_vm1, %v5715_v32  ;;  %v6085_v2 = vadd.f32 %v6084_v19, %v4453_v53  ;;  %v5890_v33 = vpop.f32.mrb[53].mxu0 }
 0x36f   :  { %v4456_v5 = vpop.f32.mrb[54].mxu0  ;;  %v6104_v33 = vadd.f32 %v8804_v6, %v8758_v22 }
 0x370   :  { %v4701_v57 = vmax.f32 %v6085_v2, 0.0  ;;  %v6087_v18 = vadd.f32 %v6086_v62, %v4456_v5  ;;  %v5891_v4 = vpop.f32.mrb[55].mxu0  ;;  %v6106_v5 = vadd.f32 %v8804_v6, %v8763_v27 }
 0x372   :  { %v5716_v10 = vpack.c.bf16 %v4701_v57, %v4701_v57  ;;  %v4702_v36 = vmax.f32 %v6087_v18, 0.0  ;;  %5997 = vmatmul.mubr.bf16.gmra.mrb[160].mxu0 %v7289_v24 }
 0x374   :  { %5108 = vst.msk [vmem:[%s9403_s3 + $0x68] sm:$0xf] %vm5081_vm1, %v5716_v10  ;;  %v5717_v12 = vpack.c.bf16 %v4702_v36, %v4702_v36 }
 0x375   :  { %v4461_v16 = vpop.f32.mrb[56].mxu0 }
 0x376   :  { %5109 = vst.msk [vmem:[%s9403_s3 + $0x6c] sm:$0xf] %vm5081_vm1, %v5717_v12  ;;  %v6089_v61 = vadd.f32 %v6088_v29, %v4461_v16  ;;  %v5894_v56 = vpop.f32.mrb[57].mxu0  ;;  %v6108_v16 = vadd.f32 %v8804_v6, %v8773_v37 }
 0x377   :  { %v4464_v20 = vpop.f32.mrb[58].mxu0 }
 0x378   :  { %v4703_v21 = vmax.f32 %v6089_v61, 0.0  ;;  %v6091_v35 = vadd.f32 %v6090_v17, %v4464_v20  ;;  %v5895_v40 = vpop.f32.mrb[59].mxu0  ;;  %v6110_v61 = vadd.f32 %v8804_v6, %v8778_v42 }
 0x37a   :  { %v5718_v23 = vpack.c.bf16 %v4703_v21, %v4703_v21  ;;  %v4704_v7 = vmax.f32 %v6091_v35, 0.0 }
 0x37c   :  { %5110 = vst.msk [vmem:[%s9403_s3 + $0x70] sm:$0xf] %vm5081_vm1, %v5718_v23  ;;  %v5719_v39 = vpack.c.bf16 %v4704_v7, %v4704_v7 }
 0x37d   :  { %v4469_v3 = vpop.f32.mrb[60].mxu0 }
 0x37e   :  { %5111 = vst.msk [vmem:[%s9403_s3 + $0x74] sm:$0xf] %vm5081_vm1, %v5719_v39  ;;  %v6093_v31 = vadd.f32 %v6092_v26, %v4469_v3  ;;  %v5898_v46 = vpop.f32.mrb[61].mxu0  ;;  %v6112_v26 = vadd.f32 %v8804_v6, %v8788_v52 }
 0x37f   :  { %v4472_v25 = vpop.f32.mrb[62].mxu0 }
 0x380   :  { %v4705_v0 = vmax.f32 %v6093_v31, 0.0  ;;  %v6095_v44 = vadd.f32 %v6094_v30, %v4472_v25  ;;  %v5899_v60 = vpop.f32.mrb[63].mxu0  ;;  %v6114_v31 = vadd.f32 %v8804_v6, %v8793_v59 }
 0x382   :  { %v5720_v34 = vpack.c.bf16 %v4705_v0, %v4705_v0  ;;  %v4706_v11 = vmax.f32 %v6095_v44, 0.0 }
 0x384   :  { %5112 = vst.msk [vmem:[%s9403_s3 + $0x78] sm:$0xf] %vm5081_vm1, %v5720_v34  ;;  %v5721_v50 = vpack.c.bf16 %v4706_v11, %v4706_v11 }
 0x385   :  { %v4477_v8 = vpop.f32.mrb[64].mxu0 }
 0x386   :  { %5113 = vst.msk [vmem:[%s9403_s3 + $0x7c] sm:$0xf] %vm5081_vm1, %v5721_v50  ;;  %v6097_v43 = vadd.f32 %v6096_v38, %v4477_v8  ;;  %v5902_v47 = vpop.f32.mrb[65].mxu0 }
 0x387   :  { %v4480_v49 = vpop.f32.mrb[66].mxu0 }
 0x388   :  { %v4707_v28 = vmax.f32 %v6097_v43, 0.0  ;;  %v6099_v58 = vadd.f32 %v6098_v41, %v4480_v49  ;;  %v5903_v45 = vpop.f32.mrb[67].mxu0 }
 0x38a   :  { %v5722_v15 = vpack.c.bf16 %v4707_v28, %v4707_v28  ;;  %v4708_v48 = vmax.f32 %v6099_v58, 0.0 }
 0x38c   :  { %5114 = vst.msk [vmem:[%s9403_s3 + $0x80] sm:$0xf] %vm5081_vm1, %v5722_v15  ;;  %v5723_v1 = vpack.c.bf16 %v4708_v48, %v4708_v48 }
 0x38d   :  { %v4485_v14 = vpop.f32.mrb[68].mxu0 }
 0x38e   :  { %5115 = vst.msk [vmem:[%s9403_s3 + $0x84] sm:$0xf] %vm5081_vm1, %v5723_v1  ;;  %v6101_v51 = vadd.f32 %v6100_v63, %v4485_v14  ;;  %v5906_v55 = vpop.f32.mrb[69].mxu0 }
 0x38f   :  { %v4488_v19 = vpop.f32.mrb[70].mxu0 }
 0x390   :  { %v4709_v32 = vmax.f32 %v6101_v51, 0.0  ;;  %v6103_v9 = vadd.f32 %v6102_v54, %v4488_v19  ;;  %v5907_v53 = vpop.f32.mrb[71].mxu0 }
 0x392   :  { %v5724_v62 = vpack.c.bf16 %v4709_v32, %v4709_v32  ;;  %v4710_v2 = vmax.f32 %v6103_v9, 0.0 }
 0x394   :  { %5116 = vst.msk [vmem:[%s9403_s3 + $0x88] sm:$0xf] %vm5081_vm1, %v5724_v62  ;;  %v5725_v13 = vpack.c.bf16 %v4710_v2, %v4710_v2 }
 0x395   :  { %v4493_v24 = vpop.f32.mrb[72].mxu0 }
 0x396   :  { %5117 = vst.msk [vmem:[%s9403_s3 + $0x8c] sm:$0xf] %vm5081_vm1, %v5725_v13  ;;  %v6105_v57 = vadd.f32 %v6104_v33, %v4493_v24  ;;  %v5910_v18 = vpop.f32.mrb[73].mxu0 }
 0x397   :  { %v4496_v4 = vpop.f32.mrb[74].mxu0 }
 0x398   :  { %v4711_v10 = vmax.f32 %v6105_v57, 0.0  ;;  %v6107_v22 = vadd.f32 %v6106_v5, %v4496_v4  ;;  %v5911_v36 = vpop.f32.mrb[75].mxu0 }
 0x39a   :  { %v5726_v29 = vpack.c.bf16 %v4711_v10, %v4711_v10  ;;  %v4712_v12 = vmax.f32 %v6107_v22, 0.0 }
 0x39c   :  { %5118 = vst.msk [vmem:[%s9403_s3 + $0x90] sm:$0xf] %vm5081_vm1, %v5726_v29  ;;  %v5727_v27 = vpack.c.bf16 %v4712_v12, %v4712_v12 }
 0x39d   :  { %v4501_v17 = vpop.f32.mrb[76].mxu0 }
 0x39e   :  { %5119 = vst.msk [vmem:[%s9403_s3 + $0x94] sm:$0xf] %vm5081_vm1, %v5727_v27  ;;  %v6109_v56 = vadd.f32 %v6108_v16, %v4501_v17  ;;  %v5914_v20 = vpop.f32.mrb[77].mxu0 }
 0x39f   :  { %v4504_v21 = vpop.f32.mrb[78].mxu0 }
 0x3a0   :  { %v4713_v35 = vmax.f32 %v6109_v56, 0.0  ;;  %v6111_v37 = vadd.f32 %v6110_v61, %v4504_v21  ;;  %v5915_v40 = vpop.f32.mrb[79].mxu0 }
 0x3a2   :  { %v5728_v23 = vpack.c.bf16 %v4713_v35, %v4713_v35  ;;  %v4714_v7 = vmax.f32 %v6111_v37, 0.0 }
 0x3a4   :  { %5120 = vst.msk [vmem:[%s9403_s3 + $0x98] sm:$0xf] %vm5081_vm1, %v5728_v23  ;;  %v5729_v42 = vpack.c.bf16 %v4714_v7, %v4714_v7  ;;  %v3797_v39 = vpop.f32.mrb[84].mxu1 }
 0x3a5   :  { %v4509_v3 = vpop.f32.mrb[80].mxu0  ;;  %v3799_v30 = vpop.f32.mrb[85].mxu1  ;;  %v6116_v8 = vadd.f32 %v8804_v6, %v3797_v39 }
 0x3a6   :  { %5121 = vst.msk [vmem:[%s9403_s3 + $0x9c] sm:$0xf] %vm5081_vm1, %v5729_v42  ;;  %v6113_v46 = vadd.f32 %v6112_v26, %v4509_v3  ;;  %v5918_v25 = vpop.f32.mrb[81].mxu0  ;;  %v3800_v52 = vpop.f32.mrb[86].mxu1 }
 0x3a7   :  { %v4512_v0 = vpop.f32.mrb[82].mxu0  ;;  %v3802_v44 = vpop.f32.mrb[87].mxu1  ;;  %v6118_v49 = vadd.f32 %v8804_v6, %v3800_v52 }
 0x3a8   :  { %v4715_v60 = vmax.f32 %v6113_v46, 0.0  ;;  %v6115_v34 = vadd.f32 %v6114_v31, %v4512_v0  ;;  %v5919_v11 = vpop.f32.mrb[83].mxu0 }
 0x3aa   :  { %v5730_v38 = vpack.c.bf16 %v4715_v60, %v4715_v60  ;;  %v4716_v50 = vmax.f32 %v6115_v34, 0.0 }
 0x3ac   :  { %5122 = vst.msk [vmem:[%s9403_s3 + $0xa0] sm:$0xf] %vm5081_vm1, %v5730_v38  ;;  %v5731_v59 = vpack.c.bf16 %v4716_v50, %v4716_v50  ;;  %v3805_v41 = vpop.f32.mrb[88].mxu1 }
 0x3ad   :  { %v4517_v43 = vpop.f32.mrb[84].mxu0  ;;  %v3807_v47 = vpop.f32.mrb[89].mxu1  ;;  %v6120_v55 = vadd.f32 %v8804_v6, %v3805_v41 }
 0x3ae   :  { %5123 = vst.msk [vmem:[%s9403_s3 + $0xa4] sm:$0xf] %vm5081_vm1, %v5731_v59  ;;  %v6117_v28 = vadd.f32 %v6116_v8, %v4517_v43  ;;  %v5922_v58 = vpop.f32.mrb[85].mxu0  ;;  %v3808_v45 = vpop.f32.mrb[90].mxu1 }
 0x3af   :  { %v4520_v15 = vpop.f32.mrb[86].mxu0  ;;  %v3810_v48 = vpop.f32.mrb[91].mxu1  ;;  %v6122_v62 = vadd.f32 %v8804_v6, %v3808_v45 }
 0x3b0   :  { %v4717_v63 = vmax.f32 %v6117_v28, 0.0  ;;  %v6119_v1 = vadd.f32 %v6118_v49, %v4520_v15  ;;  %v5923_v14 = vpop.f32.mrb[87].mxu0 }
 0x3b2   :  { %v5732_v54 = vpack.c.bf16 %v4717_v63, %v4717_v63  ;;  %v4718_v51 = vmax.f32 %v6119_v1, 0.0 }
 0x3b4   :  { %5124 = vst.msk [vmem:[%s9403_s3 + $0xa8] sm:$0xf] %vm5081_vm1, %v5732_v54  ;;  %v5733_v19 = vpack.c.bf16 %v4718_v51, %v4718_v51  ;;  %v3813_v32 = vpop.f32.mrb[92].mxu1 }
 0x3b5   :  { %v4525_v9 = vpop.f32.mrb[88].mxu0  ;;  %v3815_v53 = vpop.f32.mrb[93].mxu1  ;;  %v6124_v36 = vadd.f32 %v8804_v6, %v3813_v32 }
 0x3b6   :  { %5125 = vst.msk [vmem:[%s9403_s3 + $0xac] sm:$0xf] %vm5081_vm1, %v5733_v19  ;;  %v6121_v2 = vadd.f32 %v6120_v55, %v4525_v9  ;;  %v5926_v33 = vpop.f32.mrb[89].mxu0  ;;  %v3816_v13 = vpop.f32.mrb[94].mxu1 }
 0x3b7   :  { %v4528_v24 = vpop.f32.mrb[90].mxu0  ;;  %v3818_v5 = vpop.f32.mrb[95].mxu1  ;;  %v6126_v17 = vadd.f32 %v8804_v6, %v3816_v13 }
 0x3b8   :  { %v4719_v57 = vmax.f32 %v6121_v2, 0.0  ;;  %v6123_v18 = vadd.f32 %v6122_v62, %v4528_v24  ;;  %v5927_v4 = vpop.f32.mrb[91].mxu0 }
 0x3ba   :  { %v5734_v10 = vpack.c.bf16 %v4719_v57, %v4719_v57  ;;  %v4720_v22 = vmax.f32 %v6123_v18, 0.0 }
 0x3bc   :  { %5126 = vst.msk [vmem:[%s9403_s3 + $0xb0] sm:$0xf] %vm5081_vm1, %v5734_v10  ;;  %v5735_v29 = vpack.c.bf16 %v4720_v22, %v4720_v22  ;;  %v3821_v12 = vpop.f32.mrb[96].mxu1 }
 0x3bd   :  { %v4533_v16 = vpop.f32.mrb[92].mxu0  ;;  %v3823_v27 = vpop.f32.mrb[97].mxu1  ;;  %v6128_v42 = vadd.f32 %v8804_v6, %v3821_v12 }
 0x3be   :  { %5127 = vst.msk [vmem:[%s9403_s3 + $0xb4] sm:$0xf] %vm5081_vm1, %v5735_v29  ;;  %v6125_v61 = vadd.f32 %v6124_v36, %v4533_v16  ;;  %v5930_v56 = vpop.f32.mrb[93].mxu0  ;;  %v3824_v20 = vpop.f32.mrb[98].mxu1 }
 0x3bf   :  { %v4536_v21 = vpop.f32.mrb[94].mxu0  ;;  %v3826_v35 = vpop.f32.mrb[99].mxu1  ;;  %v6130_v46 = vadd.f32 %v8804_v6, %v3824_v20 }
 0x3c0   :  { %v4721_v37 = vmax.f32 %v6125_v61, 0.0  ;;  %v6127_v40 = vadd.f32 %v6126_v17, %v4536_v21  ;;  %v5931_v23 = vpop.f32.mrb[95].mxu0 }
 0x3c2   :  { %v5736_v7 = vpack.c.bf16 %v4721_v37, %v4721_v37  ;;  %v4722_v26 = vmax.f32 %v6127_v40, 0.0 }
 0x3c4   :  { %5128 = vst.msk [vmem:[%s9403_s3 + $0xb8] sm:$0xf] %vm5081_vm1, %v5736_v7  ;;  %v5737_v39 = vpack.c.bf16 %v4722_v26, %v4722_v26  ;;  %v3829_v3 = vpop.f32.mrb[100].mxu1 }
 0x3c5   :  { %v4541_v30 = vpop.f32.mrb[96].mxu0  ;;  %v3831_v31 = vpop.f32.mrb[101].mxu1  ;;  %v6132_v59 = vadd.f32 %v8804_v6, %v3829_v3 }
 0x3c6   :  { %5129 = vst.msk [vmem:[%s9403_s3 + $0xbc] sm:$0xf] %vm5081_vm1, %v5737_v39  ;;  %v6129_v25 = vadd.f32 %v6128_v42, %v4541_v30  ;;  %v5934_v52 = vpop.f32.mrb[97].mxu0  ;;  %v3832_v0 = vpop.f32.mrb[102].mxu1  ;;  %v9265_v39 = vld [vmem:[%s9402_s2] ss:$0 sm:$0xff] }
 0x3c7   :  { %v4544_v44 = vpop.f32.mrb[98].mxu0  ;;  %v3834_v60 = vpop.f32.mrb[103].mxu1  ;;  %v6134_v28 = vadd.f32 %v8804_v6, %v3832_v0 }
 0x3c8   :  { %v4723_v34 = vmax.f32 %v6129_v25, 0.0  ;;  %v6131_v11 = vadd.f32 %v6130_v46, %v4544_v44  ;;  %v5935_v38 = vpop.f32.mrb[99].mxu0 }
 0x3ca   :  { %v5738_v50 = vpack.c.bf16 %v4723_v34, %v4723_v34  ;;  %v4724_v8 = vmax.f32 %v6131_v11, 0.0 }
 0x3cc   :  { %5130 = vst.msk [vmem:[%s9403_s3 + $0xc0] sm:$0xf] %vm5081_vm1, %v5738_v50  ;;  %v5739_v41 = vpack.c.bf16 %v4724_v8, %v4724_v8  ;;  %v3837_v43 = vpop.f32.mrb[104].mxu1 }
 0x3cd   :  { %v4549_v47 = vpop.f32.mrb[100].mxu0  ;;  %v3839_v49 = vpop.f32.mrb[105].mxu1  ;;  %v6136_v19 = vadd.f32 %v8804_v6, %v3837_v43 }
 0x3ce   :  { %5131 = vst.msk [vmem:[%s9403_s3 + $0xc4] sm:$0xf] %vm5081_vm1, %v5739_v41  ;;  %v6133_v58 = vadd.f32 %v6132_v59, %v4549_v47  ;;  %v5938_v45 = vpop.f32.mrb[101].mxu0  ;;  %v3840_v15 = vpop.f32.mrb[106].mxu1 }
 0x3cf   :  { %v4552_v48 = vpop.f32.mrb[102].mxu0  ;;  %v3842_v63 = vpop.f32.mrb[107].mxu1  ;;  %v6138_v2 = vadd.f32 %v8804_v6, %v3840_v15 }
 0x3d0   :  { %v4725_v1 = vmax.f32 %v6133_v58, 0.0  ;;  %v6135_v14 = vadd.f32 %v6134_v28, %v4552_v48  ;;  %v5939_v54 = vpop.f32.mrb[103].mxu0 }
 0x3d2   :  { %v5740_v51 = vpack.c.bf16 %v4725_v1, %v4725_v1  ;;  %v4726_v55 = vmax.f32 %v6135_v14, 0.0 }
 0x3d4   :  { %5132 = vst.msk [vmem:[%s9403_s3 + $0xc8] sm:$0xf] %vm5081_vm1, %v5740_v51  ;;  %v5741_v32 = vpack.c.bf16 %v4726_v55, %v4726_v55  ;;  %v3845_v9 = vpop.f32.mrb[108].mxu1 }
 0x3d5   :  { %v4557_v53 = vpop.f32.mrb[104].mxu0  ;;  %v3847_v62 = vpop.f32.mrb[109].mxu1  ;;  %v6140_v29 = vadd.f32 %v8804_v6, %v3845_v9 }
 0x3d6   :  { %5133 = vst.msk [vmem:[%s9403_s3 + $0xcc] sm:$0xf] %vm5081_vm1, %v5741_v32  ;;  %v6137_v33 = vadd.f32 %v6136_v19, %v4557_v53  ;;  %v5942_v13 = vpop.f32.mrb[105].mxu0  ;;  %v3848_v24 = vpop.f32.mrb[110].mxu1 }
 0x3d7   :  { %v4560_v5 = vpop.f32.mrb[106].mxu0  ;;  %v3850_v57 = vpop.f32.mrb[111].mxu1  ;;  %v6142_v61 = vadd.f32 %v8804_v6, %v3848_v24 }
 0x3d8   :  { %v4727_v18 = vmax.f32 %v6137_v33, 0.0  ;;  %v6139_v4 = vadd.f32 %v6138_v2, %v4560_v5  ;;  %v5943_v10 = vpop.f32.mrb[107].mxu0 }
 0x3da   :  { %v5742_v22 = vpack.c.bf16 %v4727_v18, %v4727_v18  ;;  %v4728_v36 = vmax.f32 %v6139_v4, 0.0 }
 0x3dc   :  { %5134 = vst.msk [vmem:[%s9403_s3 + $0xd0] sm:$0xf] %vm5081_vm1, %v5742_v22  ;;  %v5743_v12 = vpack.c.bf16 %v4728_v36, %v4728_v36  ;;  %v3853_v16 = vpop.f32.mrb[112].mxu1 }
 0x3dd   :  { %v4565_v27 = vpop.f32.mrb[108].mxu0  ;;  %v3855_v17 = vpop.f32.mrb[113].mxu1  ;;  %v6144_v6 = vadd.f32 %v9265_v39, %v3853_v16 }
 0x3de   :  { %5135 = vst.msk [vmem:[%s9403_s3 + $0xd4] sm:$0xf] %vm5081_vm1, %v5743_v12  ;;  %v6141_v56 = vadd.f32 %v6140_v29, %v4565_v27  ;;  %v5946_v20 = vpop.f32.mrb[109].mxu0  ;;  %v3856_v21 = vpop.f32.mrb[114].mxu1 }
 0x3df   :  { %v4568_v35 = vpop.f32.mrb[110].mxu0  ;;  %v3858_v37 = vpop.f32.mrb[115].mxu1  ;;  %v6146_v25 = vadd.f32 %v9265_v39, %v3856_v21 }
 0x3e0   :  { %v4729_v40 = vmax.f32 %v6141_v56, 0.0  ;;  %v6143_v23 = vadd.f32 %v6142_v61, %v4568_v35  ;;  %v5947_v7 = vpop.f32.mrb[111].mxu0 }
 0x3e2   :  { %v5744_v26 = vpack.c.bf16 %v4729_v40, %v4729_v40  ;;  %v4730_v42 = vmax.f32 %v6143_v23, 0.0 }
 0x3e4   :  { %5136 = vst.msk [vmem:[%s9403_s3 + $0xd8] sm:$0xf] %vm5081_vm1, %v5744_v26  ;;  %v5745_v3 = vpack.c.bf16 %v4730_v42, %v4730_v42  ;;  %v3861_v30 = vpop.f32.mrb[116].mxu1 }
 0x3e5   :  { %v4573_v31 = vpop.f32.mrb[112].mxu0  ;;  %v3863_v46 = vpop.f32.mrb[117].mxu1  ;;  %v6148_v41 = vadd.f32 %v9265_v39, %v3861_v30 }
 0x3e6   :  { %5137 = vst.msk [vmem:[%s9403_s3 + $0xdc] sm:$0xf] %vm5081_vm1, %v5745_v3  ;;  %v6145_v52 = vadd.f32 %v6144_v6, %v4573_v31  ;;  %v5950_v0 = vpop.f32.mrb[113].mxu0  ;;  %v3864_v44 = vpop.f32.mrb[118].mxu1 }
 0x3e7   :  { %v4576_v60 = vpop.f32.mrb[114].mxu0  ;;  %v3866_v34 = vpop.f32.mrb[119].mxu1  ;;  %v6150_v58 = vadd.f32 %v9265_v39, %v3864_v44 }
 0x3e8   :  { %v4731_v11 = vmax.f32 %v6145_v52, 0.0  ;;  %v6147_v38 = vadd.f32 %v6146_v25, %v4576_v60  ;;  %v5951_v50 = vpop.f32.mrb[115].mxu0 }
 0x3ea   :  { %v5746_v8 = vpack.c.bf16 %v4731_v11, %v4731_v11  ;;  %v4732_v59 = vmax.f32 %v6147_v38, 0.0 }
 0x3ec   :  { %5138 = vst.msk [vmem:[%s9403_s3 + $0xe0] sm:$0xf] %vm5081_vm1, %v5746_v8  ;;  %v5747_v43 = vpack.c.bf16 %v4732_v59, %v4732_v59  ;;  %v3869_v47 = vpop.f32.mrb[120].mxu1 }
 0x3ed   :  { %v4581_v49 = vpop.f32.mrb[116].mxu0  ;;  %v3871_v28 = vpop.f32.mrb[121].mxu1  ;;  %v6152_v32 = vadd.f32 %v9265_v39, %v3869_v47 }
 0x3ee   :  { %5139 = vst.msk [vmem:[%s9403_s3 + $0xe4] sm:$0xf] %vm5081_vm1, %v5747_v43  ;;  %v6149_v45 = vadd.f32 %v6148_v41, %v4581_v49  ;;  %v5954_v15 = vpop.f32.mrb[117].mxu0  ;;  %v3872_v48 = vpop.f32.mrb[122].mxu1 }
 0x3ef   :  { %v4584_v63 = vpop.f32.mrb[118].mxu0  ;;  %v3874_v1 = vpop.f32.mrb[123].mxu1  ;;  %v6154_v33 = vadd.f32 %v9265_v39, %v3872_v48 }
 0x3f0   :  { %v4733_v14 = vmax.f32 %v6149_v45, 0.0  ;;  %v6151_v54 = vadd.f32 %v6150_v58, %v4584_v63  ;;  %v5955_v51 = vpop.f32.mrb[119].mxu0 }
 0x3f2   :  { %v5748_v55 = vpack.c.bf16 %v4733_v14, %v4733_v14  ;;  %v4734_v19 = vmax.f32 %v6151_v54, 0.0 }
 0x3f4   :  { %5140 = vst.msk [vmem:[%s9403_s3 + $0xe8] sm:$0xf] %vm5081_vm1, %v5748_v55  ;;  %v5749_v9 = vpack.c.bf16 %v4734_v19, %v4734_v19  ;;  %v3877_v53 = vpop.f32.mrb[124].mxu1 }
 0x3f5   :  { %v4589_v62 = vpop.f32.mrb[120].mxu0  ;;  %v3879_v2 = vpop.f32.mrb[125].mxu1  ;;  %v6156_v12 = vadd.f32 %v9265_v39, %v3877_v53 }
 0x3f6   :  { %5141 = vst.msk [vmem:[%s9403_s3 + $0xec] sm:$0xf] %vm5081_vm1, %v5749_v9  ;;  %v6153_v13 = vadd.f32 %v6152_v32, %v4589_v62  ;;  %v5958_v24 = vpop.f32.mrb[121].mxu0  ;;  %v3880_v5 = vpop.f32.mrb[126].mxu1 }
 0x3f7   :  { %v4592_v57 = vpop.f32.mrb[122].mxu0  ;;  %v3882_v18 = vpop.f32.mrb[127].mxu1  ;;  %v6158_v56 = vadd.f32 %v9265_v39, %v3880_v5 }
 0x3f8   :  { %v4735_v4 = vmax.f32 %v6153_v13, 0.0  ;;  %v6155_v10 = vadd.f32 %v6154_v33, %v4592_v57  ;;  %v5959_v22 = vpop.f32.mrb[123].mxu0 }
 0x3fa   :  { %v5750_v36 = vpack.c.bf16 %v4735_v4, %v4735_v4  ;;  %v4736_v29 = vmax.f32 %v6155_v10, 0.0 }
 0x3fc   :  { %5142 = vst.msk [vmem:[%s9403_s3 + $0xf0] sm:$0xf] %vm5081_vm1, %v5750_v36  ;;  %v5751_v16 = vpack.c.bf16 %v4736_v29, %v4736_v29  ;;  %v3885_v27 = vpop.f32.mrb[128].mxu1 }
 0x3fd   :  { %v4597_v17 = vpop.f32.mrb[124].mxu0  ;;  %v3887_v61 = vpop.f32.mrb[129].mxu1  ;;  %v6160_v3 = vadd.f32 %v9265_v39, %v3885_v27 }
 0x3fe   :  { %5143 = vst.msk [vmem:[%s9403_s3 + $0xf4] sm:$0xf] %vm5081_vm1, %v5751_v16  ;;  %v6157_v20 = vadd.f32 %v6156_v12, %v4597_v17  ;;  %v5962_v21 = vpop.f32.mrb[125].mxu0  ;;  %v3888_v35 = vpop.f32.mrb[130].mxu1 }
 0x3ff   :  { %v4600_v37 = vpop.f32.mrb[126].mxu0  ;;  %v3890_v40 = vpop.f32.mrb[131].mxu1  ;;  %v6162_v52 = vadd.f32 %v9265_v39, %v3888_v35 }
 0x400   :  { %v4737_v23 = vmax.f32 %v6157_v20, 0.0  ;;  %v6159_v7 = vadd.f32 %v6158_v56, %v4600_v37  ;;  %v5963_v26 = vpop.f32.mrb[127].mxu0 }
 0x402   :  { %v5752_v42 = vpack.c.bf16 %v4737_v23, %v4737_v23  ;;  %v4738_v6 = vmax.f32 %v6159_v7, 0.0 }
 0x404   :  { %5144 = vst.msk [vmem:[%s9403_s3 + $0xf8] sm:$0xf] %vm5081_vm1, %v5752_v42  ;;  %v5753_v30 = vpack.c.bf16 %v4738_v6, %v4738_v6  ;;  %v3893_v31 = vpop.f32.mrb[132].mxu1 }
 0x405   :  { %v4605_v46 = vpop.f32.mrb[128].mxu0  ;;  %v3895_v25 = vpop.f32.mrb[133].mxu1  ;;  %v6164_v43 = vadd.f32 %v9265_v39, %v3893_v31 }
 0x406   :  { %5145 = vst.msk [vmem:[%s9403_s3 + $0xfc] sm:$0xf] %vm5081_vm1, %v5753_v30  ;;  %v6161_v0 = vadd.f32 %v6160_v3, %v4605_v46  ;;  %v5966_v44 = vpop.f32.mrb[129].mxu0  ;;  %v3896_v60 = vpop.f32.mrb[134].mxu1 }
 0x407   :  { %v4608_v34 = vpop.f32.mrb[130].mxu0  ;;  %v3898_v11 = vpop.f32.mrb[135].mxu1  ;;  %v6166_v45 = vadd.f32 %v9265_v39, %v3896_v60 }
 0x408   :  { %v4739_v38 = vmax.f32 %v6161_v0, 0.0  ;;  %v6163_v50 = vadd.f32 %v6162_v52, %v4608_v34  ;;  %v5967_v8 = vpop.f32.mrb[131].mxu0 }
 0x40a   :  { %v5754_v59 = vpack.c.bf16 %v4739_v38, %v4739_v38  ;;  %v4740_v41 = vmax.f32 %v6163_v50, 0.0 }
 0x40c   :  { %5146 = vst.msk [vmem:[%s9403_s3 + $0x100] sm:$0xf] %vm5081_vm1, %v5754_v59  ;;  %v5755_v47 = vpack.c.bf16 %v4740_v41, %v4740_v41  ;;  %v3901_v49 = vpop.f32.mrb[136].mxu1 }
 0x40d   :  { %v4613_v28 = vpop.f32.mrb[132].mxu0  ;;  %v3903_v58 = vpop.f32.mrb[137].mxu1  ;;  %v6168_v9 = vadd.f32 %v9265_v39, %v3901_v49 }
 0x40e   :  { %5147 = vst.msk [vmem:[%s9403_s3 + $0x104] sm:$0xf] %vm5081_vm1, %v5755_v47  ;;  %v6165_v15 = vadd.f32 %v6164_v43, %v4613_v28  ;;  %v5970_v48 = vpop.f32.mrb[133].mxu0  ;;  %v3904_v63 = vpop.f32.mrb[138].mxu1 }
 0x40f   :  { %v4616_v1 = vpop.f32.mrb[134].mxu0  ;;  %v3906_v14 = vpop.f32.mrb[139].mxu1  ;;  %v6170_v13 = vadd.f32 %v9265_v39, %v3904_v63 }
 0x410   :  { %v4741_v54 = vmax.f32 %v6165_v15, 0.0  ;;  %v6167_v51 = vadd.f32 %v6166_v45, %v4616_v1  ;;  %v5971_v55 = vpop.f32.mrb[135].mxu0 }
 0x412   :  { %v5756_v19 = vpack.c.bf16 %v4741_v54, %v4741_v54  ;;  %v4742_v32 = vmax.f32 %v6167_v51, 0.0 }
 0x414   :  { %5148 = vst.msk [vmem:[%s9403_s3 + $0x108] sm:$0xf] %vm5081_vm1, %v5756_v19  ;;  %v5757_v53 = vpack.c.bf16 %v4742_v32, %v4742_v32  ;;  %v3909_v62 = vpop.f32.mrb[140].mxu1 }
 0x415   :  { %v4621_v2 = vpop.f32.mrb[136].mxu0  ;;  %v3911_v33 = vpop.f32.mrb[141].mxu1  ;;  %v6172_v16 = vadd.f32 %v9265_v39, %v3909_v62 }
 0x416   :  { %5149 = vst.msk [vmem:[%s9403_s3 + $0x10c] sm:$0xf] %vm5081_vm1, %v5757_v53  ;;  %v6169_v24 = vadd.f32 %v6168_v9, %v4621_v2  ;;  %v5974_v5 = vpop.f32.mrb[137].mxu0  ;;  %v3912_v57 = vpop.f32.mrb[142].mxu1 }
 0x417   :  { %v4624_v18 = vpop.f32.mrb[138].mxu0  ;;  %v3914_v4 = vpop.f32.mrb[143].mxu1  ;;  %v6174_v20 = vadd.f32 %v9265_v39, %v3912_v57 }
 0x418   :  { %v4743_v10 = vmax.f32 %v6169_v24, 0.0  ;;  %v6171_v22 = vadd.f32 %v6170_v13, %v4624_v18  ;;  %v5975_v36 = vpop.f32.mrb[139].mxu0 }
 0x41a   :  { %v5758_v29 = vpack.c.bf16 %v4743_v10, %v4743_v10  ;;  %v4744_v12 = vmax.f32 %v6171_v22, 0.0 }
 0x41c   :  { %5150 = vst.msk [vmem:[%s9403_s3 + $0x110] sm:$0xf] %vm5081_vm1, %v5758_v29  ;;  %v5759_v27 = vpack.c.bf16 %v4744_v12, %v4744_v12  ;;  %v3917_v17 = vpop.f32.mrb[144].mxu1 }
 0x41d   :  { %v4629_v61 = vpop.f32.mrb[140].mxu0  ;;  %v3919_v56 = vpop.f32.mrb[145].mxu1  ;;  %v6176_v30 = vadd.f32 %v9265_v39, %v3917_v17 }
 0x41e   :  { %5151 = vst.msk [vmem:[%s9403_s3 + $0x114] sm:$0xf] %vm5081_vm1, %v5759_v27  ;;  %v6173_v21 = vadd.f32 %v6172_v16, %v4629_v61  ;;  %v5978_v35 = vpop.f32.mrb[141].mxu0  ;;  %v3920_v37 = vpop.f32.mrb[146].mxu1 }
 0x41f   :  { %v4632_v40 = vpop.f32.mrb[142].mxu0  ;;  %v3922_v23 = vpop.f32.mrb[147].mxu1  ;;  %v6178_v0 = vadd.f32 %v9265_v39, %v3920_v37 }
 0x420   :  { %v4745_v7 = vmax.f32 %v6173_v21, 0.0  ;;  %v6175_v26 = vadd.f32 %v6174_v20, %v4632_v40  ;;  %v5979_v42 = vpop.f32.mrb[143].mxu0 }
 0x422   :  { %v5760_v6 = vpack.c.bf16 %v4745_v7, %v4745_v7  ;;  %v4746_v3 = vmax.f32 %v6175_v26, 0.0 }
 0x424   :  { %5152 = vst.msk [vmem:[%s9403_s3 + $0x118] sm:$0xf] %vm5081_vm1, %v5760_v6  ;;  %v5761_v31 = vpack.c.bf16 %v4746_v3, %v4746_v3  ;;  %v3925_v46 = vpop.f32.mrb[148].mxu1 }
 0x425   :  { %v4637_v25 = vpop.f32.mrb[144].mxu0  ;;  %v3927_v52 = vpop.f32.mrb[149].mxu1  ;;  %v6180_v47 = vadd.f32 %v9265_v39, %v3925_v46 }
 0x426   :  { %5153 = vst.msk [vmem:[%s9403_s3 + $0x11c] sm:$0xf] %vm5081_vm1, %v5761_v31  ;;  %v6177_v44 = vadd.f32 %v6176_v30, %v4637_v25  ;;  %v5982_v60 = vpop.f32.mrb[145].mxu0  ;;  %v3928_v34 = vpop.f32.mrb[150].mxu1 }
 0x427   :  { %v4640_v11 = vpop.f32.mrb[146].mxu0  ;;  %v3930_v38 = vpop.f32.mrb[151].mxu1  ;;  %v6182_v15 = vadd.f32 %v9265_v39, %v3928_v34 }
 0x428   :  { %v4747_v50 = vmax.f32 %v6177_v44, 0.0  ;;  %v6179_v8 = vadd.f32 %v6178_v0, %v4640_v11  ;;  %v5983_v59 = vpop.f32.mrb[147].mxu0 }
 0x42a   :  { %v5762_v41 = vpack.c.bf16 %v4747_v50, %v4747_v50  ;;  %v4748_v43 = vmax.f32 %v6179_v8, 0.0 }
 0x42c   :  { %5154 = vst.msk [vmem:[%s9403_s3 + $0x120] sm:$0xf] %vm5081_vm1, %v5762_v41  ;;  %v5763_v49 = vpack.c.bf16 %v4748_v43, %v4748_v43  ;;  %v3933_v28 = vpop.f32.mrb[152].mxu1 }
 0x42d   :  { %v4645_v58 = vpop.f32.mrb[148].mxu0  ;;  %v3935_v45 = vpop.f32.mrb[153].mxu1  ;;  %v6184_v53 = vadd.f32 %v9265_v39, %v3933_v28 }
 0x42e   :  { %5155 = vst.msk [vmem:[%s9403_s3 + $0x124] sm:$0xf] %vm5081_vm1, %v5763_v49  ;;  %v6181_v48 = vadd.f32 %v6180_v47, %v4645_v58  ;;  %v5986_v63 = vpop.f32.mrb[149].mxu0  ;;  %v3936_v1 = vpop.f32.mrb[154].mxu1 }
 0x42f   :  { %v4648_v14 = vpop.f32.mrb[150].mxu0  ;;  %v3938_v54 = vpop.f32.mrb[155].mxu1  ;;  %v6186_v24 = vadd.f32 %v9265_v39, %v3936_v1 }
 0x430   :  { %v4749_v51 = vmax.f32 %v6181_v48, 0.0  ;;  %v6183_v55 = vadd.f32 %v6182_v15, %v4648_v14  ;;  %v5987_v19 = vpop.f32.mrb[151].mxu0 }
 0x432   :  { %v5764_v32 = vpack.c.bf16 %v4749_v51, %v4749_v51  ;;  %v4750_v9 = vmax.f32 %v6183_v55, 0.0 }
 0x434   :  { %5156 = vst.msk [vmem:[%s9403_s3 + $0x128] sm:$0xf] %vm5081_vm1, %v5764_v32  ;;  %v5765_v62 = vpack.c.bf16 %v4750_v9, %v4750_v9  ;;  %v3941_v2 = vpop.f32.mrb[156].mxu1 }
 0x435   :  { %v4653_v33 = vpop.f32.mrb[152].mxu0  ;;  %v3943_v13 = vpop.f32.mrb[157].mxu1  ;;  %v6188_v27 = vadd.f32 %v9265_v39, %v3941_v2 }
 0x436   :  { %5157 = vst.msk [vmem:[%s9403_s3 + $0x12c] sm:$0xf] %vm5081_vm1, %v5765_v62  ;;  %v6185_v5 = vadd.f32 %v6184_v53, %v4653_v33  ;;  %v5990_v57 = vpop.f32.mrb[153].mxu0  ;;  %v3944_v18 = vpop.f32.mrb[158].mxu1 }
 0x437   :  { %v4656_v4 = vpop.f32.mrb[154].mxu0  ;;  %v3946_v10 = vpop.f32.mrb[159].mxu1  ;;  %v6190_v21 = vadd.f32 %v9265_v39, %v3944_v18 }
 0x438   :  { %v4751_v22 = vmax.f32 %v6185_v5, 0.0  ;;  %v6187_v36 = vadd.f32 %v6186_v24, %v4656_v4  ;;  %v5991_v29 = vpop.f32.mrb[155].mxu0 }
 0x43a   :  { %v5766_v12 = vpack.c.bf16 %v4751_v22, %v4751_v22  ;;  %v4752_v16 = vmax.f32 %v6187_v36, 0.0 }
 0x43c   :  { %5158 = vst.msk [vmem:[%s9403_s3 + $0x130] sm:$0xf] %vm5081_vm1, %v5766_v12  ;;  %v5767_v17 = vpack.c.bf16 %v4752_v16, %v4752_v16  ;;  %v3949_v61 = vpop.f32.mrb[160].mxu1 }
 0x43d   :  { %v4661_v56 = vpop.f32.mrb[156].mxu0  ;;  %v3951_v20 = vpop.f32.mrb[161].mxu1  ;;  %v6192_v31 = vadd.f32 %v9265_v39, %v3949_v61 }
 0x43e   :  { %5159 = vst.msk [vmem:[%s9403_s3 + $0x134] sm:$0xf] %vm5081_vm1, %v5767_v17  ;;  %v6189_v35 = vadd.f32 %v6188_v27, %v4661_v56  ;;  %v5994_v37 = vpop.f32.mrb[157].mxu0  ;;  %v3952_v40 = vpop.f32.mrb[162].mxu1 }
 0x43f   :  { %v4664_v23 = vpop.f32.mrb[158].mxu0  ;;  %v3953_v7 = vpop.f32.mrb[163].mxu1 }
 0x440   :  { %v4753_v26 = vmax.f32 %v6189_v35, 0.0  ;;  %v6191_v42 = vadd.f32 %v6190_v21, %v4664_v23  ;;  %v5995_v6 = vpop.f32.mrb[159].mxu0 }
 0x442   :  { %v5768_v3 = vpack.c.bf16 %v4753_v26, %v4753_v26  ;;  %v4754_v30 = vmax.f32 %v6191_v42, 0.0 }
 0x444   :  { %5160 = vst.msk [vmem:[%s9403_s3 + $0x138] sm:$0xf] %vm5081_vm1, %v5768_v3  ;;  %v5769_v46 = vpack.c.bf16 %v4754_v30, %v4754_v30 }
 0x445   :  { %v4669_v25 = vpop.f32.mrb[160].mxu0 }
 0x446   :  { %5161 = vst.msk [vmem:[%s9403_s3 + $0x13c] sm:$0xf] %vm5081_vm1, %v5769_v46  ;;  %v6193_v52 = vadd.f32 %v6192_v31, %v4669_v25  ;;  %v5998_v0 = vpop.f32.mrb[161].mxu0 }
 0x447   :  { %v4672_v44 = vpop.f32.mrb[162].mxu0 }
 0x448   :  { %v4755_v60 = vmax.f32 %v6193_v52, 0.0  ;;  %v5999_v34 = vpop.f32.mrb[163].mxu0 }
 0x44a   :  { %v5770_v11 = vpack.c.bf16 %v4755_v60, %v4755_v60 }
 0x44c   :  { %5162 = vst.msk [vmem:[%s9403_s3 + $0x140] sm:$0xf] %vm5081_vm1, %v5770_v11 }

</bundles_post_ra>
